<compile_context>
chip_gen: v7x
topology: tpu7x:2x2x1
jax: 0.10.0
libtpu: 0.0.40
codegen_flags: <defaults>
</compile_context>

<pallas_src>
import jax
import jax.numpy as jnp
from jax.experimental import pallas as pl
from jax.experimental.pallas import tpu as pltpu

NEG_SLOPE = 0.01  # nn.LeakyReLU default
HIDDEN = 128
N_CLASSES = 2
L_IN = 161  # smallest input length producing the 336-wide flatten

CONV_CFG = [
    # (in_channels, out_channels, kernel_size)
    (12, 24, 102),
    (24, 24, 24),
    (24, 24, 11),
    (24, 36, 9),
    (36, 36, 3),
    (36, 36, 3),
    (36, 48, 3),
    (48, 48, 3),
    (48, 48, 3),
    (48, 48, 3),
]


def _leaky_relu(x):
    return jnp.where(x >= 0, x, NEG_SLOPE * x)


def _final_len():
    l = L_IN
    for (_, _, k) in CONV_CFG:
        l = l - k + 1
    return l


# ----------------------------------------------------------------------------
# Fused kernel: one sample (one grid step) runs the whole network in VMEM.
#   x_ref            : (1, L_in, C_in)      channels-last input tile
#   per conv layer   : w (K*C_in, C_out), b (1, C_out)    [im2col-flattened]
#   MLP head         : w1 (336, 128), b1 (1, 128), w2 (128, 2), b2 (1, 2)
#   o_ref            : (1, 1, 2)
# ----------------------------------------------------------------------------
def _make_fused_kernel(conv_cfg, l_in):
    n_conv = len(conv_cfg)

    def kernel(x_ref, *refs):
        # refs = [w0, b0, ..., w9, b9, w_lin1, b_lin1, w_out, b_out, o_ref]
        o_ref = refs[-1]
        w1_ref, b1_ref, w2_ref, b2_ref = refs[2 * n_conv: 2 * n_conv + 4]

        x = x_ref[0]                                  # (L, C_in), channels-last
        l = l_in
        for li, (cin, cout, k) in enumerate(conv_cfg):
            w = refs[2 * li][...]                     # (k*cin, cout)
            b = refs[2 * li + 1][...]                 # (1, cout)
            l_out = l - k + 1
            # im2col: row t = [x[t+0,:], x[t+1,:], ..., x[t+k-1,:]]  (tap-major,
            # channel-minor) -> one deep-contraction MXU matmul per layer.
            patches = jnp.concatenate(
                [x[t:t + l_out, :] for t in range(k)], axis=-1)  # (l_out, k*cin)
            y = jnp.dot(patches, w, preferred_element_type=jnp.float32) + b
            x = _leaky_relu(y)                        # (l_out, cout)
            l = l_out

        # Channels-last flatten (t-major, c-minor).  w1's rows were permuted at
        # init to match torch's (B, C, W).view(B, -1) ordering, so no runtime
        # transpose is needed here.
        feat = jnp.concatenate([x[t:t + 1, :] for t in range(l)], axis=-1)  # (1, 336)
        h = jnp.dot(feat, w1_ref[...], preferred_element_type=jnp.float32) + b1_ref[...]
        # nn.Dropout(p=0.6): identity in eval/inference mode.
        h = _leaky_relu(h)
        out = jnp.dot(h, w2_ref[...], preferred_element_type=jnp.float32) + b2_ref[...]
        o_ref[0] = out.astype(o_ref.dtype)            # (1, 2)

    return kernel


# ----------------------------------------------------------------------------
# Forward pass wrapper (single pallas_call).
# ----------------------------------------------------------------------------
@jax.jit
def cnn_forward(x_ncw, params):
    """x_ncw: (B, 12, 161) float32 in PyTorch NCW layout -> logits (B, 2)."""
    B, c_in, l_in = x_ncw.shape
    # Channels-last (NWC) so channels sit on the TPU lane axis.
    x = jnp.transpose(x_ncw, (0, 2, 1))

    flat_args = [x]
    in_specs = [pl.BlockSpec((1, l_in, c_in), lambda i: (i, 0, 0))]
    for (w, b) in params["convs"]:
        flat_args += [w, b]
        in_specs += [pl.BlockSpec(w.shape, lambda i: (0, 0)),
                     pl.BlockSpec(b.shape, lambda i: (0, 0))]
    for name in ("w1", "b1", "w2", "b2"):
        p = params[name]
        flat_args.append(p)
        in_specs.append(pl.BlockSpec(p.shape, lambda i: (0, 0)))

    out = pl.pallas_call(
        _make_fused_kernel(tuple(CONV_CFG), l_in),
        out_shape=jax.ShapeDtypeStruct((B, 1, N_CLASSES), x.dtype),
        grid_spec=pltpu.PrefetchScalarGridSpec(
            num_scalar_prefetch=0,
            grid=(B,),
            in_specs=in_specs,
            out_specs=pl.BlockSpec((1, 1, N_CLASSES), lambda i: (i, 0, 0)),
        ),
        compiler_params=pltpu.CompilerParams(
            dimension_semantics=("parallel",),   # v7x: batch splits across both TCs
        ),
    )(*flat_args)
    return out.reshape(B, N_CLASSES)


# ----------------------------------------------------------------------------
# Parameter construction (PyTorch-like uniform(-1/sqrt(fan_in), +1/sqrt(fan_in))).
# Conv weights are stored pre-reshaped for the im2col matmul as (K*C_in, C_out)
# with row index k*C_in + c  (== torch (C_out, C_in, K) -> (K, C_in, C_out) flat).
# ----------------------------------------------------------------------------
def init_params(key):
    params = {"convs": []}
    for (cin, cout, k) in CONV_CFG:
        key, kw, kb = jax.random.split(key, 3)
        bound = 1.0 / (cin * k) ** 0.5
        w = jax.random.uniform(kw, (k, cin, cout), jnp.float32, -bound, bound)
        b = jax.random.uniform(kb, (1, cout), jnp.float32, -bound, bound)
        params["convs"].append((w.reshape(k * cin, cout), b))

    l_final = _final_len()                    # 7
    c_final = CONV_CFG[-1][1]                 # 48
    feat = c_final * l_final                  # 336

    key, kw1, kb1, kw2, kb2 = jax.random.split(key, 5)
    bound1 = 1.0 / feat ** 0.5
    w1_torch = jax.random.uniform(kw1, (feat, HIDDEN), jnp.float32, -bound1, bound1)
    # torch flattens (B, C, W) -> row c*W + t; the fused kernel flattens
    # channels-last (B, W, C) -> row t*C + c.  Permute w1's rows once here so
    # no runtime transpose is needed before the linear head.
    params["w1"] = (w1_torch.reshape(c_final, l_final, HIDDEN)
                    .transpose(1, 0, 2).reshape(feat, HIDDEN))
    params["b1"] = jax.random.uniform(kb1, (1, HIDDEN), jnp.float32, -bound1, bound1)
    bound2 = 1.0 / HIDDEN ** 0.5
    params["w2"] = jax.random.uniform(kw2, (HIDDEN, N_CLASSES), jnp.float32, -bound2, bound2)
    params["b2"] = jax.random.uniform(kb2, (1, N_CLASSES), jnp.float32, -bound2, bound2)
    return params


# ----------------------------------------------------------------------------
# Pure-JAX reference (lax.conv in PyTorch NCW layout) for validation.
# ----------------------------------------------------------------------------
def cnn_reference(x_ncw, params):
    x = x_ncw
    for (w, b), (cin, cout, k) in zip(params["convs"], CONV_CFG):
        w_oiw = jnp.transpose(w.reshape(k, cin, cout), (2, 1, 0))   # (C_out, C_in, K)
        y = jax.lax.conv_general_dilated(
            x, w_oiw, window_strides=(1,), padding="VALID",
            dimension_numbers=("NCW", "OIW", "NCW"))
        x = _leaky_relu(y + b[0][None, :, None])
    flat = x.reshape(x.shape[0], -1)                   # torch's x.view(B, -1)
    l_final, c_final = x.shape[2], x.shape[1]
    # recover w1 in torch row order from the permuted copy stored in params
    w1_torch = (params["w1"].reshape(l_final, c_final, HIDDEN)
                .transpose(1, 0, 2).reshape(c_final * l_final, HIDDEN))
    h = _leaky_relu(flat @ w1_torch + params["b1"])
    return h @ params["w2"] + params["b2"]


if __name__ == "__main__":
    key = jax.random.PRNGKey(0)
    key, kx = jax.random.split(key)
    B = 2
    x = jax.random.normal(kx, (B, CONV_CFG[0][0], L_IN), jnp.float32)
    params = init_params(key)

    out = jax.block_until_ready(cnn_forward(x, params))
    assert out.shape == (B, N_CLASSES), out.shape

    ref = jax.block_until_ready(cnn_reference(x, params))
    err = float(jnp.max(jnp.abs(out - ref)))
    scale = 1.0 + float(jnp.max(jnp.abs(ref)))
    assert err <= 5e-2 * scale, f"mismatch vs reference: max abs err {err}"

    print("KERNEL_OK")
</pallas_src>

<mosaic_0001>
module attributes {stable_mosaic.version = 11 : i64} {
  func.func @kernel(%arg0: i32, %arg1: memref<1x161x12xf32, #tpu.memory_space<vmem>>, %arg2: memref<1224x24xf32, #tpu.memory_space<vmem>>, %arg3: memref<1x24xf32, #tpu.memory_space<vmem>>, %arg4: memref<576x24xf32, #tpu.memory_space<vmem>>, %arg5: memref<1x24xf32, #tpu.memory_space<vmem>>, %arg6: memref<264x24xf32, #tpu.memory_space<vmem>>, %arg7: memref<1x24xf32, #tpu.memory_space<vmem>>, %arg8: memref<216x36xf32, #tpu.memory_space<vmem>>, %arg9: memref<1x36xf32, #tpu.memory_space<vmem>>, %arg10: memref<108x36xf32, #tpu.memory_space<vmem>>, %arg11: memref<1x36xf32, #tpu.memory_space<vmem>>, %arg12: memref<108x36xf32, #tpu.memory_space<vmem>>, %arg13: memref<1x36xf32, #tpu.memory_space<vmem>>, %arg14: memref<108x48xf32, #tpu.memory_space<vmem>>, %arg15: memref<1x48xf32, #tpu.memory_space<vmem>>, %arg16: memref<144x48xf32, #tpu.memory_space<vmem>>, %arg17: memref<1x48xf32, #tpu.memory_space<vmem>>, %arg18: memref<144x48xf32, #tpu.memory_space<vmem>>, %arg19: memref<1x48xf32, #tpu.memory_space<vmem>>, %arg20: memref<144x48xf32, #tpu.memory_space<vmem>>, %arg21: memref<1x48xf32, #tpu.memory_space<vmem>>, %arg22: memref<336x128xf32, #tpu.memory_space<vmem>>, %arg23: memref<1x128xf32, #tpu.memory_space<vmem>>, %arg24: memref<128x2xf32, #tpu.memory_space<vmem>>, %arg25: memref<1x2xf32, #tpu.memory_space<vmem>>, %arg26: memref<1x1x2xf32, #tpu.memory_space<vmem>>) attributes {dimension_semantics = [#tpu.dimension_semantics<parallel>], iteration_bounds = array<i64: 2>, scalar_prefetch = 0 : i64, scratch_operands = 0 : i64, tpu.core_type = #tpu.core_type<tc>, window_params = [{transform_indices = @transform_0, window_bounds = array<i64: 1, 161, 12>}, {pipeline_mode = #tpu.pipeline_mode<synchronous>, transform_indices = @transform_1, window_bounds = array<i64: 1224, 24>}, {pipeline_mode = #tpu.pipeline_mode<synchronous>, transform_indices = @transform_2, window_bounds = array<i64: 1, 24>}, {pipeline_mode = #tpu.pipeline_mode<synchronous>, transform_indices = @transform_3, window_bounds = array<i64: 576, 24>}, {pipeline_mode = #tpu.pipeline_mode<synchronous>, transform_indices = @transform_4, window_bounds = array<i64: 1, 24>}, {pipeline_mode = #tpu.pipeline_mode<synchronous>, transform_indices = @transform_5, window_bounds = array<i64: 264, 24>}, {pipeline_mode = #tpu.pipeline_mode<synchronous>, transform_indices = @transform_6, window_bounds = array<i64: 1, 24>}, {pipeline_mode = #tpu.pipeline_mode<synchronous>, transform_indices = @transform_7, window_bounds = array<i64: 216, 36>}, {pipeline_mode = #tpu.pipeline_mode<synchronous>, transform_indices = @transform_8, window_bounds = array<i64: 1, 36>}, {pipeline_mode = #tpu.pipeline_mode<synchronous>, transform_indices = @transform_9, window_bounds = array<i64: 108, 36>}, {pipeline_mode = #tpu.pipeline_mode<synchronous>, transform_indices = @transform_10, window_bounds = array<i64: 1, 36>}, {pipeline_mode = #tpu.pipeline_mode<synchronous>, transform_indices = @transform_11, window_bounds = array<i64: 108, 36>}, {pipeline_mode = #tpu.pipeline_mode<synchronous>, transform_indices = @transform_12, window_bounds = array<i64: 1, 36>}, {pipeline_mode = #tpu.pipeline_mode<synchronous>, transform_indices = @transform_13, window_bounds = array<i64: 108, 48>}, {pipeline_mode = #tpu.pipeline_mode<synchronous>, transform_indices = @transform_14, window_bounds = array<i64: 1, 48>}, {pipeline_mode = #tpu.pipeline_mode<synchronous>, transform_indices = @transform_15, window_bounds = array<i64: 144, 48>}, {pipeline_mode = #tpu.pipeline_mode<synchronous>, transform_indices = @transform_16, window_bounds = array<i64: 1, 48>}, {pipeline_mode = #tpu.pipeline_mode<synchronous>, transform_indices = @transform_17, window_bounds = array<i64: 144, 48>}, {pipeline_mode = #tpu.pipeline_mode<synchronous>, transform_indices = @transform_18, window_bounds = array<i64: 1, 48>}, {pipeline_mode = #tpu.pipeline_mode<synchronous>, transform_indices = @transform_19, window_bounds = array<i64: 144, 48>}, {pipeline_mode = #tpu.pipeline_mode<synchronous>, transform_indices = @transform_20, window_bounds = array<i64: 1, 48>}, {pipeline_mode = #tpu.pipeline_mode<synchronous>, transform_indices = @transform_21, window_bounds = array<i64: 336, 128>}, {pipeline_mode = #tpu.pipeline_mode<synchronous>, transform_indices = @transform_22, window_bounds = array<i64: 1, 128>}, {pipeline_mode = #tpu.pipeline_mode<synchronous>, transform_indices = @transform_23, window_bounds = array<i64: 128, 2>}, {pipeline_mode = #tpu.pipeline_mode<synchronous>, transform_indices = @transform_24, window_bounds = array<i64: 1, 2>}, {transform_indices = @transform_25, window_bounds = array<i64: 1, 1, 2>}]} {
    %c0 = arith.constant 0 : index
    %c0_0 = arith.constant 0 : index
    %c0_1 = arith.constant 0 : index
    %0 = vector.load %arg1[%c0, %c0_0, %c0_1] : memref<1x161x12xf32, #tpu.memory_space<vmem>>, vector<1x161x12xf32>
    %1 = vector.shape_cast %0 : vector<1x161x12xf32> to vector<161x12xf32>
    %c0_2 = arith.constant 0 : index
    %c0_3 = arith.constant 0 : index
    %2 = vector.load %arg2[%c0_2, %c0_3] : memref<1224x24xf32, #tpu.memory_space<vmem>>, vector<1224x24xf32>
    %c0_4 = arith.constant 0 : index
    %c0_5 = arith.constant 0 : index
    %3 = vector.load %arg3[%c0_4, %c0_5] : memref<1x24xf32, #tpu.memory_space<vmem>>, vector<1x24xf32>
    %4 = vector.extract_strided_slice %1 {offsets = [0, 0], sizes = [60, 12], strides = [1, 1]} : vector<161x12xf32> to vector<60x12xf32>
    %5 = vector.extract_strided_slice %1 {offsets = [1, 0], sizes = [60, 12], strides = [1, 1]} : vector<161x12xf32> to vector<60x12xf32>
    %6 = vector.extract_strided_slice %1 {offsets = [2, 0], sizes = [60, 12], strides = [1, 1]} : vector<161x12xf32> to vector<60x12xf32>
    %7 = vector.extract_strided_slice %1 {offsets = [3, 0], sizes = [60, 12], strides = [1, 1]} : vector<161x12xf32> to vector<60x12xf32>
    %8 = vector.extract_strided_slice %1 {offsets = [4, 0], sizes = [60, 12], strides = [1, 1]} : vector<161x12xf32> to vector<60x12xf32>
    %9 = vector.extract_strided_slice %1 {offsets = [5, 0], sizes = [60, 12], strides = [1, 1]} : vector<161x12xf32> to vector<60x12xf32>
    %10 = vector.extract_strided_slice %1 {offsets = [6, 0], sizes = [60, 12], strides = [1, 1]} : vector<161x12xf32> to vector<60x12xf32>
    %11 = vector.extract_strided_slice %1 {offsets = [7, 0], sizes = [60, 12], strides = [1, 1]} : vector<161x12xf32> to vector<60x12xf32>
    %12 = vector.extract_strided_slice %1 {offsets = [8, 0], sizes = [60, 12], strides = [1, 1]} : vector<161x12xf32> to vector<60x12xf32>
    %13 = vector.extract_strided_slice %1 {offsets = [9, 0], sizes = [60, 12], strides = [1, 1]} : vector<161x12xf32> to vector<60x12xf32>
    %14 = vector.extract_strided_slice %1 {offsets = [10, 0], sizes = [60, 12], strides = [1, 1]} : vector<161x12xf32> to vector<60x12xf32>
    %15 = vector.extract_strided_slice %1 {offsets = [11, 0], sizes = [60, 12], strides = [1, 1]} : vector<161x12xf32> to vector<60x12xf32>
    %16 = vector.extract_strided_slice %1 {offsets = [12, 0], sizes = [60, 12], strides = [1, 1]} : vector<161x12xf32> to vector<60x12xf32>
    %17 = vector.extract_strided_slice %1 {offsets = [13, 0], sizes = [60, 12], strides = [1, 1]} : vector<161x12xf32> to vector<60x12xf32>
    %18 = vector.extract_strided_slice %1 {offsets = [14, 0], sizes = [60, 12], strides = [1, 1]} : vector<161x12xf32> to vector<60x12xf32>
    %19 = vector.extract_strided_slice %1 {offsets = [15, 0], sizes = [60, 12], strides = [1, 1]} : vector<161x12xf32> to vector<60x12xf32>
    %20 = vector.extract_strided_slice %1 {offsets = [16, 0], sizes = [60, 12], strides = [1, 1]} : vector<161x12xf32> to vector<60x12xf32>
    %21 = vector.extract_strided_slice %1 {offsets = [17, 0], sizes = [60, 12], strides = [1, 1]} : vector<161x12xf32> to vector<60x12xf32>
    %22 = vector.extract_strided_slice %1 {offsets = [18, 0], sizes = [60, 12], strides = [1, 1]} : vector<161x12xf32> to vector<60x12xf32>
    %23 = vector.extract_strided_slice %1 {offsets = [19, 0], sizes = [60, 12], strides = [1, 1]} : vector<161x12xf32> to vector<60x12xf32>
    %24 = vector.extract_strided_slice %1 {offsets = [20, 0], sizes = [60, 12], strides = [1, 1]} : vector<161x12xf32> to vector<60x12xf32>
    %25 = vector.extract_strided_slice %1 {offsets = [21, 0], sizes = [60, 12], strides = [1, 1]} : vector<161x12xf32> to vector<60x12xf32>
    %26 = vector.extract_strided_slice %1 {offsets = [22, 0], sizes = [60, 12], strides = [1, 1]} : vector<161x12xf32> to vector<60x12xf32>
    %27 = vector.extract_strided_slice %1 {offsets = [23, 0], sizes = [60, 12], strides = [1, 1]} : vector<161x12xf32> to vector<60x12xf32>
    %28 = vector.extract_strided_slice %1 {offsets = [24, 0], sizes = [60, 12], strides = [1, 1]} : vector<161x12xf32> to vector<60x12xf32>
    %29 = vector.extract_strided_slice %1 {offsets = [25, 0], sizes = [60, 12], strides = [1, 1]} : vector<161x12xf32> to vector<60x12xf32>
    %30 = vector.extract_strided_slice %1 {offsets = [26, 0], sizes = [60, 12], strides = [1, 1]} : vector<161x12xf32> to vector<60x12xf32>
    %31 = vector.extract_strided_slice %1 {offsets = [27, 0], sizes = [60, 12], strides = [1, 1]} : vector<161x12xf32> to vector<60x12xf32>
    %32 = vector.extract_strided_slice %1 {offsets = [28, 0], sizes = [60, 12], strides = [1, 1]} : vector<161x12xf32> to vector<60x12xf32>
    %33 = vector.extract_strided_slice %1 {offsets = [29, 0], sizes = [60, 12], strides = [1, 1]} : vector<161x12xf32> to vector<60x12xf32>
    %34 = vector.extract_strided_slice %1 {offsets = [30, 0], sizes = [60, 12], strides = [1, 1]} : vector<161x12xf32> to vector<60x12xf32>
    %35 = vector.extract_strided_slice %1 {offsets = [31, 0], sizes = [60, 12], strides = [1, 1]} : vector<161x12xf32> to vector<60x12xf32>
    %36 = vector.extract_strided_slice %1 {offsets = [32, 0], sizes = [60, 12], strides = [1, 1]} : vector<161x12xf32> to vector<60x12xf32>
    %37 = vector.extract_strided_slice %1 {offsets = [33, 0], sizes = [60, 12], strides = [1, 1]} : vector<161x12xf32> to vector<60x12xf32>
    %38 = vector.extract_strided_slice %1 {offsets = [34, 0], sizes = [60, 12], strides = [1, 1]} : vector<161x12xf32> to vector<60x12xf32>
    %39 = vector.extract_strided_slice %1 {offsets = [35, 0], sizes = [60, 12], strides = [1, 1]} : vector<161x12xf32> to vector<60x12xf32>
    %40 = vector.extract_strided_slice %1 {offsets = [36, 0], sizes = [60, 12], strides = [1, 1]} : vector<161x12xf32> to vector<60x12xf32>
    %41 = vector.extract_strided_slice %1 {offsets = [37, 0], sizes = [60, 12], strides = [1, 1]} : vector<161x12xf32> to vector<60x12xf32>
    %42 = vector.extract_strided_slice %1 {offsets = [38, 0], sizes = [60, 12], strides = [1, 1]} : vector<161x12xf32> to vector<60x12xf32>
    %43 = vector.extract_strided_slice %1 {offsets = [39, 0], sizes = [60, 12], strides = [1, 1]} : vector<161x12xf32> to vector<60x12xf32>
    %44 = vector.extract_strided_slice %1 {offsets = [40, 0], sizes = [60, 12], strides = [1, 1]} : vector<161x12xf32> to vector<60x12xf32>
    %45 = vector.extract_strided_slice %1 {offsets = [41, 0], sizes = [60, 12], strides = [1, 1]} : vector<161x12xf32> to vector<60x12xf32>
    %46 = vector.extract_strided_slice %1 {offsets = [42, 0], sizes = [60, 12], strides = [1, 1]} : vector<161x12xf32> to vector<60x12xf32>
    %47 = vector.extract_strided_slice %1 {offsets = [43, 0], sizes = [60, 12], strides = [1, 1]} : vector<161x12xf32> to vector<60x12xf32>
    %48 = vector.extract_strided_slice %1 {offsets = [44, 0], sizes = [60, 12], strides = [1, 1]} : vector<161x12xf32> to vector<60x12xf32>
    %49 = vector.extract_strided_slice %1 {offsets = [45, 0], sizes = [60, 12], strides = [1, 1]} : vector<161x12xf32> to vector<60x12xf32>
    %50 = vector.extract_strided_slice %1 {offsets = [46, 0], sizes = [60, 12], strides = [1, 1]} : vector<161x12xf32> to vector<60x12xf32>
    %51 = vector.extract_strided_slice %1 {offsets = [47, 0], sizes = [60, 12], strides = [1, 1]} : vector<161x12xf32> to vector<60x12xf32>
    %52 = vector.extract_strided_slice %1 {offsets = [48, 0], sizes = [60, 12], strides = [1, 1]} : vector<161x12xf32> to vector<60x12xf32>
    %53 = vector.extract_strided_slice %1 {offsets = [49, 0], sizes = [60, 12], strides = [1, 1]} : vector<161x12xf32> to vector<60x12xf32>
    %54 = vector.extract_strided_slice %1 {offsets = [50, 0], sizes = [60, 12], strides = [1, 1]} : vector<161x12xf32> to vector<60x12xf32>
    %55 = vector.extract_strided_slice %1 {offsets = [51, 0], sizes = [60, 12], strides = [1, 1]} : vector<161x12xf32> to vector<60x12xf32>
    %56 = vector.extract_strided_slice %1 {offsets = [52, 0], sizes = [60, 12], strides = [1, 1]} : vector<161x12xf32> to vector<60x12xf32>
    %57 = vector.extract_strided_slice %1 {offsets = [53, 0], sizes = [60, 12], strides = [1, 1]} : vector<161x12xf32> to vector<60x12xf32>
    %58 = vector.extract_strided_slice %1 {offsets = [54, 0], sizes = [60, 12], strides = [1, 1]} : vector<161x12xf32> to vector<60x12xf32>
    %59 = vector.extract_strided_slice %1 {offsets = [55, 0], sizes = [60, 12], strides = [1, 1]} : vector<161x12xf32> to vector<60x12xf32>
    %60 = vector.extract_strided_slice %1 {offsets = [56, 0], sizes = [60, 12], strides = [1, 1]} : vector<161x12xf32> to vector<60x12xf32>
    %61 = vector.extract_strided_slice %1 {offsets = [57, 0], sizes = [60, 12], strides = [1, 1]} : vector<161x12xf32> to vector<60x12xf32>
    %62 = vector.extract_strided_slice %1 {offsets = [58, 0], sizes = [60, 12], strides = [1, 1]} : vector<161x12xf32> to vector<60x12xf32>
    %63 = vector.extract_strided_slice %1 {offsets = [59, 0], sizes = [60, 12], strides = [1, 1]} : vector<161x12xf32> to vector<60x12xf32>
    %64 = vector.extract_strided_slice %1 {offsets = [60, 0], sizes = [60, 12], strides = [1, 1]} : vector<161x12xf32> to vector<60x12xf32>
    %65 = vector.extract_strided_slice %1 {offsets = [61, 0], sizes = [60, 12], strides = [1, 1]} : vector<161x12xf32> to vector<60x12xf32>
    %66 = vector.extract_strided_slice %1 {offsets = [62, 0], sizes = [60, 12], strides = [1, 1]} : vector<161x12xf32> to vector<60x12xf32>
    %67 = vector.extract_strided_slice %1 {offsets = [63, 0], sizes = [60, 12], strides = [1, 1]} : vector<161x12xf32> to vector<60x12xf32>
    %68 = vector.extract_strided_slice %1 {offsets = [64, 0], sizes = [60, 12], strides = [1, 1]} : vector<161x12xf32> to vector<60x12xf32>
    %69 = vector.extract_strided_slice %1 {offsets = [65, 0], sizes = [60, 12], strides = [1, 1]} : vector<161x12xf32> to vector<60x12xf32>
    %70 = vector.extract_strided_slice %1 {offsets = [66, 0], sizes = [60, 12], strides = [1, 1]} : vector<161x12xf32> to vector<60x12xf32>
    %71 = vector.extract_strided_slice %1 {offsets = [67, 0], sizes = [60, 12], strides = [1, 1]} : vector<161x12xf32> to vector<60x12xf32>
    %72 = vector.extract_strided_slice %1 {offsets = [68, 0], sizes = [60, 12], strides = [1, 1]} : vector<161x12xf32> to vector<60x12xf32>
    %73 = vector.extract_strided_slice %1 {offsets = [69, 0], sizes = [60, 12], strides = [1, 1]} : vector<161x12xf32> to vector<60x12xf32>
    %74 = vector.extract_strided_slice %1 {offsets = [70, 0], sizes = [60, 12], strides = [1, 1]} : vector<161x12xf32> to vector<60x12xf32>
    %75 = vector.extract_strided_slice %1 {offsets = [71, 0], sizes = [60, 12], strides = [1, 1]} : vector<161x12xf32> to vector<60x12xf32>
    %76 = vector.extract_strided_slice %1 {offsets = [72, 0], sizes = [60, 12], strides = [1, 1]} : vector<161x12xf32> to vector<60x12xf32>
    %77 = vector.extract_strided_slice %1 {offsets = [73, 0], sizes = [60, 12], strides = [1, 1]} : vector<161x12xf32> to vector<60x12xf32>
    %78 = vector.extract_strided_slice %1 {offsets = [74, 0], sizes = [60, 12], strides = [1, 1]} : vector<161x12xf32> to vector<60x12xf32>
    %79 = vector.extract_strided_slice %1 {offsets = [75, 0], sizes = [60, 12], strides = [1, 1]} : vector<161x12xf32> to vector<60x12xf32>
    %80 = vector.extract_strided_slice %1 {offsets = [76, 0], sizes = [60, 12], strides = [1, 1]} : vector<161x12xf32> to vector<60x12xf32>
    %81 = vector.extract_strided_slice %1 {offsets = [77, 0], sizes = [60, 12], strides = [1, 1]} : vector<161x12xf32> to vector<60x12xf32>
    %82 = vector.extract_strided_slice %1 {offsets = [78, 0], sizes = [60, 12], strides = [1, 1]} : vector<161x12xf32> to vector<60x12xf32>
    %83 = vector.extract_strided_slice %1 {offsets = [79, 0], sizes = [60, 12], strides = [1, 1]} : vector<161x12xf32> to vector<60x12xf32>
    %84 = vector.extract_strided_slice %1 {offsets = [80, 0], sizes = [60, 12], strides = [1, 1]} : vector<161x12xf32> to vector<60x12xf32>
    %85 = vector.extract_strided_slice %1 {offsets = [81, 0], sizes = [60, 12], strides = [1, 1]} : vector<161x12xf32> to vector<60x12xf32>
    %86 = vector.extract_strided_slice %1 {offsets = [82, 0], sizes = [60, 12], strides = [1, 1]} : vector<161x12xf32> to vector<60x12xf32>
    %87 = vector.extract_strided_slice %1 {offsets = [83, 0], sizes = [60, 12], strides = [1, 1]} : vector<161x12xf32> to vector<60x12xf32>
    %88 = vector.extract_strided_slice %1 {offsets = [84, 0], sizes = [60, 12], strides = [1, 1]} : vector<161x12xf32> to vector<60x12xf32>
    %89 = vector.extract_strided_slice %1 {offsets = [85, 0], sizes = [60, 12], strides = [1, 1]} : vector<161x12xf32> to vector<60x12xf32>
    %90 = vector.extract_strided_slice %1 {offsets = [86, 0], sizes = [60, 12], strides = [1, 1]} : vector<161x12xf32> to vector<60x12xf32>
    %91 = vector.extract_strided_slice %1 {offsets = [87, 0], sizes = [60, 12], strides = [1, 1]} : vector<161x12xf32> to vector<60x12xf32>
    %92 = vector.extract_strided_slice %1 {offsets = [88, 0], sizes = [60, 12], strides = [1, 1]} : vector<161x12xf32> to vector<60x12xf32>
    %93 = vector.extract_strided_slice %1 {offsets = [89, 0], sizes = [60, 12], strides = [1, 1]} : vector<161x12xf32> to vector<60x12xf32>
    %94 = vector.extract_strided_slice %1 {offsets = [90, 0], sizes = [60, 12], strides = [1, 1]} : vector<161x12xf32> to vector<60x12xf32>
    %95 = vector.extract_strided_slice %1 {offsets = [91, 0], sizes = [60, 12], strides = [1, 1]} : vector<161x12xf32> to vector<60x12xf32>
    %96 = vector.extract_strided_slice %1 {offsets = [92, 0], sizes = [60, 12], strides = [1, 1]} : vector<161x12xf32> to vector<60x12xf32>
    %97 = vector.extract_strided_slice %1 {offsets = [93, 0], sizes = [60, 12], strides = [1, 1]} : vector<161x12xf32> to vector<60x12xf32>
    %98 = vector.extract_strided_slice %1 {offsets = [94, 0], sizes = [60, 12], strides = [1, 1]} : vector<161x12xf32> to vector<60x12xf32>
    %99 = vector.extract_strided_slice %1 {offsets = [95, 0], sizes = [60, 12], strides = [1, 1]} : vector<161x12xf32> to vector<60x12xf32>
    %100 = vector.extract_strided_slice %1 {offsets = [96, 0], sizes = [60, 12], strides = [1, 1]} : vector<161x12xf32> to vector<60x12xf32>
    %101 = vector.extract_strided_slice %1 {offsets = [97, 0], sizes = [60, 12], strides = [1, 1]} : vector<161x12xf32> to vector<60x12xf32>
    %102 = vector.extract_strided_slice %1 {offsets = [98, 0], sizes = [60, 12], strides = [1, 1]} : vector<161x12xf32> to vector<60x12xf32>
    %103 = vector.extract_strided_slice %1 {offsets = [99, 0], sizes = [60, 12], strides = [1, 1]} : vector<161x12xf32> to vector<60x12xf32>
    %104 = vector.extract_strided_slice %1 {offsets = [100, 0], sizes = [60, 12], strides = [1, 1]} : vector<161x12xf32> to vector<60x12xf32>
    %105 = vector.extract_strided_slice %1 {offsets = [101, 0], sizes = [60, 12], strides = [1, 1]} : vector<161x12xf32> to vector<60x12xf32>
    %106 = tpu.concatenate %4, %5, %6, %7, %8, %9, %10, %11, %12, %13, %14, %15, %16, %17, %18, %19 in 1 : vector<60x12xf32>, vector<60x12xf32>, vector<60x12xf32>, vector<60x12xf32>, vector<60x12xf32>, vector<60x12xf32>, vector<60x12xf32>, vector<60x12xf32>, vector<60x12xf32>, vector<60x12xf32>, vector<60x12xf32>, vector<60x12xf32>, vector<60x12xf32>, vector<60x12xf32>, vector<60x12xf32>, vector<60x12xf32> -> vector<60x192xf32>
    %107 = tpu.concatenate %20, %21, %22, %23, %24, %25, %26, %27, %28, %29, %30, %31, %32, %33, %34, %35 in 1 : vector<60x12xf32>, vector<60x12xf32>, vector<60x12xf32>, vector<60x12xf32>, vector<60x12xf32>, vector<60x12xf32>, vector<60x12xf32>, vector<60x12xf32>, vector<60x12xf32>, vector<60x12xf32>, vector<60x12xf32>, vector<60x12xf32>, vector<60x12xf32>, vector<60x12xf32>, vector<60x12xf32>, vector<60x12xf32> -> vector<60x192xf32>
    %108 = tpu.concatenate %36, %37, %38, %39, %40, %41, %42, %43, %44, %45, %46, %47, %48, %49, %50, %51 in 1 : vector<60x12xf32>, vector<60x12xf32>, vector<60x12xf32>, vector<60x12xf32>, vector<60x12xf32>, vector<60x12xf32>, vector<60x12xf32>, vector<60x12xf32>, vector<60x12xf32>, vector<60x12xf32>, vector<60x12xf32>, vector<60x12xf32>, vector<60x12xf32>, vector<60x12xf32>, vector<60x12xf32>, vector<60x12xf32> -> vector<60x192xf32>
    %109 = tpu.concatenate %52, %53, %54, %55, %56, %57, %58, %59, %60, %61, %62, %63, %64, %65, %66, %67 in 1 : vector<60x12xf32>, vector<60x12xf32>, vector<60x12xf32>, vector<60x12xf32>, vector<60x12xf32>, vector<60x12xf32>, vector<60x12xf32>, vector<60x12xf32>, vector<60x12xf32>, vector<60x12xf32>, vector<60x12xf32>, vector<60x12xf32>, vector<60x12xf32>, vector<60x12xf32>, vector<60x12xf32>, vector<60x12xf32> -> vector<60x192xf32>
    %110 = tpu.concatenate %68, %69, %70, %71, %72, %73, %74, %75, %76, %77, %78, %79, %80, %81, %82, %83 in 1 : vector<60x12xf32>, vector<60x12xf32>, vector<60x12xf32>, vector<60x12xf32>, vector<60x12xf32>, vector<60x12xf32>, vector<60x12xf32>, vector<60x12xf32>, vector<60x12xf32>, vector<60x12xf32>, vector<60x12xf32>, vector<60x12xf32>, vector<60x12xf32>, vector<60x12xf32>, vector<60x12xf32>, vector<60x12xf32> -> vector<60x192xf32>
    %111 = tpu.concatenate %84, %85, %86, %87, %88, %89, %90, %91, %92, %93, %94, %95, %96, %97, %98, %99 in 1 : vector<60x12xf32>, vector<60x12xf32>, vector<60x12xf32>, vector<60x12xf32>, vector<60x12xf32>, vector<60x12xf32>, vector<60x12xf32>, vector<60x12xf32>, vector<60x12xf32>, vector<60x12xf32>, vector<60x12xf32>, vector<60x12xf32>, vector<60x12xf32>, vector<60x12xf32>, vector<60x12xf32>, vector<60x12xf32> -> vector<60x192xf32>
    %112 = tpu.concatenate %100, %101, %102, %103, %104, %105 in 1 : vector<60x12xf32>, vector<60x12xf32>, vector<60x12xf32>, vector<60x12xf32>, vector<60x12xf32>, vector<60x12xf32> -> vector<60x72xf32>
    %113 = tpu.concatenate %106, %107, %108, %109, %110, %111, %112 in 1 : vector<60x192xf32>, vector<60x192xf32>, vector<60x192xf32>, vector<60x192xf32>, vector<60x192xf32>, vector<60x192xf32>, vector<60x72xf32> -> vector<60x1224xf32>
    %cst = arith.constant dense<0.000000e+00> : vector<60x24xf32>
    %114 = tpu.matmul %113, %2, %cst {dimension_numbers = #tpu.dot_dimension_numbers<[1], [0], [0], [1], [0, 0, 1, 1], [], []>} : vector<60x1224xf32>, vector<1224x24xf32>, vector<60x24xf32> -> vector<60x24xf32>
    %115 = vector.broadcast %3 : vector<1x24xf32> to vector<60x24xf32>
    %116 = arith.addf %114, %115 : vector<60x24xf32>
    %cst_6 = arith.constant 0.000000e+00 : f32
    %117 = vector.broadcast %cst_6 : f32 to vector<60x24xf32>
    %118 = arith.cmpf oge, %116, %117 : vector<60x24xf32>
    %cst_7 = arith.constant 0.00999999977 : f32
    %119 = vector.broadcast %cst_7 : f32 to vector<60x24xf32>
    %120 = arith.mulf %119, %116 : vector<60x24xf32>
    %121 = arith.select %118, %116, %120 : vector<60x24xi1>, vector<60x24xf32>
    %c0_8 = arith.constant 0 : index
    %c0_9 = arith.constant 0 : index
    %122 = vector.load %arg4[%c0_8, %c0_9] : memref<576x24xf32, #tpu.memory_space<vmem>>, vector<576x24xf32>
    %c0_10 = arith.constant 0 : index
    %c0_11 = arith.constant 0 : index
    %123 = vector.load %arg5[%c0_10, %c0_11] : memref<1x24xf32, #tpu.memory_space<vmem>>, vector<1x24xf32>
    %124 = vector.extract_strided_slice %121 {offsets = [0, 0], sizes = [37, 24], strides = [1, 1]} : vector<60x24xf32> to vector<37x24xf32>
    %125 = vector.extract_strided_slice %121 {offsets = [1, 0], sizes = [37, 24], strides = [1, 1]} : vector<60x24xf32> to vector<37x24xf32>
    %126 = vector.extract_strided_slice %121 {offsets = [2, 0], sizes = [37, 24], strides = [1, 1]} : vector<60x24xf32> to vector<37x24xf32>
    %127 = vector.extract_strided_slice %121 {offsets = [3, 0], sizes = [37, 24], strides = [1, 1]} : vector<60x24xf32> to vector<37x24xf32>
    %128 = vector.extract_strided_slice %121 {offsets = [4, 0], sizes = [37, 24], strides = [1, 1]} : vector<60x24xf32> to vector<37x24xf32>
    %129 = vector.extract_strided_slice %121 {offsets = [5, 0], sizes = [37, 24], strides = [1, 1]} : vector<60x24xf32> to vector<37x24xf32>
    %130 = vector.extract_strided_slice %121 {offsets = [6, 0], sizes = [37, 24], strides = [1, 1]} : vector<60x24xf32> to vector<37x24xf32>
    %131 = vector.extract_strided_slice %121 {offsets = [7, 0], sizes = [37, 24], strides = [1, 1]} : vector<60x24xf32> to vector<37x24xf32>
    %132 = vector.extract_strided_slice %121 {offsets = [8, 0], sizes = [37, 24], strides = [1, 1]} : vector<60x24xf32> to vector<37x24xf32>
    %133 = vector.extract_strided_slice %121 {offsets = [9, 0], sizes = [37, 24], strides = [1, 1]} : vector<60x24xf32> to vector<37x24xf32>
    %134 = vector.extract_strided_slice %121 {offsets = [10, 0], sizes = [37, 24], strides = [1, 1]} : vector<60x24xf32> to vector<37x24xf32>
    %135 = vector.extract_strided_slice %121 {offsets = [11, 0], sizes = [37, 24], strides = [1, 1]} : vector<60x24xf32> to vector<37x24xf32>
    %136 = vector.extract_strided_slice %121 {offsets = [12, 0], sizes = [37, 24], strides = [1, 1]} : vector<60x24xf32> to vector<37x24xf32>
    %137 = vector.extract_strided_slice %121 {offsets = [13, 0], sizes = [37, 24], strides = [1, 1]} : vector<60x24xf32> to vector<37x24xf32>
    %138 = vector.extract_strided_slice %121 {offsets = [14, 0], sizes = [37, 24], strides = [1, 1]} : vector<60x24xf32> to vector<37x24xf32>
    %139 = vector.extract_strided_slice %121 {offsets = [15, 0], sizes = [37, 24], strides = [1, 1]} : vector<60x24xf32> to vector<37x24xf32>
    %140 = vector.extract_strided_slice %121 {offsets = [16, 0], sizes = [37, 24], strides = [1, 1]} : vector<60x24xf32> to vector<37x24xf32>
    %141 = vector.extract_strided_slice %121 {offsets = [17, 0], sizes = [37, 24], strides = [1, 1]} : vector<60x24xf32> to vector<37x24xf32>
    %142 = vector.extract_strided_slice %121 {offsets = [18, 0], sizes = [37, 24], strides = [1, 1]} : vector<60x24xf32> to vector<37x24xf32>
    %143 = vector.extract_strided_slice %121 {offsets = [19, 0], sizes = [37, 24], strides = [1, 1]} : vector<60x24xf32> to vector<37x24xf32>
    %144 = vector.extract_strided_slice %121 {offsets = [20, 0], sizes = [37, 24], strides = [1, 1]} : vector<60x24xf32> to vector<37x24xf32>
    %145 = vector.extract_strided_slice %121 {offsets = [21, 0], sizes = [37, 24], strides = [1, 1]} : vector<60x24xf32> to vector<37x24xf32>
    %146 = vector.extract_strided_slice %121 {offsets = [22, 0], sizes = [37, 24], strides = [1, 1]} : vector<60x24xf32> to vector<37x24xf32>
    %147 = vector.extract_strided_slice %121 {offsets = [23, 0], sizes = [37, 24], strides = [1, 1]} : vector<60x24xf32> to vector<37x24xf32>
    %148 = tpu.concatenate %124, %125, %126, %127, %128, %129, %130, %131, %132, %133, %134, %135, %136, %137, %138, %139 in 1 : vector<37x24xf32>, vector<37x24xf32>, vector<37x24xf32>, vector<37x24xf32>, vector<37x24xf32>, vector<37x24xf32>, vector<37x24xf32>, vector<37x24xf32>, vector<37x24xf32>, vector<37x24xf32>, vector<37x24xf32>, vector<37x24xf32>, vector<37x24xf32>, vector<37x24xf32>, vector<37x24xf32>, vector<37x24xf32> -> vector<37x384xf32>
    %149 = tpu.concatenate %140, %141, %142, %143, %144, %145, %146, %147 in 1 : vector<37x24xf32>, vector<37x24xf32>, vector<37x24xf32>, vector<37x24xf32>, vector<37x24xf32>, vector<37x24xf32>, vector<37x24xf32>, vector<37x24xf32> -> vector<37x192xf32>
    %150 = tpu.concatenate %148, %149 in 1 : vector<37x384xf32>, vector<37x192xf32> -> vector<37x576xf32>
    %cst_12 = arith.constant dense<0.000000e+00> : vector<37x24xf32>
    %151 = tpu.matmul %150, %122, %cst_12 {dimension_numbers = #tpu.dot_dimension_numbers<[1], [0], [0], [1], [0, 0, 1, 1], [], []>} : vector<37x576xf32>, vector<576x24xf32>, vector<37x24xf32> -> vector<37x24xf32>
    %152 = vector.broadcast %123 : vector<1x24xf32> to vector<37x24xf32>
    %153 = arith.addf %151, %152 : vector<37x24xf32>
    %cst_13 = arith.constant 0.000000e+00 : f32
    %154 = vector.broadcast %cst_13 : f32 to vector<37x24xf32>
    %155 = arith.cmpf oge, %153, %154 : vector<37x24xf32>
    %cst_14 = arith.constant 0.00999999977 : f32
    %156 = vector.broadcast %cst_14 : f32 to vector<37x24xf32>
    %157 = arith.mulf %156, %153 : vector<37x24xf32>
    %158 = arith.select %155, %153, %157 : vector<37x24xi1>, vector<37x24xf32>
    %c0_15 = arith.constant 0 : index
    %c0_16 = arith.constant 0 : index
    %159 = vector.load %arg6[%c0_15, %c0_16] : memref<264x24xf32, #tpu.memory_space<vmem>>, vector<264x24xf32>
    %c0_17 = arith.constant 0 : index
    %c0_18 = arith.constant 0 : index
    %160 = vector.load %arg7[%c0_17, %c0_18] : memref<1x24xf32, #tpu.memory_space<vmem>>, vector<1x24xf32>
    %161 = vector.extract_strided_slice %158 {offsets = [0, 0], sizes = [27, 24], strides = [1, 1]} : vector<37x24xf32> to vector<27x24xf32>
    %162 = vector.extract_strided_slice %158 {offsets = [1, 0], sizes = [27, 24], strides = [1, 1]} : vector<37x24xf32> to vector<27x24xf32>
    %163 = vector.extract_strided_slice %158 {offsets = [2, 0], sizes = [27, 24], strides = [1, 1]} : vector<37x24xf32> to vector<27x24xf32>
    %164 = vector.extract_strided_slice %158 {offsets = [3, 0], sizes = [27, 24], strides = [1, 1]} : vector<37x24xf32> to vector<27x24xf32>
    %165 = vector.extract_strided_slice %158 {offsets = [4, 0], sizes = [27, 24], strides = [1, 1]} : vector<37x24xf32> to vector<27x24xf32>
    %166 = vector.extract_strided_slice %158 {offsets = [5, 0], sizes = [27, 24], strides = [1, 1]} : vector<37x24xf32> to vector<27x24xf32>
    %167 = vector.extract_strided_slice %158 {offsets = [6, 0], sizes = [27, 24], strides = [1, 1]} : vector<37x24xf32> to vector<27x24xf32>
    %168 = vector.extract_strided_slice %158 {offsets = [7, 0], sizes = [27, 24], strides = [1, 1]} : vector<37x24xf32> to vector<27x24xf32>
    %169 = vector.extract_strided_slice %158 {offsets = [8, 0], sizes = [27, 24], strides = [1, 1]} : vector<37x24xf32> to vector<27x24xf32>
    %170 = vector.extract_strided_slice %158 {offsets = [9, 0], sizes = [27, 24], strides = [1, 1]} : vector<37x24xf32> to vector<27x24xf32>
    %171 = vector.extract_strided_slice %158 {offsets = [10, 0], sizes = [27, 24], strides = [1, 1]} : vector<37x24xf32> to vector<27x24xf32>
    %172 = tpu.concatenate %161, %162, %163, %164, %165, %166, %167, %168, %169, %170, %171 in 1 : vector<27x24xf32>, vector<27x24xf32>, vector<27x24xf32>, vector<27x24xf32>, vector<27x24xf32>, vector<27x24xf32>, vector<27x24xf32>, vector<27x24xf32>, vector<27x24xf32>, vector<27x24xf32>, vector<27x24xf32> -> vector<27x264xf32>
    %cst_19 = arith.constant dense<0.000000e+00> : vector<27x24xf32>
    %173 = tpu.matmul %172, %159, %cst_19 {dimension_numbers = #tpu.dot_dimension_numbers<[1], [0], [0], [1], [0, 0, 1, 1], [], []>} : vector<27x264xf32>, vector<264x24xf32>, vector<27x24xf32> -> vector<27x24xf32>
    %174 = vector.broadcast %160 : vector<1x24xf32> to vector<27x24xf32>
    %175 = arith.addf %173, %174 : vector<27x24xf32>
    %cst_20 = arith.constant 0.000000e+00 : f32
    %176 = vector.broadcast %cst_20 : f32 to vector<27x24xf32>
    %177 = arith.cmpf oge, %175, %176 : vector<27x24xf32>
    %cst_21 = arith.constant 0.00999999977 : f32
    %178 = vector.broadcast %cst_21 : f32 to vector<27x24xf32>
    %179 = arith.mulf %178, %175 : vector<27x24xf32>
    %180 = arith.select %177, %175, %179 : vector<27x24xi1>, vector<27x24xf32>
    %c0_22 = arith.constant 0 : index
    %c0_23 = arith.constant 0 : index
    %181 = vector.load %arg8[%c0_22, %c0_23] : memref<216x36xf32, #tpu.memory_space<vmem>>, vector<216x36xf32>
    %c0_24 = arith.constant 0 : index
    %c0_25 = arith.constant 0 : index
    %182 = vector.load %arg9[%c0_24, %c0_25] : memref<1x36xf32, #tpu.memory_space<vmem>>, vector<1x36xf32>
    %183 = vector.extract_strided_slice %180 {offsets = [0, 0], sizes = [19, 24], strides = [1, 1]} : vector<27x24xf32> to vector<19x24xf32>
    %184 = vector.extract_strided_slice %180 {offsets = [1, 0], sizes = [19, 24], strides = [1, 1]} : vector<27x24xf32> to vector<19x24xf32>
    %185 = vector.extract_strided_slice %180 {offsets = [2, 0], sizes = [19, 24], strides = [1, 1]} : vector<27x24xf32> to vector<19x24xf32>
    %186 = vector.extract_strided_slice %180 {offsets = [3, 0], sizes = [19, 24], strides = [1, 1]} : vector<27x24xf32> to vector<19x24xf32>
    %187 = vector.extract_strided_slice %180 {offsets = [4, 0], sizes = [19, 24], strides = [1, 1]} : vector<27x24xf32> to vector<19x24xf32>
    %188 = vector.extract_strided_slice %180 {offsets = [5, 0], sizes = [19, 24], strides = [1, 1]} : vector<27x24xf32> to vector<19x24xf32>
    %189 = vector.extract_strided_slice %180 {offsets = [6, 0], sizes = [19, 24], strides = [1, 1]} : vector<27x24xf32> to vector<19x24xf32>
    %190 = vector.extract_strided_slice %180 {offsets = [7, 0], sizes = [19, 24], strides = [1, 1]} : vector<27x24xf32> to vector<19x24xf32>
    %191 = vector.extract_strided_slice %180 {offsets = [8, 0], sizes = [19, 24], strides = [1, 1]} : vector<27x24xf32> to vector<19x24xf32>
    %192 = tpu.concatenate %183, %184, %185, %186, %187, %188, %189, %190, %191 in 1 : vector<19x24xf32>, vector<19x24xf32>, vector<19x24xf32>, vector<19x24xf32>, vector<19x24xf32>, vector<19x24xf32>, vector<19x24xf32>, vector<19x24xf32>, vector<19x24xf32> -> vector<19x216xf32>
    %cst_26 = arith.constant dense<0.000000e+00> : vector<19x36xf32>
    %193 = tpu.matmul %192, %181, %cst_26 {dimension_numbers = #tpu.dot_dimension_numbers<[1], [0], [0], [1], [0, 0, 1, 1], [], []>} : vector<19x216xf32>, vector<216x36xf32>, vector<19x36xf32> -> vector<19x36xf32>
    %194 = vector.broadcast %182 : vector<1x36xf32> to vector<19x36xf32>
    %195 = arith.addf %193, %194 : vector<19x36xf32>
    %cst_27 = arith.constant 0.000000e+00 : f32
    %196 = vector.broadcast %cst_27 : f32 to vector<19x36xf32>
    %197 = arith.cmpf oge, %195, %196 : vector<19x36xf32>
    %cst_28 = arith.constant 0.00999999977 : f32
    %198 = vector.broadcast %cst_28 : f32 to vector<19x36xf32>
    %199 = arith.mulf %198, %195 : vector<19x36xf32>
    %200 = arith.select %197, %195, %199 : vector<19x36xi1>, vector<19x36xf32>
    %c0_29 = arith.constant 0 : index
    %c0_30 = arith.constant 0 : index
    %201 = vector.load %arg10[%c0_29, %c0_30] : memref<108x36xf32, #tpu.memory_space<vmem>>, vector<108x36xf32>
    %c0_31 = arith.constant 0 : index
    %c0_32 = arith.constant 0 : index
    %202 = vector.load %arg11[%c0_31, %c0_32] : memref<1x36xf32, #tpu.memory_space<vmem>>, vector<1x36xf32>
    %203 = vector.extract_strided_slice %200 {offsets = [0, 0], sizes = [17, 36], strides = [1, 1]} : vector<19x36xf32> to vector<17x36xf32>
    %204 = vector.extract_strided_slice %200 {offsets = [1, 0], sizes = [17, 36], strides = [1, 1]} : vector<19x36xf32> to vector<17x36xf32>
    %205 = vector.extract_strided_slice %200 {offsets = [2, 0], sizes = [17, 36], strides = [1, 1]} : vector<19x36xf32> to vector<17x36xf32>
    %206 = tpu.concatenate %203, %204, %205 in 1 : vector<17x36xf32>, vector<17x36xf32>, vector<17x36xf32> -> vector<17x108xf32>
    %cst_33 = arith.constant dense<0.000000e+00> : vector<17x36xf32>
    %207 = tpu.matmul %206, %201, %cst_33 {dimension_numbers = #tpu.dot_dimension_numbers<[1], [0], [0], [1], [0, 0, 1, 1], [], []>} : vector<17x108xf32>, vector<108x36xf32>, vector<17x36xf32> -> vector<17x36xf32>
    %208 = vector.broadcast %202 : vector<1x36xf32> to vector<17x36xf32>
    %209 = arith.addf %207, %208 : vector<17x36xf32>
    %cst_34 = arith.constant 0.000000e+00 : f32
    %210 = vector.broadcast %cst_34 : f32 to vector<17x36xf32>
    %211 = arith.cmpf oge, %209, %210 : vector<17x36xf32>
    %cst_35 = arith.constant 0.00999999977 : f32
    %212 = vector.broadcast %cst_35 : f32 to vector<17x36xf32>
    %213 = arith.mulf %212, %209 : vector<17x36xf32>
    %214 = arith.select %211, %209, %213 : vector<17x36xi1>, vector<17x36xf32>
    %c0_36 = arith.constant 0 : index
    %c0_37 = arith.constant 0 : index
    %215 = vector.load %arg12[%c0_36, %c0_37] : memref<108x36xf32, #tpu.memory_space<vmem>>, vector<108x36xf32>
    %c0_38 = arith.constant 0 : index
    %c0_39 = arith.constant 0 : index
    %216 = vector.load %arg13[%c0_38, %c0_39] : memref<1x36xf32, #tpu.memory_space<vmem>>, vector<1x36xf32>
    %217 = vector.extract_strided_slice %214 {offsets = [0, 0], sizes = [15, 36], strides = [1, 1]} : vector<17x36xf32> to vector<15x36xf32>
    %218 = vector.extract_strided_slice %214 {offsets = [1, 0], sizes = [15, 36], strides = [1, 1]} : vector<17x36xf32> to vector<15x36xf32>
    %219 = vector.extract_strided_slice %214 {offsets = [2, 0], sizes = [15, 36], strides = [1, 1]} : vector<17x36xf32> to vector<15x36xf32>
    %220 = tpu.concatenate %217, %218, %219 in 1 : vector<15x36xf32>, vector<15x36xf32>, vector<15x36xf32> -> vector<15x108xf32>
    %cst_40 = arith.constant dense<0.000000e+00> : vector<15x36xf32>
    %221 = tpu.matmul %220, %215, %cst_40 {dimension_numbers = #tpu.dot_dimension_numbers<[1], [0], [0], [1], [0, 0, 1, 1], [], []>} : vector<15x108xf32>, vector<108x36xf32>, vector<15x36xf32> -> vector<15x36xf32>
    %222 = vector.broadcast %216 : vector<1x36xf32> to vector<15x36xf32>
    %223 = arith.addf %221, %222 : vector<15x36xf32>
    %cst_41 = arith.constant 0.000000e+00 : f32
    %224 = vector.broadcast %cst_41 : f32 to vector<15x36xf32>
    %225 = arith.cmpf oge, %223, %224 : vector<15x36xf32>
    %cst_42 = arith.constant 0.00999999977 : f32
    %226 = vector.broadcast %cst_42 : f32 to vector<15x36xf32>
    %227 = arith.mulf %226, %223 : vector<15x36xf32>
    %228 = arith.select %225, %223, %227 : vector<15x36xi1>, vector<15x36xf32>
    %c0_43 = arith.constant 0 : index
    %c0_44 = arith.constant 0 : index
    %229 = vector.load %arg14[%c0_43, %c0_44] : memref<108x48xf32, #tpu.memory_space<vmem>>, vector<108x48xf32>
    %c0_45 = arith.constant 0 : index
    %c0_46 = arith.constant 0 : index
    %230 = vector.load %arg15[%c0_45, %c0_46] : memref<1x48xf32, #tpu.memory_space<vmem>>, vector<1x48xf32>
    %231 = vector.extract_strided_slice %228 {offsets = [0, 0], sizes = [13, 36], strides = [1, 1]} : vector<15x36xf32> to vector<13x36xf32>
    %232 = vector.extract_strided_slice %228 {offsets = [1, 0], sizes = [13, 36], strides = [1, 1]} : vector<15x36xf32> to vector<13x36xf32>
    %233 = vector.extract_strided_slice %228 {offsets = [2, 0], sizes = [13, 36], strides = [1, 1]} : vector<15x36xf32> to vector<13x36xf32>
    %234 = tpu.concatenate %231, %232, %233 in 1 : vector<13x36xf32>, vector<13x36xf32>, vector<13x36xf32> -> vector<13x108xf32>
    %cst_47 = arith.constant dense<0.000000e+00> : vector<13x48xf32>
    %235 = tpu.matmul %234, %229, %cst_47 {dimension_numbers = #tpu.dot_dimension_numbers<[1], [0], [0], [1], [0, 0, 1, 1], [], []>} : vector<13x108xf32>, vector<108x48xf32>, vector<13x48xf32> -> vector<13x48xf32>
    %236 = vector.broadcast %230 : vector<1x48xf32> to vector<13x48xf32>
    %237 = arith.addf %235, %236 : vector<13x48xf32>
    %cst_48 = arith.constant 0.000000e+00 : f32
    %238 = vector.broadcast %cst_48 : f32 to vector<13x48xf32>
    %239 = arith.cmpf oge, %237, %238 : vector<13x48xf32>
    %cst_49 = arith.constant 0.00999999977 : f32
    %240 = vector.broadcast %cst_49 : f32 to vector<13x48xf32>
    %241 = arith.mulf %240, %237 : vector<13x48xf32>
    %242 = arith.select %239, %237, %241 : vector<13x48xi1>, vector<13x48xf32>
    %c0_50 = arith.constant 0 : index
    %c0_51 = arith.constant 0 : index
    %243 = vector.load %arg16[%c0_50, %c0_51] : memref<144x48xf32, #tpu.memory_space<vmem>>, vector<144x48xf32>
    %c0_52 = arith.constant 0 : index
    %c0_53 = arith.constant 0 : index
    %244 = vector.load %arg17[%c0_52, %c0_53] : memref<1x48xf32, #tpu.memory_space<vmem>>, vector<1x48xf32>
    %245 = vector.extract_strided_slice %242 {offsets = [0, 0], sizes = [11, 48], strides = [1, 1]} : vector<13x48xf32> to vector<11x48xf32>
    %246 = vector.extract_strided_slice %242 {offsets = [1, 0], sizes = [11, 48], strides = [1, 1]} : vector<13x48xf32> to vector<11x48xf32>
    %247 = vector.extract_strided_slice %242 {offsets = [2, 0], sizes = [11, 48], strides = [1, 1]} : vector<13x48xf32> to vector<11x48xf32>
    %248 = tpu.concatenate %245, %246, %247 in 1 : vector<11x48xf32>, vector<11x48xf32>, vector<11x48xf32> -> vector<11x144xf32>
    %cst_54 = arith.constant dense<0.000000e+00> : vector<11x48xf32>
    %249 = tpu.matmul %248, %243, %cst_54 {dimension_numbers = #tpu.dot_dimension_numbers<[1], [0], [0], [1], [0, 0, 1, 1], [], []>} : vector<11x144xf32>, vector<144x48xf32>, vector<11x48xf32> -> vector<11x48xf32>
    %250 = vector.broadcast %244 : vector<1x48xf32> to vector<11x48xf32>
    %251 = arith.addf %249, %250 : vector<11x48xf32>
    %cst_55 = arith.constant 0.000000e+00 : f32
    %252 = vector.broadcast %cst_55 : f32 to vector<11x48xf32>
    %253 = arith.cmpf oge, %251, %252 : vector<11x48xf32>
    %cst_56 = arith.constant 0.00999999977 : f32
    %254 = vector.broadcast %cst_56 : f32 to vector<11x48xf32>
    %255 = arith.mulf %254, %251 : vector<11x48xf32>
    %256 = arith.select %253, %251, %255 : vector<11x48xi1>, vector<11x48xf32>
    %c0_57 = arith.constant 0 : index
    %c0_58 = arith.constant 0 : index
    %257 = vector.load %arg18[%c0_57, %c0_58] : memref<144x48xf32, #tpu.memory_space<vmem>>, vector<144x48xf32>
    %c0_59 = arith.constant 0 : index
    %c0_60 = arith.constant 0 : index
    %258 = vector.load %arg19[%c0_59, %c0_60] : memref<1x48xf32, #tpu.memory_space<vmem>>, vector<1x48xf32>
    %259 = vector.extract_strided_slice %256 {offsets = [0, 0], sizes = [9, 48], strides = [1, 1]} : vector<11x48xf32> to vector<9x48xf32>
    %260 = vector.extract_strided_slice %256 {offsets = [1, 0], sizes = [9, 48], strides = [1, 1]} : vector<11x48xf32> to vector<9x48xf32>
    %261 = vector.extract_strided_slice %256 {offsets = [2, 0], sizes = [9, 48], strides = [1, 1]} : vector<11x48xf32> to vector<9x48xf32>
    %262 = tpu.concatenate %259, %260, %261 in 1 : vector<9x48xf32>, vector<9x48xf32>, vector<9x48xf32> -> vector<9x144xf32>
    %cst_61 = arith.constant dense<0.000000e+00> : vector<9x48xf32>
    %263 = tpu.matmul %262, %257, %cst_61 {dimension_numbers = #tpu.dot_dimension_numbers<[1], [0], [0], [1], [0, 0, 1, 1], [], []>} : vector<9x144xf32>, vector<144x48xf32>, vector<9x48xf32> -> vector<9x48xf32>
    %264 = vector.broadcast %258 : vector<1x48xf32> to vector<9x48xf32>
    %265 = arith.addf %263, %264 : vector<9x48xf32>
    %cst_62 = arith.constant 0.000000e+00 : f32
    %266 = vector.broadcast %cst_62 : f32 to vector<9x48xf32>
    %267 = arith.cmpf oge, %265, %266 : vector<9x48xf32>
    %cst_63 = arith.constant 0.00999999977 : f32
    %268 = vector.broadcast %cst_63 : f32 to vector<9x48xf32>
    %269 = arith.mulf %268, %265 : vector<9x48xf32>
    %270 = arith.select %267, %265, %269 : vector<9x48xi1>, vector<9x48xf32>
    %c0_64 = arith.constant 0 : index
    %c0_65 = arith.constant 0 : index
    %271 = vector.load %arg20[%c0_64, %c0_65] : memref<144x48xf32, #tpu.memory_space<vmem>>, vector<144x48xf32>
    %c0_66 = arith.constant 0 : index
    %c0_67 = arith.constant 0 : index
    %272 = vector.load %arg21[%c0_66, %c0_67] : memref<1x48xf32, #tpu.memory_space<vmem>>, vector<1x48xf32>
    %273 = vector.extract_strided_slice %270 {offsets = [0, 0], sizes = [7, 48], strides = [1, 1]} : vector<9x48xf32> to vector<7x48xf32>
    %274 = vector.extract_strided_slice %270 {offsets = [1, 0], sizes = [7, 48], strides = [1, 1]} : vector<9x48xf32> to vector<7x48xf32>
    %275 = vector.extract_strided_slice %270 {offsets = [2, 0], sizes = [7, 48], strides = [1, 1]} : vector<9x48xf32> to vector<7x48xf32>
    %276 = tpu.concatenate %273, %274, %275 in 1 : vector<7x48xf32>, vector<7x48xf32>, vector<7x48xf32> -> vector<7x144xf32>
    %cst_68 = arith.constant dense<0.000000e+00> : vector<7x48xf32>
    %277 = tpu.matmul %276, %271, %cst_68 {dimension_numbers = #tpu.dot_dimension_numbers<[1], [0], [0], [1], [0, 0, 1, 1], [], []>} : vector<7x144xf32>, vector<144x48xf32>, vector<7x48xf32> -> vector<7x48xf32>
    %278 = vector.broadcast %272 : vector<1x48xf32> to vector<7x48xf32>
    %279 = arith.addf %277, %278 : vector<7x48xf32>
    %cst_69 = arith.constant 0.000000e+00 : f32
    %280 = vector.broadcast %cst_69 : f32 to vector<7x48xf32>
    %281 = arith.cmpf oge, %279, %280 : vector<7x48xf32>
    %cst_70 = arith.constant 0.00999999977 : f32
    %282 = vector.broadcast %cst_70 : f32 to vector<7x48xf32>
    %283 = arith.mulf %282, %279 : vector<7x48xf32>
    %284 = arith.select %281, %279, %283 : vector<7x48xi1>, vector<7x48xf32>
    %285 = vector.extract_strided_slice %284 {offsets = [0, 0], sizes = [1, 48], strides = [1, 1]} : vector<7x48xf32> to vector<1x48xf32>
    %286 = vector.extract_strided_slice %284 {offsets = [1, 0], sizes = [1, 48], strides = [1, 1]} : vector<7x48xf32> to vector<1x48xf32>
    %287 = vector.extract_strided_slice %284 {offsets = [2, 0], sizes = [1, 48], strides = [1, 1]} : vector<7x48xf32> to vector<1x48xf32>
    %288 = vector.extract_strided_slice %284 {offsets = [3, 0], sizes = [1, 48], strides = [1, 1]} : vector<7x48xf32> to vector<1x48xf32>
    %289 = vector.extract_strided_slice %284 {offsets = [4, 0], sizes = [1, 48], strides = [1, 1]} : vector<7x48xf32> to vector<1x48xf32>
    %290 = vector.extract_strided_slice %284 {offsets = [5, 0], sizes = [1, 48], strides = [1, 1]} : vector<7x48xf32> to vector<1x48xf32>
    %291 = vector.extract_strided_slice %284 {offsets = [6, 0], sizes = [1, 48], strides = [1, 1]} : vector<7x48xf32> to vector<1x48xf32>
    %292 = tpu.concatenate %285, %286, %287, %288, %289, %290, %291 in 1 : vector<1x48xf32>, vector<1x48xf32>, vector<1x48xf32>, vector<1x48xf32>, vector<1x48xf32>, vector<1x48xf32>, vector<1x48xf32> -> vector<1x336xf32>
    %c0_71 = arith.constant 0 : index
    %c0_72 = arith.constant 0 : index
    %293 = vector.load %arg22[%c0_71, %c0_72] : memref<336x128xf32, #tpu.memory_space<vmem>>, vector<336x128xf32>
    %cst_73 = arith.constant dense<0.000000e+00> : vector<1x128xf32>
    %294 = tpu.matmul %292, %293, %cst_73 {dimension_numbers = #tpu.dot_dimension_numbers<[1], [0], [0], [1], [0, 0, 1, 1], [], []>} : vector<1x336xf32>, vector<336x128xf32>, vector<1x128xf32> -> vector<1x128xf32>
    %c0_74 = arith.constant 0 : index
    %c0_75 = arith.constant 0 : index
    %295 = vector.load %arg23[%c0_74, %c0_75] : memref<1x128xf32, #tpu.memory_space<vmem>>, vector<1x128xf32>
    %296 = arith.addf %294, %295 : vector<1x128xf32>
    %cst_76 = arith.constant 0.000000e+00 : f32
    %297 = vector.broadcast %cst_76 : f32 to vector<1x128xf32>
    %298 = arith.cmpf oge, %296, %297 : vector<1x128xf32>
    %cst_77 = arith.constant 0.00999999977 : f32
    %299 = vector.broadcast %cst_77 : f32 to vector<1x128xf32>
    %300 = arith.mulf %299, %296 : vector<1x128xf32>
    %301 = arith.select %298, %296, %300 : vector<1x128xi1>, vector<1x128xf32>
    %c0_78 = arith.constant 0 : index
    %c0_79 = arith.constant 0 : index
    %302 = vector.load %arg24[%c0_78, %c0_79] : memref<128x2xf32, #tpu.memory_space<vmem>>, vector<128x2xf32>
    %cst_80 = arith.constant dense<0.000000e+00> : vector<1x2xf32>
    %303 = tpu.matmul %301, %302, %cst_80 {dimension_numbers = #tpu.dot_dimension_numbers<[1], [0], [0], [1], [0, 0, 1, 1], [], []>} : vector<1x128xf32>, vector<128x2xf32>, vector<1x2xf32> -> vector<1x2xf32>
    %c0_81 = arith.constant 0 : index
    %c0_82 = arith.constant 0 : index
    %304 = vector.load %arg25[%c0_81, %c0_82] : memref<1x2xf32, #tpu.memory_space<vmem>>, vector<1x2xf32>
    %305 = arith.addf %303, %304 : vector<1x2xf32>
    %c0_83 = arith.constant 0 : index
    %c0_84 = arith.constant 0 : index
    %c0_85 = arith.constant 0 : index
    %306 = vector.load %arg26[%c0_83, %c0_84, %c0_85] : memref<1x1x2xf32, #tpu.memory_space<vmem>>, vector<1x1x2xf32>
    %307 = vector.shape_cast %306 : vector<1x1x2xf32> to vector<1x2xf32>
    %308 = vector.shape_cast %305 : vector<1x2xf32> to vector<1x1x2xf32>
    tpu.vector_store %arg26[%c0_83, %c0_84, %c0_85], %308 {strides = array<i32>} : memref<1x1x2xf32, #tpu.memory_space<vmem>>, vector<1x1x2xf32>,
    return
  }
  func.func @transform_0(%arg0: i32) -> (i32, i32, i32) {
    %c0_i32 = arith.constant 0 : i32
    %c0_i32_0 = arith.constant 0 : i32
    %c0_i32_1 = arith.constant 0 : i32
    return %arg0, %c0_i32, %c0_i32_0 : i32, i32, i32
  }
  func.func @transform_1(%arg0: i32) -> (i32, i32) {
    %c0_i32 = arith.constant 0 : i32
    %c0_i32_0 = arith.constant 0 : i32
    %c0_i32_1 = arith.constant 0 : i32
    return %c0_i32, %c0_i32_0 : i32, i32
  }
  func.func @transform_2(%arg0: i32) -> (i32, i32) {
    %c0_i32 = arith.constant 0 : i32
    %c0_i32_0 = arith.constant 0 : i32
    %c0_i32_1 = arith.constant 0 : i32
    return %c0_i32, %c0_i32_0 : i32, i32
  }
  func.func @transform_3(%arg0: i32) -> (i32, i32) {
    %c0_i32 = arith.constant 0 : i32
    %c0_i32_0 = arith.constant 0 : i32
    %c0_i32_1 = arith.constant 0 : i32
    return %c0_i32, %c0_i32_0 : i32, i32
  }
  func.func @transform_4(%arg0: i32) -> (i32, i32) {
    %c0_i32 = arith.constant 0 : i32
    %c0_i32_0 = arith.constant 0 : i32
    %c0_i32_1 = arith.constant 0 : i32
    return %c0_i32, %c0_i32_0 : i32, i32
  }
  func.func @transform_5(%arg0: i32) -> (i32, i32) {
    %c0_i32 = arith.constant 0 : i32
    %c0_i32_0 = arith.constant 0 : i32
    %c0_i32_1 = arith.constant 0 : i32
    return %c0_i32, %c0_i32_0 : i32, i32
  }
  func.func @transform_6(%arg0: i32) -> (i32, i32) {
    %c0_i32 = arith.constant 0 : i32
    %c0_i32_0 = arith.constant 0 : i32
    %c0_i32_1 = arith.constant 0 : i32
    return %c0_i32, %c0_i32_0 : i32, i32
  }
  func.func @transform_7(%arg0: i32) -> (i32, i32) {
    %c0_i32 = arith.constant 0 : i32
    %c0_i32_0 = arith.constant 0 : i32
    %c0_i32_1 = arith.constant 0 : i32
    return %c0_i32, %c0_i32_0 : i32, i32
  }
  func.func @transform_8(%arg0: i32) -> (i32, i32) {
    %c0_i32 = arith.constant 0 : i32
    %c0_i32_0 = arith.constant 0 : i32
    %c0_i32_1 = arith.constant 0 : i32
    return %c0_i32, %c0_i32_0 : i32, i32
  }
  func.func @transform_9(%arg0: i32) -> (i32, i32) {
    %c0_i32 = arith.constant 0 : i32
    %c0_i32_0 = arith.constant 0 : i32
    %c0_i32_1 = arith.constant 0 : i32
    return %c0_i32, %c0_i32_0 : i32, i32
  }
  func.func @transform_10(%arg0: i32) -> (i32, i32) {
    %c0_i32 = arith.constant 0 : i32
    %c0_i32_0 = arith.constant 0 : i32
    %c0_i32_1 = arith.constant 0 : i32
    return %c0_i32, %c0_i32_0 : i32, i32
  }
  func.func @transform_11(%arg0: i32) -> (i32, i32) {
    %c0_i32 = arith.constant 0 : i32
    %c0_i32_0 = arith.constant 0 : i32
    %c0_i32_1 = arith.constant 0 : i32
    return %c0_i32, %c0_i32_0 : i32, i32
  }
  func.func @transform_12(%arg0: i32) -> (i32, i32) {
    %c0_i32 = arith.constant 0 : i32
    %c0_i32_0 = arith.constant 0 : i32
    %c0_i32_1 = arith.constant 0 : i32
    return %c0_i32, %c0_i32_0 : i32, i32
  }
  func.func @transform_13(%arg0: i32) -> (i32, i32) {
    %c0_i32 = arith.constant 0 : i32
    %c0_i32_0 = arith.constant 0 : i32
    %c0_i32_1 = arith.constant 0 : i32
    return %c0_i32, %c0_i32_0 : i32, i32
  }
  func.func @transform_14(%arg0: i32) -> (i32, i32) {
    %c0_i32 = arith.constant 0 : i32
    %c0_i32_0 = arith.constant 0 : i32
    %c0_i32_1 = arith.constant 0 : i32
    return %c0_i32, %c0_i32_0 : i32, i32
  }
  func.func @transform_15(%arg0: i32) -> (i32, i32) {
    %c0_i32 = arith.constant 0 : i32
    %c0_i32_0 = arith.constant 0 : i32
    %c0_i32_1 = arith.constant 0 : i32
    return %c0_i32, %c0_i32_0 : i32, i32
  }
  func.func @transform_16(%arg0: i32) -> (i32, i32) {
    %c0_i32 = arith.constant 0 : i32
    %c0_i32_0 = arith.constant 0 : i32
    %c0_i32_1 = arith.constant 0 : i32
    return %c0_i32, %c0_i32_0 : i32, i32
  }
  func.func @transform_17(%arg0: i32) -> (i32, i32) {
    %c0_i32 = arith.constant 0 : i32
    %c0_i32_0 = arith.constant 0 : i32
    %c0_i32_1 = arith.constant 0 : i32
    return %c0_i32, %c0_i32_0 : i32, i32
  }
  func.func @transform_18(%arg0: i32) -> (i32, i32) {
    %c0_i32 = arith.constant 0 : i32
    %c0_i32_0 = arith.constant 0 : i32
    %c0_i32_1 = arith.constant 0 : i32
    return %c0_i32, %c0_i32_0 : i32, i32
  }
  func.func @transform_19(%arg0: i32) -> (i32, i32) {
    %c0_i32 = arith.constant 0 : i32
    %c0_i32_0 = arith.constant 0 : i32
    %c0_i32_1 = arith.constant 0 : i32
    return %c0_i32, %c0_i32_0 : i32, i32
  }
  func.func @transform_20(%arg0: i32) -> (i32, i32) {
    %c0_i32 = arith.constant 0 : i32
    %c0_i32_0 = arith.constant 0 : i32
    %c0_i32_1 = arith.constant 0 : i32
    return %c0_i32, %c0_i32_0 : i32, i32
  }
  func.func @transform_21(%arg0: i32) -> (i32, i32) {
    %c0_i32 = arith.constant 0 : i32
    %c0_i32_0 = arith.constant 0 : i32
    %c0_i32_1 = arith.constant 0 : i32
    return %c0_i32, %c0_i32_0 : i32, i32
  }
  func.func @transform_22(%arg0: i32) -> (i32, i32) {
    %c0_i32 = arith.constant 0 : i32
    %c0_i32_0 = arith.constant 0 : i32
    %c0_i32_1 = arith.constant 0 : i32
    return %c0_i32, %c0_i32_0 : i32, i32
  }
  func.func @transform_23(%arg0: i32) -> (i32, i32) {
    %c0_i32 = arith.constant 0 : i32
    %c0_i32_0 = arith.constant 0 : i32
    %c0_i32_1 = arith.constant 0 : i32
    return %c0_i32, %c0_i32_0 : i32, i32
  }
  func.func @transform_24(%arg0: i32) -> (i32, i32) {
    %c0_i32 = arith.constant 0 : i32
    %c0_i32_0 = arith.constant 0 : i32
    %c0_i32_1 = arith.constant 0 : i32
    return %c0_i32, %c0_i32_0 : i32, i32
  }
  func.func @transform_25(%arg0: i32) -> (i32, i32, i32) {
    %c0_i32 = arith.constant 0 : i32
    %c0_i32_0 = arith.constant 0 : i32
    %c0_i32_1 = arith.constant 0 : i32
    return %arg0, %c0_i32, %c0_i32_0 : i32, i32, i32
  }
}

</mosaic_0001>

<bundles_post_ra>
// kernel: cnn_forward.1
= control target key start
LH: loop header
LB: loop body
LE: loop exit
PB: predicated region body
PF: predicated region fallthrough
CT: control target
= control target key end

     0   :  { %s13978_s0 = inlined_call_operand.vmem [shape: f32[2,161,12], index: 0, kind: input, shape index: {}]   ;;  %s13979_s1 = inlined_call_operand.vmem [shape: f32[1224,24], index: 1, kind: input, shape index: {}]   ;;  %s13980_s2 = inlined_call_operand.vmem [shape: f32[1,24], index: 2, kind: input, shape index: {}]   ;;  %s13981_s3 = inlined_call_operand.vmem [shape: f32[576,24], index: 3, kind: input, shape index: {}]   ;;  %s13982_s4 = inlined_call_operand.vmem [shape: f32[1,24], index: 4, kind: input, shape index: {}]   ;;  %s13983_s5 = inlined_call_operand.vmem [shape: f32[264,24], index: 5, kind: input, shape index: {}]   ;;  %s13984_s6 = inlined_call_operand.vmem [shape: f32[1,24], index: 6, kind: input, shape index: {}]   ;;  %s13985_s7 = inlined_call_operand.vmem [shape: f32[216,36], index: 7, kind: input, shape index: {}]   ;;  %s13986_s8 = inlined_call_operand.vmem [shape: f32[1,36], index: 8, kind: input, shape index: {}]   ;;  %s13987_s9 = inlined_call_operand.vmem [shape: f32[108,36], index: 9, kind: input, shape index: {}]   ;;  %s13988_s10 = inlined_call_operand.vmem [shape: f32[1,36], index: 10, kind: input, shape index: {}]   ;;  %s13989_s11 = inlined_call_operand.vmem [shape: f32[108,36], index: 11, kind: input, shape index: {}]   ;;  %s13990_s12 = inlined_call_operand.vmem [shape: f32[1,36], index: 12, kind: input, shape index: {}]   ;;  %s13991_s13 = inlined_call_operand.vmem [shape: f32[108,48], index: 13, kind: input, shape index: {}]   ;;  %s13992_s14 = inlined_call_operand.vmem [shape: f32[1,48], index: 14, kind: input, shape index: {}]   ;;  %s13993_s15 = inlined_call_operand.vmem [shape: f32[144,48], index: 15, kind: input, shape index: {}]   ;;  %s13994_s16 = inlined_call_operand.vmem [shape: f32[1,48], index: 16, kind: input, shape index: {}]   ;;  %s13995_s17 = inlined_call_operand.vmem [shape: f32[144,48], index: 17, kind: input, shape index: {}]   ;;  %s13996_s18 = inlined_call_operand.vmem [shape: f32[1,48], index: 18, kind: input, shape index: {}]   ;;  %s13997_s19 = inlined_call_operand.vmem [shape: f32[144,48], index: 19, kind: input, shape index: {}]   ;;  %s13998_s20 = inlined_call_operand.vmem [shape: f32[1,48], index: 20, kind: input, shape index: {}]   ;;  %s13999_s21 = inlined_call_operand.vmem [shape: f32[336,128], index: 21, kind: input, shape index: {}]   ;;  %s14000_s22 = inlined_call_operand.vmem [shape: f32[1,128], index: 22, kind: input, shape index: {}]   ;;  %s14001_s23 = inlined_call_operand.vmem [shape: f32[128,2], index: 23, kind: input, shape index: {}]   ;;  %s14002_s24 = inlined_call_operand.vmem [shape: f32[1,2], index: 24, kind: input, shape index: {}]   ;;  %s14003_s25 = inlined_call_operand.hbm [shape: f32[2,1,2], index: 25, kind: output, shape index: {}]  }
   0x1   :  { %14224 = sst [smem:[#allocation74_spill]] %s13978_s0 }
   0x2   :  { %14225 = sst [smem:[#allocation75_spill]] %s13979_s1 }
   0x3   :  { %14226 = sst [smem:[#allocation76_spill]] %s13980_s2 }
   0x4   :  { %14227 = sst [smem:[#allocation77_spill]] %s13981_s3 }
   0x5   :  { %14228 = sst [smem:[#allocation78_spill]] %s13982_s4 }
   0x6   :  { %14229 = sst [smem:[#allocation79_spill]] %s13983_s5 }
   0x7   :  { %14230 = sst [smem:[#allocation80_spill]] %s13984_s6 }
   0x8   :  { %14231 = sst [smem:[#allocation81_spill]] %s13985_s7 }
   0x9   :  { %14232 = sst [smem:[#allocation82_spill]] %s13986_s8 }
   0xa   :  { %14233 = sst [smem:[#allocation83_spill]] %s13987_s9 }
   0xb   :  { %14234 = sst [smem:[#allocation84_spill]] %s13994_s16 }
   0xc   :  { %14235 = sst [smem:[#allocation85_spill]] %s13995_s17 }
   0xd   :  { %14236 = sst [smem:[#allocation86_spill]] %s13996_s18 }
   0xe   :  { %14237 = sst [smem:[#allocation87_spill]] %s13997_s19 }
   0xf   :  { %14238 = sst [smem:[#allocation88_spill]] %s13998_s20 }
  0x10   :  { %14239 = sst [smem:[#allocation89_spill]] %s13999_s21 }
  0x11   :  { %14240 = sst [smem:[#allocation90_spill]] %s14000_s22 }
  0x12   :  { %14241 = sst [smem:[#allocation91_spill]] %s14001_s23 }
  0x13   :  { %14242 = sst [smem:[#allocation92_spill]] %s14002_s24 }
  0x14   :  { %14243 = sst [smem:[#allocation93_spill]] %s14003_s25 }
  0x15   :  { %30 = vsyncpa [#allocation3], 0 }
  0x16   :  { %32 = vsyncpa [#allocation3 + $0x1], 0  ;;  %s8759_s29 = smov 0   ;;  %s8761_s2 = smov 0  }
  0x17   :  { %s8763_s6 = smov 0   ;;  %s8765_s30 = smov 0  }
  0x18 LB: > { %14244 = sst [smem:[#allocation5_spill]] %s8587_s29  ;;  %s8780_s7 = sadd.s32 4294967295, %s8599_s30   ;;  %s8599_s30 = sphi %s8765_s30, %s14837_s30   ;;  %s8595_s6 = sphi %s8763_s6, %s14840_s6   ;;  %s8591_s2 = sphi %s8761_s2, %s14839_s2   ;;  %s8587_s29 = sphi %s8759_s29, %s14838_s29  }
  0x19   : > { %14245 = sst [smem:[#allocation6_spill]] %s8591_s2  ;;  %s6124_s3 = sadd.s32 4294967294, %s8599_s30  }
  0x1a   : > { %14246 = sst [smem:[#allocation7_spill]] %s8595_s6  ;;  %s8784_s26 = sadd.s32 1, %s8599_s30  }
  0x1b   : > { %14247 = sst [smem:[#allocation8_spill]] %s8599_s30  ;;  %s575_s1 = sadd.s32 1, %s8595_s6 }
  0x1c   : > { %14248 = sst [smem:[#allocation9_spill]] %s8780_s7  ;;  %s572_s8 = ssub.s32 %s8599_s30, %s8784_s26 }
  0x1d   : > { %14249 = sst [smem:[#allocation10_spill]] %s8784_s26  ;;  %p585_p0 = scmp.ne.s32.totalorder %s8595_s6, %s8591_s2 }
  0x1e   : > { %p573_p1 = scmp.eq.s32.totalorder %s572_s8, 0  ;;  %p586_p2 = scmp.eq.s32.totalorder %s8780_s7, 1 }
  0x1f   : > { %p591_p3 = scmp.ne.s32.totalorder %s8591_s2, %s8587_s29  ;;  %p592_p4 = scmp.eq.s32.totalorder %s6124_s3, 1 }
  0x20   : > { %s8795_s27 = scalar_select %p573_p1, %s8595_s6, %s575_s1  }
  0x21   : > { %p8797_p5 = por %p586_p2, %p585_p0  ;;  %p8801_p6 = por %p592_p4, %p591_p3 }
  0x22   : > { %14250 = sst [smem:[#allocation11_spill]] %s8795_s27  ;;  %p6127_p7 = scmp.ge.s32.totalorder %s8599_s30, 1 }
  0x23   : > { %s14251_s4 = scalar_select %p8797_p5, 1, 0 }
  0x24   : > { %s14253_s28 = scalar_select %p8801_p6, 1, 0 }
  0x25   : > { %14252 = sst [smem:[#allocation12_spill]] %s14251_s4  ;;  %p690_p8 = scmp.lt.s32.totalorder %s8599_s30, 3 }
  0x26   : > { %14254 = sst [smem:[#allocation13_spill]] %s14253_s28 }
  0x27   : > { %p691_p9 = pnand %p6127_p7, %p690_p8 }
  0x29   : > { %694 = sbr.rel (%p691_p9) target bundleno = 4621 (0x120d), region = 120 }
  0x30   : > { %p757_p10 = scmp.lt.s32.totalorder %s8780_s7, 1  ;;  %s14255_s1 = sld [smem:[#allocation74_spill]]  ;;  %vm14098_vm0 = vcmask 1044480   ;;  %vm14202_vm1 = vcmask 1046528   ;;  %vm14144_vm2 = vcmask 1043456   ;;  %vm14146_vm3 = vcmask 1045504  }
  0x31   : > { %vm14147_vm4 = vcmask 1041408   ;;  %vm14143_vm5 = vcmask 1042432   ;;  %vm14145_vm6 = vcmask 1040384   ;;  %s14015_s0 = smov 48   ;;  %s14021_s3 = smov 24   ;;  %vm14119_vm7 = vcmask 97280  }
  0x32   : > { %s758_s9 = scalar_select %p757_p10, %s8780_s7, 1  ;;  %vm14118_vm8 = vcmask 195584   ;;  %vm14081_vm9 = vcmask 293888   ;;  %vm14073_vm10 = vcmask 392192   ;;  %vm1475_vm11 = vcmask 490496  }
  0x33   : > { %s14265_s27 = smov 84   ;;  %s14268_s6 = smov 12   ;;  %vm1484_vm12 = vcmask 588800   ;;  %vm1493_vm13 = vcmask 687104   ;;  %vm1502_vm14 = vcmask 785408   ;;  %vm14222_vm15 = vcmask 883712  }
  0x34   : > { %s7411_s5 = smul.u32 168, %s758_s9  ;;  %s14009_s9 = smov 36  }
  0x35   : > { %s14269_s26 = smov 120   ;;  %s14270_s28 = smov 24  }
  0x36   : > { %s8812_s8 = scalar_lea.vmem %s14255_s1, %s7411_s5  ;;  %s14023_s5 = smov 12  }
  0x37   : > { %v8815_v0 = vld [vmem:[%s8812_s8 + $0x18] sm:$0xff]  ;;  %v8818_v1 = vld [vmem:[%s8812_s8 + $0x20] sm:$0xff]  ;;  %v8823_v4 = vld [vmem:[%s8812_s8 + $0x10] sm:$0xff]  ;;  %s14011_s1 = smov 72   ;;  %s14271_s29 = smov 96  }
  0x38   : > { %v1031_v2 = vrot.slane %v8815_v0, 3  ;;  %v1033_v3 = vrot.slane %v8818_v1, 3  ;;  %v14037_v6 = vrot.slane %v8823_v4, 3  ;;  %v951_v7 = vrot.slane %v8815_v0, 1  ;;  %v8876_v26 = vld [vmem:[%s8812_s8 + $0x28] sm:$0xff]  ;;  %v8900_v39 = vld [vmem:[%s8812_s8 + $0x30] sm:$0xff] }
  0x39   : > { %v953_v8 = vrot.slane %v8818_v1, 1  ;;  %v14033_v12 = vrot.slane %v8823_v4, 1  ;;  %v14036_v13 = vrot.slane %v8823_v4, 4  ;;  %v1071_v14 = vrot.slane %v8815_v0, 4  ;;  %s14057_s30 = smov 16   ;;  %s14063_s25 = smov 4  }
  0x3a   : > { %v8828_v5 = vsel %vm14098_vm0, %v1031_v2, %v1033_v3  ;;  %v8836_v9 = vsel %vm14098_vm0, %v14037_v6, %v1031_v2  ;;  %v1073_v16 = vrot.slane %v8818_v1, 4  ;;  %v14035_v17 = vrot.slane %v8823_v4, 2  ;;  %s14059_s24 = smov 40   ;;  %s14061_s4 = smov 28  }
  0x3b   : > { %v7488_v10 = vpack.i.bf16 %v8828_v5, %v8836_v9  ;;  %v8841_v11 = vsel %vm14202_vm1, %v951_v7, %v953_v8  ;;  %v8850_v15 = vsel %vm14202_vm1, %v14033_v12, %v951_v7  ;;  %v991_v18 = vrot.slane %v8815_v0, 2  ;;  %s14275_s22 = smov 16   ;;  %s14283_s23 = smov 4  }
  0x3c   : > { %v7478_v19 = vpack.i.bf16 %v8841_v11, %v8850_v15  ;;  %v8860_v20 = vsel %vm14144_vm2, %v14036_v13, %v1071_v14  ;;  %v993_v21 = vrot.slane %v8818_v1, 2  ;;  %v8866_v22 = vsel %vm14144_vm2, %v1071_v14, %v1073_v16  ;;  %s14288_s18 = smov 28   ;;  %s14289_s21 = smov 40  }
  0x3d   : > { %7489 = vrot.lane.b32.xlu1 %v7488_v10, %s14009_s9  ;;  %v8871_v23 = vsel %vm14146_vm3, %v14035_v17, %v991_v18  ;;  %v1152_v24 = vrot.slane %v8823_v4, 6  ;;  %v1154_v25 = vrot.slane %v8815_v0, 6  ;;  %v7493_v27 = vpack.i.bf16 %v8866_v22, %v8860_v20  ;;  %s14013_s9 = smov 60   ;;  %s14294_s16 = smov 52  }
  0x3e   : > { %7479 = vrot.lane.b32.xlu0 %v7478_v19, %s14023_s5  ;;  %v994_v28 = vsel %vm14146_vm3, %v991_v18, %v993_v21  ;;  %v1156_v29 = vrot.slane %v8818_v1, 6  ;;  %v14034_v30 = vrot.slane %v8823_v4, 5  ;;  %v1112_v33 = vrot.slane %v8815_v0, 5  ;;  %s8616_s17 = smov 64   ;;  %s8621_s7 = smov 112  }
  0x3f   : > { %v7483_v31 = vpack.i.bf16 %v994_v28, %v8871_v23  ;;  %v8888_v32 = vsel %vm14147_vm4, %v1152_v24, %v1154_v25  ;;  %v1114_v34 = vrot.slane %v8818_v1, 5  ;;  %v1194_v36 = vrot.slane %v8823_v4, 7  ;;  %s8623_s2 = smov 8   ;;  %s14788_s20 = sld [smem:[#allocation82_spill]] }
  0x40   : > { %v8894_v35 = vsel %vm14147_vm4, %v1154_v25, %v1156_v29  ;;  %v1196_v37 = vrot.slane %v8815_v0, 7  ;;  %v1198_v38 = vrot.slane %v8818_v1, 7  ;;  %v955_v40 = vrot.slane %v8876_v26, 1 }
  0x41   : > { %7494 = vrot.lane.b32.xlu1 %v7493_v27, %s14015_s0  ;;  %v7503_v41 = vpack.i.bf16 %v8894_v35, %v8888_v32  ;;  %v8908_v42 = vsel %vm14143_vm5, %v14034_v30, %v1112_v33  ;;  %v8911_v43 = vsel %vm14143_vm5, %v1112_v33, %v1114_v34  ;;  %v957_v47 = vrot.slane %v8900_v39, 1  ;;  %s14017_s0 = smov 108   ;;  %v8974_v27 = vld [vmem:[%s8812_s8 + $0x38] sm:$0xff] }
  0x42   : > { %7484 = vrot.lane.b32.xlu0 %v7483_v31, %s14021_s3  ;;  %v7498_v44 = vpack.i.bf16 %v8911_v43, %v8908_v42  ;;  %v8919_v45 = vsel %vm14145_vm6, %v1194_v36, %v1196_v37  ;;  %v8924_v46 = vsel %vm14145_vm6, %v1196_v37, %v1198_v38  ;;  %v7513_v48 = vpack.i.bf16 %v8818_v1, %v8815_v0 }
  0x43   : > { %v956_v49 = vsel %vm14202_vm1, %v953_v8, %v955_v40  ;;  %v995_v50 = vrot.slane %v8876_v26, 2  ;;  %v7508_v51 = vpack.i.bf16 %v8924_v46, %v8919_v45  ;;  %v8936_v52 = vsel %vm14202_vm1, %v955_v40, %v957_v47  ;;  %v8984_v40 = vld [vmem:[%s8812_s8 + $0x40] sm:$0xff] }
  0x44   : > { %v997_v53 = vrot.slane %v8900_v39, 2  ;;  %v7523_v54 = vpack.i.bf16 %v956_v49, %v8841_v11  ;;  %v1075_v56 = vrot.slane %v8876_v26, 4  ;;  %v1077_v57 = vrot.slane %v8900_v39, 4 }
  0x45   : > { %7504 = vrot.lane.b32.xlu1 %v7503_v41, %s14011_s1  ;;  %s14027_s1 = smov 96   ;;  %v996_v55 = vsel %vm14146_vm3, %v993_v21, %v995_v50  ;;  %v7518_v58 = vpack.i.bf16 %v8936_v52, %v956_v49  ;;  %v1035_v60 = vrot.slane %v8876_v26, 3  ;;  %v1037_v61 = vrot.slane %v8900_v39, 3 }
  0x46   : > { %7499 = vrot.lane.b32.xlu0 %v7498_v44, %s14013_s9  ;;  %s14025_s9 = smov 84   ;;  %v8947_v59 = vsel %vm14146_vm3, %v995_v50, %v997_v53  ;;  %v7533_v62 = vpack.i.bf16 %v996_v55, %v994_v28  ;;  %v1076_v63 = vsel %vm14144_vm2, %v1073_v16, %v1075_v56  ;;  %v1078_v2 = vsel %vm14144_vm2, %v1075_v56, %v1077_v57 }
  0x47   : > { %v1158_v7 = vrot.slane %v8876_v26, 6  ;;  %v1160_v8 = vrot.slane %v8900_v39, 6  ;;  %v7528_v10 = vpack.i.bf16 %v8947_v59, %v996_v55  ;;  %v1036_v11 = vsel %vm14098_vm0, %v1033_v3, %v1035_v60 }
  0x48   : > { %v1038_v14 = vsel %vm14098_vm0, %v1035_v60, %v1037_v61  ;;  %v1116_v16 = vrot.slane %v8876_v26, 5  ;;  %v1118_v18 = vrot.slane %v8900_v39, 5  ;;  %v8969_v19 = vpack.i.bf16 %v1078_v2, %v1076_v63 }
  0x49   : > { %7514 = vrot.lane.b32.xlu1 %v7513_v48, %s14027_s1  ;;  %v1159_v21 = vsel %vm14147_vm4, %v1156_v29, %v1158_v7  ;;  %v1161_v25 = vsel %vm14147_vm4, %v1158_v7, %v1160_v8  ;;  %v8977_v3 = vpack.i.bf16 %v1038_v14, %v1036_v11  ;;  %v1200_v33 = vrot.slane %v8876_v26, 7 }
  0x4a   : > { %7509 = vrot.lane.b32.xlu0 %v7508_v51, %s14025_s9  ;;  %v1117_v28 = vsel %vm14143_vm5, %v1114_v34, %v1116_v16  ;;  %v1119_v31 = vsel %vm14143_vm5, %v1116_v16, %v1118_v18  ;;  %v1202_v37 = vrot.slane %v8900_v39, 7  ;;  %v8988_v29 = vpack.i.bf16 %v1161_v25, %v1159_v21  ;;  %s14262_s9 = smov 60  }
  0x4b   : > { %v8991_v41 = vrot.slane %v8974_v27, 1  ;;  %v8995_v34 = vpack.i.bf16 %v1119_v31, %v1117_v28  ;;  %v1201_v44 = vsel %vm14145_vm6, %v1198_v38, %v1200_v33  ;;  %v9004_v49 = vrot.slane %v8984_v40, 1 }
  0x4c   : > { %v1203_v48 = vsel %vm14145_vm6, %v1200_v33, %v1202_v37  ;;  %v7563_v50 = vpack.i.bf16 %v8900_v39, %v8876_v26  ;;  %v9025_v56 = vrot.slane %v8984_v40, 2  ;;  %v9035_v60 = vrot.slane %v8984_v40, 4 }
  0x4d   : > { %7524 = vrot.lane.b32.xlu1 %v7523_v54, %s14017_s0  ;;  %s14019_s0 = smov 120   ;;  %14257 = vst [vmem:[#allocation14_spill] sm:$0xff] %v8991_v41  ;;  %14259 = vst [vmem:[#allocation15_spill] sm:$0xff] %v9004_v49  ;;  %v960_v51 = vsel %vm14202_vm1, %v957_v47, %v8991_v41  ;;  %v9013_v54 = vrot.slane %v8974_v27, 2  ;;  %v9017_v38 = vpack.i.bf16 %v1203_v48, %v1201_v44  ;;  %v9041_v63 = vrot.slane %v8974_v27, 3  ;;  %v9091_v44 = vld [vmem:[%s8812_s8 + $0x48] sm:$0xff] }
  0x4e   : > { %7519 = vrot.lane.b32.xlu0 %v7518_v58, %s14023_s5  ;;  %s14260_s5 = smov 72   ;;  %v9022_v55 = vsel %vm14202_vm1, %v8991_v41, %v9004_v49  ;;  %v7573_v26 = vpack.i.bf16 %v960_v51, %v8936_v52  ;;  %v9032_v58 = vrot.slane %v8974_v27, 4  ;;  %14264 = vst [vmem:[#allocation18_spill] sm:$0xff] %v9035_v60  ;;  %v9044_v2 = vrot.slane %v8984_v40, 3 }
  0x4f   : > { %14261 = vst [vmem:[#allocation16_spill] sm:$0xff] %v9013_v54  ;;  %v1000_v47 = vsel %vm14146_vm3, %v997_v53, %v9013_v54  ;;  %14266 = vst [vmem:[#allocation19_spill] sm:$0xff] %v9041_v63  ;;  %v9049_v52 = vsel %vm14146_vm3, %v9013_v54, %v9025_v56  ;;  %v1162_v11 = vrot.slane %v8974_v27, 6  ;;  %v14040_v14 = vrot.slane %v8984_v40, 6 }
  0x50   : > { %14263 = vst [vmem:[#allocation17_spill] sm:$0xff] %v9032_v58  ;;  %v7583_v53 = vpack.i.bf16 %v1000_v47, %v8947_v59  ;;  %v9055_v7 = vsel %vm14144_vm2, %v1077_v57, %v9032_v58  ;;  %v7578_v16 = vpack.i.bf16 %v9049_v52, %v1000_v47  ;;  %v9069_v59 = vsel %vm14098_vm0, %v9041_v63, %v9044_v2 }
  0x51   : > { %7534 = vrot.lane.b32.xlu1 %v7533_v62, %s14019_s0  ;;  %s14256_s0 = smov 48   ;;  %v7568_v62 = vpack.i.bf16 %v9022_v55, %v960_v51  ;;  %v9075_v57 = vsel %vm14098_vm0, %v1037_v61, %v9041_v63  ;;  %v1120_v21 = vrot.slane %v8974_v27, 5  ;;  %v14039_v25 = vrot.slane %v8984_v40, 5  ;;  %v9094_v61 = vld [vmem:[%s8812_s8 + $0x50] sm:$0xff] }
  0x52   : > { %7529 = vrot.lane.b32.xlu0 %v7528_v10, %s14021_s3  ;;  %s14258_s3 = smov 36   ;;  %v9060_v10 = vsel %vm14144_vm2, %v9032_v58, %v9035_v60  ;;  %v9083_v31 = vsel %vm14147_vm4, %v1160_v8, %v1162_v11  ;;  %v9088_v33 = vsel %vm14147_vm4, %v1162_v11, %v14040_v14  ;;  %v7588_v48 = vpack.i.bf16 %v9069_v59, %v9075_v57 }
  0x53   : > { %v7593_v28 = vpack.i.bf16 %v9060_v10, %v9055_v7  ;;  %v9105_v8 = vsel %vm14143_vm5, %v1120_v21, %v14039_v25  ;;  %v1204_v51 = vrot.slane %v8974_v27, 7  ;;  %v7603_v47 = vpack.i.bf16 %v9088_v33, %v9083_v31 }
  0x54   : > { %v1413_v11 = vrot.slane %v9091_v44, 7  ;;  %v7613_v13 = vpack.i.bf16 %v8984_v40, %v8974_v27  ;;  %v9181_v58 = vrot.slane %v9091_v44, 4  ;;  %v9193_v54 = vrot.slane %v9091_v44, 3 }
  0x55   : > { %7544 = vrot.lane.b32.xlu1 %v8969_v19, %s14256_s0  ;;  %v9128_v12 = vsel %vm14145_vm6, %v1202_v37, %v1204_v51  ;;  %v1585_v37 = vrot.slane %v9091_v44, 2 }
  0x56   : > { %7539 = vrot.lane.b32.xlu0 %v8977_v3, %s14258_s3 }
  0x59   : > { %7554 = vrot.lane.b32.xlu1 %v8988_v29, %s14260_s5 }
  0x5a   : > { %7549 = vrot.lane.b32.xlu0 %v8995_v34, %s14262_s9 }
  0x5d   : > { %7564 = vrot.lane.b32.xlu1 %v7563_v50, %s14027_s1  ;;  %s14267_s1 = smov 108   ;;  %v9100_v50 = vsel %vm14143_vm5, %v1118_v18, %v1120_v21  ;;  %v1387_v18 = vrot.slane %v9091_v44, 6 }
  0x5e   : > { %7559 = vrot.lane.b32.xlu0 %v9017_v38, %s14265_s27  ;;  %v7598_v21 = vpack.i.bf16 %v9105_v8, %v9100_v50 }
  0x61   : > { %7574 = vrot.lane.b32.xlu1 %v7573_v26, %s14267_s1  ;;  %v14038_v26 = vrot.slane %v8984_v40, 7 }
  0x62   : > { %7569 = vrot.lane.b32.xlu0 %v7568_v62, %s14268_s6  ;;  %v9113_v62 = vrot.slane %v9091_v44, 1 }
  0x63   : > { %v9133_v30 = vsel %vm14145_vm6, %v1204_v51, %v14038_v26 }
  0x64   : > { %v1575_v39 = vsel %vm14202_vm1, %v9004_v49, %v9113_v62  ;;  %v7608_v26 = vpack.i.bf16 %v9133_v30, %v9128_v12 }
  0x65   : > { %7584 = vrot.lane.b32.xlu1 %v7583_v53, %s14269_s26  ;;  %v1627_v53 = vrot.slane %v9094_v61, 6  ;;  %v7618_v14 = vpack.i.bf16 %v1575_v39, %v9022_v55 }
  0x66   : > { %7579 = vrot.lane.b32.xlu0 %v7578_v16, %s14270_s28  ;;  %v1635_v16 = vrot.slane %v9094_v61, 7 }
  0x67   : > { %v9145_v6 = vsel %vm14147_vm4, %v1387_v18, %v1627_v53 }
  0x68   : > { %v9148_v51 = vsel %vm14145_vm6, %v1413_v11, %v1635_v16 }
  0x69   : > { %7594 = vrot.lane.b32.xlu1 %v7593_v28, %s14256_s0  ;;  %v9123_v28 = vld [vmem:[%s8812_s8 + $0x8] sm:$0xff] }
  0x6a   : > { %7589 = vrot.lane.b32.xlu0 %v7588_v48, %s14258_s3  ;;  %v14042_v17 = vrot.slane %v9123_v28, 6  ;;  %v14043_v48 = vrot.slane %v9123_v28, 7 }
  0x6c   : > { %v9162_v27 = vsel %vm14145_vm6, %v14043_v48, %v1194_v36  ;;  %v1619_v36 = vrot.slane %v9094_v61, 5 }
  0x6d   : > { %7604 = vrot.lane.b32.xlu1 %v7603_v47, %s14260_s5  ;;  %v9155_v47 = vsel %vm14147_vm4, %v14042_v17, %v1152_v24  ;;  %v9172_v24 = vld [vmem:[%s8812_s8 + $0x58] sm:$0xff]  ;;  %v7623_v17 = vpack.i.bf16 %v9113_v62, %v1575_v39 }
  0x6e   : > { %7599 = vrot.lane.b32.xlu0 %v7598_v21, %s14262_s9  ;;  %v14049_v48 = vrot.slane %v9172_v24, 5  ;;  %v1586_v21 = vsel %vm14146_vm3, %v9025_v56, %v1585_v37  ;;  %v14050_v25 = vrot.slane %v9172_v24, 6  ;;  %v14051_v63 = vrot.slane %v9172_v24, 7 }
  0x6f   : > { %v7633_v55 = vpack.i.bf16 %v1585_v37, %v1586_v21 }
  0x70   : > { %v9200_v41 = vsel %vm14147_vm4, %v1627_v53, %v14050_v25  ;;  %v9208_v39 = vsel %vm14145_vm6, %v1635_v16, %v14051_v63  ;;  %v1597_v53 = vsel %vm14098_vm0, %v9044_v2, %v9193_v54  ;;  %v1361_v25 = vrot.slane %v9091_v44, 5 }
  0x71   : > { %7614 = vrot.lane.b32.xlu1 %v7613_v13, %s14271_s29  ;;  %v9189_v13 = vsel %vm14143_vm5, %v1619_v36, %v14049_v48  ;;  %v1608_v48 = vsel %vm14144_vm2, %v9035_v60, %v9181_v58  ;;  %v14272_v63 = vrot.slane %v8984_v40, 6  ;;  %v9240_v60 = vrot.slane %v9094_v61, 2 }
  0x72   : > { %7609 = vrot.lane.b32.xlu0 %v7608_v26, %s14265_s27  ;;  %v7643_v16 = vpack.i.bf16 %v9181_v58, %v1608_v48  ;;  %v9234_v49 = vsel %vm14143_vm5, %v1361_v25, %v1619_v36  ;;  %v7663_v36 = vpack.i.bf16 %v9094_v61, %v9091_v44 }
  0x73   : > { %v9226_v26 = vsel %vm14147_vm4, %v14272_v63, %v1387_v18  ;;  %v14274_v18 = vrot.slane %v8984_v40, 7 }
  0x75   : > { %7624 = vrot.lane.b32.xlu1 %v7623_v17, %s14268_s6  ;;  %v7628_v17 = vpack.i.bf16 %v1586_v21, %v9049_v52  ;;  %v14273_v52 = vrot.slane %v8984_v40, 5 }
  0x76   : > { %7619 = vrot.lane.b32.xlu0 %v7618_v14, %s14267_s1  ;;  %v7638_v14 = vpack.i.bf16 %v9193_v54, %v1597_v53 }
  0x77   : > { %v1362_v21 = vsel %vm14143_vm5, %v14273_v52, %v1361_v25  ;;  %v9250_v25 = vrot.slane %v9094_v61, 1  ;;  %v7678_v52 = vpack.i.bf16 %v8828_v5, %v9069_v59  ;;  %v7698_v5 = vpack.i.bf16 %v8924_v46, %v9133_v30 }
  0x78   : > { %v7648_v63 = vpack.i.bf16 %v9234_v49, %v1362_v21  ;;  %v7733_v30 = vpack.i.bf16 %v9055_v7, %v1608_v48  ;;  %v7728_v46 = vpack.i.bf16 %v9075_v57, %v1597_v53  ;;  %v9310_v7 = vrot.slane %v9094_v61, 3 }
  0x79   : > { %7634 = vrot.lane.b32.xlu1 %v7633_v55, %s14270_s28  ;;  %v7653_v55 = vpack.i.bf16 %v9145_v6, %v9226_v26  ;;  %v1650_v40 = vsel %vm14202_vm1, %v9113_v62, %v9250_v25  ;;  %v7693_v62 = vpack.i.bf16 %v8894_v35, %v9088_v33  ;;  %v1027_v57 = vrot.slane %v9123_v28, 3 }
  0x7a   : > { %7629 = vrot.lane.b32.xlu0 %v7628_v17, %s14269_s26  ;;  %v9247_v17 = vsel %vm14145_vm6, %v14274_v18, %v1413_v11  ;;  %v7668_v44 = vpack.i.bf16 %v9250_v25, %v1650_v40  ;;  %v7753_v33 = vpack.i.bf16 %v9083_v31, %v9226_v26  ;;  %v9321_v48 = vrot.slane %v9094_v61, 4 }
  0x7b   : > { %v7763_v31 = vpack.i.bf16 %v9128_v12, %v9247_v17 }
  0x7c   : > { %v1683_v61 = vsel %vm14144_vm2, %v9181_v58, %v9321_v48 }
  0x7d   : > { %7644 = vrot.lane.b32.xlu1 %v7643_v16, %s14256_s0  ;;  %v1661_v16 = vsel %vm14146_vm3, %v1585_v37, %v9240_v60  ;;  %v7683_v37 = vpack.i.bf16 %v8866_v22, %v9060_v10  ;;  %v9289_v22 = vld [vmem:[%s8812_s8] sm:$0xff]  ;;  %v7743_v10 = vpack.i.bf16 %v9100_v50, %v1362_v21  ;;  %v1067_v50 = vrot.slane %v9123_v28, 4 }
  0x7e   : > { %7639 = vrot.lane.b32.xlu0 %v7638_v14, %s14258_s3  ;;  %v7658_v14 = vpack.i.bf16 %v9148_v51, %v9247_v17  ;;  %v7673_v11 = vpack.i.bf16 %v9240_v60, %v1661_v16  ;;  %v946_v35 = vrot.slane %v9289_v22, 1  ;;  %v1026_v59 = vrot.slane %v9289_v22, 3 }
  0x80   : > { %v1028_v21 = vsel %vm14098_vm0, %v1026_v59, %v1027_v57 }
  0x81   : > { %7654 = vrot.lane.b32.xlu1 %v7653_v55, %s14260_s5  ;;  %v7688_v55 = vpack.i.bf16 %v8911_v43, %v9105_v8  ;;  %v947_v43 = vrot.slane %v9123_v28, 1  ;;  %v1066_v8 = vrot.slane %v9289_v22, 4 }
  0x82   : > { %7649 = vrot.lane.b32.xlu0 %v7648_v63, %s14262_s9  ;;  %v1672_v63 = vsel %vm14098_vm0, %v9193_v54, %v9310_v7  ;;  %v9342_v54 = vrot.slane %v9172_v24, 2 }
  0x83   : > { %v1068_v26 = vsel %vm14144_vm2, %v1066_v8, %v1067_v50  ;;  %v7758_v18 = vpack.i.bf16 %v1672_v63, %v1028_v21 }
  0x84   : > { %14277 = vst [vmem:[#allocation20_spill] sm:$0xff] %v9342_v54  ;;  %v7773_v12 = vpack.i.bf16 %v1683_v61, %v1068_v26 }
  0x85   : > { %7664 = vrot.lane.b32.xlu1 %v7663_v36, %s14271_s29  ;;  %v14276_v36 = vrot.slane %v8823_v4, 3 }
  0x86   : > { %7659 = vrot.lane.b32.xlu0 %v7658_v14, %s14265_s27  ;;  %v14278_v14 = vrot.slane %v8823_v4, 4 }
  0x88   : > { %v9350_v58 = vsel %vm14144_vm2, %v1067_v50, %v14278_v14  ;;  %v14284_v50 = vrot.slane %v8823_v4, 1 }
  0x89   : > { %7674 = vrot.lane.b32.xlu1 %v7673_v11, %s14269_s26  ;;  %v1108_v11 = vrot.slane %v9123_v28, 5 }
  0x8a   : > { %7669 = vrot.lane.b32.xlu0 %v7668_v44, %s14267_s1 }
  0x8d   : > { %7684 = vrot.lane.b32.xlu1 %v7683_v37, %s14057_s30  ;;  %s14065_s30 = smov 52  }
  0x8e   : > { %7679 = vrot.lane.b32.xlu0 %v7678_v52, %s14063_s25 }
  0x91   : > { %7694 = vrot.lane.b32.xlu1 %v7693_v62, %s14059_s24  ;;  %v9363_v62 = vrot.slane %v9172_v24, 1 }
  0x92   : > { %7689 = vrot.lane.b32.xlu0 %v7688_v55, %s14061_s4  ;;  %v14281_v55 = vrot.slane %v8823_v4, 2 }
  0x93   : > { %14280 = vst [vmem:[#allocation21_spill] sm:$0xff] %v9363_v62  ;;  %v1764_v21 = vsel %vm14202_vm1, %v9250_v25, %v9363_v62 }
  0x95   : > { %7704 = vrot.lane.b32.xlu1 %v8977_v3, %s14063_s25  ;;  %v948_v3 = vsel %vm14202_vm1, %v946_v35, %v947_v43  ;;  %v1775_v35 = vsel %vm14146_vm3, %v9240_v60, %v9342_v54  ;;  %v14282_v60 = vrot.slane %v8823_v4, 5 }
  0x96   : > { %7699 = vrot.lane.b32.xlu0 %v7698_v5, %s14065_s30 }
  0x99   : > { %7714 = vrot.lane.b32.xlu1 %v8995_v34, %s14061_s4  ;;  %v987_v34 = vrot.slane %v9123_v28, 2 }
  0x9a   : > { %7709 = vrot.lane.b32.xlu0 %v8969_v19, %s14275_s22  ;;  %v986_v19 = vrot.slane %v9289_v22, 2 }
  0x9b   : > { %v990_v5 = vsel %vm14146_vm3, %v987_v34, %v14281_v55  ;;  %v9433_v55 = vrot.slane %v9172_v24, 3 }
  0x9d   : > { %7724 = vrot.lane.b32.xlu1 %v9017_v38, %s14065_s30  ;;  %v7738_v38 = vpack.i.bf16 %v1650_v40, %v948_v3  ;;  %v1107_v40 = vrot.slane %v9289_v22, 5  ;;  %14285 = vst [vmem:[#allocation22_spill] sm:$0xff] %v9433_v55 }
  0x9e   : > { %7719 = vrot.lane.b32.xlu0 %v8988_v29, %s14059_s24  ;;  %v988_v29 = vsel %vm14146_vm3, %v986_v19, %v987_v34 }
  0x9f   : > { %v7748_v53 = vpack.i.bf16 %v1661_v16, %v988_v29  ;;  %v9339_v16 = vsel %vm14098_vm0, %v1027_v57, %v14276_v36  ;;  %v1111_v29 = vsel %vm14143_vm5, %v1108_v11, %v14282_v60  ;;  %v7778_v57 = vpack.i.bf16 %v1775_v35, %v990_v5 }
  0xa0   : > { %v7768_v44 = vpack.i.bf16 %v9339_v16, %v1672_v63  ;;  %v1191_v5 = vrot.slane %v9289_v22, 7 }
  0xa1   : > { %7734 = vrot.lane.b32.xlu1 %v7733_v30, %s14275_s22 }
  0xa2   : > { %7729 = vrot.lane.b32.xlu0 %v7728_v46, %s14063_s25  ;;  %s14279_s25 = sld [smem:[#allocation75_spill]] }
  0xa5   : > { %7744 = vrot.lane.b32.xlu1 %v7743_v10, %s14061_s4  ;;  %v7783_v10 = vpack.i.bf16 %v9350_v58, %v1683_v61  ;;  %s8624_s4 = smov 56  }
  0xa6   : > { %7739 = vrot.lane.b32.xlu0 %v7738_v38, %s14268_s6  ;;  %v1109_v38 = vsel %vm14143_vm5, %v1107_v40, %v1108_v11  ;;  %v1149_v40 = vrot.slane %v9289_v22, 6 }
  0xa7   : > { %v7793_v61 = vpack.i.bf16 %v1111_v29, %v1109_v38 }
  0xa8   : > { %v799_v37 = vld [vmem:[%s14279_s25 + $0x80] sm:$0xff]  ;;  %v800_v52 = vld [vmem:[%s14279_s25 + $0x88] sm:$0xff]  ;;  %v802_v8 = vld [vmem:[%s14279_s25 + $0x98] sm:$0xff] }
  0xa9   : > { %7754 = vrot.lane.b32.xlu1 %v7753_v33, %s14059_s24  ;;  %v6866_v30 = vpack.c.bf16 %v800_v52, %v799_v37  ;;  %v783_v46 = vld [vmem:[%s14279_s25] sm:$0xff]  ;;  %v784_v3 = vld [vmem:[%s14279_s25 + $0x8] sm:$0xff]  ;;  %v801_v33 = vld [vmem:[%s14279_s25 + $0x90] sm:$0xff]  ;;  %s14823_s24 = sld [smem:[#allocation89_spill]] }
  0xaa   : > { %7749 = vrot.lane.b32.xlu0 %v7748_v53, %s14270_s28  ;;  %v6868_v34 = vpack.c.bf16 %v784_v3, %v783_v46  ;;  %v950_v53 = vsel %vm14202_vm1, %v947_v43, %v14284_v50  ;;  %v785_v63 = vld [vmem:[%s14279_s25 + $0x10] sm:$0xff]  ;;  %v804_v14 = vld [vmem:[%s14279_s25 + $0xa8] sm:$0xff]  ;;  %v787_v11 = vld [vmem:[%s14279_s25 + $0x20] sm:$0xff] }
  0xab   : > { %6867 = vmatprep.subr.bf16.mxu0 %v6866_v30  ;;  %v9414_v25 = vpack.i.bf16 %v1764_v21, %v950_v53  ;;  %v7798_v30 = vpack.i.bf16 %v1111_v29, %v9234_v49  ;;  %v805_v3 = vld [vmem:[%s14279_s25 + $0xb0] sm:$0xff]  ;;  %v790_v49 = vld [vmem:[%s14279_s25 + $0x38] sm:$0xff]  ;;  %v9462_v29 = vsel %vm14098_vm0, %v9310_v7, %v9433_v55 }
  0xac   : > { %6869 = vmatpush3.bf16.msra.mxu0 %v6868_v34  ;;  %v14286_v34 = vrot.slane %v9123_v28, 6  ;;  %v789_v38 = vld [vmem:[%s14279_s25 + $0x30] sm:$0xff] }
  0xad   : > { %7764 = vrot.lane.b32.xlu1 %v7763_v31, %s14065_s30  ;;  %v786_v31 = vld [vmem:[%s14279_s25 + $0x18] sm:$0xff]  ;;  %s8625_s30 = smov 104  }
  0xae   : > { %7759 = vrot.lane.b32.xlu0 %v7758_v18, %s14258_s3  ;;  %v6870_v18 = vpack.c.bf16 %v802_v8, %v801_v33  ;;  %v6872_v36 = vpack.c.bf16 %v786_v31, %v785_v63  ;;  %v1151_v22 = vsel %vm14147_vm4, %v1149_v40, %v14286_v34  ;;  %v14287_v8 = vrot.slane %v9123_v28, 7 }
  0xaf   : > { %v9345_v17 = vpop.permute.xlu1 %7489  ;;  %v7808_v31 = vpack.i.bf16 %v9155_v47, %v1151_v22  ;;  %v810_v22 = vld [vmem:[%s14279_s25 + $0xd8] sm:$0xff] }
  0xb0   : > { %v9377_v19 = vpop.permute.xlu0 %7479  ;;  %6871 = vmatprep.subr.bf16.mxu0 %v6870_v18  ;;  %v1193_v50 = vsel %vm14145_vm6, %v1191_v5, %v14287_v8  ;;  %v807_v18 = vld [vmem:[%s14279_s25 + $0xc0] sm:$0xff]  ;;  %v7492_v5 = vunpack.i.h.bf16 %v9345_v17 }
  0xb1   : > { %7774 = vrot.lane.b32.xlu1 %v7773_v12, %s14256_s0  ;;  %v803_v12 = vld [vmem:[%s14279_s25 + $0xa0] sm:$0xff]  ;;  %6873 = vmatpush3.bf16.msra.mxu0 %v6872_v36  ;;  %v7481_v33 = vunpack.i.l.bf16 %v9377_v19  ;;  %v7482_v21 = vunpack.i.h.bf16 %v9377_v19  ;;  %v808_v19 = vld [vmem:[%s14279_s25 + $0xc8] sm:$0xff] }
  0xb2   : > { %7769 = vrot.lane.b32.xlu0 %v7768_v44, %s14283_s23  ;;  %v788_v44 = vld [vmem:[%s14279_s25 + $0x28] sm:$0xff]  ;;  %v6874_v52 = vpack.c.bf16 %v804_v14, %v803_v12  ;;  %v791_v12 = vld [vmem:[%s14279_s25 + $0x40] sm:$0xff] }
  0xb3   : > { %v9386_v59 = vpop.permute.xlu1 %7494  ;;  %v6876_v46 = vpack.c.bf16 %v788_v44, %v787_v11  ;;  %v792_v14 = vld [vmem:[%s14279_s25 + $0x48] sm:$0xff]  ;;  %v7823_v11 = vpack.i.bf16 %v9162_v27, %v1193_v50  ;;  %v7818_v44 = vpack.i.bf16 %v9462_v29, %v9339_v16 }
  0xb4   : > { %v9408_v26 = vpop.permute.xlu0 %7484  ;;  %6875 = vmatprep.subr.bf16.mxu0 %v6874_v52  ;;  %v9497_v52 = vld [vmem:[%s8812_s8 + $0x60] sm:$0xff]  ;;  %v6884_v34 = vpack.c.bf16 %v792_v14, %v791_v12  ;;  %v7496_v8 = vunpack.i.l.bf16 %v9386_v59 }
  0xb5   : > { %7784 = vrot.lane.b32.xlu1 %v7783_v10, %s14275_s22  ;;  %v806_v10 = vld [vmem:[%s14279_s25 + $0xb8] sm:$0xff]  ;;  %6877 = vmatpush3.bf16.msra.mxu0 %v6876_v46  ;;  %v7486_v63 = vunpack.i.l.bf16 %v9408_v26  ;;  %v7487_v36 = vunpack.i.h.bf16 %v9408_v26  ;;  %v14290_v26 = vpack.i.bf16 %v9155_v47, %v9145_v6  ;;  %v1442_v46 = vsel %vm14119_vm7, %v8823_v4, %v7481_v33 }
  0xb6   : > { %7779 = vrot.lane.b32.xlu0 %v7778_v57, %s14269_s26  ;;  %v6878_v53 = vpack.c.bf16 %v806_v10, %v805_v3  ;;  %v9504_v3 = vrot.slane %v9172_v24, 4  ;;  %v1443_v6 = vsel %vm14119_vm7, %v8815_v0, %v7482_v21  ;;  %v6882_v10 = vpack.c.bf16 %v808_v19, %v807_v18  ;;  %v794_v33 = vld [vmem:[%s14279_s25 + $0x58] sm:$0xff]  ;;  %v812_v19 = vld [vmem:[%s14279_s25 + $0xe8] sm:$0xff] }
  0xb7   : > { %v9412_v43 = vpop.permute.xlu1 %7504  ;;  %v1451_v47 = vsel %vm14118_vm8, %v1442_v46, %v7486_v63  ;;  %v1452_v0 = vsel %vm14118_vm8, %v1443_v6, %v7487_v36 }
  0xb8   : > { %v9429_v37 = vpop.permute.xlu0 %7499  ;;  %6879 = vmatprep.subr.bf16.mxu0 %v6878_v53  ;;  %14291 = vst [vmem:[#allocation23_spill] sm:$0xff] %v9504_v3  ;;  %v9532_v53 = vrot.slane %v9497_v52, 2  ;;  %v9544_v36 = vsel %vm14144_vm2, %v9321_v48, %v9504_v3 }
  0xb9   : > { %7794 = vrot.lane.b32.xlu1 %v7793_v61, %s14262_s9  ;;  %v6880_v61 = vpack.c.bf16 %v790_v49, %v789_v38  ;;  %v7833_v38 = vpack.i.bf16 %v8836_v9, %v9462_v29  ;;  %v793_v49 = vld [vmem:[%s14279_s25 + $0x50] sm:$0xff]  ;;  %v7497_v29 = vunpack.i.h.bf16 %v9386_v59  ;;  %v811_v59 = vld [vmem:[%s14279_s25 + $0xe0] sm:$0xff]  ;;  %v7501_v12 = vunpack.i.l.bf16 %v9429_v37 }
  0xba   : > { %7789 = vrot.lane.b32.xlu0 %v9414_v25, %s14268_s6  ;;  %14293 = vst [vmem:[#allocation25_spill] sm:$0xff] %v9532_v53  ;;  %v6888_v63 = vpack.c.bf16 %v794_v33, %v793_v49  ;;  %v7853_v49 = vpack.i.bf16 %v8860_v20, %v9544_v36  ;;  %v797_v20 = vld [vmem:[%s14279_s25 + $0x70] sm:$0xff] }
  0xbb   : > { %v9438_v35 = vpop.permute.xlu1 %7514  ;;  %6881 = vmatpush3.bf16.msra.mxu0 %v6880_v61 }
  0xbc   : > { %v9456_v60 = vpop.permute.xlu0 %7509  ;;  %6883 = vmatprep.subr.bf16.mxu0 %v6882_v10  ;;  %v7838_v10 = vpack.i.bf16 %v9544_v36, %v9350_v58  ;;  %v813_v58 = vld [vmem:[%s14279_s25 + $0xf0] sm:$0xff] }
  0xbd   : > { %7804 = vrot.lane.b32.xlu1 %v7778_v57, %s14270_s28  ;;  %v7511_v33 = vunpack.i.l.bf16 %v9456_v60 }
  0xbe   : > { %7799 = vrot.lane.b32.xlu0 %v7798_v30, %s14288_s18  ;;  %v7491_v30 = vunpack.i.l.bf16 %v9345_v17  ;;  %v809_v17 = vld [vmem:[%s14279_s25 + $0xd0] sm:$0xff] }
  0xbf   : > { %v9471_v57 = vpop.permute.xlu1 %7524  ;;  %v6886_v9 = vpack.c.bf16 %v810_v22, %v809_v17  ;;  %6885 = vmatpush3.bf16.msra.mxu0 %v6884_v34  ;;  %v7507_v34 = vunpack.i.h.bf16 %v9412_v43  ;;  %v7506_v17 = vunpack.i.l.bf16 %v9412_v43  ;;  %v814_v43 = vld [vmem:[%s14279_s25 + $0xf8] sm:$0xff] }
  0xc0   : > { %v9487_v40 = vpop.permute.xlu0 %7519  ;;  %v1460_v21 = vsel %vm14081_vm9, %v1451_v47, %v7491_v30 }
  0xc1   : > { %7814 = vrot.lane.b32.xlu1 %v14290_v26, %s14289_s21  ;;  %v7521_v61 = vunpack.i.l.bf16 %v9487_v40  ;;  %6887 = vmatprep.subr.bf16.mxu0 %v6886_v9  ;;  %v7843_v26 = vpack.i.bf16 %v8823_v4, %v9123_v28  ;;  %v1469_v30 = vsel %vm14073_vm10, %v1460_v21, %v7496_v8  ;;  %v9570_v4 = vsel %vm14146_vm3, %v9342_v54, %v9532_v53  ;;  %v798_v8 = vld [vmem:[%s14279_s25 + $0x78] sm:$0xff] }
  0xc2   : > { %7809 = vrot.lane.b32.xlu0 %v7808_v31, %s14260_s5  ;;  %v1461_v31 = vsel %vm14081_vm9, %v1452_v0, %v7492_v5  ;;  %v7502_v5 = vunpack.i.h.bf16 %v9429_v37  ;;  %v6890_v28 = vpack.c.bf16 %v812_v19, %v811_v59  ;;  %v6896_v59 = vpack.c.bf16 %v798_v8, %v797_v20 }
  0xc3   : > { %v9510_v16 = vpop.permute.xlu1 %7534  ;;  %v1470_v6 = vsel %vm14073_vm10, %v1461_v31, %v7497_v29  ;;  %6889 = vmatpush3.bf16.msra.mxu0 %v6888_v63  ;;  %v1444_v22 = vsel %vm14119_vm7, %v8818_v1, %v7521_v61  ;;  %v1478_v1 = vsel %vm1475_vm11, %v1469_v30, %v7501_v12  ;;  %v7512_v29 = vunpack.i.h.bf16 %v9456_v60 }
  0xc4   : > { %14292 = vst [vmem:[#allocation24_spill] sm:$0xff] %v9510_v16  ;;  %v9528_v50 = vpop.permute.xlu0 %7529  ;;  %6891 = vmatprep.subr.bf16.mxu0 %v6890_v28  ;;  %v1479_v9 = vsel %vm1475_vm11, %v1470_v6, %v7502_v5  ;;  %v6894_v31 = vpack.c.bf16 %v814_v43, %v813_v58  ;;  %v9611_v61 = vrot.slane %v9497_v52, 1  ;;  %v7517_v19 = vunpack.i.h.bf16 %v9438_v35  ;;  %v9627_v28 = vld [vmem:[%s8812_s8 + $0x68] sm:$0xff] }
  0xc5   : > { %7824 = vrot.lane.b32.xlu1 %v7823_v11, %s14265_s27  ;;  %v7531_v14 = vunpack.i.l.bf16 %v9528_v50  ;;  %v795_v11 = vld [vmem:[%s14279_s25 + $0x60] sm:$0xff]  ;;  %v7516_v60 = vunpack.i.l.bf16 %v9438_v35  ;;  %v1487_v12 = vsel %vm1484_vm12, %v1478_v1, %v7506_v17  ;;  %v7527_v6 = vunpack.i.h.bf16 %v9471_v57 }
  0xc6   : > { %7819 = vrot.lane.b32.xlu0 %v7818_v44, %s14258_s3  ;;  %v796_v44 = vld [vmem:[%s14279_s25 + $0x68] sm:$0xff]  ;;  %14296 = vst [vmem:[#allocation26_spill] sm:$0xff] %v9611_v61  ;;  %v14297_v20 = vpack.i.bf16 %v8908_v42, %v9189_v13  ;;  %v1816_v42 = vrot.slane %v9497_v52, 6  ;;  %v14321_v54 = vrot.slane %v9627_v28, 5 }
  0xc7   : > { %v9539_v18 = vpop.permute.xlu1 %7544  ;;  %v6892_v37 = vpack.c.bf16 %v796_v44, %v795_v11  ;;  %v1488_v11 = vsel %vm1484_vm12, %v1479_v9, %v7507_v34  ;;  %v1496_v44 = vsel %vm1493_vm13, %v1487_v12, %v7511_v33  ;;  %v14076_v34 = vunpack.i.l.bf16 %v9510_v16 }
  0xc8   : > { %v9564_v46 = vpop.permute.xlu0 %7539  ;;  %v1497_v35 = vsel %vm1493_vm13, %v1488_v11, %v7512_v29  ;;  %v1505_v43 = vsel %vm1502_vm14, %v1496_v44, %v7516_v60  ;;  %v1839_v29 = vsel %vm14202_vm1, %v9363_v62, %v9611_v61  ;;  %v14301_v60 = vrot.slane %v9172_v24, 5 }
  0xc9   : > { %7834 = vrot.lane.b32.xlu1 %v7833_v38, %s14283_s23  ;;  %v7541_v47 = vunpack.i.l.bf16 %v9564_v46  ;;  %v14295_v38 = vpack.i.bf16 %v9162_v27, %v9148_v51  ;;  %v1453_v51 = vsel %vm14118_vm8, %v1444_v22, %v7531_v14  ;;  %v7546_v27 = vunpack.i.l.bf16 %v9539_v18  ;;  %6893 = vmatpush3.bf16.msra.mxu0 %v6892_v37 }
  0xca   : > { %6895 = vmatprep.subr.bf16.mxu0 %v6894_v31  ;;  %v14075_v37 = vunpack.i.h.bf16 %v9510_v16  ;;  %v1506_v1 = vsel %vm1502_vm14, %v1497_v35, %v7517_v19  ;;  %v14302_v11 = vpack.i.bf16 %v8888_v32, %v9200_v41  ;;  %v14304_v35 = vrot.slane %v9172_v24, 6 }
  0xcb   : > { %7829 = vrot.lane.b32.xlu0 %v14295_v38, %s14294_s16  ;;  %v9584_v0 = vpop.permute.xlu1 %7554  ;;  %v1462_v21 = vsel %vm14081_vm9, %v1453_v51, %v7541_v47  ;;  %v7526_v47 = vunpack.i.l.bf16 %v9471_v57  ;;  %v9643_v57 = vrot.slane %v9627_v28, 1  ;;  %v1808_v38 = vrot.slane %v9497_v52, 5 }
  0xcc   : > { %v9607_v63 = vpop.permute.xlu0 %7549  ;;  %v7556_v5 = vunpack.i.l.bf16 %v9584_v0  ;;  %v1471_v30 = vsel %vm14073_vm10, %v1462_v21, %v7546_v27  ;;  %vm1520_vm10 = vcmask 982016   ;;  %v1515_v9 = vsel %vm14222_vm15, %v1506_v1, %v7527_v6 }
  0xcd   : > { %7844 = vrot.lane.b32.xlu1 %v7843_v26, %s14271_s29  ;;  %v7551_v36 = vunpack.i.l.bf16 %v9607_v63  ;;  %v7848_v26 = vpack.i.bf16 %v9570_v4, %v8871_v23  ;;  %6897 = vmatpush3.bf16.msra.mxu0 %v6896_v59  ;;  %v1514_v8 = vsel %vm14222_vm15, %v1505_v43, %v7526_v47  ;;  %v9671_v31 = vsel %vm1520_vm10, %v1515_v9, %v14075_v37 }
  0xce   : > { %v9666_v21 = vsel %vm1520_vm10, %v1514_v8, %v14076_v34  ;;  %14299 = vst [vmem:[#allocation28_spill] sm:$0xff] %v9671_v31  ;;  %v9685_v12 = vsel %vm14143_vm5, %v14301_v60, %v1808_v38  ;;  %v9705_v6 = vsel %vm14147_vm4, %v14304_v35, %v1816_v42  ;;  %v9725_v43 = vrot.slane %v9627_v28, 2  ;;  %v9811_v34 = vld [vmem:[%s8812_s8 + $0x70] sm:$0xff] }
  0xcf   : > { %7839 = vrot.lane.b32.xlu0 %v7838_v10, %s14256_s0  ;;  %v9618_v14 = vpop.permute.xlu1 %7564  ;;  %v1480_v10 = vsel %vm1475_vm11, %v1471_v30, %v7551_v36  ;;  %14298 = vst [vmem:[#allocation27_spill] sm:$0xff] %v9666_v21  ;;  %v7878_v47 = vpack.i.bf16 %v9685_v12, %v9189_v13  ;;  %v9728_v1 = vrot.slane %v9497_v52, 4  ;;  %v9731_v13 = vrot.slane %v9627_v28, 4 }
  0xd0   : > { %v9633_v23 = vpop.permute.xlu0 %7559  ;;  %v1489_v58 = vsel %vm1484_vm12, %v1480_v10, %v7556_v5  ;;  %v7883_v5 = vpack.i.bf16 %v9643_v57, %v1839_v29  ;;  %v9714_v10 = vrot.slane %v9497_v52, 3  ;;  %v7903_v9 = vpack.i.bf16 %v9725_v43, %v9570_v4 }
  0xd1   : > { %7854 = vrot.lane.b32.xlu1 %v7853_v49, %s14275_s22  ;;  %v7561_v17 = vunpack.i.l.bf16 %v9633_v23  ;;  %v7566_v49 = vunpack.i.l.bf16 %v9618_v14  ;;  %14306 = vst [vmem:[#allocation32_spill] sm:$0xff] %v9728_v1  ;;  %v9756_v60 = vsel %vm14144_vm2, %v9728_v1, %v9731_v13  ;;  %v14311_v4 = vrot.slane %v9172_v24, 7 }
  0xd2   : > { %14305 = vst [vmem:[#allocation31_spill] sm:$0xff] %v9714_v10 }
  0xd3   : > { %7849 = vrot.lane.b32.xlu0 %v7848_v26, %s14269_s26  ;;  %v9640_v22 = vpop.permute.xlu1 %7574  ;;  %v1498_v33 = vsel %vm1493_vm13, %v1489_v58, %v7561_v17  ;;  %v9717_v17 = vrot.slane %v9627_v28, 3  ;;  %v7893_v58 = vpack.i.bf16 %v9705_v6, %v9200_v41 }
  0xd4   : > { %v7576_v51 = vunpack.i.l.bf16 %v9640_v22  ;;  %v9652_v27 = vpop.permute.xlu0 %7569  ;;  %v1507_v19 = vsel %vm1502_vm14, %v1498_v33, %v7566_v49 }
  0xd5   : > { %7864 = vrot.lane.b32.xlu1 %v14297_v20, %s14288_s18  ;;  %v9742_v41 = vsel %vm14098_vm0, %v9714_v10, %v9717_v17  ;;  %v1824_v20 = vrot.slane %v9497_v52, 7 }
  0xd6   : > { %v1516_v44 = vsel %vm14222_vm15, %v1507_v19, %v7576_v51  ;;  %v1861_v51 = vsel %vm14098_vm0, %v9433_v55, %v9714_v10  ;;  %v1872_v19 = vsel %vm14144_vm2, %v9504_v3, %v9728_v1  ;;  %v8520_v1 = vld [vmem:[%s8812_s8 + $0x30] sm:$0xff] }
  0xd7   : > { %7859 = vrot.lane.b32.xlu0 %v9414_v25, %s14267_s1  ;;  %v9676_v36 = vpop.permute.xlu1 %7584  ;;  %v7868_v25 = vpack.i.bf16 %v9671_v31, %v9666_v21  ;;  %v8519_v21 = vld [vmem:[%s8812_s8 + $0x38] sm:$0xff] }
  0xd8   : > { %14300 = vst [vmem:[#allocation29_spill] sm:$0xff] %v9676_v36  ;;  %v14074_v59 = vunpack.i.l.bf16 %v9676_v36  ;;  %v9687_v26 = vpop.permute.xlu0 %7579 }
  0xd9   : > { %7874 = vrot.lane.b32.xlu1 %v14302_v11, %s14289_s21  ;;  %v14309_v11 = vpack.i.bf16 %v8919_v45, %v9208_v39 }
  0xda   : > { %v9700_v30 = vsel %vm1520_vm10, %v1516_v44, %v14074_v59  ;;  %v7898_v44 = vpack.i.bf16 %v9742_v41, %v1861_v51  ;;  %v7923_v59 = vpack.i.bf16 %v1839_v29, %v8850_v15  ;;  %v7918_v15 = vpack.i.bf16 %v9717_v17, %v1861_v51 }
  0xdb   : > { %14303 = vst [vmem:[#allocation30_spill] sm:$0xff] %v9700_v30  ;;  %7869 = vrot.lane.b32.xlu0 %v7868_v25, %s8616_s17  ;;  %v9708_v32 = vpop.permute.xlu1 %7594  ;;  %2967 = vmatprep.mubr.f32.mxu1 %v9700_v30 }
  0xdc   : > { %v9719_v49 = vpop.permute.xlu0 %7589 }
  0xdd   : > { %7884 = vrot.lane.b32.xlu1 %v7883_v5, %s14268_s6  ;;  %v1825_v5 = vsel %vm14145_vm6, %v14311_v4, %v1824_v20  ;;  %v7592_v55 = vunpack.i.h.bf16 %v9719_v49  ;;  %v7591_v62 = vunpack.i.l.bf16 %v9719_v49 }
  0xdf   : > { %7879 = vrot.lane.b32.xlu0 %v7878_v47, %s14262_s9  ;;  %v9734_v33 = vpop.permute.xlu1 %7604  ;;  %v7913_v47 = vpack.i.bf16 %v9756_v60, %v1872_v19 }
  0xe0   : > { %14307 = vst [vmem:[#allocation33_spill] sm:$0xff] %v9734_v33  ;;  %v9745_v8 = vpop.permute.xlu0 %7599 }
  0xe1   : > { %14308 = vst [vmem:[#allocation34_spill] sm:$0xff] %v9745_v8  ;;  %7894 = vrot.lane.b32.xlu1 %v7893_v58, %s14260_s5  ;;  %v14077_v58 = vrot.slane %v9627_v28, 5 }
  0xe3   : > { %7889 = vrot.lane.b32.xlu0 %v14309_v11, %s14294_s16  ;;  %v9762_v25 = vpop.permute.xlu1 %7614  ;;  %v7908_v11 = vpack.i.bf16 %v1825_v5, %v9208_v39 }
  0xe4   : > { %14310 = vst [vmem:[#allocation35_spill] sm:$0xff] %v9762_v25  ;;  %v9768_v35 = vpop.permute.xlu0 %7609 }
  0xe5   : > { %14312 = vst [vmem:[#allocation36_spill] sm:$0xff] %v9768_v35  ;;  %7904 = vrot.lane.b32.xlu1 %v7903_v9, %s14270_s28  ;;  %v9786_v9 = vsel %vm14143_vm5, %v1808_v38, %v14077_v58  ;;  %v7542_v58 = vunpack.i.h.bf16 %v9564_v46 }
  0xe6   : > { %v7933_v29 = vpack.i.bf16 %v9786_v9, %v9685_v12  ;;  %v7532_v12 = vunpack.i.h.bf16 %v9528_v50 }
  0xe7   : > { %7899 = vrot.lane.b32.xlu0 %v7898_v44, %s14283_s23  ;;  %v9774_v45 = vpop.permute.xlu1 %7624  ;;  %v14079_v44 = vrot.slane %v9627_v28, 6 }
  0xe8   : > { %v9778_v37 = vpop.permute.xlu0 %7619 }
  0xe9   : > { %7914 = vrot.lane.b32.xlu1 %v7913_v47, %s14275_s22  ;;  %v9801_v38 = vsel %vm14147_vm4, %v1816_v42, %v14079_v44  ;;  %v14080_v47 = vrot.slane %v9627_v28, 7 }
  0xeb   : > { %7909 = vrot.lane.b32.xlu0 %v7908_v11, %s14265_s27  ;;  %v9790_v4 = vpop.permute.xlu1 %7634  ;;  %v7522_v11 = vunpack.i.h.bf16 %v9487_v40  ;;  %v7943_v40 = vpack.i.bf16 %v9801_v38, %v9705_v6  ;;  %v9823_v42 = vsel %vm14145_vm6, %v1824_v20, %v14080_v47  ;;  %v7547_v6 = vunpack.i.h.bf16 %v9539_v18 }
  0xec   : > { %v9793_v39 = vpop.permute.xlu0 %7629  ;;  %v7552_v20 = vunpack.i.h.bf16 %v9607_v63  ;;  %v7557_v63 = vunpack.i.h.bf16 %v9584_v0  ;;  %v7567_v0 = vunpack.i.h.bf16 %v9618_v14 }
  0xed   : > { %14313 = vst [vmem:[#allocation37_spill] sm:$0xff] %v9793_v39  ;;  %7924 = vrot.lane.b32.xlu1 %v7923_v59, %s14267_s1  ;;  %v7928_v59 = vpack.i.bf16 %v9497_v52, %v9172_v24  ;;  %v9826_v24 = vrot.slane %v9811_v34, 2  ;;  %v8518_v52 = vld [vmem:[%s8812_s8 + $0x28] sm:$0xff] }
  0xee   : > { %v1445_v50 = vsel %vm14119_vm7, %v8518_v52, %v7522_v11  ;;  %v7948_v11 = vpack.i.bf16 %v9823_v42, %v1825_v5  ;;  %v1953_v5 = vsel %vm14202_vm1, %v9611_v61, %v9643_v57  ;;  %v7601_v61 = vunpack.i.l.bf16 %v9745_v8 }
  0xef   : > { %7919 = vrot.lane.b32.xlu0 %v7918_v15, %s14258_s3  ;;  %v9806_v51 = vpop.permute.xlu1 %7644  ;;  %v7938_v15 = vpack.i.bf16 %v9731_v13, %v1872_v19  ;;  %v9848_v19 = vsel %vm14146_vm3, %v9725_v43, %v9826_v24 }
  0xf0   : > { %v9815_v3 = vpop.permute.xlu0 %7639 }
  0xf1   : > { %7934 = vrot.lane.b32.xlu1 %v7933_v29, %s14288_s18  ;;  %v1454_v29 = vsel %vm14118_vm8, %v1445_v50, %v7532_v12 }
  0xf2   : > { %v1463_v44 = vsel %vm14081_vm9, %v1454_v29, %v7542_v58  ;;  %vm14314_vm9 = vcmask 392192   ;;  %v7577_v29 = vunpack.i.h.bf16 %v9640_v22 }
  0xf3   : > { %7929 = vrot.lane.b32.xlu0 %v7928_v59, %s14271_s29  ;;  %v9831_v46 = vpop.permute.xlu1 %7654  ;;  %v1964_v59 = vsel %vm14146_vm3, %v9532_v53, %v9725_v43  ;;  %v1472_v58 = vsel %vm14314_vm9, %v1463_v44, %v7547_v6  ;;  %vm14324_vm9 = vcmask 293888  }
  0xf4   : > { %v9838_v47 = vpop.permute.xlu0 %7649  ;;  %v1481_v12 = vsel %vm1475_vm11, %v1472_v58, %v7552_v20  ;;  %v7953_v43 = vpack.i.bf16 %v9848_v19, %v1964_v59  ;;  %v9876_v20 = vrot.slane %v9811_v34, 3 }
  0xf5   : > { %7944 = vrot.lane.b32.xlu1 %v7943_v40, %s14289_s21  ;;  %v7562_v40 = vunpack.i.h.bf16 %v9633_v23  ;;  %v1490_v44 = vsel %vm1484_vm12, %v1481_v12, %v7557_v63  ;;  %v14082_v23 = vunpack.i.h.bf16 %v9676_v36  ;;  %v9883_v63 = vrot.slane %v9811_v34, 1 }
  0xf7   : > { %7939 = vrot.lane.b32.xlu0 %v7938_v15, %s14256_s0  ;;  %v9851_v18 = vpop.permute.xlu1 %7664  ;;  %v1499_v15 = vsel %vm1493_vm13, %v1490_v44, %v7562_v40  ;;  %v9901_v40 = vrot.slane %v9811_v34, 4  ;;  %v9912_v44 = vsel %vm14202_vm1, %v9643_v57, %v9883_v63 }
  0xf8   : > { %v9860_v52 = vpop.permute.xlu0 %7659  ;;  %v1508_v14 = vsel %vm1502_vm14, %v1499_v15, %v7567_v0  ;;  %v14087_v0 = vrot.slane %v9811_v34, 7  ;;  %v7963_v57 = vpack.i.bf16 %v9912_v44, %v1953_v5 }
  0xf9   : > { %7949 = vrot.lane.b32.xlu1 %v7948_v11, %s14294_s16  ;;  %v1517_v22 = vsel %vm14222_vm15, %v1508_v14, %v7577_v29  ;;  %v9925_v29 = vsel %vm14144_vm2, %v9731_v13, %v9901_v40  ;;  %v9928_v14 = vld [vmem:[%s8812_s8 + $0x78] sm:$0xff] }
  0xfa   : > { %v9893_v12 = vsel %vm1520_vm10, %v1517_v22, %v14082_v23  ;;  %v14318_v23 = vrot.slane %v9627_v28, 6  ;;  %v14101_v53 = vrot.slane %v9928_v14, 6 }
  0xfb   : > { %1956 = vrot.lane.b32.xlu0 %v1953_v5, %s14268_s6  ;;  %v9865_v50 = vpop.permute.xlu1 %7674  ;;  %14316 = vst [vmem:[#allocation39_spill] sm:$0xff] %v9893_v12  ;;  %v7572_v5 = vunpack.i.h.bf16 %v9652_v27 }
  0xfc   : > { %14315 = vst [vmem:[#allocation38_spill] sm:$0xff] %v9865_v50  ;;  %v9871_v6 = vpop.permute.xlu0 %7669 }
  0xfd   : > { %7954 = vrot.lane.b32.xlu1 %v7953_v43, %s14269_s26  ;;  %v1718_v49 = vsel %vm14119_vm7, %v8519_v21, %v7572_v5  ;;  %v7597_v21 = vunpack.i.h.bf16 %v9708_v32  ;;  %v7596_v5 = vunpack.i.l.bf16 %v9708_v32  ;;  %v14105_v32 = vunpack.i.h.bf16 %v9734_v33 }
  0xff   : > { %1967 = vrot.lane.b32.xlu0 %v1964_v59, %s14270_s28  ;;  %v9879_v11 = vpop.permute.xlu1 %7684  ;;  %v9898_v59 = vsel %vm14098_vm0, %v9717_v17, %v9876_v20  ;;  %v7958_v17 = vpack.i.bf16 %v9893_v12, %v9700_v30  ;;  %v1997_v12 = vrot.slane %v9811_v34, 5  ;;  %vm14325_vm0 = vmmov %vm14324_vm9 }
 0x100   : > { %v9886_v58 = vpop.permute.xlu0 %7679 }
 0x101   : > { %1989 = vrot.lane.b32.xlu1 %v9756_v60, %s14256_s0  ;;  %v2005_v60 = vrot.slane %v9811_v34, 6 }
 0x103   : > { %1978 = vrot.lane.b32.xlu0 %v9742_v41, %s14258_s3  ;;  %v9905_v43 = vpop.permute.xlu1 %7694  ;;  %v7968_v41 = vpack.i.bf16 %v9898_v59, %v9310_v7  ;;  %v14319_v7 = vrot.slane %v9627_v28, 7 }
 0x104   : > { %v9916_v15 = vpop.permute.xlu0 %7689 }
 0x105   : > { %1999 = vrot.lane.b32.xlu1 %v9786_v9, %s14262_s9  ;;  %v9937_v9 = vsel %vm14147_vm4, %v14318_v23, %v2005_v60  ;;  %v9944_v13 = vsel %vm14145_vm6, %v14319_v7, %v14087_v0  ;;  %v7978_v23 = vpack.i.bf16 %v9925_v29, %v9321_v48  ;;  %v7582_v7 = vunpack.i.h.bf16 %v9687_v26 }
 0x106   : > { %v7581_v0 = vunpack.i.l.bf16 %v9687_v26  ;;  %v7983_v48 = vpack.i.bf16 %v9944_v13, %v9823_v42  ;;  %v1998_v26 = vsel %vm14143_vm5, %v14321_v54, %v1997_v12 }
 0x107   : > { %7959 = vrot.lane.b32.xlu0 %v7958_v17, %s8616_s17  ;;  %v9932_v22 = vpop.permute.xlu1 %7704  ;;  %v7571_v17 = vunpack.i.l.bf16 %v9652_v27  ;;  %v7973_v27 = vpack.i.bf16 %v9937_v9, %v9801_v38  ;;  %v1721_v54 = vsel %vm14118_vm8, %v1718_v49, %v7582_v7  ;;  %v7606_v7 = vunpack.i.l.bf16 %v9734_v33 }
 0x108   : > { %14317 = vst [vmem:[#allocation40_spill] sm:$0xff] %v9932_v22  ;;  %v9949_v30 = vpop.permute.xlu0 %7699 }
 0x109   : > { %7969 = vrot.lane.b32.xlu1 %v7968_v41, %s14283_s23  ;;  %v7988_v41 = vpack.i.bf16 %v9811_v34, %v9627_v28  ;;  %v1446_v38 = vsel %vm14119_vm7, %v8520_v1, %v7571_v17  ;;  %v1724_v17 = vsel %vm14325_vm0, %v1721_v54, %v7592_v55  ;;  %v14108_v55 = vrot.slane %v9928_v14, 7 }
 0x10a   : > { %v1455_v28 = vsel %vm14118_vm8, %v1446_v38, %v7581_v0  ;;  %vm14328_vm0 = vcmask 392192  }
 0x10b   : > { %7964 = vrot.lane.b32.xlu0 %v7963_v57, %s14267_s1  ;;  %v9962_v31 = vpop.permute.xlu1 %7714  ;;  %v14323_v57 = vrot.slane %v9928_v14, 5  ;;  %v1464_v1 = vsel %vm14324_vm9, %v1455_v28, %v7591_v62  ;;  %v10002_v62 = vsel %vm14147_vm4, %v2005_v60, %v14101_v53  ;;  %vm14329_vm9 = vmmov %vm14328_vm0  ;;  %v14103_v28 = vunpack.i.h.bf16 %v9768_v35 }
 0x10c   : > { %14320 = vst [vmem:[#allocation41_spill] sm:$0xff] %v9962_v31  ;;  %v9975_v10 = vpop.permute.xlu0 %7709  ;;  %v1727_v49 = vsel %vm14329_vm9, %v1724_v17, %v7597_v21  ;;  %v7611_v60 = vunpack.i.l.bf16 %v9768_v35  ;;  %v8003_v21 = vpack.i.bf16 %v9025_v56, %v9826_v24  ;;  %v7616_v17 = vunpack.i.l.bf16 %v9762_v25 }
 0x10d   : > { %14322 = vst [vmem:[#allocation42_spill] sm:$0xff] %v9975_v10  ;;  %7979 = vrot.lane.b32.xlu1 %v7978_v23, %s14275_s22  ;;  %v9981_v42 = vsel %vm14143_vm5, %v1997_v12, %v14323_v57  ;;  %v14102_v23 = vunpack.i.h.bf16 %v9745_v8  ;;  %v7642_v35 = vunpack.i.h.bf16 %v9815_v3  ;;  %v14369_v31 = vunpack.i.l.bf16 %v9510_v16 }
 0x10e   : > { %v7993_v0 = vpack.i.bf16 %v9981_v42, %v1998_v26 }
 0x10f   : > { %7974 = vrot.lane.b32.xlu0 %v7973_v27, %s14260_s5  ;;  %v9993_v12 = vpop.permute.xlu1 %7724  ;;  %v1473_v27 = vsel %vm14328_vm0, %v1464_v1, %v7596_v5  ;;  %v14332_v5 = vrot.slane %v9811_v34, 7  ;;  %vm14342_vm0 = vcmask 293888  }
 0x110   : > { %14326 = vst [vmem:[#allocation43_spill] sm:$0xff] %v9993_v12  ;;  %v9995_v57 = vpop.permute.xlu0 %7719  ;;  %v1482_v38 = vsel %vm1475_vm11, %v1473_v27, %v7601_v61  ;;  %v7998_v61 = vpack.i.bf16 %v10002_v62, %v9937_v9  ;;  %v7622_v27 = vunpack.i.h.bf16 %v9778_v37  ;;  %vm14344_vm9 = vmmov %vm14342_vm0  ;;  %v7682_v12 = vunpack.i.h.bf16 %v9886_v58 }
 0x111   : > { %14327 = vst [vmem:[#allocation44_spill] sm:$0xff] %v9995_v57  ;;  %7989 = vrot.lane.b32.xlu1 %v7988_v41, %s14271_s29  ;;  %v1730_v41 = vsel %vm1475_vm11, %v1727_v49, %v14102_v23  ;;  %v10030_v1 = vsel %vm14145_vm6, %v14332_v5, %v14108_v55  ;;  %v7621_v49 = vunpack.i.l.bf16 %v9778_v37  ;;  %v823_v57 = vld [vmem:[%s14279_s25 + $0x140] sm:$0xff] }
 0x112   : > { %v1733_v56 = vsel %vm1484_vm12, %v1730_v41, %v14105_v32  ;;  %v8013_v41 = vpack.i.bf16 %v10030_v1, %v9944_v13  ;;  %v8008_v13 = vpack.i.bf16 %v9044_v2, %v9876_v20  ;;  %v7637_v32 = vunpack.i.h.bf16 %v9790_v4 }
 0x113   : > { %7984 = vrot.lane.b32.xlu0 %v7983_v48, %s14265_s27  ;;  %v10016_v54 = vpop.permute.xlu1 %7734  ;;  %v14104_v48 = vunpack.i.h.bf16 %v9762_v25  ;;  %v1736_v34 = vsel %vm1493_vm13, %v1733_v56, %v14103_v28 }
 0x114   : > { %14330 = vst [vmem:[#allocation45_spill] sm:$0xff] %v10016_v54  ;;  %v10018_v53 = vpop.permute.xlu0 %7729  ;;  %v822_v54 = vld [vmem:[%s14279_s25 + $0x138] sm:$0xff] }
 0x115   : > { %14331 = vst [vmem:[#allocation46_spill] sm:$0xff] %v10018_v53  ;;  %2001 = vrot.lane.b32.xlu1 %v1998_v26, %s14262_s9  ;;  %v1491_v26 = vsel %vm1484_vm12, %v1482_v38, %v7606_v7  ;;  %v14106_v7 = vunpack.i.h.bf16 %v9793_v39  ;;  %v14107_v38 = vunpack.i.l.bf16 %v9793_v39  ;;  %v1739_v37 = vsel %vm1502_vm14, %v1736_v34, %v14104_v48 }
 0x116   : > { %v1500_v9 = vsel %vm1493_vm13, %v1491_v26, %v7611_v60  ;;  %v1742_v56 = vsel %vm14222_vm15, %v1739_v37, %v7622_v27  ;;  %v14337_v27 = vld [vmem:[#allocation18_spill] sm:$0xff]  ;;  %v7687_v53 = vunpack.i.h.bf16 %v9879_v11 }
 0x117   : > { %7994 = vrot.lane.b32.xlu0 %v7993_v0, %s14288_s18  ;;  %v10045_v5 = vpop.permute.xlu1 %7744  ;;  %v1509_v60 = vsel %vm1502_vm14, %v1500_v9, %v7616_v17  ;;  %v10059_v0 = vld [vmem:[%s8812_s8 + $0x88] sm:$0xff]  ;;  %v10077_v9 = vsel %vm1520_vm10, %v1742_v56, %v14106_v7 }
 0x118   : > { %14333 = vst [vmem:[#allocation47_spill] sm:$0xff] %v10045_v5  ;;  %v10049_v23 = vpop.permute.xlu0 %7739  ;;  %v1518_v26 = vsel %vm14222_vm15, %v1509_v60, %v7621_v49  ;;  %14336 = vst [vmem:[#allocation50_spill] sm:$0xff] %v10077_v9  ;;  %v10084_v2 = vrot.slane %v10059_v0, 1  ;;  %v8018_v49 = vpack.i.bf16 %v14337_v27, %v9901_v40  ;;  %v7636_v60 = vunpack.i.l.bf16 %v9790_v4  ;;  %v8522_v7 = vld [vmem:[%s8812_s8 + $0x48] sm:$0xff]  ;;  %v821_v5 = vld [vmem:[%s14279_s25 + $0x130] sm:$0xff] }
 0x119   : > { %8004 = vrot.lane.b32.xlu1 %v8003_v21, %s14269_s26  ;;  %v7626_v21 = vunpack.i.l.bf16 %v9774_v45  ;;  %v10072_v17 = vsel %vm1520_vm10, %v1518_v26, %v14107_v38  ;;  %v7742_v37 = vunpack.i.h.bf16 %v10049_v23  ;;  %v10096_v56 = vrot.slane %v10059_v0, 2 }
 0x11a   : > { %14335 = vst [vmem:[#allocation49_spill] sm:$0xff] %v10072_v17  ;;  %v7741_v10 = vunpack.i.l.bf16 %v10049_v23 }
 0x11b   : > { %7999 = vrot.lane.b32.xlu0 %v7998_v61, %s14289_s21  ;;  %v10064_v28 = vpop.permute.xlu1 %7754  ;;  %v7627_v61 = vunpack.i.h.bf16 %v9774_v45  ;;  %v8023_v45 = vpack.i.bf16 %v10077_v9, %v10072_v17  ;;  %v7641_v17 = vunpack.i.l.bf16 %v9815_v3  ;;  %v7647_v3 = vunpack.i.h.bf16 %v9806_v51 }
 0x11c   : > { %14334 = vst [vmem:[#allocation48_spill] sm:$0xff] %v10064_v28  ;;  %v10080_v34 = vpop.permute.xlu0 %7749 }
 0x11d   : > { %8014 = vrot.lane.b32.xlu1 %v8013_v41, %s14294_s16  ;;  %v8521_v41 = vld [vmem:[%s8812_s8 + $0x40] sm:$0xff]  ;;  %v7752_v27 = vunpack.i.h.bf16 %v10080_v34  ;;  %v1720_v38 = vsel %vm14119_vm7, %v8522_v7, %v7627_v61  ;;  %v1907_v61 = vsel %vm14119_vm7, %v8522_v7, %v7742_v37  ;;  %v7652_v7 = vunpack.i.h.bf16 %v9838_v47 }
 0x11e   : > { %v1719_v48 = vsel %vm14119_vm7, %v8521_v41, %v7626_v21  ;;  %v14340_v21 = vld [vmem:[#allocation15_spill] sm:$0xff]  ;;  %v1723_v8 = vsel %vm14118_vm8, %v1720_v38, %v7637_v32  ;;  %v7657_v38 = vunpack.i.h.bf16 %v9831_v46  ;;  %v7651_v37 = vunpack.i.l.bf16 %v9838_v47  ;;  %vm14346_vm7 = vmmov %vm14342_vm0 }
 0x11f   : > { %8009 = vrot.lane.b32.xlu0 %v8008_v13, %s14283_s23  ;;  %v10091_v26 = vpop.permute.xlu1 %7764  ;;  %v14339_v13 = vld [vmem:[#allocation14_spill] sm:$0xff]  ;;  %v8028_v41 = vpack.i.bf16 %v14340_v21, %v9883_v63  ;;  %v1722_v4 = vsel %vm14118_vm8, %v1719_v48, %v7636_v60  ;;  %v10125_v21 = vrot.slane %v10059_v0, 3  ;;  %v7646_v48 = vunpack.i.l.bf16 %v9806_v51 }
 0x120   : > { %14338 = vst [vmem:[#allocation18_spill] sm:$0xff] %v10091_v26  ;;  %v10104_v55 = vpop.permute.xlu0 %7759  ;;  %v8033_v9 = vpack.i.bf16 %v10084_v2, %v14339_v13  ;;  %v1910_v26 = vsel %vm14118_vm8, %v1907_v61, %v7752_v27  ;;  %v1725_v32 = vsel %vm14344_vm9, %v1722_v4, %v7641_v17  ;;  %vm14345_vm8 = vcmask 392192  }
 0x121   : > { %8024 = vrot.lane.b32.xlu1 %v8023_v45, %s8616_s17  ;;  %v7762_v25 = vunpack.i.h.bf16 %v10104_v55  ;;  %v14341_v45 = vld [vmem:[#allocation16_spill] sm:$0xff]  ;;  %v1726_v61 = vsel %vm14346_vm7, %v1723_v8, %v7642_v35  ;;  %v7662_v51 = vunpack.i.h.bf16 %v9860_v52  ;;  %v7656_v47 = vunpack.i.l.bf16 %v9831_v46  ;;  %vm14349_vm7 = vmmov %vm14345_vm8 }
 0x122   : > { %v8038_v13 = vpack.i.bf16 %v10096_v56, %v14341_v45  ;;  %v10154_v35 = vrot.slane %v10059_v0, 4  ;;  %vm1529_vm9 = vcmask 31744  }
 0x123   : > { %8019 = vrot.lane.b32.xlu0 %v8018_v49, %s14275_s22  ;;  %v10117_v33 = vpop.permute.xlu1 %7774  ;;  %v1913_v49 = vsel %vm14342_vm0, %v1910_v26, %v7762_v25  ;;  %v14348_v26 = vld [vmem:[#allocation19_spill] sm:$0xff]  ;;  %vm14362_vm0 = vcmask 1044480  }
 0x124   : > { %v7777_v28 = vunpack.i.h.bf16 %v10117_v33  ;;  %v10131_v60 = vpop.permute.xlu0 %7769  ;;  %v8043_v4 = vpack.i.bf16 %v10125_v21, %v14348_v26 }
 0x125   : > { %14343 = vst [vmem:[#allocation14_spill] sm:$0xff] %v10131_v60  ;;  %8034 = vrot.lane.b32.xlu1 %v8033_v9, %s14268_s6  ;;  %v7667_v9 = vunpack.i.h.bf16 %v9851_v18 }
 0x126   : > { %v1916_v27 = vsel %vm14345_vm8, %v1913_v49, %v7777_v28  ;;  %v1728_v28 = vsel %vm14345_vm8, %v1725_v32, %v7646_v48  ;;  %v1729_v49 = vsel %vm14349_vm7, %v1726_v61, %v7647_v3  ;;  %v14351_v3 = vld [vmem:[#allocation17_spill] sm:$0xff]  ;;  %v7666_v61 = vunpack.i.l.bf16 %v9851_v18 }
 0x127   : > { %v1919_v45 = vsel %vm1475_vm11, %v1916_v27, %v7652_v7  ;;  %8029 = vrot.lane.b32.xlu0 %v8028_v41, %s14267_s1  ;;  %v10142_v25 = vpop.permute.xlu1 %7784  ;;  %v1731_v27 = vsel %vm1475_vm11, %v1728_v28, %v7651_v37  ;;  %v1732_v46 = vsel %vm1475_vm11, %v1729_v49, %v7652_v7  ;;  %v8048_v37 = vpack.i.bf16 %v10154_v35, %v14351_v3  ;;  %v815_v49 = vld [vmem:[%s14279_s25 + $0x100] sm:$0xff] }
 0x128   : > { %14347 = vst [vmem:[#allocation15_spill] sm:$0xff] %v10142_v25  ;;  %v1922_v17 = vsel %vm1484_vm12, %v1919_v45, %v7657_v38  ;;  %v10150_v8 = vpop.permute.xlu0 %7779  ;;  %v7661_v45 = vunpack.i.l.bf16 %v9860_v52  ;;  %v1734_v48 = vsel %vm1484_vm12, %v1731_v27, %v7656_v47  ;;  %v10175_v52 = vrot.slane %v9928_v14, 1  ;;  %v816_v27 = vld [vmem:[%s14279_s25 + $0x108] sm:$0xff] }
 0x129   : > { %8039 = vrot.lane.b32.xlu1 %v8038_v13, %s14270_s28  ;;  %v1925_v41 = vsel %vm1493_vm13, %v1922_v17, %v7662_v51  ;;  %v1735_v7 = vsel %vm1484_vm12, %v1732_v46, %v7657_v38  ;;  %v831_v17 = vld [vmem:[%s14279_s25 + $0x180] sm:$0xff]  ;;  %v7672_v28 = vunpack.i.h.bf16 %v9871_v6  ;;  %v6900_v46 = vpack.c.bf16 %v816_v27, %v815_v49  ;;  %v833_v27 = vld [vmem:[%s14279_s25 + $0x190] sm:$0xff] }
 0x12a   : > { %v10161_v26 = vsel %vm1502_vm14, %v1925_v41, %v7667_v9  ;;  %14352 = vst [vmem:[#allocation19_spill] sm:$0xff] %v10175_v52  ;;  %v1738_v47 = vsel %vm1493_vm13, %v1735_v7, %v7662_v51  ;;  %v7671_v41 = vunpack.i.l.bf16 %v9871_v6  ;;  %v863_v51 = vld [vmem:[%s14279_s25 + $0x280] sm:$0xff]  ;;  %v14120_v3 = vunpack.i.h.bf16 %v9865_v50 }
 0x12b   : > { %14350 = vst [vmem:[#allocation16_spill] sm:$0xff] %v10161_v26  ;;  %2143 = vrot.lane.b32.xlu0 %v9912_v44, %s14268_s6  ;;  %v10166_v13 = vpop.permute.xlu1 %7794  ;;  %v1737_v44 = vsel %vm1493_vm13, %v1734_v48, %v7661_v45  ;;  %v10211_v45 = vrot.slane %v9928_v14, 2  ;;  %v864_v48 = vld [vmem:[%s14279_s25 + $0x288] sm:$0xff]  ;;  %v14121_v7 = vunpack.i.l.bf16 %v9865_v50  ;;  %vm1538_vm8 = vcmask 130048  }
 0x12c   : > { %v10169_v32 = vpop.permute.xlu0 %7789  ;;  %v6930_v49 = vpack.c.bf16 %v864_v48, %v863_v51  ;;  %v10262_v48 = vrot.slane %v9928_v14, 4  ;;  %vm1547_vm7 = vcmask 228352  }
 0x12d   : > { %8044 = vrot.lane.b32.xlu1 %v8043_v4, %s14258_s3  ;;  %v832_v4 = vld [vmem:[%s14279_s25 + $0x188] sm:$0xff]  ;;  %14354 = vst [vmem:[#allocation51_spill] sm:$0xff] %v10211_v45 }
 0x12e   : > { %v6898_v38 = vpack.c.bf16 %v832_v4, %v831_v17  ;;  %v1741_v17 = vsel %vm1502_vm14, %v1738_v47, %v7667_v9  ;;  %v10221_v4 = vld [vmem:[%s8812_s8 + $0x80] sm:$0xff]  ;;  %v834_v9 = vld [vmem:[%s14279_s25 + $0x198] sm:$0xff]  ;;  %6931 = vmatprep.subr.bf16.mxu0 %v6930_v49  ;;  %v817_v47 = vld [vmem:[%s14279_s25 + $0x110] sm:$0xff]  ;;  %14358 = vst [vmem:[#allocation55_spill] sm:$0xff] %v10262_v48 }
 0x12f   : > { %2154 = vrot.lane.b32.xlu0 %v9848_v19, %s14270_s28  ;;  %v10191_v18 = vpop.permute.xlu1 %7804  ;;  %v10208_v19 = vsel %vm14202_vm1, %v9883_v63, %v10175_v52  ;;  %v1744_v26 = vsel %vm14222_vm15, %v1741_v17, %v7672_v28  ;;  %v818_v28 = vld [vmem:[%s14279_s25 + $0x118] sm:$0xff]  ;;  %v835_v17 = vld [vmem:[%s14279_s25 + $0x1a0] sm:$0xff] }
 0x130   : > { %v10202_v6 = vpop.permute.xlu0 %7799  ;;  %6899 = vmatprep.subr.bf16.mxu1 %v6898_v38  ;;  %v838_v49 = vld [vmem:[%s14279_s25 + $0x1b8] sm:$0xff] }
 0x131   : > { %14353 = vst [vmem:[#allocation17_spill] sm:$0xff] %v10202_v6  ;;  %8049 = vrot.lane.b32.xlu1 %v8048_v37, %s14256_s0  ;;  %v1740_v37 = vsel %vm1502_vm14, %v1737_v44, %v7666_v61  ;;  %6901 = vmatpush3.bf16.msra.mxu1 %v6900_v46  ;;  %v10238_v44 = vrot.slane %v10221_v4, 1  ;;  %v1747_v46 = vsel %vm1520_vm10, %v1744_v26, %v14120_v3  ;;  %v10275_v26 = vrot.slane %v9928_v14, 3  ;;  %v819_v3 = vld [vmem:[%s14279_s25 + $0x120] sm:$0xff] }
 0x132   : > { %v1743_v63 = vsel %vm14222_vm15, %v1740_v37, %v7671_v41  ;;  %v10251_v41 = vsel %vm14146_vm3, %v9826_v24, %v10211_v45  ;;  %v6904_v24 = vpack.c.bf16 %v818_v28, %v817_v47  ;;  %v837_v28 = vld [vmem:[%s14279_s25 + $0x1b0] sm:$0xff] }
 0x133   : > { %2165 = vrot.lane.b32.xlu0 %v9898_v59, %s14258_s3  ;;  %v10227_v38 = vpop.permute.xlu1 %7814  ;;  %14356 = vst [vmem:[#allocation53_spill] sm:$0xff] %v10238_v44  ;;  %v6902_v59 = vpack.c.bf16 %v834_v9, %v833_v27  ;;  %v10256_v51 = vsel %vm1520_vm10, %v1743_v63, %v14121_v7  ;;  %v836_v63 = vld [vmem:[%s14279_s25 + $0x1a8] sm:$0xff]  ;;  %14359 = vst [vmem:[#allocation56_spill] sm:$0xff] %v10275_v26  ;;  %v10279_v27 = vrot.slane %v10221_v4, 2 }
 0x134   : > { %14355 = vst [vmem:[#allocation52_spill] sm:$0xff] %v10227_v38  ;;  %v10235_v61 = vpop.permute.xlu0 %7809  ;;  %14357 = vst [vmem:[#allocation54_spill] sm:$0xff] %v10256_v51  ;;  %v10284_v9 = vsel %vm14202_vm1, %v10175_v52, %v10238_v44  ;;  %v8053_v47 = vpack.i.bf16 %v1747_v46, %v10256_v51 }
 0x135   : > { %2145 = vrot.lane.b32.xlu1 %v10208_v19, %s14268_s6  ;;  %6903 = vmatprep.subr.bf16.mxu1 %v6902_v59  ;;  %14360 = vst [vmem:[#allocation57_spill] sm:$0xff] %v10279_v27  ;;  %v10332_v51 = vsel %vm14146_vm3, %v10211_v45, %v10279_v27  ;;  %v6910_v45 = vpack.c.bf16 %v838_v49, %v837_v28  ;;  %vm14373_vm3 = vcmask 195584  }
 0x136   : > { %6905 = vmatpush3.bf16.msra.mxu1 %v6904_v24  ;;  %v10307_v24 = vrot.slane %v10221_v4, 3 }
 0x137   : > { %2176 = vrot.lane.b32.xlu0 %v9925_v29, %s14256_s0  ;;  %v10266_v37 = vpop.permute.xlu1 %7824  ;;  %v6906_v29 = vpack.c.bf16 %v836_v63, %v835_v17  ;;  %v820_v17 = vld [vmem:[%s14279_s25 + $0x128] sm:$0xff]  ;;  %v10301_v63 = vsel %vm14144_vm2, %v9901_v40, %v10262_v48  ;;  %v8058_v40 = vpack.i.bf16 %v10284_v9, %v10208_v19  ;;  %v14366_v19 = vrot.slane %v9928_v14, 7 }
 0x138   : > { %v10286_v59 = vpop.permute.xlu0 %7819  ;;  %v6908_v7 = vpack.c.bf16 %v820_v17, %v819_v3  ;;  %14361 = vst [vmem:[#allocation58_spill] sm:$0xff] %v10307_v24  ;;  %v10320_v3 = vsel %vm14362_vm0, %v9876_v20, %v10275_v26  ;;  %v14365_v20 = vrot.slane %v10221_v4, 7  ;;  %v10366_v28 = vsel %vm14362_vm0, %v10275_v26, %v10307_v24  ;;  %v839_v26 = vld [vmem:[%s14279_s25 + $0x1c0] sm:$0xff] }
 0x139   : > { %2156 = vrot.lane.b32.xlu1 %v10251_v41, %s14270_s28  ;;  %6907 = vmatprep.subr.bf16.mxu1 %v6906_v29  ;;  %v14363_v29 = vrot.slane %v10221_v4, 6  ;;  %vm14204_vm0 = vcmask 326656  }
 0x13a   : > { %v10343_v50 = vsel %vm14145_vm6, %v14366_v19, %v14365_v20  ;;  %6909 = vmatpush3.bf16.msra.mxu1 %v6908_v7  ;;  %v6912_v20 = vpack.c.bf16 %v822_v54, %v821_v5  ;;  %v7681_v19 = vunpack.i.l.bf16 %v9886_v58  ;;  %v14368_v54 = vrot.slane %v9928_v14, 5 }
 0x13b   : > { %8054 = vrot.lane.b32.xlu0 %v8053_v47, %s8616_s17  ;;  %v10304_v46 = vpop.permute.xlu1 %7834  ;;  %v14364_v47 = vrot.slane %v9928_v14, 6  ;;  %6911 = vmatprep.subr.bf16.mxu1 %v6910_v45  ;;  %v840_v45 = vld [vmem:[%s14279_s25 + $0x1c8] sm:$0xff]  ;;  %vm14372_vm6 = vcmask 97280  }
 0x13c   : > { %v6914_v36 = vpack.c.bf16 %v840_v45, %v839_v26  ;;  %v7686_v26 = vunpack.i.l.bf16 %v9879_v11  ;;  %v7691_v11 = vunpack.i.l.bf16 %v9916_v15 }
 0x13d   : > { %v10327_v17 = vsel %vm14147_vm4, %v14364_v47, %v14363_v29  ;;  %v10334_v52 = vpop.permute.xlu0 %7829  ;;  %2178 = vrot.lane.b32.xlu1 %v10301_v63, %s14256_s0  ;;  %v2186_v29 = vrot.slane %v10221_v4, 5  ;;  %v10347_v47 = vrot.slane %v10221_v4, 4  ;;  %vm14374_vm4 = vcmask 293888  }
 0x13e   : > { %v8063_v49 = vpack.i.bf16 %v10327_v17, %v10002_v62  ;;  %6913 = vmatpush3.bf16.msra.mxu1 %v6912_v20  ;;  %v14370_v20 = vunpack.i.l.bf16 %v9793_v39 }
 0x13f   : > { %14367 = vst [vmem:[#allocation59_spill] sm:$0xff] %v10347_v47  ;;  %2167 = vrot.lane.b32.xlu0 %v10320_v3, %s14258_s3  ;;  %v10359_v7 = vpop.permute.xlu1 %7844  ;;  %v10390_v5 = vsel %vm14143_vm5, %v14368_v54, %v2186_v29  ;;  %v10395_v62 = vsel %vm14144_vm2, %v10262_v48, %v10347_v47  ;;  %v1532_v54 = vsel %vm1529_vm9, %v14369_v31, %v7682_v12  ;;  %v7751_v47 = vunpack.i.l.bf16 %v10080_v34  ;;  %v826_v48 = vld [vmem:[%s14279_s25 + $0x158] sm:$0xff] }
 0x140   : > { %v1536_v45 = vsel %vm1529_vm9, %v14370_v20, %v7681_v19  ;;  %v14371_v31 = vrot.slane %v10059_v0, 5  ;;  %6915 = vmatprep.subr.bf16.mxu1 %v6914_v36  ;;  %v7692_v36 = vunpack.i.h.bf16 %v9916_v15  ;;  %v1541_v19 = vsel %vm1538_vm8, %v1532_v54, %v7687_v53  ;;  %v8523_v53 = vld [vmem:[%s8812_s8] sm:$0xff] }
 0x141   : > { %v10384_v58 = vpop.permute.xlu0 %7839  ;;  %8059 = vrot.lane.b32.xlu1 %v8058_v40, %s14267_s1  ;;  %v824_v40 = vld [vmem:[%s14279_s25 + $0x148] sm:$0xff]  ;;  %vm14203_vm2 = vcmask 424960   ;;  %v7772_v54 = vunpack.i.h.bf16 %v10131_v60  ;;  %v7802_v60 = vunpack.i.h.bf16 %v10202_v6 }
 0x142   : > { %v6916_v22 = vpack.c.bf16 %v824_v40, %v823_v57  ;;  %v10421_v23 = vsel %vm14143_vm5, %v2186_v29, %v14371_v31  ;;  %v7761_v57 = vunpack.i.l.bf16 %v10104_v55  ;;  %v842_v29 = vld [vmem:[%s14279_s25 + $0x1d8] sm:$0xff]  ;;  %v7776_v40 = vunpack.i.l.bf16 %v10117_v33  ;;  %v825_v31 = vld [vmem:[%s14279_s25 + $0x150] sm:$0xff] }
 0x143   : > { %2188 = vrot.lane.b32.xlu0 %v9981_v42, %s14262_s9  ;;  %v10416_v16 = vpop.permute.xlu1 %7854  ;;  %v841_v42 = vld [vmem:[%s14279_s25 + $0x1d0] sm:$0xff]  ;;  %vm2635_vm5 = vcmask 523264   ;;  %v1440_v33 = vsel %vm14372_vm6, %v8523_v53, %v7741_v10  ;;  %v6920_v15 = vpack.c.bf16 %v826_v48, %v825_v31  ;;  %v14375_v10 = vunpack.i.l.bf16 %v10150_v8 }
 0x144   : > { %6917 = vmatpush3.bf16.msra.mxu1 %v6916_v22  ;;  %v6918_v55 = vpack.c.bf16 %v842_v29, %v841_v42  ;;  %v1449_v22 = vsel %vm14373_vm3, %v1440_v33, %v7751_v47  ;;  %v7787_v42 = vunpack.i.h.bf16 %v10142_v25  ;;  %v7811_v29 = vunpack.i.l.bf16 %v10235_v61  ;;  %v843_v33 = vld [vmem:[%s14279_s25 + $0x1e0] sm:$0xff] }
 0x145   : > { %v10436_v20 = vpop.permute.xlu0 %7849  ;;  %8064 = vrot.lane.b32.xlu1 %v8063_v49, %s14260_s5  ;;  %v7796_v49 = vunpack.i.l.bf16 %v10166_v13  ;;  %v1458_v34 = vsel %vm14374_vm4, %v1449_v22, %v7761_v57  ;;  %v1530_v53 = vsel %vm1529_vm9, %v14375_v10, %v7772_v54  ;;  %v7826_v47 = vunpack.i.l.bf16 %v10266_v37  ;;  %v827_v22 = vld [vmem:[%s14279_s25 + $0x160] sm:$0xff]  ;;  %v828_v10 = vld [vmem:[%s14279_s25 + $0x168] sm:$0xff]  ;;  %vm14386_vm4 = vmmov %vm14372_vm6 }
 0x146   : > { %6919 = vmatprep.subr.bf16.mxu1 %v6918_v55  ;;  %vm14376_vm3 = vcmask 392192   ;;  %v7817_v57 = vunpack.i.h.bf16 %v10227_v38  ;;  %v7846_v55 = vunpack.i.l.bf16 %v10359_v7  ;;  %v1539_v39 = vsel %vm1538_vm8, %v1530_v53, %v7787_v42  ;;  %v845_v42 = vld [vmem:[%s14279_s25 + $0x1f0] sm:$0xff] }
 0x147   : > { %2332 = vrot.lane.b32.xlu0 %v10284_v9, %s14268_s6  ;;  %v10455_v12 = vpop.permute.xlu1 %7864  ;;  %v844_v9 = vld [vmem:[%s14279_s25 + $0x1e8] sm:$0xff]  ;;  %v1467_v48 = vsel %vm14376_vm3, %v1458_v34, %v7776_v40  ;;  %v1545_v34 = vsel %vm1538_vm8, %v1536_v45, %v7686_v26  ;;  %v1550_v40 = vsel %vm1547_vm7, %v1541_v19, %v7692_v36  ;;  %v847_v26 = vld [vmem:[%s14279_s25 + $0x200] sm:$0xff]  ;;  %v7702_v19 = vunpack.i.h.bf16 %v9949_v30 }
 0x148   : > { %6921 = vmatpush3.bf16.msra.mxu1 %v6920_v15  ;;  %v6922_v54 = vpack.c.bf16 %v844_v9, %v843_v33  ;;  %v1476_v38 = vsel %vm1475_vm11, %v1467_v48, %v7796_v49  ;;  %v7832_v15 = vunpack.i.h.bf16 %v10334_v52  ;;  %v14378_v33 = vpack.i.bf16 %v10332_v51, %v10251_v41  ;;  %v848_v45 = vld [vmem:[%s14279_s25 + $0x208] sm:$0xff]  ;;  %v865_v49 = vld [vmem:[%s14279_s25 + $0x290] sm:$0xff] }
 0x149   : > { %v10472_v31 = vpop.permute.xlu0 %7859  ;;  %2343 = vrot.lane.b32.xlu1 %v10332_v51, %s14270_s28  ;;  %v1485_v25 = vsel %vm1484_vm12, %v1476_v38, %v7811_v29  ;;  %v6924_v38 = vpack.c.bf16 %v828_v10, %v827_v22  ;;  %v1554_v36 = vsel %vm1547_vm7, %v1545_v34, %v7691_v11  ;;  %v1548_v51 = vsel %vm1547_vm7, %v1539_v39, %v7802_v60  ;;  %v846_v29 = vld [vmem:[%s14279_s25 + $0x1f8] sm:$0xff]  ;;  %v829_v48 = vld [vmem:[%s14279_s25 + $0x170] sm:$0xff] }
 0x14a   : > { %14377 = vst [vmem:[#allocation60_spill] sm:$0xff] %v10472_v31  ;;  %v7861_v6 = vunpack.i.l.bf16 %v10472_v31  ;;  %6923 = vmatprep.subr.bf16.mxu1 %v6922_v54  ;;  %v1494_v41 = vsel %vm1493_vm13, %v1485_v25, %v7826_v47  ;;  %v7791_v11 = vunpack.i.l.bf16 %v10169_v32  ;;  %v1557_v39 = vsel %vm14204_vm0, %v1548_v51, %v7817_v57  ;;  %v866_v25 = vld [vmem:[%s14279_s25 + $0x298] sm:$0xff]  ;;  %v10535_v34 = vld [vmem:[%s8812_s8 + $0x90] sm:$0xff] }
 0x14b   : > { %8069 = vrot.lane.b32.xlu0 %v14378_v33, %s14269_s26  ;;  %v10492_v9 = vpop.permute.xlu1 %7874  ;;  %v1503_v60 = vsel %vm1502_vm14, %v1494_v41, %v7846_v55  ;;  %v6926_v47 = vpack.c.bf16 %v846_v29, %v845_v42  ;;  %v830_v54 = vld [vmem:[%s14279_s25 + $0x178] sm:$0xff]  ;;  %v7837_v22 = vunpack.i.h.bf16 %v10304_v46  ;;  %v7806_v33 = vunpack.i.l.bf16 %v10191_v18 }
 0x14c   : > { %6925 = vmatpush3.bf16.msra.mxu1 %v6924_v38  ;;  %v1512_v10 = vsel %vm14222_vm15, %v1503_v60, %v7861_v6  ;;  %v14380_v38 = vpack.i.bf16 %v10343_v50, %v10030_v1  ;;  %v1566_v51 = vsel %vm14203_vm2, %v1557_v39, %v7832_v15  ;;  %v6932_v42 = vpack.c.bf16 %v848_v45, %v847_v26  ;;  %v849_v1 = vld [vmem:[%s14279_s25 + $0x210] sm:$0xff]  ;;  %v850_v15 = vld [vmem:[%s14279_s25 + $0x218] sm:$0xff] }
 0x14d   : > { %v10515_v53 = vpop.permute.xlu0 %7869  ;;  %2354 = vrot.lane.b32.xlu1 %v10366_v28, %s14258_s3  ;;  %6927 = vmatprep.subr.bf16.mxu1 %v6926_v47  ;;  %v6928_v29 = vpack.c.bf16 %v830_v54, %v829_v48  ;;  %v7701_v57 = vunpack.i.l.bf16 %v9949_v30  ;;  %v7821_v6 = vunpack.i.l.bf16 %v10286_v59  ;;  %v6934_v31 = vpack.c.bf16 %v866_v25, %v865_v49  ;;  %v867_v48 = vld [vmem:[%s14279_s25 + $0x2a0] sm:$0xff]  ;;  %v868_v54 = vld [vmem:[%s14279_s25 + $0x2a8] sm:$0xff] }
 0x14e   : > { %14379 = vst [vmem:[#allocation61_spill] sm:$0xff] %v10515_v53  ;;  %v14154_v55 = vunpack.i.l.bf16 %v10515_v53  ;;  %v7841_v26 = vunpack.i.l.bf16 %v10384_v58  ;;  %v7857_v30 = vunpack.i.h.bf16 %v10416_v16  ;;  %v14383_v39 = vunpack.i.l.bf16 %v10150_v8 }
 0x14f   : > { %8074 = vrot.lane.b32.xlu0 %v14380_v38, %s14265_s27  ;;  %v10542_v41 = vpop.permute.xlu1 %7884  ;;  %v14384_v49 = vpack.i.bf16 %v10366_v28, %v10320_v3  ;;  %v10568_v25 = vrot.slane %v10535_v34, 1  ;;  %v14385_v38 = vunpack.i.h.bf16 %v9905_v43  ;;  %v14387_v3 = vunpack.i.l.bf16 %v10436_v20 }
 0x150   : > { %14381 = vst [vmem:[#allocation62_spill] sm:$0xff] %v10542_v41  ;;  %v2750_v60 = vsel %vm2635_vm5, %v1566_v51, %v14154_v55  ;;  %v1521_v47 = vsel %vm1520_vm10, %v1512_v10, %v14383_v39  ;;  %v8524_v51 = vld [vmem:[%s8812_s8 + $0x8] sm:$0xff]  ;;  %v7867_v39 = vunpack.i.h.bf16 %v10455_v12  ;;  %6929 = vmatpush3.bf16.msra.mxu1 %v6928_v29  ;;  %vm14389_vm6 = vcmask 195584   ;;  %v851_v29 = vld [vmem:[%s14279_s25 + $0x220] sm:$0xff] }
 0x151   : > { %v10558_v45 = vpop.permute.xlu0 %7879  ;;  %2862 = vmatprep.mubr.f32.mxu0 %v2750_v60  ;;  %8084 = vrot.lane.b32.xlu1 %v14384_v49, %s14283_s23  ;;  %v1559_v10 = vsel %vm14204_vm0, %v1550_v40, %v14385_v38  ;;  %v1441_v60 = vsel %vm14386_vm4, %v8524_v51, %v7791_v11  ;;  %v1531_v28 = vsel %vm1529_vm9, %v14387_v3, %v7837_v22  ;;  %v14388_v49 = vunpack.i.l.bf16 %v9905_v43 }
 0x152   : > { %14382 = vst [vmem:[#allocation63_spill] sm:$0xff] %v10558_v45  ;;  %2863 = vmatmul.mubr.f32.vlgmr.msra.gmra.mrb[0].mxu0 %v1521_v47  ;;  %v1450_v45 = vsel %vm14389_vm6, %v1441_v60, %v7806_v33  ;;  %v7877_v41 = vunpack.i.h.bf16 %v10492_v9  ;;  %v14390_v40 = vpack.i.bf16 %v10221_v4, %v9928_v14  ;;  %v6936_v22 = vpack.c.bf16 %v850_v15, %v849_v1  ;;  %v852_v14 = vld [vmem:[%s14279_s25 + $0x228] sm:$0xff] }
 0x153   : > { %v1563_v55 = vsel %vm14204_vm0, %v1554_v36, %v14388_v49  ;;  %v10594_v11 = vpop.permute.xlu1 %7894  ;;  %6933 = vmatpush3.bf16.msra.mxu0 %v6932_v42  ;;  %v10597_v47 = vsel %vm14203_vm2, %v1559_v10, %v7702_v19  ;;  %vm14392_vm3 = vcmask 293888   ;;  %v6938_v33 = vpack.c.bf16 %v868_v54, %v867_v48 }
 0x154   : > { %8079 = vrot.lane.b32.xlu0 %v14390_v40, %s14271_s29  ;;  %v10600_v43 = vsel %vm14203_vm2, %v1563_v55, %v7701_v57  ;;  %v1459_v36 = vsel %vm14392_vm3, %v1450_v45, %v7821_v6  ;;  %6935 = vmatprep.subr.bf16.mxu0 %v6934_v31  ;;  %vm14393_vm4 = vcmask 392192   ;;  %v1540_v19 = vsel %vm1538_vm8, %v1531_v28, %v7857_v30  ;;  %v869_v55 = vld [vmem:[%s14279_s25 + $0x2b0] sm:$0xff]  ;;  %v870_v6 = vld [vmem:[%s14279_s25 + $0x2b8] sm:$0xff] }
 0x155   : > { %14391 = vst [vmem:[#allocation64_spill] sm:$0xff] %v10600_v43  ;;  %v1468_v42 = vsel %vm14393_vm4, %v1459_v36, %v7841_v26  ;;  %v10611_v1 = vpop.permute.xlu0 %7889  ;;  %2190 = vrot.lane.b32.xlu1 %v10390_v5, %s14262_s9  ;;  %v10618_v31 = vsel %vm14202_vm1, %v10238_v44, %v10084_v2  ;;  %v10623_v57 = vsel %vm14202_vm1, %v10084_v2, %v10568_v25  ;;  %v7797_v15 = vunpack.i.h.bf16 %v10166_v13  ;;  %v853_v28 = vld [vmem:[%s14279_s25 + $0x230] sm:$0xff] }
 0x156   : > { %14394 = vst [vmem:[#allocation65_spill] sm:$0xff] %v10623_v57  ;;  %v1549_v26 = vsel %vm1547_vm7, %v1540_v19, %v7867_v39  ;;  %v7892_v30 = vunpack.i.h.bf16 %v10611_v1  ;;  %v14158_v45 = vrot.slane %v10059_v0, 6  ;;  %v14157_v48 = vunpack.i.h.bf16 %v10515_v53 }
 0x157   : > { %v10638_v2 = vpop.permute.xlu1 %7904  ;;  %v1558_v54 = vsel %vm14204_vm0, %v1549_v26, %v7877_v41  ;;  %v8093_v38 = vpack.i.bf16 %v10597_v47, %v10600_v43  ;;  %6937 = vmatpush3.bf16.msra.mxu0 %v6936_v22  ;;  %v6940_v13 = vpack.c.bf16 %v852_v14, %v851_v29  ;;  %v1477_v10 = vsel %vm1475_vm11, %v1468_v42, %v7797_v15  ;;  %v854_v41 = vld [vmem:[%s14279_s25 + $0x238] sm:$0xff] }
 0x158   : > { %2365 = vrot.lane.b32.xlu0 %v10395_v62, %s14256_s0  ;;  %v1567_v51 = vsel %vm14203_vm2, %v1558_v54, %v7892_v30  ;;  %v10646_v60 = vrot.slane %v10535_v34, 2  ;;  %6939 = vmatprep.subr.bf16.mxu0 %v6938_v33  ;;  %v6942_v3 = vpack.c.bf16 %v870_v6, %v869_v55  ;;  %v7812_v39 = vunpack.i.h.bf16 %v10235_v61  ;;  %v871_v33 = vld [vmem:[%s14279_s25 + $0x2c0] sm:$0xff]  ;;  %v872_v61 = vld [vmem:[%s14279_s25 + $0x2c8] sm:$0xff] }
 0x159   : > { %v8103_v49 = vpack.i.bf16 %v10421_v23, %v10390_v5  ;;  %v10657_v40 = vpop.permute.xlu0 %7899  ;;  %v2751_v22 = vsel %vm2635_vm5, %v1567_v51, %v14157_v48  ;;  %8094 = vrot.lane.b32.xlu1 %v8093_v38, %s8616_s17  ;;  %v10664_v36 = vrot.slane %v10535_v34, 3  ;;  %v8098_v5 = vpack.i.bf16 %v10623_v57, %v10618_v31  ;;  %v855_v54 = vld [vmem:[%s14279_s25 + $0x240] sm:$0xff]  ;;  %v856_v38 = vld [vmem:[%s14279_s25 + $0x248] sm:$0xff] }
 0x15a   : > { %2867 = vmatprep.mubr.f32.mxu0 %v2751_v22  ;;  %v14396_v29 = vrot.slane %v10221_v4, 6  ;;  %vm14397_vm6 = vcmask 1041408   ;;  %v14398_v42 = vpack.i.bf16 %v10395_v62, %v10301_v63  ;;  %vm14400_vm3 = vcmask 1045504  }
 0x15b   : > { %14395 = vst [vmem:[#allocation66_spill] sm:$0xff] %v10664_v36  ;;  %v10685_v19 = vpop.permute.xlu1 %7914  ;;  %v10690_v55 = vsel %vm14400_vm3, %v10279_v27, %v10096_v56  ;;  %v1486_v6 = vsel %vm1484_vm12, %v1477_v10, %v7812_v39  ;;  %6941 = vmatpush3.bf16.msra.mxu0 %v6940_v13  ;;  %v6944_v15 = vpack.c.bf16 %v854_v41, %v853_v28  ;;  %v7827_v26 = vunpack.i.h.bf16 %v10266_v37  ;;  %vm14401_vm4 = vmmov %vm14400_vm3  ;;  %v10738_v39 = vld [vmem:[%s8812_s8 + $0x98] sm:$0xff] }
 0x15c   : > { %v10679_v14 = vsel %vm14397_vm6, %v14396_v29, %v14158_v45  ;;  %8089 = vrot.lane.b32.xlu0 %v14398_v42, %s14275_s22  ;;  %14399 = vst [vmem:[#allocation67_spill] sm:$0xff] %v10685_v19  ;;  %v10697_v30 = vsel %vm14401_vm4, %v10096_v56, %v10646_v60  ;;  %v2277_v63 = vrot.slane %v10059_v0, 7  ;;  %6943 = vmatprep.subr.bf16.mxu0 %v6942_v3  ;;  %v7847_v37 = vunpack.i.h.bf16 %v10359_v7  ;;  %v873_v7 = vld [vmem:[%s14279_s25 + $0x2d0] sm:$0xff]  ;;  %v874_v3 = vld [vmem:[%s14279_s25 + $0x2d8] sm:$0xff] }
 0x15d   : > { %14402 = vst [vmem:[#allocation68_spill] sm:$0xff] %v10697_v30  ;;  %v6946_v62 = vpack.c.bf16 %v872_v61, %v871_v33  ;;  %v10707_v13 = vpop.permute.xlu0 %7909  ;;  %8104 = vrot.lane.b32.xlu1 %v8103_v49, %s14288_s18  ;;  %v8113_v56 = vpack.i.bf16 %v10679_v14, %v10327_v17  ;;  %vm14403_vm6 = vcmask 1044480   ;;  %v1495_v17 = vsel %vm1493_vm13, %v1486_v6, %v7827_v26  ;;  %14407 = vst [vmem:[#allocation71_spill] sm:$0xff] %v10738_v39  ;;  %v857_v42 = vld [vmem:[%s14279_s25 + $0x250] sm:$0xff]  ;;  %v858_v6 = vld [vmem:[%s14279_s25 + $0x258] sm:$0xff] }
 0x15e   : > { %v10715_v10 = vsel %vm14403_vm6, %v10307_v24, %v10125_v21  ;;  %vm14404_vm3 = vmmov %vm14403_vm6  ;;  %v10730_v28 = vrot.slane %v10535_v34, 4  ;;  %v6948_v49 = vpack.c.bf16 %v856_v38, %v855_v54  ;;  %v14408_v61 = vrot.slane %v10221_v4, 7  ;;  %v14410_v4 = vld [vmem:[#allocation59_spill] sm:$0xff] }
 0x15f   : > { %v10720_v51 = vsel %vm14404_vm3, %v10125_v21, %v10664_v36  ;;  %v10733_v41 = vpop.permute.xlu1 %7924  ;;  %v8108_v21 = vpack.i.bf16 %v10697_v30, %v10690_v55  ;;  %6945 = vmatpush3.bf16.msra.mxu0 %v6944_v15  ;;  %vm14409_vm4 = vcmask 1040384   ;;  %v1504_v26 = vsel %vm1502_vm14, %v1495_v17, %v7847_v37 }
 0x160   : > { %14405 = vst [vmem:[#allocation69_spill] sm:$0xff] %v10720_v51  ;;  %8099 = vrot.lane.b32.xlu0 %v8098_v5, %s14267_s1  ;;  %14406 = vst [vmem:[#allocation70_spill] sm:$0xff] %v10733_v41  ;;  %v7926_v22 = vunpack.i.l.bf16 %v10733_v41  ;;  %v8123_v33 = vpack.i.bf16 %v10720_v51, %v10715_v10  ;;  %v10746_v29 = vsel %vm14409_vm4, %v14408_v61, %v2277_v63  ;;  %6947 = vmatprep.subr.bf16.mxu0 %v6946_v62  ;;  %vm14411_vm6 = vcmask 1043456   ;;  %v860_v61 = vld [vmem:[%s14279_s25 + $0x268] sm:$0xff] }
 0x161   : > { %v6950_v5 = vpack.c.bf16 %v874_v3, %v873_v7  ;;  %v10754_v15 = vpop.permute.xlu0 %7919  ;;  %8114 = vrot.lane.b32.xlu1 %v8113_v56, %s14289_s21  ;;  %v10761_v54 = vsel %vm14411_vm6, %v14410_v4, %v10154_v35  ;;  %v2391_v62 = vrot.slane %v10535_v34, 7  ;;  %v2383_v38 = vrot.slane %v10535_v34, 6  ;;  %v875_v7 = vld [vmem:[%s14279_s25 + $0x2e0] sm:$0xff]  ;;  %v876_v3 = vld [vmem:[%s14279_s25 + $0x2e8] sm:$0xff]  ;;  %vm14412_vm3 = vmmov %vm14411_vm6 }
 0x162   : > { %v1513_v56 = vsel %vm14222_vm15, %v1504_v26, %v7926_v22  ;;  %v10775_v37 = vsel %vm14412_vm3, %v10154_v35, %v10730_v28  ;;  %v2375_v17 = vrot.slane %v10535_v34, 5  ;;  %v14415_v45 = vunpack.i.l.bf16 %v10436_v20  ;;  %v14416_v4 = vld [vmem:[#allocation40_spill] sm:$0xff] }
 0x163   : > { %14413 = vst [vmem:[#allocation72_spill] sm:$0xff] %v10775_v37  ;;  %v10780_v48 = vpop.permute.xlu1 %7934  ;;  %v8118_v22 = vpack.i.bf16 %v10746_v29, %v10343_v50  ;;  %v2458_v26 = vrot.slane %v10738_v39, 6  ;;  %6949 = vmatpush3.bf16.msra.mxu0 %v6948_v49  ;;  %v6952_v35 = vpack.c.bf16 %v858_v6, %v857_v42  ;;  %v6954_v44 = vpack.c.bf16 %v876_v3, %v875_v7  ;;  %v877_v42 = vld [vmem:[%s14279_s25 + $0x2f0] sm:$0xff]  ;;  %v878_v6 = vld [vmem:[%s14279_s25 + $0x2f8] sm:$0xff] }
 0x164   : > { %8109 = vrot.lane.b32.xlu0 %v8108_v21, %s14269_s26  ;;  %14414 = vst [vmem:[#allocation73_spill] sm:$0xff] %v10780_v48  ;;  %v1522_v27 = vsel %vm1520_vm10, %v1513_v56, %v14415_v45  ;;  %6951 = vmatprep.subr.bf16.mxu0 %v6950_v5  ;;  %v859_v21 = vld [vmem:[%s14279_s25 + $0x260] sm:$0xff]  ;;  %v7706_v45 = vunpack.i.l.bf16 %v14416_v4  ;;  %v8128_v50 = vpack.i.bf16 %v10775_v37, %v10761_v54  ;;  %v14417_v49 = vrot.slane %v10059_v0, 6 }
 0x165   : > { %2868 = vmatmul.mubr.f32.gmra.mrb[2].mxu0 %v1522_v27  ;;  %v10795_v56 = vpop.permute.xlu0 %7929  ;;  %8124 = vrot.lane.b32.xlu1 %v8123_v33, %s14283_s23  ;;  %v10801_v27 = vsel %vm14409_vm4, %v2277_v63, %v2391_v62  ;;  %vm14418_vm6 = vcmask 1041408   ;;  %v14419_v33 = vld [vmem:[#allocation42_spill] sm:$0xff]  ;;  %v14420_v3 = vrot.slane %v10059_v0, 5  ;;  %vm14421_vm3 = vcmask 1042432  }
 0x166   : > { %v10806_v5 = vsel %vm14418_vm6, %v14417_v49, %v2383_v38  ;;  %v7711_v7 = vunpack.i.l.bf16 %v14419_v33  ;;  %v14422_v24 = vrot.slane %v10738_v39, 5  ;;  %vm14423_vm4 = vmmov %vm14421_vm3  ;;  %v2466_v37 = vrot.slane %v10738_v39, 7 }
 0x167   : > { %v10818_v63 = vsel %vm14421_vm3, %v14420_v3, %v2375_v17  ;;  %v7707_v51 = vunpack.i.h.bf16 %v14416_v4  ;;  %v10828_v30 = vpop.permute.xlu1 %7944  ;;  %v10831_v57 = vsel %vm14418_vm6, %v2383_v38, %v2458_v26  ;;  %6953 = vmatpush3.bf16.msra.mxu0 %v6952_v35  ;;  %v6956_v53 = vpack.c.bf16 %v860_v61, %v859_v21  ;;  %v861_v4 = vld [vmem:[%s14279_s25 + $0x270] sm:$0xff]  ;;  %v862_v38 = vld [vmem:[%s14279_s25 + $0x278] sm:$0xff] }
 0x168   : > { %v10823_v49 = vsel %vm14423_vm4, %v2375_v17, %v14422_v24  ;;  %8119 = vrot.lane.b32.xlu0 %v8118_v22, %s14294_s16  ;;  %14425 = vst [vmem:[#allocation42_spill] sm:$0xff] %v10828_v30  ;;  %v7712_v3 = vunpack.i.h.bf16 %v14419_v33  ;;  %6955 = vmatprep.subr.bf16.mxu0 %v6954_v44  ;;  %v6958_v17 = vpack.c.bf16 %v878_v6, %v877_v42  ;;  %v14426_v22 = vld [vmem:[#allocation24_spill] sm:$0xff]  ;;  %v14428_v35 = vld [vmem:[#allocation41_spill] sm:$0xff]  ;;  %vm14430_vm3 = vcmask 1040384   ;;  %v14433_v44 = vld [vmem:[#allocation46_spill] sm:$0xff] }
 0x169   : > { %14424 = vst [vmem:[#allocation40_spill] sm:$0xff] %v10823_v49  ;;  %v14427_v61 = vunpack.i.h.bf16 %v14426_v22  ;;  %v7716_v21 = vunpack.i.l.bf16 %v14428_v35  ;;  %v10848_v33 = vpop.permute.xlu0 %7939  ;;  %8129 = vrot.lane.b32.xlu1 %v8128_v50, %s14275_s22  ;;  %v14429_v24 = vld [vmem:[#allocation44_spill] sm:$0xff]  ;;  %v7717_v30 = vunpack.i.h.bf16 %v14428_v35  ;;  %v7732_v48 = vunpack.i.h.bf16 %v14433_v44  ;;  %v14435_v42 = vld [vmem:[#allocation26_spill] sm:$0xff] }
 0x16a   : > { %v7721_v43 = vunpack.i.l.bf16 %v14429_v24  ;;  %vm14457_vm4 = vcmask 97280   ;;  %vm14459_vm6 = vcmask 195584  }
 0x16b   : > { %v1533_v26 = vsel %vm1529_vm9, %v14427_v61, %v7706_v45  ;;  %v10860_v45 = vsel %vm14430_vm3, %v2391_v62, %v2466_v37  ;;  %v14431_v61 = vld [vmem:[#allocation29_spill] sm:$0xff]  ;;  %6957 = vmatpush3.bf16.msra.mxu0 %v6956_v53  ;;  %v7722_v62 = vunpack.i.h.bf16 %v14429_v24  ;;  %v7731_v37 = vunpack.i.l.bf16 %v14433_v44  ;;  %v14441_v53 = vld [vmem:[#allocation47_spill] sm:$0xff] }
 0x16c   : > { %v1542_v6 = vsel %vm1538_vm8, %v1533_v26, %v7711_v7  ;;  %v14432_v39 = vunpack.i.l.bf16 %v14431_v61  ;;  %2334 = vrot.lane.b32.xlu0 %v10618_v31, %s14268_s6  ;;  %v10869_v7 = vpop.permute.xlu1 %7949  ;;  %v6960_v26 = vpack.c.bf16 %v862_v38, %v861_v4  ;;  %6959 = vmatprep.subr.bf16.mxu0 %v6958_v17  ;;  %v14437_v31 = vld [vmem:[#allocation25_spill] sm:$0xff]  ;;  %vm14460_vm3 = vcmask 293888  }
 0x16d   : > { %14434 = vst [vmem:[#allocation24_spill] sm:$0xff] %v10869_v7  ;;  %v1551_v19 = vsel %vm1547_vm7, %v1542_v6, %v7716_v21  ;;  %v10878_v41 = vpop.permute.xlu0 %1956  ;;  %2356 = vrot.lane.b32.xlu1 %v10715_v10, %s14258_s3  ;;  %v14438_v17 = vld [vmem:[#allocation45_spill] sm:$0xff]  ;;  %v14440_v10 = vunpack.i.h.bf16 %v14431_v61  ;;  %v7747_v7 = vunpack.i.h.bf16 %v14441_v53  ;;  %v14444_v61 = vld [vmem:[#allocation32_spill] sm:$0xff] }
 0x16e   : > { %v1534_v50 = vsel %vm1529_vm9, %v14432_v39, %v7707_v51  ;;  %v14436_v39 = vld [vmem:[#allocation43_spill] sm:$0xff]  ;;  %v1560_v4 = vsel %vm14204_vm0, %v1551_v19, %v7721_v43  ;;  %v7737_v38 = vunpack.i.h.bf16 %v14438_v17  ;;  %v14442_v19 = vld [vmem:[#allocation37_spill] sm:$0xff] }
 0x16f   : > { %v1543_v22 = vsel %vm1538_vm8, %v1534_v50, %v7712_v3  ;;  %v7726_v35 = vunpack.i.l.bf16 %v14436_v39  ;;  %v7727_v24 = vunpack.i.h.bf16 %v14436_v39  ;;  %v7736_v50 = vunpack.i.l.bf16 %v14438_v17  ;;  %6961 = vmatpush3.bf16.msra.mxu0 %v6960_v26  ;;  %v14446_v3 = vld [vmem:[#allocation14_spill] sm:$0xff] }
 0x170   : > { %v1552_v6 = vsel %vm1547_vm7, %v1543_v22, %v7717_v30  ;;  %v1535_v51 = vsel %vm1529_vm9, %v14440_v10, %v7732_v48  ;;  %2345 = vrot.lane.b32.xlu0 %v10690_v55, %s14270_s28  ;;  %v10899_v39 = vpop.permute.xlu1 %7954  ;;  %v14443_v21 = vunpack.i.h.bf16 %v14442_v19  ;;  %v14445_v48 = vld [vmem:[#allocation48_spill] sm:$0xff]  ;;  %v7771_v36 = vunpack.i.l.bf16 %v14446_v3 }
 0x171   : > { %v1561_v43 = vsel %vm14204_vm0, %v1552_v6, %v7722_v62  ;;  %v7757_v10 = vunpack.i.h.bf16 %v14445_v48  ;;  %v10910_v44 = vpop.permute.xlu0 %1967  ;;  %2377 = vrot.lane.b32.xlu1 %v10421_v23, %s14262_s9  ;;  %v10915_v55 = vsel %vm14203_vm2, %v1560_v4, %v7726_v35  ;;  %v1544_v26 = vsel %vm1538_vm8, %v1535_v51, %v7737_v38  ;;  %v14448_v6 = vld [vmem:[#allocation15_spill] sm:$0xff]  ;;  %v14454_v62 = vld [vmem:[#allocation52_spill] sm:$0xff] }
 0x172   : > { %v1748_v30 = vsel %vm1529_vm9, %v14443_v21, %v7731_v37  ;;  %v14447_v37 = vld [vmem:[#allocation18_spill] sm:$0xff]  ;;  %v7786_v19 = vunpack.i.l.bf16 %v14448_v6  ;;  %v14177_v17 = vmov 0.0|0.0   ;;  %v1553_v3 = vsel %vm1547_vm7, %v1544_v26, %v7747_v7 }
 0x173   : > { %v7767_v21 = vunpack.i.h.bf16 %v14447_v37  ;;  %6994 = vmatprep.subr.bf16.mxu0 %v14177_v17  ;;  %v1751_v22 = vsel %vm1538_vm8, %v1748_v30, %v7736_v50  ;;  %v7792_v23 = vunpack.i.h.bf16 %v10169_v32  ;;  %v10930_v51 = vsel %vm14203_vm2, %v1561_v43, %v7727_v24  ;;  %v14451_v50 = vld [vmem:[#allocation17_spill] sm:$0xff]  ;;  %v14452_v26 = vld [vmem:[#allocation38_spill] sm:$0xff] }
 0x174   : > { %2367 = vrot.lane.b32.xlu0 %v10761_v54, %s14256_s0  ;;  %v10927_v35 = vpop.permute.xlu1 %1989  ;;  %v14450_v4 = vunpack.i.l.bf16 %v14441_v53  ;;  %v14181_v6 = vunpack.i.l.bf16 %v14447_v37  ;;  %v7807_v7 = vunpack.i.h.bf16 %v10191_v18  ;;  %v7801_v30 = vunpack.i.l.bf16 %v14451_v50 }
 0x175   : > { %14449 = vst [vmem:[#allocation41_spill] sm:$0xff] %v10927_v35  ;;  %v1562_v32 = vsel %vm14204_vm0, %v1553_v3, %v7757_v10  ;;  %v14453_v54 = vunpack.i.l.bf16 %v14452_v26  ;;  %v7816_v35 = vunpack.i.l.bf16 %v14454_v62  ;;  %v7822_v24 = vunpack.i.h.bf16 %v10286_v59  ;;  %v10944_v43 = vpop.permute.xlu0 %1978  ;;  %v8525_v59 = vld [vmem:[%s8812_s8 + $0x50] sm:$0xff] }
 0x176   : > { %v1754_v38 = vsel %vm1547_vm7, %v1751_v22, %v14450_v4  ;;  %v14455_v22 = vpack.i.bf16 %v10801_v27, %v10746_v29  ;;  %v14456_v18 = vunpack.i.l.bf16 %v14445_v48  ;;  %v10954_v10 = vsel %vm14203_vm2, %v1562_v32, %v7767_v21  ;;  %v14461_v32 = vld [vmem:[#allocation60_spill] sm:$0xff] }
 0x177   : > { %v1749_v17 = vsel %vm1529_vm9, %v14453_v54, %v7771_v36  ;;  %v8148_v62 = vpack.i.bf16 %v10930_v51, %v10915_v55  ;;  %v1908_v3 = vsel %vm14457_vm4, %v8525_v59, %v7792_v23  ;;  %v7836_v50 = vunpack.i.l.bf16 %v10304_v46 }
 0x178   : > { %8139 = vrot.lane.b32.xlu1 %v14455_v22, %s14265_s27  ;;  %v1757_v4 = vsel %vm14204_vm0, %v1754_v38, %v14456_v18  ;;  %v1752_v36 = vsel %vm1538_vm8, %v1749_v17, %v7786_v19  ;;  %v7831_v29 = vunpack.i.l.bf16 %v10334_v52  ;;  %v7842_v54 = vunpack.i.h.bf16 %v10384_v58  ;;  %v10968_v21 = vpop.permute.xlu1 %1999  ;;  %s14223_s27 = smov 32  }
 0x179   : > { %v14458_v38 = vpack.i.bf16 %v10806_v5, %v10679_v14  ;;  %v10973_v17 = vsel %vm14203_vm2, %v1757_v4, %v14181_v6  ;;  %v7782_v19 = vunpack.i.h.bf16 %v10150_v8  ;;  %v1911_v46 = vsel %vm14459_vm6, %v1908_v3, %v7807_v7  ;;  %v10982_v18 = vpop.permute.xlu0 %7959  ;;  %v895_v8 = vld [vmem:[%s14279_s25 + $0x380] sm:$0xff]  ;;  %v896_v7 = vld [vmem:[%s14279_s25 + $0x388] sm:$0xff] }
 0x17a   : > { %v1755_v52 = vsel %vm1547_vm7, %v1752_v36, %v7801_v30  ;;  %v1914_v23 = vsel %vm14460_vm3, %v1911_v46, %v7822_v24  ;;  %v7856_v14 = vunpack.i.l.bf16 %v10416_v16  ;;  %v7862_v22 = vunpack.i.h.bf16 %v14461_v32  ;;  %v14462_v30 = vld [vmem:[#allocation62_spill] sm:$0xff]  ;;  %v14465_v32 = vld [vmem:[#allocation63_spill] sm:$0xff] }
 0x17b   : > { %8134 = vrot.lane.b32.xlu0 %v14458_v38, %s14260_s5  ;;  %v1758_v58 = vsel %vm14204_vm0, %v1755_v52, %v7816_v35  ;;  %v7886_v35 = vunpack.i.l.bf16 %v14462_v30  ;;  %v14180_v24 = vunpack.i.h.bf16 %v10982_v18  ;;  %v14179_v16 = vunpack.i.l.bf16 %v10982_v18 }
 0x17c   : > { %8149 = vrot.lane.b32.xlu1 %v8148_v62, %s8616_s17  ;;  %v6962_v4 = vpack.c.bf16 %v896_v7, %v895_v8  ;;  %v1937_v36 = vsel %vm1529_vm9, %v7782_v19, %v7836_v50  ;;  %v10996_v59 = vsel %vm14203_vm2, %v1758_v58, %v7831_v29  ;;  %vm14463_vm4 = vcmask 392192   ;;  %v11003_v38 = vpop.permute.xlu1 %7969 }
 0x17d   : > { %v1917_v62 = vsel %vm14463_vm4, %v1914_v23, %v7842_v54  ;;  %v14464_v3 = vpack.i.bf16 %v10535_v34, %v10059_v0  ;;  %v8158_v46 = vpack.i.bf16 %v10954_v10, %v10973_v17  ;;  %v14183_v52 = vunpack.i.l.bf16 %v10455_v12  ;;  %v14466_v34 = vld [vmem:[#allocation16_spill] sm:$0xff]  ;;  %v11019_v7 = vpop.permute.xlu0 %7964 }
 0x17e   : > { %v7887_v50 = vunpack.i.h.bf16 %v14462_v30  ;;  %v7881_v29 = vunpack.i.l.bf16 %v14465_v32  ;;  %v2752_v54 = vsel %vm2635_vm5, %v10597_v47, %v14179_v16  ;;  %6963 = vmatprep.subr.bf16.mxu1 %v6962_v4  ;;  %v1940_v0 = vsel %vm1538_vm8, %v1937_v36, %v7856_v14  ;;  %v8526_v47 = vld [vmem:[%s8812_s8 + $0x58] sm:$0xff]  ;;  %v14469_v36 = vld [vmem:[#allocation27_spill] sm:$0xff] }
 0x17f   : > { %8144 = vrot.lane.b32.xlu0 %v14464_v3, %s14271_s29  ;;  %v1931_v58 = vsel %vm14222_vm15, %v14466_v34, %v7862_v22  ;;  %v7896_v23 = vunpack.i.l.bf16 %v10594_v11  ;;  %v7906_v8 = vunpack.i.l.bf16 %v10638_v2  ;;  %2872 = vmatprep.mubr.f32.mxu0 %v2752_v54  ;;  %v14467_v30 = vpack.i.bf16 %v10823_v49, %v10818_v63 }
 0x180   : > { %vm14468_vm6 = vcmask 97280   ;;  %v7911_v14 = vunpack.i.l.bf16 %v10707_v13  ;;  %v7921_v22 = vunpack.i.l.bf16 %v10754_v15  ;;  %2873 = vmatmul.mubr.f32.gmra.mrb[4].mxu0 %v14469_v36  ;;  %v2753_v3 = vsel %vm2635_vm5, %v10915_v55, %v14180_v24  ;;  %v11046_v36 = vld [vmem:[%s8812_s8 + $0x68] sm:$0xff] }
 0x181   : > { %8154 = vrot.lane.b32.xlu1 %v14467_v30, %s14288_s18  ;;  %v2096_v4 = vsel %vm14468_vm6, %v8526_v47, %v7886_v35  ;;  %v7852_v54 = vunpack.i.h.bf16 %v10436_v20  ;;  %v7931_v30 = vunpack.i.l.bf16 %v10795_v56  ;;  %v7941_v16 = vunpack.i.l.bf16 %v10848_v33  ;;  %2877 = vmatprep.mubr.f32.mxu0 %v2753_v3  ;;  %v11040_v35 = vpop.permute.xlu1 %7979  ;;  %vm14470_vm3 = vmmov %vm14468_vm6  ;;  %v11058_v49 = vpop.permute.xlu0 %7974  ;;  %s14661_s18 = sld [smem:[#allocation77_spill]] }
 0x182   : > { %v1943_v47 = vsel %vm1547_vm7, %v1940_v0, %v14183_v52  ;;  %v2098_v20 = vsel %vm14470_vm3, %v11046_v36, %v7887_v50  ;;  %v1920_v55 = vsel %vm1475_vm11, %v1917_v62, %v7881_v29  ;;  %v11052_v24 = vsel %vm1520_vm10, %v1931_v58, %v7782_v19  ;;  %v14473_v50 = vld [vmem:[#allocation70_spill] sm:$0xff] }
 0x183   : > { %2379 = vrot.lane.b32.xlu0 %v10818_v63, %s14262_s9  ;;  %v1923_v6 = vsel %vm1484_vm12, %v1920_v55, %v7896_v23  ;;  %v14190_v63 = vunpack.i.l.bf16 %v10611_v1  ;;  %v7907_v3 = vunpack.i.h.bf16 %v10638_v2  ;;  %vm14471_vm4 = vcmask 195584   ;;  %v14475_v23 = vld [vmem:[#allocation28_spill] sm:$0xff] }
 0x184   : > { %v2099_v34 = vsel %vm14471_vm4, %v2096_v4, %v7906_v8  ;;  %v14472_v0 = vpack.i.bf16 %v10831_v57, %v10806_v5  ;;  %v7901_v62 = vunpack.i.l.bf16 %v10657_v40  ;;  %v1926_v19 = vsel %vm1493_vm13, %v1923_v6, %v7911_v14  ;;  %2878 = vmatmul.mubr.f32.gmra.mrb[6].mxu0 %v14475_v23  ;;  %v14477_v4 = vld [vmem:[#allocation67_spill] sm:$0xff] }
 0x185   : > { %v7927_v29 = vunpack.i.h.bf16 %v14473_v50  ;;  %vm14474_vm6 = vcmask 293888   ;;  %v14476_v2 = vunpack.i.l.bf16 %v10492_v9  ;;  %v7916_v55 = vunpack.i.l.bf16 %v14477_v4  ;;  %v11076_v5 = vpop.permute.xlu1 %7989 }
 0x186   : > { %8164 = vrot.lane.b32.xlu1 %v14472_v0, %s14289_s21  ;;  %v2102_v58 = vsel %vm14474_vm6, %v2099_v34, %v7921_v22  ;;  %v1929_v52 = vsel %vm1502_vm14, %v1926_v19, %v7931_v30  ;;  %vm14478_vm3 = vcmask 392192   ;;  %v14184_v6 = vunpack.i.h.bf16 %v14465_v32  ;;  %v14479_v22 = vld [vmem:[#allocation73_spill] sm:$0xff]  ;;  %v11091_v19 = vpop.permute.xlu0 %7984 }
 0x187   : > { %v1946_v8 = vsel %vm14204_vm0, %v1943_v47, %v14476_v2  ;;  %v2105_v57 = vsel %vm14478_vm3, %v2102_v58, %v7941_v16  ;;  %8159 = vrot.lane.b32.xlu0 %v8158_v46, %s8616_s17  ;;  %v7922_v14 = vunpack.i.h.bf16 %v10754_v15  ;;  %v7936_v34 = vunpack.i.l.bf16 %v14479_v22 }
 0x188   : > { %v8183_v0 = vpack.i.bf16 %v11052_v24, %v10996_v59  ;;  %v14185_v47 = vunpack.i.h.bf16 %v10594_v11  ;;  %v11087_v30 = vsel %vm14203_vm2, %v1946_v8, %v14190_v63  ;;  %v2101_v16 = vsel %vm14471_vm4, %v2098_v20, %v7907_v3  ;;  %v14481_v8 = vld [vmem:[#allocation42_spill] sm:$0xff] }
 0x189   : > { %v7902_v46 = vunpack.i.h.bf16 %v10657_v40  ;;  %v14480_v15 = vpack.i.bf16 %v10860_v45, %v10801_v27  ;;  %v1938_v50 = vsel %vm1529_vm9, %v7852_v54, %v7901_v62  ;;  %v1932_v58 = vsel %vm14222_vm15, %v1929_v52, %v7927_v29  ;;  %v11111_v52 = vpop.permute.xlu1 %2001  ;;  %v14496_v63 = vld [vmem:[#allocation22_spill] sm:$0xff] }
 0x18a   : > { %v2108_v23 = vsel %vm1475_vm11, %v2105_v57, %v14184_v6  ;;  %v7956_v20 = vunpack.i.l.bf16 %v10899_v39  ;;  %v7917_v40 = vunpack.i.h.bf16 %v14477_v4  ;;  %v1941_v3 = vsel %vm1538_vm8, %v1938_v50, %v7916_v55  ;;  %v8528_v50 = vld [vmem:[%s8812_s8 + $0x60] sm:$0xff] }
 0x18b   : > { %8174 = vrot.lane.b32.xlu1 %v14480_v15, %s14294_s16  ;;  %v14186_v2 = vunpack.i.h.bf16 %v10707_v13  ;;  %v7946_v27 = vunpack.i.l.bf16 %v14481_v8  ;;  %v14482_v45 = vpack.i.bf16 %v14435_v42, %v10568_v25  ;;  %v14187_v62 = vunpack.i.h.bf16 %v14479_v22  ;;  %s8619_s16 = smov 88  }
 0x18c   : > { %v1944_v29 = vsel %vm1547_vm7, %v1941_v3, %v7936_v34  ;;  %v14188_v57 = vunpack.i.h.bf16 %v10795_v56  ;;  %v2104_v4 = vsel %vm14474_vm6, %v2101_v16, %v7922_v14  ;;  %v7942_v55 = vunpack.i.h.bf16 %v10848_v33  ;;  %v14484_v3 = vld [vmem:[#allocation24_spill] sm:$0xff] }
 0x18d   : > { %8169 = vrot.lane.b32.xlu0 %v14482_v45, %s14267_s1  ;;  %v2111_v15 = vsel %vm1484_vm12, %v2108_v23, %v14185_v47  ;;  %vm14483_vm3 = vcmask 97280   ;;  %v11124_v45 = vpop.permute.xlu0 %7994  ;;  %v11128_v34 = vsel %vm1520_vm10, %v1932_v58, %v7852_v54  ;;  %v7951_v6 = vunpack.i.l.bf16 %v14484_v3 }
 0x18e   : > { %v2097_v42 = vsel %vm14483_vm3, %v8528_v50, %v10878_v41  ;;  %v2126_v33 = vsel %vm1529_vm9, %v7956_v20, %v7902_v46  ;;  %v7971_v16 = vunpack.i.l.bf16 %v11003_v38  ;;  %v14191_v41 = vunpack.i.h.bf16 %v14481_v8  ;;  %v11146_v46 = vpop.permute.xlu1 %8004 }
 0x18f   : > { %8184 = vrot.lane.b32.xlu1 %v8183_v0, %s8616_s17  ;;  %v2100_v14 = vsel %vm14471_vm4, %v2097_v42, %v10910_v44  ;;  %v1947_v23 = vsel %vm14204_vm0, %v1944_v29, %v7946_v27  ;;  %v7981_v54 = vunpack.i.l.bf16 %v11040_v35  ;;  %v14485_v58 = vpack.i.bf16 %v14437_v31, %v10646_v60 }
 0x190   : > { %v2103_v0 = vsel %vm14474_vm6, %v2100_v14, %v10944_v43  ;;  %v2114_v50 = vsel %vm1493_vm13, %v2111_v15, %v14186_v2  ;;  %v7976_v27 = vunpack.i.l.bf16 %v11058_v49  ;;  %v8198_v43 = vpack.i.bf16 %v11128_v34, %v11087_v30  ;;  %v14488_v2 = vld [vmem:[#allocation41_spill] sm:$0xff] }
 0x191   : > { %8179 = vrot.lane.b32.xlu0 %v14485_v58, %s14269_s26  ;;  %v2129_v29 = vsel %vm1538_vm8, %v2126_v33, %v7917_v40  ;;  %v7972_v42 = vunpack.i.h.bf16 %v11003_v38  ;;  %v7986_v31 = vunpack.i.l.bf16 %v11091_v19  ;;  %vm14486_vm3 = vcmask 392192   ;;  %v11159_v58 = vpop.permute.xlu0 %7999 }
 0x192   : > { %v2107_v14 = vsel %vm14486_vm3, %v2104_v4, %v7942_v55  ;;  %v14487_v47 = vpack.i.bf16 %v14444_v61, %v10730_v28  ;;  %v11166_v15 = vsel %vm14203_vm2, %v1947_v23, %v7951_v6  ;;  %vm14489_vm4 = vmmov %vm14486_vm3  ;;  %v14490_v40 = vunpack.i.h.bf16 %v14452_v26 }
 0x193   : > { %v2106_v44 = vsel %vm14489_vm4, %v2103_v0, %v14488_v2  ;;  %v7966_v33 = vunpack.i.l.bf16 %v11019_v7  ;;  %v7957_v4 = vunpack.i.h.bf16 %v10899_v39  ;;  %v2117_v61 = vsel %vm1502_vm14, %v2114_v50, %v14188_v57  ;;  %v14492_v2 = vld [vmem:[#allocation66_spill] sm:$0xff] }
 0x194   : > { %8194 = vrot.lane.b32.xlu1 %v14487_v47, %s14275_s22  ;;  %v1750_v38 = vsel %vm1529_vm9, %v14490_v40, %v7971_v16  ;;  %v11177_v55 = vsel %vm1475_vm11, %v2106_v44, %v10968_v21  ;;  %v14491_v47 = vld [vmem:[#allocation31_spill] sm:$0xff]  ;;  %v11187_v16 = vpop.permute.xlu1 %8014  ;;  %v2132_v23 = vsel %vm1547_vm7, %v2129_v29, %v14187_v62  ;;  %v7991_v0 = vunpack.i.l.bf16 %v11076_v5  ;;  %v14494_v29 = vld [vmem:[#allocation21_spill] sm:$0xff] }
 0x195   : > { %v1753_v6 = vsel %vm1538_vm8, %v1750_v38, %v7981_v54  ;;  %v14493_v26 = vpack.i.bf16 %v14491_v47, %v14492_v2  ;;  %v2112_v21 = vsel %vm1484_vm12, %v11177_v55, %v7976_v27  ;;  %v2110_v44 = vsel %vm1475_vm11, %v2107_v14, %v11111_v52  ;;  %v11201_v47 = vpop.permute.xlu0 %8009 }
 0x196   : > { %v2127_v54 = vsel %vm1529_vm9, %v7957_v4, %v7972_v42  ;;  %v7982_v50 = vunpack.i.h.bf16 %v11040_v35  ;;  %v14189_v40 = vunpack.i.h.bf16 %v11058_v49  ;;  %v2115_v38 = vsel %vm1493_vm13, %v2112_v21, %v7986_v31 }
 0x197   : > { %8189 = vrot.lane.b32.xlu0 %v14493_v26, %s14283_s23  ;;  %v2120_v27 = vsel %vm14222_vm15, %v2117_v61, %v7966_v33  ;;  %v14495_v26 = vunpack.i.l.bf16 %v10455_v12  ;;  %v14198_v14 = vunpack.i.h.bf16 %v11091_v19  ;;  %v7996_v42 = vunpack.i.l.bf16 %v11124_v45 }
 0x198   : > { %1769 = vrot.lane.b32.xlu1 %v14494_v29, %s14268_s6  ;;  %v2113_v35 = vsel %vm1484_vm12, %v2110_v44, %v14189_v40  ;;  %v8006_v31 = vunpack.i.l.bf16 %v11146_v46  ;;  %v8001_v21 = vunpack.i.l.bf16 %v11159_v58  ;;  %v8011_v29 = vunpack.i.l.bf16 %v11201_v47  ;;  %v11218_v33 = vpop.permute.xlu1 %8024 }
 0x199   : > { %v1756_v62 = vsel %vm1547_vm7, %v1753_v6, %v14495_v26  ;;  %v2118_v12 = vsel %vm1502_vm14, %v2115_v38, %v7991_v0  ;;  %v8016_v61 = vunpack.i.l.bf16 %v11187_v16  ;;  %v14192_v6 = vunpack.i.h.bf16 %v11218_v33  ;;  %v11226_v40 = vpop.permute.xlu0 %8019 }
 0x19a   : > { %v14194_v26 = vunpack.i.l.bf16 %v11218_v33  ;;  %v7967_v44 = vunpack.i.h.bf16 %v11019_v7  ;;  %v2130_v57 = vsel %vm1538_vm8, %v2127_v54, %v7982_v50  ;;  %v14498_v0 = vunpack.i.l.bf16 %v10492_v9 }
 0x19b   : > { %8199 = vrot.lane.b32.xlu0 %v8198_v43, %s8616_s17  ;;  %v11233_v43 = vsel %vm1520_vm10, %v2120_v27, %v7956_v20  ;;  %v2116_v7 = vsel %vm1493_vm13, %v2113_v35, %v14198_v14  ;;  %v2133_v54 = vsel %vm1547_vm7, %v2130_v57, %v7996_v42  ;;  %v8021_v50 = vunpack.i.l.bf16 %v11226_v40 }
 0x19c   : > { %1791 = vrot.lane.b32.xlu1 %v14496_v63, %s14258_s3  ;;  %14497 = vst [vmem:[#allocation44_spill] sm:$0xff] %v11233_v43  ;;  %v1759_v38 = vsel %vm14204_vm0, %v1756_v62, %v14498_v0  ;;  %v11247_v39 = vsel %vm2635_vm5, %v10930_v51, %v14194_v26  ;;  %v14197_v63 = vunpack.i.h.bf16 %v11076_v5  ;;  %v2136_v9 = vsel %vm14204_vm0, %v2133_v54, %v8001_v21  ;;  %v14499_v62 = vld [vmem:[#allocation20_spill] sm:$0xff]  ;;  %v11254_v27 = vpop.permute.xlu1 %8034  ;;  %v14501_v0 = vld [vmem:[#allocation30_spill] sm:$0xff] }
 0x19d   : > { %v2128_v20 = vsel %vm1529_vm9, %v8006_v31, %v8011_v29  ;;  %2882 = vmatprep.mubr.f32.mxu0 %v11247_v39  ;;  %v2121_v57 = vsel %vm14222_vm15, %v2118_v12, %v7967_v44  ;;  %v14193_v42 = vunpack.i.h.bf16 %v11124_v45  ;;  %v11260_v51 = vsel %vm14203_vm2, %v2136_v9, %v8016_v61  ;;  %v11271_v54 = vpop.permute.xlu0 %8029  ;;  %v14502_v61 = vld [vmem:[#allocation23_spill] sm:$0xff] }
 0x19e   : > { %14500 = vst [vmem:[#allocation29_spill] sm:$0xff] %v11260_v51  ;;  %v2131_v35 = vsel %vm1538_vm8, %v2128_v20, %v8021_v50  ;;  %2883 = vmatmul.mubr.f32.gmra.mrb[8].mxu0 %v14501_v0  ;;  %v11268_v21 = vsel %vm2635_vm5, %v10954_v10, %v14192_v6  ;;  %v8036_v29 = vunpack.i.l.bf16 %v11254_v27  ;;  %v8203_v12 = vpack.i.bf16 %v11233_v43, %v11166_v15 }
 0x19f   : > { %1780 = vrot.lane.b32.xlu0 %v14499_v62, %s14270_s28  ;;  %2887 = vmatprep.mubr.f32.mxu0 %v11268_v21  ;;  %v2135_v44 = vsel %vm14204_vm0, %v2132_v23, %v14191_v41  ;;  %v2134_v10 = vsel %vm1547_vm7, %v2131_v35, %v14193_v42  ;;  %v8031_v50 = vunpack.i.l.bf16 %v11271_v54  ;;  %v14503_v9 = vunpack.i.l.bf16 %v10611_v1 }
 0x1a0   : > { %1802 = vrot.lane.b32.xlu1 %v14502_v61, %s14256_s0  ;;  %v11289_v62 = vsel %vm1520_vm10, %v2121_v57, %v7957_v4  ;;  %v14195_v0 = vunpack.i.h.bf16 %v11159_v58  ;;  %v2119_v61 = vsel %vm1502_vm14, %v2116_v7, %v14197_v63  ;;  %v11296_v23 = vpop.permute.xlu1 %8039  ;;  %v14196_v1 = vunpack.i.h.bf16 %v11187_v16  ;;  %v14505_v57 = vld [vmem:[#allocation39_spill] sm:$0xff]  ;;  %v8529_v7 = vld [vmem:[%s8812_s8 + $0x38] sm:$0xff] }
 0x1a1   : > { %v1762_v20 = vsel %vm14203_vm2, %v1759_v38, %v14503_v9  ;;  %14504 = vst [vmem:[#allocation46_spill] sm:$0xff] %v11289_v62  ;;  %v8213_v35 = vpack.i.bf16 %v11260_v51, %v11289_v62  ;;  %v2122_v38 = vsel %vm14222_vm15, %v2119_v61, %v8031_v50  ;;  %v8041_v4 = vunpack.i.l.bf16 %v11296_v23  ;;  %v2144_v6 = vpop.permute.xlu0 %2143  ;;  %v8530_v51 = vld [vmem:[%s8812_s8 + $0x70] sm:$0xff] }
 0x1a2   : > { %2888 = vmatmul.mubr.f32.gmra.mrb[10].mxu0 %v14505_v57  ;;  %v14506_v9 = vunpack.i.h.bf16 %v14484_v3  ;;  %vm14508_vm6 = vcmask 97280   ;;  %v2137_v50 = vsel %vm14204_vm0, %v2134_v10, %v14195_v0  ;;  %v2125_v61 = vsel %vm1520_vm10, %v2122_v38, %v8006_v31 }
 0x1a3   : > { %8204 = vrot.lane.b32.xlu0 %v8203_v12, %s8616_s17  ;;  %v1447_v12 = vsel %vm14508_vm6, %v8529_v7, %v8036_v29  ;;  %vm14509_vm3 = vcmask 195584   ;;  %v2140_v29 = vsel %vm14203_vm2, %v2137_v50, %v14196_v1  ;;  %v8007_v7 = vunpack.i.h.bf16 %v11146_v46 }
 0x1a4   : > { %v11307_v41 = vsel %vm14203_vm2, %v2135_v44, %v14506_v9  ;;  %8214 = vrot.lane.b32.xlu1 %v8213_v35, %s8616_s17  ;;  %v11318_v26 = vpop.permute.xlu1 %8044  ;;  %v1456_v44 = vsel %vm14509_vm3, %v1447_v12, %v8041_v4  ;;  %v8218_v35 = vpack.i.bf16 %v2140_v29, %v2125_v61  ;;  %v8012_v10 = vunpack.i.h.bf16 %v11201_v47  ;;  %v14512_v61 = vld [vmem:[#allocation34_spill] sm:$0xff] }
 0x1a5   : > { %14507 = vst [vmem:[#allocation26_spill] sm:$0xff] %v11307_v41  ;;  %v8208_v42 = vpack.i.bf16 %v1762_v20, %v11307_v41  ;;  %v8046_v9 = vunpack.i.l.bf16 %v11318_v26  ;;  %v2155_v20 = vpop.permute.xlu0 %2154  ;;  %vm14510_vm4 = vcmask 293888   ;;  %v8022_v38 = vunpack.i.h.bf16 %v11226_v40 }
 0x1a6   : > { %vm14511_vm6 = vcmask 392192   ;;  %v1537_v50 = vsel %vm1529_vm9, %v8007_v7, %v8012_v10  ;;  %v14513_v29 = vunpack.i.h.bf16 %v14512_v61  ;;  %v14516_v14 = vunpack.i.l.bf16 %v14441_v53 }
 0x1a7   : > { %8209 = vrot.lane.b32.xlu0 %v8208_v42, %s8616_s17  ;;  %v1465_v31 = vsel %vm14510_vm4, %v1456_v44, %v8046_v9  ;;  %v1546_v44 = vsel %vm1538_vm8, %v1537_v50, %v8022_v38  ;;  %v14519_v50 = vunpack.i.l.bf16 %v14445_v48  ;;  %v14523_v48 = vunpack.i.l.bf16 %v14447_v37 }
 0x1a8   : > { %v11329_v42 = vpop.permute.xlu1 %8049  ;;  %v1555_v62 = vsel %vm1547_vm7, %v1546_v44, %v14516_v14  ;;  %v8032_v14 = vunpack.i.h.bf16 %v11271_v54  ;;  %vm14526_vm3 = vcmask 97280   ;;  %vm14527_vm4 = vcmask 195584  }
 0x1a9   : > { %v8051_v4 = vunpack.i.l.bf16 %v11329_v42  ;;  %v2166_v12 = vpop.permute.xlu0 %2165  ;;  %v2285_v37 = vsel %vm14526_vm3, %v11046_v36, %v2144_v6  ;;  %vm14529_vm1 = vmmov %vm14526_vm3 }
 0x1ab   : > { %8219 = vrot.lane.b32.xlu0 %v8218_v35, %s8616_s17  ;;  %v1474_v0 = vsel %vm14511_vm6, %v1465_v31, %v8051_v4  ;;  %v14514_v35 = vld [vmem:[#allocation33_spill] sm:$0xff]  ;;  %v14517_v31 = vld [vmem:[#allocation36_spill] sm:$0xff]  ;;  %vm14528_vm6 = vcmask 293888  }
 0x1ac   : > { %v1483_v46 = vsel %vm1475_vm11, %v1474_v0, %v14513_v29  ;;  %v2146_v47 = vpop.permute.xlu1 %2145  ;;  %v14515_v1 = vunpack.i.h.bf16 %v14514_v35  ;;  %v14518_v4 = vunpack.i.h.bf16 %v14517_v31  ;;  %v1564_v29 = vsel %vm14204_vm0, %v1555_v62, %v14519_v50  ;;  %vm14531_vm0 = vmmov %vm14527_vm4 }
 0x1ad   : > { %v2177_v9 = vpop.permute.xlu0 %2176  ;;  %v1573_v62 = vsel %vm14203_vm2, %v1564_v29, %v14523_v48  ;;  %v2288_v48 = vsel %vm14527_vm4, %v2285_v37, %v2155_v20  ;;  %vm14530_vm2 = vcmask 392192   ;;  %vm14532_vm3 = vmmov %vm14528_vm6 }
 0x1ae   : > { %v1492_v63 = vsel %vm1484_vm12, %v1483_v46, %v14515_v1  ;;  %v14520_v46 = vld [vmem:[#allocation35_spill] sm:$0xff]  ;;  %vm14542_vm4 = vmmov %vm14532_vm3 }
 0x1af   : > { %v1501_v10 = vsel %vm1493_vm13, %v1492_v63, %v14518_v4  ;;  %v14521_v35 = vunpack.i.h.bf16 %v14520_v46  ;;  %v14522_v63 = vld [vmem:[#allocation64_spill] sm:$0xff]  ;;  %v14524_v4 = vld [vmem:[#allocation49_spill] sm:$0xff] }
 0x1b0   : > { %v2157_v40 = vpop.permute.xlu1 %2156 }
 0x1b1   : > { %v11348_v61 = vpop.permute.xlu0 %8054  ;;  %v1510_v53 = vsel %vm1502_vm14, %v1501_v10, %v14521_v35 }
 0x1b2   : > { %v14205_v0 = vunpack.i.h.bf16 %v11348_v61  ;;  %v14200_v38 = vunpack.i.l.bf16 %v11348_v61  ;;  %v1519_v10 = vsel %vm14222_vm15, %v1510_v53, %v8032_v14 }
 0x1b3   : > { %v1528_v35 = vsel %vm1520_vm10, %v1519_v10, %v8007_v7 }
 0x1b4   : > { %v2179_v1 = vpop.permute.xlu1 %2178  ;;  %v11363_v44 = vsel %vm2635_vm5, %v14522_v63, %v14200_v38  ;;  %v2757_v54 = vsel %vm2635_vm5, %v1573_v62, %v14205_v0  ;;  %v2291_v38 = vsel %vm14528_vm6, %v2288_v48, %v2166_v12  ;;  %v2286_v62 = vsel %vm14529_vm1, %v8530_v51, %v2146_v47  ;;  %vm14535_vm1 = vmmov %vm14530_vm2 }
 0x1b5   : > { %v2168_v31 = vpop.permute.xlu0 %2167  ;;  %2892 = vmatprep.mubr.f32.mxu0 %v11363_v44  ;;  %v2294_v14 = vsel %vm14530_vm2, %v2291_v38, %v2177_v9  ;;  %v2289_v7 = vsel %vm14531_vm0, %v2286_v62, %v2157_v40  ;;  %v14534_v12 = vunpack.i.h.bf16 %v11058_v49  ;;  %v14536_v38 = vunpack.i.h.bf16 %v11091_v19  ;;  %vm14544_vm6 = vmmov %vm14535_vm1 }
 0x1b6   : > { %2893 = vmatmul.mubr.f32.gmra.mrb[12].mxu0 %v14524_v4  ;;  %v11389_v10 = vsel %vm1475_vm11, %v2294_v14, %v11111_v52  ;;  %v2292_v6 = vsel %vm14532_vm3, %v2289_v7, %v2168_v31  ;;  %vm14539_vm2 = vcmask 97280   ;;  %vm14555_vm3 = vcmask 326656  }
 0x1b7   : > { %2897 = vmatprep.mubr.f32.mxu0 %v2757_v54  ;;  %v2300_v51 = vsel %vm1484_vm12, %v11389_v10, %v14534_v12  ;;  %v2295_v52 = vsel %vm14535_vm1, %v2292_v6, %v2179_v1  ;;  %v11416_v12 = vld [vmem:[%s8812_s8 + $0x78] sm:$0xff]  ;;  %vm14557_vm1 = vcmask 424960  }
 0x1b8   : > { %v8060_v50 = vpop.permute.xlu1 %8059  ;;  %14538 = vst [vmem:[#allocation47_spill] sm:$0xff] %v11416_v12 }
 0x1b9   : > { %v2189_v46 = vpop.permute.xlu0 %2188  ;;  %v8061_v31 = vunpack.i.l.bf16 %v8060_v50  ;;  %v8062_v7 = vunpack.i.h.bf16 %v8060_v50 }
 0x1ba   : > { %2898 = vmatmul.mubr.f32.gmra.mrb[14].mxu0 %v1528_v35  ;;  %v2303_v35 = vsel %vm1493_vm13, %v2300_v51, %v14536_v38  ;;  %v11407_v37 = vsel %vm1475_vm11, %v2295_v52, %v2189_v46  ;;  %v14541_v46 = vunpack.i.h.bf16 %v11076_v5 }
 0x1bc   : > { %v11375_v63 = vpop.permute.xlu1 %8064  ;;  %v2306_v51 = vsel %vm1502_vm14, %v2303_v35, %v14541_v46  ;;  %v911_v35 = vld [vmem:[%s14279_s25 + $0x400] sm:$0xff]  ;;  %v898_v46 = vld [vmem:[%s14279_s25 + $0x398] sm:$0xff] }
 0x1bd   : > { %14525 = vst [vmem:[#allocation43_spill] sm:$0xff] %v11375_v63  ;;  %v2333_v29 = vpop.permute.xlu0 %2332  ;;  %v8066_v47 = vunpack.i.l.bf16 %v11375_v63  ;;  %v2309_v50 = vsel %vm14222_vm15, %v2306_v51, %v8061_v31 }
 0x1be   : > { %v2474_v19 = vsel %vm14539_vm2, %v11416_v12, %v2333_v29 }
 0x1bf   : > { %v2301_v48 = vsel %vm1484_vm12, %v11407_v37, %v8066_v47 }
 0x1c0   : > { %v2344_v53 = vpop.permute.xlu1 %2343 }
 0x1c1   : > { %v11384_v54 = vpop.permute.xlu0 %8069  ;;  %v2477_v47 = vsel %vm14531_vm0, %v2474_v19, %v2344_v53  ;;  %vm14562_vm0 = vmmov %vm14555_vm3 }
 0x1c2   : > { %v8071_v62 = vunpack.i.l.bf16 %v11384_v54  ;;  %v14207_v52 = vunpack.i.h.bf16 %v11384_v54 }
 0x1c4   : > { %v2355_v36 = vpop.permute.xlu1 %2354 }
 0x1c5   : > { %v11392_v20 = vpop.permute.xlu0 %8074  ;;  %v2480_v0 = vsel %vm14542_vm4, %v2477_v47, %v2355_v36  ;;  %v912_v36 = vld [vmem:[%s14279_s25 + $0x408] sm:$0xff]  ;;  %vm14564_vm4 = vmmov %vm14562_vm0 }
 0x1c6   : > { %14533 = vst [vmem:[#allocation25_spill] sm:$0xff] %v11392_v20  ;;  %v8076_v9 = vunpack.i.l.bf16 %v11392_v20 }
 0x1c8   : > { %v11400_v40 = vpop.permute.xlu1 %8084  ;;  %v2304_v1 = vsel %vm1493_vm13, %v2301_v48, %v8076_v9  ;;  %v11433_v9 = vsel %vm1520_vm10, %v2309_v50, %v8071_v62  ;;  %v14212_v50 = vunpack.i.h.bf16 %v11375_v63 }
 0x1c9   : > { %v11409_v49 = vpop.permute.xlu0 %8079  ;;  %14543 = vst [vmem:[#allocation32_spill] sm:$0xff] %v11433_v9  ;;  %v8086_v31 = vunpack.i.l.bf16 %v11400_v40 }
 0x1ca   : > { %14537 = vst [vmem:[#allocation45_spill] sm:$0xff] %v11409_v49  ;;  %v8081_v14 = vunpack.i.l.bf16 %v11409_v49 }
 0x1cc   : > { %v11421_v6 = vpop.permute.xlu1 %2190  ;;  %v2307_v38 = vsel %vm1502_vm14, %v2304_v1, %v8081_v14  ;;  %v897_v1 = vld [vmem:[%s14279_s25 + $0x390] sm:$0xff] }
 0x1cd   : > { %14540 = vst [vmem:[#allocation37_spill] sm:$0xff] %v11421_v6  ;;  %v2310_v29 = vsel %vm14222_vm15, %v2307_v38, %v8062_v7  ;;  %v2366_v12 = vpop.permute.xlu0 %2365  ;;  %v880_v7 = vld [vmem:[%s14279_s25 + $0x308] sm:$0xff]  ;;  %v6995_v38 = vpack.c.bf16 %v912_v36, %v911_v35  ;;  %v14550_v35 = vunpack.i.l.bf16 %v11218_v33 }
 0x1ce   : > { %v2483_v5 = vsel %vm14544_vm6, %v2480_v0, %v2366_v12  ;;  %v11439_v53 = vsel %vm1520_vm10, %v2310_v29, %v14207_v52  ;;  %v879_v0 = vld [vmem:[%s14279_s25 + $0x300] sm:$0xff]  ;;  %vm14565_vm6 = vmmov %vm14557_vm1 }
 0x1cf   : > { %14545 = vst [vmem:[#allocation48_spill] sm:$0xff] %v11439_v53  ;;  %v8223_v14 = vpack.i.bf16 %v11439_v53, %v11433_v9  ;;  %v11464_v51 = vsel %vm1475_vm11, %v2483_v5, %v11421_v6  ;;  %v913_v9 = vld [vmem:[%s14279_s25 + $0x410] sm:$0xff]  ;;  %v6964_v43 = vpack.c.bf16 %v880_v7, %v879_v0  ;;  %v2315_v5 = vsel %vm1529_vm9, %v8071_v62, %v8086_v31  ;;  %v882_v62 = vld [vmem:[%s14279_s25 + $0x318] sm:$0xff]  ;;  %v899_v0 = vld [vmem:[%s14279_s25 + $0x3a0] sm:$0xff] }
 0x1d0   : > { %v8095_v48 = vpop.permute.xlu1 %8094  ;;  %14546 = vst [vmem:[#allocation14_spill] sm:$0xff] %v11464_v51  ;;  %v900_v7 = vld [vmem:[%s14279_s25 + $0x3a8] sm:$0xff] }
 0x1d1   : > { %v8097_v12 = vunpack.i.h.bf16 %v8095_v48  ;;  %v8096_v19 = vunpack.i.l.bf16 %v8095_v48  ;;  %v11466_v47 = vpop.permute.xlu0 %8089  ;;  %8224 = vrot.lane.b32.xlu1 %v8223_v14, %s8616_s17  ;;  %v14547_v48 = vld [vmem:[#allocation61_spill] sm:$0xff] }
 0x1d2   : > { %v8091_v29 = vunpack.i.l.bf16 %v11466_v47  ;;  %v14548_v52 = vunpack.i.l.bf16 %v14547_v48  ;;  %v914_v14 = vld [vmem:[%s14279_s25 + $0x418] sm:$0xff] }
 0x1d3   : > { %v11483_v36 = vsel %vm2635_vm5, %v14550_v35, %v8096_v19  ;;  %v14215_v19 = vunpack.i.h.bf16 %v11392_v20  ;;  %v915_v35 = vld [vmem:[%s14279_s25 + $0x420] sm:$0xff] }
 0x1d4   : > { %v2636_v53 = vsel %vm2635_vm5, %v14548_v52, %v8097_v12  ;;  %v11478_v6 = vpop.permute.xlu1 %8104  ;;  %v6966_v52 = vpack.c.bf16 %v898_v46, %v897_v1  ;;  %v881_v12 = vld [vmem:[%s14279_s25 + $0x310] sm:$0xff]  ;;  %v2318_v31 = vsel %vm1538_vm8, %v2315_v5, %v8091_v29  ;;  %3072 = vmatprep.mubr.f32.mxu0 %v11483_v36  ;;  %v14551_v46 = vld [vmem:[#allocation65_spill] sm:$0xff]  ;;  %v14552_v29 = vunpack.i.h.bf16 %v11124_v45  ;;  %v916_v45 = vld [vmem:[%s14279_s25 + $0x428] sm:$0xff] }
 0x1d5   : > { %14549 = vst [vmem:[#allocation18_spill] sm:$0xff] %v11478_v6  ;;  %2968 = vmatmul.mubr.f32.vlgmr.msra.gmra.mrb[0].mxu1 %v2636_v53  ;;  %v2489_v53 = vsel %vm1484_vm12, %v11464_v51, %v14212_v50  ;;  %v11508_v1 = vpop.permute.xlu0 %8099  ;;  %3073 = vmatmul.mubr.f32.vlgmr.msra.gmra.mrb[16].mxu0 %v11247_v39  ;;  %v6998_v5 = vpack.c.bf16 %v914_v14, %v913_v9  ;;  %v14216_v14 = vunpack.i.h.bf16 %v11409_v49  ;;  %v8106_v20 = vunpack.i.l.bf16 %v11478_v6  ;;  %v887_v51 = vld [vmem:[%s14279_s25 + $0x340] sm:$0xff] }
 0x1d6   : > { %2972 = vmatprep.mubr.f32.mxu1 %v14505_v57  ;;  %2521 = vrot.lane.b32.xlu1 %v14551_v46, %s14268_s6  ;;  %v2321_v57 = vsel %vm1547_vm7, %v2318_v31, %v14552_v29  ;;  %v6968_v50 = vpack.c.bf16 %v882_v62, %v881_v12  ;;  %v2492_v63 = vsel %vm1493_vm13, %v2489_v53, %v14215_v19  ;;  %v8101_v39 = vunpack.i.l.bf16 %v11508_v1  ;;  %v902_v31 = vld [vmem:[%s14279_s25 + $0x3b8] sm:$0xff] }
 0x1d7   : > { %6996 = vmatpush1.bf16.msra.mxu0 %v6995_v38  ;;  %6965 = vmatpush3.bf16.msra.mxu1 %v6964_v43  ;;  %v14553_v46 = vmov 0.0|0.0   ;;  %v6970_v9 = vpack.c.bf16 %v900_v7, %v899_v0  ;;  %v883_v43 = vld [vmem:[%s14279_s25 + $0x320] sm:$0xff]  ;;  %v884_v38 = vld [vmem:[%s14279_s25 + $0x328] sm:$0xff]  ;;  %v14554_v62 = vunpack.i.h.bf16 %v11159_v58  ;;  %v2495_v0 = vsel %vm1502_vm14, %v2492_v63, %v14216_v14  ;;  %v917_v58 = vld [vmem:[%s14279_s25 + $0x430] sm:$0xff] }
 0x1d8   : > { %v11523_v41 = vpop.permute.xlu1 %8114  ;;  %6997 = vmatprep.subr.bf16.mxu0 %v14553_v46  ;;  %6967 = vmatprep.subr.bf16.mxu1 %v6966_v52  ;;  %v901_v52 = vld [vmem:[%s14279_s25 + $0x3b0] sm:$0xff]  ;;  %v7001_v29 = vpack.c.bf16 %v916_v45, %v915_v35  ;;  %v918_v63 = vld [vmem:[%s14279_s25 + $0x438] sm:$0xff] }
 0x1d9   : > { %v11536_v12 = vpop.permute.xlu0 %8109  ;;  %v2324_v53 = vsel %vm14555_vm3, %v2321_v57, %v14554_v62  ;;  %v6972_v57 = vpack.c.bf16 %v884_v38, %v883_v43  ;;  %v2498_v62 = vsel %vm14222_vm15, %v2495_v0, %v8101_v39  ;;  %v14556_v39 = vunpack.i.h.bf16 %v11187_v16  ;;  %v919_v43 = vld [vmem:[%s14279_s25 + $0x440] sm:$0xff]  ;;  %vm14567_vm3 = vmmov %vm14557_vm1 }
 0x1da   : > { %v8111_v7 = vunpack.i.l.bf16 %v11536_v12  ;;  %v6974_v38 = vpack.c.bf16 %v902_v31, %v901_v52  ;;  %v8087_v0 = vunpack.i.h.bf16 %v11400_v40  ;;  %v7004_v52 = vpack.c.bf16 %v918_v63, %v917_v58 }
 0x1db   : > { %6999 = vmatpush1.bf16.msra.mxu0 %v6998_v5  ;;  %6969 = vmatpush3.bf16.msra.mxu1 %v6968_v50  ;;  %v885_v5 = vld [vmem:[%s14279_s25 + $0x330] sm:$0xff]  ;;  %v886_v50 = vld [vmem:[%s14279_s25 + $0x338] sm:$0xff]  ;;  %v11571_v45 = vsel %vm14557_vm1, %v2324_v53, %v14556_v39  ;;  %v903_v53 = vld [vmem:[%s14279_s25 + $0x3c0] sm:$0xff]  ;;  %v8092_v39 = vunpack.i.h.bf16 %v11466_v47  ;;  %v8116_v58 = vunpack.i.l.bf16 %v11523_v41  ;;  %vm14568_vm1 = vcmask 195584  }
 0x1dc   : > { %v11555_v19 = vpop.permute.xlu1 %8124  ;;  %7000 = vmatprep.subr.bf16.mxu0 %v14553_v46  ;;  %6971 = vmatprep.subr.bf16.mxu1 %v6970_v9  ;;  %v2501_v35 = vsel %vm1520_vm10, %v2498_v62, %v8111_v7  ;;  %14558 = vst [vmem:[#allocation15_spill] sm:$0xff] %v11571_v45  ;;  %v920_v9 = vld [vmem:[%s14279_s25 + $0x448] sm:$0xff]  ;;  %v6976_v40 = vpack.c.bf16 %v886_v50, %v885_v5  ;;  %v14559_v5 = vunpack.i.h.bf16 %v11384_v54 }
 0x1dd   : > { %v8126_v14 = vunpack.i.l.bf16 %v11555_v19  ;;  %v11581_v49 = vpop.permute.xlu0 %8119  ;;  %v8228_v16 = vpack.i.bf16 %v2501_v35, %v11571_v45  ;;  %v904_v62 = vld [vmem:[%s14279_s25 + $0x3c8] sm:$0xff]  ;;  %v7007_v45 = vpack.c.bf16 %v920_v9, %v919_v43 }
 0x1de   : > { %v888_v47 = vld [vmem:[%s14279_s25 + $0x348] sm:$0xff]  ;;  %v6978_v63 = vpack.c.bf16 %v904_v62, %v903_v53  ;;  %v2316_v50 = vsel %vm1529_vm9, %v14559_v5, %v8087_v0  ;;  %v14560_v5 = vunpack.i.h.bf16 %v11478_v6  ;;  %v907_v6 = vld [vmem:[%s14279_s25 + $0x3e0] sm:$0xff] }
 0x1df   : > { %7002 = vmatpush1.bf16.msra.mxu0 %v7001_v29  ;;  %6973 = vmatpush3.bf16.msra.mxu1 %v6972_v57  ;;  %v2504_v43 = vsel %vm1529_vm9, %v8111_v7, %v8126_v14  ;;  %v905_v29 = vld [vmem:[%s14279_s25 + $0x3d0] sm:$0xff]  ;;  %v2319_v54 = vsel %vm1538_vm8, %v2316_v50, %v8092_v39  ;;  %v922_v7 = vld [vmem:[%s14279_s25 + $0x458] sm:$0xff]  ;;  %v6980_v53 = vpack.c.bf16 %v888_v47, %v887_v51  ;;  %v8532_v39 = vld [vmem:[%s8812_s8 + $0x80] sm:$0xff]  ;;  %v14563_v47 = vunpack.i.h.bf16 %v11523_v41 }
 0x1e0   : > { %8229 = vrot.lane.b32.xlu0 %v8228_v16, %s8616_s17  ;;  %v11594_v35 = vpop.permute.xlu1 %8129  ;;  %7003 = vmatprep.subr.bf16.mxu0 %v14553_v46  ;;  %v8121_v16 = vunpack.i.l.bf16 %v11581_v49  ;;  %v921_v14 = vld [vmem:[%s14279_s25 + $0x450] sm:$0xff]  ;;  %v2322_v62 = vsel %vm1547_vm7, %v2319_v54, %v8106_v20  ;;  %v890_v20 = vld [vmem:[%s14279_s25 + $0x358] sm:$0xff] }
 0x1e1   : > { %v8131_v57 = vunpack.i.l.bf16 %v11594_v35  ;;  %6975 = vmatprep.subr.bf16.mxu1 %v6974_v38  ;;  %v2335_v31 = vpop.permute.xlu0 %2334  ;;  %v906_v38 = vld [vmem:[%s14279_s25 + $0x3d8] sm:$0xff]  ;;  %v2325_v51 = vsel %vm14562_vm0, %v2322_v62, %v8116_v58  ;;  %v908_v58 = vld [vmem:[%s14279_s25 + $0x3e8] sm:$0xff]  ;;  %vm14572_vm0 = vcmask 392192  }
 0x1e2   : > { %v14561_v50 = vld [vmem:[#allocation68_spill] sm:$0xff]  ;;  %v11646_v54 = vsel %vm14565_vm6, %v2325_v51, %v8121_v16  ;;  %v892_v62 = vld [vmem:[%s14279_s25 + $0x368] sm:$0xff]  ;;  %vm14583_vm6 = vmmov %vm14567_vm3 }
 0x1e3   : > { %v2507_v0 = vsel %vm1538_vm8, %v2504_v43, %v8131_v57  ;;  %7005 = vmatpush1.bf16.msra.mxu0 %v7004_v52  ;;  %6977 = vmatpush3.bf16.msra.mxu1 %v6976_v40  ;;  %v2475_v57 = vsel %vm14539_vm2, %v8532_v39, %v2335_v31  ;;  %v889_v40 = vld [vmem:[%s14279_s25 + $0x350] sm:$0xff]  ;;  %v6982_v43 = vpack.c.bf16 %v906_v38, %v905_v29  ;;  %vm14570_vm2 = vcmask 293888  }
 0x1e4   : > { %v2510_v9 = vsel %vm1547_vm7, %v2507_v0, %v14560_v5  ;;  %v2357_v52 = vpop.permute.xlu1 %2356  ;;  %2532 = vrot.lane.b32.xlu0 %v14561_v50, %s14270_s28  ;;  %7006 = vmatprep.subr.bf16.mxu0 %v14553_v46  ;;  %v14566_v5 = vunpack.i.h.bf16 %v11581_v49  ;;  %v7010_v50 = vpack.c.bf16 %v922_v7, %v921_v14  ;;  %v6984_v16 = vpack.c.bf16 %v890_v20, %v889_v40  ;;  %v14569_v14 = vld [vmem:[#allocation69_spill] sm:$0xff]  ;;  %v924_v7 = vld [vmem:[%s14279_s25 + $0x468] sm:$0xff] }
 0x1e5   : > { %v2513_v31 = vsel %vm14564_vm4, %v2510_v9, %v14563_v47  ;;  %6979 = vmatprep.subr.bf16.mxu1 %v6978_v63  ;;  %v2346_v0 = vpop.permute.xlu0 %2345  ;;  %v923_v9 = vld [vmem:[%s14279_s25 + $0x460] sm:$0xff]  ;;  %v910_v40 = vld [vmem:[%s14279_s25 + $0x3f8] sm:$0xff] }
 0x1e6   : > { %v2516_v39 = vsel %vm14567_vm3, %v2513_v31, %v14566_v5  ;;  %v2478_v63 = vsel %vm14568_vm1, %v2475_v57, %v2346_v0  ;;  %v909_v57 = vld [vmem:[%s14279_s25 + $0x3f0] sm:$0xff]  ;;  %v7013_v47 = vpack.c.bf16 %v924_v7, %v923_v9  ;;  %vm14586_vm3 = vcmask 1043456  }
 0x1e7   : > { %v8233_v29 = vpack.i.bf16 %v2516_v39, %v11646_v54  ;;  %7008 = vmatpush1.bf16.msra.mxu0 %v7007_v45  ;;  %6981 = vmatpush3.bf16.msra.mxu1 %v6980_v53  ;;  %v891_v45 = vld [vmem:[%s14279_s25 + $0x360] sm:$0xff]  ;;  %v6986_v53 = vpack.c.bf16 %v908_v58, %v907_v6  ;;  %v2481_v20 = vsel %vm14570_vm2, %v2478_v63, %v2357_v52  ;;  %v925_v31 = vld [vmem:[%s14279_s25 + $0x470] sm:$0xff]  ;;  %v926_v52 = vld [vmem:[%s14279_s25 + $0x478] sm:$0xff]  ;;  %vm14587_vm1 = vcmask 97280  }
 0x1e8   : > { %v2378_v38 = vpop.permute.xlu1 %2377  ;;  %2543 = vrot.lane.b32.xlu0 %v14569_v14, %s14258_s3  ;;  %7009 = vmatprep.subr.bf16.mxu0 %v14553_v46  ;;  %v14571_v0 = vld [vmem:[#allocation19_spill] sm:$0xff]  ;;  %v6990_v5 = vpack.c.bf16 %v910_v40, %v909_v57  ;;  %v14573_v63 = vld [vmem:[#allocation72_spill] sm:$0xff]  ;;  %vm14589_vm2 = vcmask 1046528  }
 0x1e9   : > { %8234 = vrot.lane.b32.xlu1 %v8233_v29, %s8616_s17  ;;  %6983 = vmatprep.subr.bf16.mxu1 %v6982_v43  ;;  %v2368_v51 = vpop.permute.xlu0 %2367  ;;  %v6988_v43 = vpack.c.bf16 %v892_v62, %v891_v45  ;;  %v893_v39 = vld [vmem:[%s14279_s25 + $0x370] sm:$0xff]  ;;  %v927_v62 = vld [vmem:[%s14279_s25 + $0x480] sm:$0xff] }
 0x1ea   : > { %v2484_v58 = vsel %vm14572_vm0, %v2481_v20, %v2368_v51  ;;  %v14574_v40 = vld [vmem:[#allocation51_spill] sm:$0xff]  ;;  %vm14590_vm0 = vcmask 195584  }
 0x1eb   : > { %7011 = vmatpush1.bf16.msra.mxu0 %v7010_v50  ;;  %6985 = vmatpush3.bf16.msra.mxu1 %v6984_v16  ;;  %v894_v50 = vld [vmem:[%s14279_s25 + $0x378] sm:$0xff]  ;;  %v7016_v16 = vpack.c.bf16 %v926_v52, %v925_v31  ;;  %v11706_v7 = vsel %vm1475_vm11, %v2484_v58, %v2378_v38  ;;  %v14575_v31 = vunpack.i.h.bf16 %v14547_v48 }
 0x1ec   : > { %v11685_v6 = vpop.permute.xlu1 %8139  ;;  %2147 = vrot.lane.b32.xlu0 %v14571_v0, %s14268_s6  ;;  %7012 = vmatprep.subr.bf16.mxu0 %v14553_v46  ;;  %v6992_v14 = vpack.c.bf16 %v894_v50, %v893_v39  ;;  %v930_v39 = vld [vmem:[%s14279_s25 + $0x498] sm:$0xff] }
 0x1ed   : > { %2554 = vrot.lane.b32.xlu1 %v14573_v63, %s14256_s0  ;;  %6987 = vmatprep.subr.bf16.mxu1 %v6986_v53  ;;  %v11702_v29 = vpop.permute.xlu0 %8134  ;;  %v928_v53 = vld [vmem:[%s14279_s25 + $0x488] sm:$0xff]  ;;  %v8141_v20 = vunpack.i.l.bf16 %v11685_v6  ;;  %v14576_v50 = vld [vmem:[#allocation56_spill] sm:$0xff] }
 0x1ee   : > { %v8136_v9 = vunpack.i.l.bf16 %v11702_v29  ;;  %v7019_v0 = vpack.c.bf16 %v928_v53, %v927_v62  ;;  %v8132_v62 = vunpack.i.h.bf16 %v11594_v35  ;;  %v931_v35 = vld [vmem:[%s14279_s25 + $0x4a0] sm:$0xff] }
 0x1ef   : > { %7014 = vmatpush1.bf16.msra.mxu0 %v7013_v47  ;;  %6989 = vmatpush3.bf16.msra.mxu1 %v6988_v43 }
 0x1f0   : > { %v8150_v45 = vpop.permute.xlu1 %8149  ;;  %7015 = vmatprep.subr.bf16.mxu0 %v14553_v46  ;;  %6991 = vmatprep.subr.bf16.mxu1 %v6990_v5  ;;  %v2490_v51 = vsel %vm1484_vm12, %v11706_v7, %v8136_v9  ;;  %v929_v5 = vld [vmem:[%s14279_s25 + $0x490] sm:$0xff]  ;;  %v8127_v9 = vunpack.i.h.bf16 %v11555_v19  ;;  %v14578_v19 = vld [vmem:[#allocation50_spill] sm:$0xff] }
 0x1f1   : > { %v8151_v57 = vunpack.i.l.bf16 %v8150_v45  ;;  %2158 = vrot.lane.b32.xlu1 %v14574_v40, %s14270_s28  ;;  %v11718_v38 = vpop.permute.xlu0 %8144  ;;  %v8152_v47 = vunpack.i.h.bf16 %v8150_v45  ;;  %v2493_v58 = vsel %vm1493_vm13, %v2490_v51, %v8141_v20  ;;  %v7022_v45 = vpack.c.bf16 %v930_v39, %v929_v5  ;;  %v14579_v20 = vld [vmem:[#allocation55_spill] sm:$0xff] }
 0x1f2   : > { %v8146_v48 = vunpack.i.l.bf16 %v11718_v38  ;;  %v932_v51 = vld [vmem:[%s14279_s25 + $0x4a8] sm:$0xff] }
 0x1f3   : > { %v2637_v43 = vsel %vm2635_vm5, %v14575_v31, %v8151_v57  ;;  %7017 = vmatpush1.bf16.msra.mxu0 %v7016_v16  ;;  %6993 = vmatpush3.bf16.msra.mxu1 %v6992_v14  ;;  %v14577_v16 = vunpack.i.l.bf16 %v10982_v18 }
 0x1f4   : > { %v11725_v52 = vpop.permute.xlu1 %8154  ;;  %2973 = vmatmul.mubr.f32.gmra.mrb[2].mxu1 %v2637_v43  ;;  %7018 = vmatprep.subr.bf16.mxu0 %v14553_v46  ;;  %v2496_v57 = vsel %vm1502_vm14, %v2493_v58, %v8146_v48  ;;  %v7025_v58 = vpack.c.bf16 %v932_v51, %v931_v35  ;;  %v8037_v51 = vunpack.i.h.bf16 %v11254_v27  ;;  %v8042_v27 = vunpack.i.h.bf16 %v11296_v23 }
 0x1f5   : > { %2977 = vmatprep.mubr.f32.mxu1 %v14524_v4  ;;  %2169 = vrot.lane.b32.xlu1 %v14576_v50, %s14258_s3  ;;  %v11739_v63 = vpop.permute.xlu0 %2379  ;;  %v2638_v14 = vsel %vm2635_vm5, %v14577_v16, %v8152_v47  ;;  %v8112_v4 = vunpack.i.h.bf16 %v11536_v12  ;;  %v8156_v40 = vunpack.i.l.bf16 %v11725_v52  ;;  %v8102_v47 = vunpack.i.h.bf16 %v11508_v1 }
 0x1f6   : > { %v14588_v23 = vunpack.i.l.bf16 %v11348_v61 }
 0x1f7   : > { %7020 = vmatpush1.bf16.msra.mxu0 %v7019_v0  ;;  %v2505_v43 = vsel %vm1529_vm9, %v8112_v4, %v8127_v9  ;;  %v2499_v48 = vsel %vm14222_vm15, %v2496_v57, %v8102_v47  ;;  %v933_v57 = vld [vmem:[%s14279_s25 + $0x4b0] sm:$0xff] }
 0x1f8   : > { %v11746_v53 = vpop.permute.xlu1 %8164  ;;  %2978 = vmatmul.mubr.f32.gmra.mrb[4].mxu1 %v2638_v14  ;;  %7021 = vmatprep.subr.bf16.mxu0 %v14553_v46  ;;  %v2508_v39 = vsel %vm1538_vm8, %v2505_v43, %v8132_v62  ;;  %v14580_v14 = vunpack.i.h.bf16 %v10982_v18  ;;  %v2502_v43 = vsel %vm1520_vm10, %v2499_v48, %v8112_v4  ;;  %v11811_v4 = vld [vmem:[%s8812_s8 + $0x88] sm:$0xff] }
 0x1f9   : > { %2982 = vmatprep.mubr.f32.mxu1 %v14578_v19  ;;  %2180 = vrot.lane.b32.xlu1 %v14579_v20, %s14256_s0  ;;  %v8166_v12 = vunpack.i.l.bf16 %v11746_v53  ;;  %v8160_v31 = vpop.permute.xlu0 %8159  ;;  %v2511_v1 = vsel %vm1547_vm7, %v2508_v39, %v8156_v40  ;;  %v14582_v19 = vld [vmem:[#allocation58_spill] sm:$0xff]  ;;  %v934_v40 = vld [vmem:[%s14279_s25 + $0x4b8] sm:$0xff]  ;;  %v2476_v48 = vsel %vm14587_vm1, %v11811_v4, %v8037_v51 }
 0x1fa   : > { %v8162_v0 = vunpack.i.h.bf16 %v8160_v31  ;;  %v8161_v5 = vunpack.i.l.bf16 %v8160_v31  ;;  %v14584_v31 = vld [vmem:[#allocation54_spill] sm:$0xff]  ;;  %v7028_v39 = vpack.c.bf16 %v934_v40, %v933_v57  ;;  %v14592_v51 = vld [vmem:[#allocation53_spill] sm:$0xff] }
 0x1fb   : > { %7023 = vmatpush1.bf16.msra.mxu0 %v7022_v45  ;;  %v14581_v45 = vunpack.i.h.bf16 %v11218_v33  ;;  %v2514_v20 = vsel %vm14564_vm4, %v2511_v1, %v8166_v12  ;;  %v11789_v33 = vld [vmem:[%s8812_s8 + $0x98] sm:$0xff]  ;;  %vm14591_vm4 = vcmask 293888  }
 0x1fc   : > { %7024 = vmatprep.subr.bf16.mxu0 %v14553_v46  ;;  %v2639_v9 = vsel %vm2635_vm5, %v14580_v14, %v8162_v0  ;;  %v2552_v35 = vrot.slane %v11789_v33, 4  ;;  %v2519_v12 = vrot.slane %v11789_v33, 1  ;;  %v14585_v14 = vld [vmem:[#allocation59_spill] sm:$0xff] }
 0x1fd   : > { %v11766_v50 = vpop.permute.xlu1 %8174  ;;  %v2641_v62 = vsel %vm2635_vm5, %v14581_v45, %v8161_v5  ;;  %2244 = vrot.lane.b32.xlu1 %v14582_v19, %s14283_s23  ;;  %2983 = vmatmul.mubr.f32.gmra.mrb[6].mxu1 %v2639_v9  ;;  %v935_v45 = vld [vmem:[%s14279_s25 + $0x4c0] sm:$0xff]  ;;  %v2479_v19 = vsel %vm14590_vm0, %v2476_v48, %v8042_v27  ;;  %s8622_s23 = smov 80  }
 0x1fe   : > { %v8176_v16 = vunpack.i.l.bf16 %v11766_v50  ;;  %3077 = vmatprep.mubr.f32.mxu0 %v2641_v62  ;;  %2987 = vmatprep.mubr.f32.mxu1 %v14584_v31 }
 0x1ff   : > { %v11786_v18 = vpop.permute.xlu0 %8169  ;;  %3078 = vmatmul.mubr.f32.gmra.mrb[18].mxu0 %v11268_v21  ;;  %v2553_v21 = vsel %vm14586_vm3, %v10730_v28, %v2552_v35  ;;  %v8047_v28 = vunpack.i.h.bf16 %v11318_v26  ;;  %v8618_v26 = vmov 0.0   ;;  %vm14595_vm3 = vcmask 392192  }
 0x200   : > { %v2517_v47 = vsel %vm14583_vm6, %v2514_v20, %v8176_v16  ;;  %7026 = vmatpush1.bf16.msra.mxu0 %v7025_v58  ;;  %vm14594_vm6 = vcmask 1045504  }
 0x201   : > { %v8185_v0 = vpop.permute.xlu1 %8184  ;;  %v8238_v5 = vpack.i.bf16 %v2517_v47, %v2502_v43  ;;  %2255 = vrot.lane.b32.xlu1 %v14585_v14, %s14275_s22  ;;  %7027 = vmatprep.subr.bf16.mxu0 %v14553_v46  ;;  %v2482_v20 = vsel %vm14591_vm4, %v2479_v19, %v8047_v28  ;;  %v14593_v43 = vld [vmem:[#allocation57_spill] sm:$0xff]  ;;  %v8137_v14 = vunpack.i.h.bf16 %v11702_v29  ;;  %v8142_v28 = vunpack.i.h.bf16 %v11685_v6 }
 0x202   : > { %v8186_v1 = vunpack.i.l.bf16 %v8185_v0  ;;  %2988 = vmatmul.mubr.f32.gmra.mrb[8].mxu1 %v11483_v36  ;;  %v2520_v36 = vsel %vm14589_vm2, %v10568_v25, %v2519_v12  ;;  %v2530_v25 = vrot.slane %v11789_v33, 2  ;;  %vm14596_vm2 = vmmov %vm14590_vm0  ;;  %vm14597_vm0 = vcmask 1044480  }
 0x203   : > { %v11802_v16 = vpop.permute.xlu0 %8179  ;;  %8239 = vrot.lane.b32.xlu0 %v8238_v5, %s8616_s17  ;;  %2992 = vmatprep.mubr.f32.mxu1 %v11052_v24  ;;  %v8172_v6 = vunpack.i.h.bf16 %v11786_v18 }
 0x204   : > { %v2642_v58 = vsel %vm2635_vm5, %v14588_v23, %v8186_v1  ;;  %7029 = vmatpush1.bf16.msra.mxu0 %v7028_v39  ;;  %v2531_v39 = vsel %vm14594_vm6, %v10646_v60, %v2530_v25  ;;  %v782_v1 = vld [vmem:[%s8812_s8 + $0xa0] sm:$0x1]  ;;  %vm14598_vm6 = vmmov %vm14595_vm3 }
 0x205   : > { %3082 = vmatprep.mubr.f32.mxu0 %v2642_v58  ;;  %2556 = vrot.lane.b32.xlu1 %v2553_v21, %s14256_s0  ;;  %v8535_v21 = vld [vmem:[%s8812_s8 + $0x58] sm:$0xff]  ;;  %v2564_v29 = vrot.slane %v782_v1, 5 }
 0x206   : > { %v11821_v9 = vpop.permute.xlu1 %8194  ;;  %3083 = vmatmul.mubr.f32.gmra.mrb[20].mxu0 %v11363_v44  ;;  %2993 = vmatmul.mubr.f32.gmra.mrb[10].mxu1 %v2641_v62  ;;  %v8052_v44 = vunpack.i.h.bf16 %v11329_v42  ;;  %v8187_v62 = vunpack.i.h.bf16 %v8185_v0  ;;  %v2541_v42 = vrot.slane %v11789_v33, 3 }
 0x207   : > { %2523 = vrot.lane.b32.xlu0 %v2520_v36, %s14268_s6  ;;  %2997 = vmatprep.mubr.f32.mxu1 %v11128_v34 }
 0x208   : > { %3266 = vmatprep.subr.mxu0 %v8618_v26  ;;  %v2485_v27 = vsel %vm14595_vm3, %v2482_v20, %v8052_v44  ;;  %v2758_v60 = vsel %vm2635_vm5, %v10973_v17, %v8187_v62  ;;  %v2542_v19 = vsel %vm14597_vm0, %v14492_v2, %v2541_v42  ;;  %v8182_v20 = vunpack.i.h.bf16 %v11802_v16 }
 0x209   : > { %v11830_v57 = vpop.permute.xlu0 %8189  ;;  %3267 = vmatpush1.msra.mxu0 %v935_v45  ;;  %2222 = vrot.lane.b32.xlu1 %v14592_v51, %s14267_s1  ;;  %v2488_v23 = vsel %vm1475_vm11, %v2485_v27, %v11739_v63  ;;  %vm14602_vm3 = vcmask 1042432   ;;  %v8147_v27 = vunpack.i.h.bf16 %v11718_v38  ;;  %s14825_s1 = smov 32  }
 0x20a   : > { %v1770_v40 = vpop.permute.xlu1 %1769  ;;  %2998 = vmatmul.mubr.f32.gmra.mrb[12].mxu1 %v2642_v58  ;;  %v2491_v44 = vsel %vm1484_vm12, %v2488_v23, %v8137_v14  ;;  %v8192_v17 = vunpack.i.h.bf16 %v11830_v57  ;;  %v8197_v23 = vunpack.i.h.bf16 %v11821_v9  ;;  %v8191_v38 = vunpack.i.l.bf16 %v11830_v57 }
 0x20b   : > { %2233 = vrot.lane.b32.xlu0 %v14593_v43, %s14269_s26  ;;  %v1909_v0 = vsel %vm14587_vm1, %v8535_v21, %v1770_v40  ;;  %v2494_v21 = vsel %vm1493_vm13, %v2491_v44, %v8142_v28  ;;  %v14606_v44 = vld [vmem:[#allocation40_spill] sm:$0xff]  ;;  %vm14610_vm1 = vcmask 326656  }
 0x20c   : > { %vm14613_vm0 = vmmov %vm14610_vm1 }
 0x20d   : > { %v8200_v47 = vpop.permute.xlu0 %8199  ;;  %2525 = vrot.lane.b32.xlu1 %v2519_v12, %s14268_s6  ;;  %s14720_s6 = sld [smem:[#allocation78_spill]] }
 0x20e   : > { %v8201_v5 = vunpack.i.l.bf16 %v8200_v47  ;;  %v1792_v48 = vpop.permute.xlu1 %1791 }
 0x20f   : > { %2534 = vrot.lane.b32.xlu0 %v2531_v39, %s14270_s28  ;;  %v14600_v39 = vld [vmem:[#allocation71_spill] sm:$0xff] }
 0x210   : > { %v2690_v58 = vsel %vm2635_vm5, %v8187_v62, %v8201_v5  ;;  %v8202_v62 = vunpack.i.h.bf16 %v8200_v47  ;;  %v14599_v5 = vunpack.i.h.bf16 %v14465_v32  ;;  %v14601_v1 = vrot.slane %v14600_v39, 5 }
 0x211   : > { %v1781_v36 = vpop.permute.xlu0 %1780  ;;  %3087 = vmatprep.mubr.f32.mxu0 %v2690_v58  ;;  %2547 = vrot.lane.b32.xlu1 %v2541_v42, %s14258_s3  ;;  %v14603_v42 = vunpack.i.h.bf16 %v10594_v11  ;;  %v8181_v32 = vunpack.i.l.bf16 %v11802_v16  ;;  %v14605_v11 = vunpack.i.h.bf16 %v10795_v56 }
 0x212   : > { %v1912_v45 = vsel %vm14596_vm2, %v1909_v0, %v1781_v36  ;;  %3088 = vmatmul.mubr.f32.gmra.mrb[22].mxu0 %v2758_v60  ;;  %v1803_v40 = vpop.permute.xlu1 %1802  ;;  %v2565_v14 = vsel %vm14602_vm3, %v14601_v1, %v2564_v29  ;;  %v14604_v36 = vunpack.i.h.bf16 %v10707_v13  ;;  %v1939_v29 = vsel %vm1529_vm9, %v8182_v20, %v8192_v17 }
 0x213   : > { %v1915_v12 = vsel %vm14591_vm4, %v1912_v45, %v1792_v48  ;;  %2545 = vrot.lane.b32.xlu0 %v2542_v19, %s14258_s3  ;;  %v8171_v48 = vunpack.i.l.bf16 %v11786_v18  ;;  %v2759_v13 = vsel %vm2635_vm5, %v10996_v59, %v8202_v62  ;;  %v2506_v39 = vsel %vm1529_vm9, %v8181_v32, %v8191_v38 }
 0x214   : > { %v1918_v51 = vsel %vm14598_vm6, %v1915_v12, %v1803_v40  ;;  %vm14612_vm2 = vcmask 424960   ;;  %vm14622_vm6 = vcmask 97280   ;;  %vm14623_vm3 = vcmask 195584  }
 0x215   : > { %v8205_v43 = vpop.permute.xlu0 %8204  ;;  %v1921_v2 = vsel %vm1475_vm11, %v1918_v51, %v14599_v5  ;;  %2568 = vrot.lane.b32.xlu1 %v2565_v14, %s14262_s9  ;;  %v1942_v51 = vsel %vm1538_vm8, %v1939_v29, %v8197_v23  ;;  %v8196_v5 = vunpack.i.l.bf16 %v11821_v9  ;;  %v8167_v23 = vunpack.i.h.bf16 %v11746_v53  ;;  %vm14614_vm4 = vmmov %vm14612_vm2 }
 0x216   : > { %v8206_v0 = vunpack.i.l.bf16 %v8205_v43  ;;  %v1924_v47 = vsel %vm1484_vm12, %v1921_v2, %v14603_v42  ;;  %v8215_v58 = vpop.permute.xlu1 %8214  ;;  %v8207_v18 = vunpack.i.h.bf16 %v8205_v43  ;;  %v2497_v43 = vsel %vm1502_vm14, %v2494_v21, %v8147_v27 }
 0x217   : > { %v1927_v60 = vsel %vm1493_vm13, %v1924_v47, %v14604_v36  ;;  %v8217_v19 = vunpack.i.h.bf16 %v8215_v58  ;;  %2566 = vrot.lane.b32.xlu0 %v14606_v44, %s14262_s9  ;;  %v8216_v17 = vunpack.i.l.bf16 %v8215_v58  ;;  %v14608_v21 = vunpack.i.h.bf16 %v14479_v22  ;;  %v14620_v44 = vld [vmem:[#allocation15_spill] sm:$0xff]  ;;  %s14653_s9 = sld [smem:[#allocation76_spill]] }
 0x218   : > { %v2691_v28 = vsel %vm2635_vm5, %v8202_v62, %v8206_v0  ;;  %v1930_v45 = vsel %vm1502_vm14, %v1927_v60, %v14605_v11  ;;  %v14607_v62 = vunpack.i.h.bf16 %v11348_v61  ;;  %v8157_v42 = vunpack.i.h.bf16 %v11725_v52  ;;  %v14617_v11 = vld [vmem:[#allocation44_spill] sm:$0xff] }
 0x219   : > { %v8210_v16 = vpop.permute.xlu0 %8209  ;;  %3092 = vmatprep.mubr.f32.mxu0 %v2691_v28  ;;  %v1933_v57 = vsel %vm14222_vm15, %v1930_v45, %v8172_v6  ;;  %v2500_v6 = vsel %vm14222_vm15, %v2497_v43, %v8171_v48  ;;  %v2693_v61 = vsel %vm2635_vm5, %v8216_v17, %v8217_v19  ;;  %v1945_v0 = vsel %vm1547_vm7, %v1942_v51, %v14608_v21  ;;  %v14618_v45 = vld [vmem:[#allocation29_spill] sm:$0xff]  ;;  %v14621_v43 = vld [vmem:[#allocation32_spill] sm:$0xff] }
 0x21a   : > { %v8212_v12 = vunpack.i.h.bf16 %v8210_v16  ;;  %v8211_v40 = vunpack.i.l.bf16 %v8210_v16  ;;  %3093 = vmatmul.mubr.f32.gmra.mrb[24].mxu0 %v2759_v13  ;;  %v1936_v56 = vsel %vm1520_vm10, %v1933_v57, %v8182_v20  ;;  %v2760_v20 = vsel %vm2635_vm5, %v11087_v30, %v8207_v18 }
 0x21b   : > { %3002 = vmatprep.mubr.f32.mxu1 %v1936_v56  ;;  %v2503_v14 = vsel %vm1520_vm10, %v2500_v6, %v8181_v32  ;;  %v2509_v47 = vsel %vm1538_vm8, %v2506_v39, %v8196_v5  ;;  %v2761_v30 = vsel %vm2635_vm5, %v11166_v15, %v8216_v17  ;;  %v14609_v48 = vunpack.i.h.bf16 %v14481_v8 }
 0x21c   : > { %v2692_v59 = vsel %vm2635_vm5, %v8207_v18, %v8211_v40  ;;  %v2643_v2 = vsel %vm2635_vm5, %v14607_v62, %v8212_v12  ;;  %2731 = vrot.lane.b32.xlu0 %v2503_v14, %s8616_s17  ;;  %v2512_v52 = vsel %vm1547_vm7, %v2509_v47, %v8157_v42  ;;  %v14611_v15 = vunpack.i.h.bf16 %v14484_v3  ;;  %v14619_v18 = vld [vmem:[#allocation46_spill] sm:$0xff] }
 0x21d   : > { %v8220_v1 = vpop.permute.xlu0 %8219  ;;  %3097 = vmatprep.mubr.f32.mxu0 %v2692_v59  ;;  %3003 = vmatmul.mubr.f32.gmra.mrb[14].mxu1 %v2643_v2  ;;  %v1948_v32 = vsel %vm14610_vm1, %v1945_v0, %v14609_v48  ;;  %v8177_v8 = vunpack.i.h.bf16 %v11766_v50  ;;  %v2515_v53 = vsel %vm14613_vm0, %v2512_v52, %v8167_v23  ;;  %vm14624_vm1 = vcmask 293888   ;;  %vm14627_vm0 = vmmov %vm14622_vm6 }
 0x21e   : > { %v8222_v27 = vunpack.i.h.bf16 %v8220_v1  ;;  %v8221_v9 = vunpack.i.l.bf16 %v8220_v1  ;;  %3098 = vmatmul.mubr.f32.gmra.mrb[26].mxu0 %v2760_v20  ;;  %3177 = vmatprep.mubr.f32.mxu1 %v2759_v13 }
 0x21f   : > { %3102 = vmatprep.mubr.f32.mxu0 %v2693_v61  ;;  %v2518_v3 = vsel %vm14614_vm4, %v2515_v53, %v8177_v8  ;;  %vm14628_vm4 = vmmov %vm14623_vm3 }
 0x220   : > { %2536 = vrot.lane.b32.xlu0 %v2530_v25, %s14270_s28  ;;  %v2694_v22 = vsel %vm2635_vm5, %v8221_v9, %v8222_v27 }
 0x221   : > { %3178 = vmatmul.mubr.f32.vlgmr.msra.gmra.mrb[16].mxu1 %v14584_v31  ;;  %v1951_v31 = vsel %vm14612_vm2, %v1948_v32, %v14611_v15  ;;  %vm14625_vm2 = vcmask 392192  }
 0x222   : > { %3103 = vmatmul.mubr.f32.gmra.mrb[28].mxu0 %v2761_v30  ;;  %3182 = vmatprep.mubr.f32.mxu1 %v2760_v20  ;;  %v2762_v58 = vsel %vm2635_vm5, %v1951_v31, %v8221_v9 }
 0x223   : > { %3107 = vmatprep.mubr.f32.mxu0 %v2694_v22 }
 0x224   : > { %2558 = vrot.lane.b32.xlu0 %v2552_v35, %s14256_s0 }
 0x225   : > { %3183 = vmatmul.mubr.f32.gmra.mrb[18].mxu1 %v11052_v24  ;;  %v6210_v24 = vpop.f32.mrb[0].mxu0 }
 0x226   : > { %3108 = vmatmul.mubr.f32.gmra.mrb[30].mxu0 %v2762_v58  ;;  %3187 = vmatprep.mubr.f32.mxu1 %v2761_v30  ;;  %v6211_v50 = vpop.f32.mrb[1].mxu0 }
 0x227   : > { %6130 = vmatprep.mubr.msk.f32.mxu0 %vm1484_vm12, %v11177_v55  ;;  %v11949_v35 = vadd.f32 %v6211_v50, %v6210_v24  ;;  %v14615_v55 = vld [vmem:[#allocation14_spill] sm:$0xff] }
 0x228   : > { %2733 = vrot.lane.b32.xlu0 %v2518_v3, %s8616_s17 }
 0x229   : > { %3188 = vmatmul.mubr.f32.gmra.mrb[20].mxu1 %v11128_v34 }
 0x22a   : > { %3283 = vmatmul.mubr.f32.vlgmr.msra.gmra.mrb[32].mxu0 %v2691_v28 }
 0x22b   : > { %6131 = vmatprep.mubr.msk.f32.mxu0 %vm1484_vm12, %v11389_v10  ;;  %v14616_v10 = vld [vmem:[#allocation26_spill] sm:$0xff] }
 0x22e   : > { %3288 = vmatmul.mubr.f32.gmra.mrb[34].mxu0 %v2692_v59 }
 0x22f   : > { %6132 = vmatprep.mubr.msk.f32.mxu0 %vm1484_vm12, %v11407_v37 }
 0x232   : > { %3293 = vmatmul.mubr.f32.gmra.mrb[36].mxu0 %v2693_v61 }
 0x233   : > { %6133 = vmatprep.mubr.msk.f32.mxu0 %vm1484_vm12, %v14615_v55 }
 0x238   : > { %v6213_v34 = vpop.f32.mrb[2].mxu0 }
 0x239   : > { %v6214_v25 = vpop.f32.mrb[3].mxu0 }
 0x23a   : > { %v11955_v36 = vadd.f32 %v6214_v25, %v6213_v34  ;;  %v14629_v25 = vld [vmem:[#allocation48_spill] sm:$0xff] }
 0x243   : > { %v8225_v60 = vpop.permute.xlu1 %8224 }
 0x244   : > { %v8227_v38 = vunpack.i.h.bf16 %v8225_v60  ;;  %v8226_v29 = vunpack.i.l.bf16 %v8225_v60 }
 0x246   : > { %v2763_v28 = vsel %vm2635_vm5, %v14616_v10, %v8226_v29  ;;  %v2764_v37 = vsel %vm2635_vm5, %v14618_v45, %v8227_v38 }
 0x247   : > { %3192 = vmatprep.mubr.f32.mxu1 %v2763_v28  ;;  %v8536_v28 = vld [vmem:[%s8812_s8 + $0x90] sm:$0xff]  ;;  %s14813_s8 = sld [smem:[#allocation85_spill]] }
 0x248   : > { %3193 = vmatmul.mubr.f32.gmra.mrb[22].mxu1 %v14617_v11  ;;  %v2522_v40 = vpop.permute.xlu1 %2521 }
 0x249   : > { %3197 = vmatprep.mubr.f32.mxu1 %v2764_v37  ;;  %v2572_v5 = vsel %vm14622_vm6, %v11811_v4, %v2522_v40  ;;  %vm14630_vm6 = vmmov %vm14624_vm1 }
 0x24c   : > { %3198 = vmatmul.mubr.f32.gmra.mrb[24].mxu1 %v14619_v18 }
 0x252   : > { %v8230_v16 = vpop.permute.xlu0 %8229 }
 0x253   : > { %v8232_v19 = vunpack.i.h.bf16 %v8230_v16  ;;  %v8231_v13 = vunpack.i.l.bf16 %v8230_v16  ;;  %v6216_v17 = vpop.f32.mrb[4].mxu0 }
 0x254   : > { %v6217_v51 = vpop.f32.mrb[5].mxu0 }
 0x255   : > { %v2765_v57 = vsel %vm2635_vm5, %v14620_v44, %v8232_v19  ;;  %v2735_v12 = vsel %vm2635_vm5, %v8226_v29, %v8231_v13  ;;  %v11971_v59 = vadd.f32 %v6217_v51, %v6216_v17 }
 0x256   : > { %3202 = vmatprep.mubr.f32.mxu1 %v2765_v57  ;;  %3298 = vmatmul.mubr.f32.gmra.mrb[38].mxu0 %v2735_v12  ;;  %v2533_v56 = vpop.permute.xlu0 %2532  ;;  %v14635_v57 = vld [vmem:[#allocation43_spill] sm:$0xff] }
 0x257   : > { %3203 = vmatmul.mubr.f32.gmra.mrb[26].mxu1 %v14621_v43  ;;  %6134 = vmatprep.mubr.msk.f32.mxu0 %vm1484_vm12, %v11706_v7  ;;  %v6219_v62 = vpop.f32.mrb[6].mxu0  ;;  %v2575_v2 = vsel %vm14623_vm3, %v2572_v5, %v2533_v56  ;;  %vm14631_vm3 = vmmov %vm14625_vm2  ;;  %v14636_v12 = vunpack.i.h.bf16 %v14635_v57  ;;  %v14639_v43 = vld [vmem:[#allocation18_spill] sm:$0xff] }
 0x258   : > { %v6220_v39 = vpop.f32.mrb[7].mxu0  ;;  %v14640_v5 = vunpack.i.h.bf16 %v14639_v43 }
 0x259   : > { %v11974_v20 = vadd.f32 %v6220_v39, %v6219_v62 }
 0x25a   : > { %v2544_v6 = vpop.permute.xlu0 %2543 }
 0x25b   : > { %v8235_v1 = vpop.permute.xlu1 %8234  ;;  %v2578_v27 = vsel %vm14624_vm1, %v2575_v2, %v2544_v6  ;;  %vm14632_vm1 = vmmov %vm14627_vm0  ;;  %v14641_v2 = vld [vmem:[#allocation25_spill] sm:$0xff] }
 0x25c   : > { %v8236_v14 = vunpack.i.l.bf16 %v8235_v1  ;;  %v8237_v9 = vunpack.i.h.bf16 %v8235_v1  ;;  %v14642_v6 = vunpack.i.h.bf16 %v14641_v2 }
 0x25e   : > { %v2736_v61 = vsel %vm2635_vm5, %v8227_v38, %v8236_v14  ;;  %v2737_v0 = vsel %vm2635_vm5, %v8232_v19, %v8237_v9  ;;  %v2148_v48 = vpop.permute.xlu0 %2147 }
 0x25f   : > { %v2555_v7 = vpop.permute.xlu1 %2554  ;;  %3303 = vmatmul.mubr.f32.gmra.mrb[40].mxu0 %v2736_v61 }
 0x260   : > { %v2581_v4 = vsel %vm14625_vm2, %v2578_v27, %v2555_v7  ;;  %vm14634_vm2 = vmmov %vm14628_vm4  ;;  %v14643_v7 = vunpack.i.h.bf16 %v11523_v41 }
 0x261   : > { %v2584_v21 = vsel %vm1475_vm11, %v2581_v4, %v11739_v63  ;;  %v14626_v63 = vld [vmem:[#allocation47_spill] sm:$0xff] }
 0x262   : > { %6135 = vmatprep.mubr.msk.f32.mxu0 %vm1484_vm12, %v2584_v21  ;;  %v2287_v53 = vsel %vm14627_vm0, %v14626_v63, %v2148_v48  ;;  %vm14637_vm0 = vmmov %vm14630_vm6  ;;  %v14645_v21 = vld [vmem:[#allocation45_spill] sm:$0xff] }
 0x263   : > { %v2159_v42 = vpop.permute.xlu1 %2158  ;;  %3308 = vmatmul.mubr.f32.gmra.mrb[42].mxu0 %v2737_v0  ;;  %v14646_v0 = vunpack.i.h.bf16 %v14645_v21 }
 0x264   : > { %v2290_v34 = vsel %vm14628_vm4, %v2287_v53, %v2159_v42  ;;  %vm14638_vm4 = vmmov %vm14631_vm3 }
 0x267   : > { %v2170_v47 = vpop.permute.xlu1 %2169 }
 0x268   : > { %v2293_v60 = vsel %vm14630_vm6, %v2290_v34, %v2170_v47  ;;  %vm14650_vm6 = vmmov %vm14634_vm2 }
 0x26b   : > { %v2181_v30 = vpop.permute.xlu1 %2180 }
 0x26c   : > { %v2296_v10 = vsel %vm14631_vm3, %v2293_v60, %v2181_v30  ;;  %vm14651_vm3 = vmmov %vm14637_vm0 }
 0x26f   : > { %v2245_v22 = vpop.permute.xlu1 %2244 }
 0x271   : > { %v6222_v32 = vpop.f32.mrb[8].mxu0 }
 0x272   : > { %v6223_v23 = vpop.f32.mrb[9].mxu0 }
 0x273   : > { %v11983_v52 = vadd.f32 %v6223_v23, %v6222_v32  ;;  %v2256_v50 = vpop.permute.xlu1 %2255  ;;  %v14647_v23 = vunpack.i.h.bf16 %v11581_v49 }
 0x275   : > { %v8240_v15 = vpop.permute.xlu0 %8239  ;;  %v6225_v31 = vpop.f32.mrb[10].mxu0 }
 0x276   : > { %v8241_v8 = vunpack.i.l.bf16 %v8240_v15  ;;  %v6226_v58 = vpop.f32.mrb[11].mxu0  ;;  %v8242_v56 = vunpack.i.h.bf16 %v8240_v15 }
 0x277   : > { %v11987_v3 = vadd.f32 %v6226_v58, %v6225_v31  ;;  %v2557_v29 = vpop.permute.xlu1 %2556 }
 0x278   : > { %v2766_v24 = vsel %vm2635_vm5, %v11646_v54, %v8241_v8  ;;  %v14633_v54 = vld [vmem:[#allocation37_spill] sm:$0xff]  ;;  %v2738_v61 = vsel %vm2635_vm5, %v8241_v8, %v8242_v56 }
 0x279   : > { %v2524_v55 = vpop.permute.xlu0 %2523  ;;  %3207 = vmatprep.mubr.f32.mxu1 %v2766_v24  ;;  %v2299_v18 = vsel %vm1475_vm11, %v2296_v10, %v14633_v54 }
 0x27a   : > { %3208 = vmatmul.mubr.f32.gmra.mrb[28].mxu1 %v14629_v25  ;;  %v2573_v11 = vsel %vm14632_vm1, %v8536_v28, %v2524_v55  ;;  %v2302_v40 = vsel %vm1484_vm12, %v2299_v18, %v14636_v12 }
 0x27b   : > { %v2223_v19 = vpop.permute.xlu1 %2222  ;;  %v2305_v39 = vsel %vm1493_vm13, %v2302_v40, %v14642_v6  ;;  %vm14648_vm13 = vcmask 424960  }
 0x27c   : > { %v2308_v42 = vsel %vm1502_vm14, %v2305_v39, %v14646_v0 }
 0x27d   : > { %v2234_v38 = vpop.permute.xlu0 %2233  ;;  %v2311_v30 = vsel %vm14222_vm15, %v2308_v42, %v2223_v19 }
 0x27e   : > { %v2317_v37 = vsel %vm1529_vm9, %v2234_v38, %v2245_v22  ;;  %vm14644_vm9 = vcmask 326656   ;;  %v2314_v63 = vsel %vm1520_vm10, %v2311_v30, %v2234_v38  ;;  %v6129_v38 = vld [vmem:[%s14653_s9] ss:$0 sm:$0xff]  ;;  %s14719_s9 = sld [smem:[#allocation79_spill]] }
 0x27f   : > { %v2320_v13 = vsel %vm1538_vm8, %v2317_v37, %v2256_v50  ;;  %v2526_v14 = vpop.permute.xlu1 %2525  ;;  %v2870_v57 = vadd.f32 %v11955_v36, %v6129_v38  ;;  %v2880_v6 = vadd.f32 %v11974_v20, %v6129_v38 }
 0x280   : > { %v2323_v62 = vsel %vm1547_vm7, %v2320_v13, %v14640_v5  ;;  %vm14649_vm7 = vmmov %vm14632_vm1 }
 0x281   : > { %v2535_v45 = vpop.permute.xlu0 %2534  ;;  %v2326_v4 = vsel %vm14644_vm9, %v2323_v62, %v14643_v7  ;;  %v2574_v58 = vsel %vm14649_vm7, %v11789_v33, %v2526_v14  ;;  %vm14652_vm1 = vmmov %vm14638_vm4  ;;  %v2885_v7 = vadd.f32 %v11983_v52, %v6129_v38 }
 0x282   : > { %v2576_v16 = vsel %vm14634_vm2, %v2573_v11, %v2535_v45  ;;  %v2329_v22 = vsel %vm14648_vm13, %v2326_v4, %v14647_v23  ;;  %v2865_v11 = vadd.f32 %v11949_v35, %v6129_v38  ;;  %vm14656_vm13 = vcmask 1041408  }
 0x283   : > { %v2548_v31 = vpop.permute.xlu1 %2547  ;;  %vm14657_vm7 = vmmov %vm14656_vm13 }
 0x285   : > { %v2546_v44 = vpop.permute.xlu0 %2545 }
 0x286   : > { %v2579_v17 = vsel %vm14637_vm0, %v2576_v16, %v2546_v44 }
 0x287   : > { %v2582_v51 = vsel %vm14638_vm4, %v2579_v17, %v2557_v29  ;;  %v2569_v55 = vpop.permute.xlu1 %2568  ;;  %vm14654_vm4 = vcmask 1042432  }
 0x288   : > { %vm14655_vm9 = vmmov %vm14654_vm4 }
 0x289   : > { %v2567_v1 = vpop.permute.xlu0 %2566  ;;  %v6228_v9 = vpop.f32.mrb[12].mxu0 }
 0x28a   : > { %v2585_v27 = vsel %vm1475_vm11, %v2582_v51, %v2567_v1  ;;  %v6229_v47 = vpop.f32.mrb[13].mxu0  ;;  %v2875_v51 = vadd.f32 %v11971_v59, %v6129_v38 }
 0x28b   : > { %6136 = vmatprep.mubr.msk.f32.mxu0 %vm1484_vm12, %v2585_v27  ;;  %v12023_v48 = vadd.f32 %v6229_v47, %v6228_v9 }
 0x28c   : > { %3313 = vmatmul.mubr.f32.gmra.mrb[44].mxu0 %v2738_v61 }
 0x28d   : > { %v6231_v15 = vpop.f32.mrb[14].mxu0 }
 0x28e   : > { %v2732_v32 = vpop.permute.xlu0 %2731  ;;  %v6232_v8 = vpop.f32.mrb[15].mxu0 }
 0x28f   : > { %v2767_v41 = vsel %vm2635_vm5, %v2329_v22, %v2732_v32  ;;  %v12032_v53 = vadd.f32 %v6232_v8, %v6231_v15 }
 0x290   : > { %3212 = vmatprep.mubr.f32.mxu1 %v2767_v41 }
 0x291   : > { %3213 = vmatmul.mubr.f32.gmra.mrb[30].mxu1 %v2314_v63 }
 0x292   : > { %v2537_v24 = vpop.permute.xlu0 %2536 }
 0x293   : > { %v2577_v50 = vsel %vm14650_vm6, %v2574_v58, %v2537_v24  ;;  %vm14658_vm6 = vcmask 1046528  }
 0x294   : > { %v2580_v49 = vsel %vm14651_vm3, %v2577_v50, %v2548_v31  ;;  %v2895_v31 = vadd.f32 %v12023_v48, %v6129_v38  ;;  %vm14659_vm3 = vcmask 1040384  }
 0x296   : > { %v2559_v34 = vpop.permute.xlu0 %2558 }
 0x297   : > { %v2583_v25 = vsel %vm14652_vm1, %v2580_v49, %v2559_v34  ;;  %vm14660_vm1 = vmmov %vm14658_vm6 }
 0x298   : > { %v2586_v60 = vsel %vm1475_vm11, %v2583_v25, %v2569_v55 }
 0x299   : > { %6137 = vmatprep.mubr.msk.f32.mxu0 %vm1484_vm12, %v2586_v60 }
 0x29a   : > { %v2734_v29 = vpop.permute.xlu0 %2733 }
 0x29b   : > { %v2739_v33 = vsel %vm2635_vm5, %v2732_v32, %v2734_v29  ;;  %v2890_v32 = vadd.f32 %v11987_v3, %v6129_v38 }
 0x29c   : > { %3318 = vmatmul.mubr.f32.gmra.mrb[46].mxu0 %v2739_v33  ;;  %v2900_v33 = vadd.f32 %v12032_v53, %v6129_v38 }
 0x2a8   : > { %v6266_v10 = vpop.f32.mrb[0].mxu1  ;;  %v6322_v37 = vpop.f32.mrb[16].mxu0 }
 0x2a9   : > { %v6267_v28 = vpop.f32.mrb[1].mxu1  ;;  %v6323_v54 = vpop.f32.mrb[17].mxu0 }
 0x2aa   : > { %v6268_v45 = vadd.f32 %v6267_v28, %v6266_v10  ;;  %v6324_v16 = vadd.f32 %v6323_v54, %v6322_v37 }
 0x2ac   : > { %v2970_v18 = vadd.f32 %v6268_v45, %v2865_v11 }
 0x2ae   : > { %v12044_v19 = vadd.f32 %v6324_v16, %v2970_v18 }
 0x2c7   : > { %v6269_v13 = vpop.f32.mrb[2].mxu1 }
 0x2c8   : > { %v6270_v44 = vpop.f32.mrb[3].mxu1 }
 0x2c9   : > { %v6271_v12 = vadd.f32 %v6270_v44, %v6269_v13 }
 0x2cb   : > { %v2975_v40 = vadd.f32 %v6271_v12, %v2870_v57  ;;  %v6272_v17 = vpop.f32.mrb[4].mxu1 }
 0x2cc   : > { %v6273_v56 = vpop.f32.mrb[5].mxu1 }
 0x2cd   : > { %v6274_v43 = vadd.f32 %v6273_v56, %v6272_v17 }
 0x2cf   : > { %v2980_v5 = vadd.f32 %v6274_v43, %v2875_v51 }
 0x2d0   : > { %v6275_v35 = vpop.f32.mrb[6].mxu1 }
 0x2d1   : > { %v6276_v62 = vpop.f32.mrb[7].mxu1 }
 0x2d2   : > { %v6325_v2 = vpop.f32.mrb[18].mxu0  ;;  %v6277_v39 = vadd.f32 %v6276_v62, %v6275_v35 }
 0x2d3   : > { %v6326_v1 = vpop.f32.mrb[19].mxu0 }
 0x2d4   : > { %v6327_v14 = vadd.f32 %v6326_v1, %v6325_v2  ;;  %v2985_v27 = vadd.f32 %v6277_v39, %v2880_v6 }
 0x2d5   : > { %v6278_v9 = vpop.f32.mrb[8].mxu1 }
 0x2d6   : > { %v3080_v61 = vadd.f32 %v6327_v14, %v2975_v40  ;;  %v6279_v36 = vpop.f32.mrb[9].mxu1 }
 0x2d7   : > { %v6280_v4 = vadd.f32 %v6279_v36, %v6278_v9 }
 0x2d9   : > { %v6328_v21 = vpop.f32.mrb[20].mxu0  ;;  %v2990_v0 = vadd.f32 %v6280_v4, %v2885_v7  ;;  %v6281_v59 = vpop.f32.mrb[10].mxu1 }
 0x2da   : > { %v6329_v42 = vpop.f32.mrb[21].mxu0  ;;  %v6282_v47 = vpop.f32.mrb[11].mxu1 }
 0x2db   : > { %v6330_v30 = vadd.f32 %v6329_v42, %v6328_v21  ;;  %v6283_v23 = vadd.f32 %v6282_v47, %v6281_v59 }
 0x2dd   : > { %v3085_v20 = vadd.f32 %v6330_v30, %v2980_v5  ;;  %v2995_v22 = vadd.f32 %v6283_v23, %v2890_v32  ;;  %v6284_v15 = vpop.f32.mrb[12].mxu1 }
 0x2de   : > { %v6285_v41 = vpop.f32.mrb[13].mxu1 }
 0x2df   : > { %v6286_v8 = vadd.f32 %v6285_v41, %v6284_v15 }
 0x2e1   : > { %v3000_v58 = vadd.f32 %v6286_v8, %v2895_v31 }
 0x2e5   : > { %v6331_v63 = vpop.f32.mrb[22].mxu0 }
 0x2e6   : > { %v6332_v52 = vpop.f32.mrb[23].mxu0 }
 0x2e7   : > { %v6333_v24 = vadd.f32 %v6332_v52, %v6331_v63 }
 0x2e9   : > { %v12052_v50 = vadd.f32 %v6333_v24, %v2985_v27 }
 0x2ed   : > { %v6334_v49 = vpop.f32.mrb[24].mxu0 }
 0x2ee   : > { %v6335_v55 = vpop.f32.mrb[25].mxu0 }
 0x2ef   : > { %v6336_v34 = vadd.f32 %v6335_v55, %v6334_v49 }
 0x2f0   : > { %v6287_v25 = vpop.f32.mrb[14].mxu1 }
 0x2f1   : > { %v12054_v60 = vadd.f32 %v6336_v34, %v2990_v0  ;;  %v6337_v3 = vpop.f32.mrb[26].mxu0  ;;  %v6288_v29 = vpop.f32.mrb[15].mxu1 }
 0x2f2   : > { %v6289_v10 = vadd.f32 %v6288_v29, %v6287_v25  ;;  %v6338_v28 = vpop.f32.mrb[27].mxu0 }
 0x2f3   : > { %v6339_v48 = vadd.f32 %v6338_v28, %v6337_v3 }
 0x2f4   : > { %v3005_v11 = vadd.f32 %v6289_v10, %v2900_v33  ;;  %v6378_v45 = vpop.f32.mrb[16].mxu1 }
 0x2f5   : > { %v12057_v37 = vadd.f32 %v6339_v48, %v2995_v22  ;;  %v6340_v54 = vpop.f32.mrb[28].mxu0  ;;  %v6379_v18 = vpop.f32.mrb[17].mxu1 }
 0x2f6   : > { %v6341_v16 = vpop.f32.mrb[29].mxu0  ;;  %v6380_v13 = vadd.f32 %v6379_v18, %v6378_v45  ;;  %v3363_v45 = vld [vmem:[%s14661_s18 + $0x80] sm:$0xff] }
 0x2f7   : > { %v6342_v44 = vadd.f32 %v6341_v16, %v6340_v54  ;;  %v3364_v54 = vld [vmem:[%s14661_s18 + $0x88] sm:$0xff] }
 0x2f8   : > { %v6381_v57 = vpop.f32.mrb[18].mxu1  ;;  %v3180_v12 = vadd.f32 %v6380_v13, %v12044_v19  ;;  %v7030_v13 = vpack.c.bf16 %v3364_v54, %v3363_v45  ;;  %v3395_v45 = vld [vmem:[%s14661_s18 + $0x180] sm:$0xff]  ;;  %v3396_v54 = vld [vmem:[%s14661_s18 + $0x188] sm:$0xff] }
 0x2f9   : > { %v12060_v40 = vadd.f32 %v6342_v44, %v3000_v58  ;;  %v6343_v17 = vpop.f32.mrb[30].mxu0  ;;  %v6382_v56 = vpop.f32.mrb[19].mxu1 }
 0x2fa   : > { %v6344_v53 = vpop.f32.mrb[31].mxu0  ;;  %v6383_v38 = vadd.f32 %v6382_v56, %v6381_v57  ;;  %v3347_v56 = vld [vmem:[%s14661_s18] sm:$0xff]  ;;  %7031 = vmatprep.subr.bf16.mxu0 %v7030_v13 }
 0x2fb   : > { %v6345_v51 = vadd.f32 %v6344_v53, %v6343_v17  ;;  %v3348_v53 = vld [vmem:[%s14661_s18 + $0x8] sm:$0xff]  ;;  %v3355_v13 = vld [vmem:[%s14661_s18 + $0x40] sm:$0xff] }
 0x2fc   : > { %v6384_v43 = vpop.f32.mrb[20].mxu1  ;;  %v3185_v5 = vadd.f32 %v6383_v38, %v3080_v61  ;;  %v3365_v38 = vld [vmem:[%s14661_s18 + $0x90] sm:$0xff] }
 0x2fd   : > { %v12062_v35 = vadd.f32 %v6345_v51, %v3005_v11  ;;  %v3284_v62 = vpop.f32.mrb[32].mxu0  ;;  %v6385_v2 = vpop.f32.mrb[21].mxu1  ;;  %v7032_v51 = vpack.c.bf16 %v3348_v53, %v3347_v56  ;;  %v3379_v56 = vld [vmem:[%s14661_s18 + $0x100] sm:$0xff] }
 0x2fe   : > { %v3285_v6 = vadd.f32 %v3284_v62, %v3180_v12  ;;  %v6386_v39 = vadd.f32 %v6385_v2, %v6384_v43  ;;  %v3286_v1 = vpop.f32.mrb[33].mxu0  ;;  %v3366_v43 = vld [vmem:[%s14661_s18 + $0x98] sm:$0xff] }
 0x2ff   : > { %v3350_v62 = vld [vmem:[%s14661_s18 + $0x18] sm:$0xff]  ;;  %7033 = vmatpush3.bf16.msra.mxu0 %v7032_v51 }
 0x300   : > { %v3190_v14 = vadd.f32 %v6386_v39, %v3085_v20  ;;  %v3331_v36 = vmul.f32 0.01, %v3285_v6  ;;  %vm3323_vm11 = vcmp.ge.f32.partialorder %v3285_v6, 0.0  ;;  %v7034_v39 = vpack.c.bf16 %v3366_v43, %v3365_v38  ;;  %v3373_v38 = vld [vmem:[%s14661_s18 + $0xd0] sm:$0xff]  ;;  %v3374_v51 = vld [vmem:[%s14661_s18 + $0xd8] sm:$0xff]  ;;  %v3380_v43 = vld [vmem:[%s14661_s18 + $0x108] sm:$0xff] }
 0x301   : > { %v3289_v27 = vpop.f32.mrb[34].mxu0 }
 0x302   : > { %v3290_v9 = vadd.f32 %v3289_v27, %v3185_v5  ;;  %v3291_v19 = vpop.f32.mrb[35].mxu0  ;;  %v12066_v59 = vsel %vm3323_vm11, %v3285_v6, %v3331_v36  ;;  %vm14662_vm11 = vmmov %vm14659_vm3  ;;  %v3349_v5 = vld [vmem:[%s14661_s18 + $0x10] sm:$0xff]  ;;  %7035 = vmatprep.subr.bf16.mxu0 %v7034_v39  ;;  %v3367_v36 = vld [vmem:[%s14661_s18 + $0xa0] sm:$0xff] }
 0x303   : > { %v3524_v23 = vrot.slane %v12066_v59, 5  ;;  %v3550_v20 = vrot.slane %v12066_v59, 6  ;;  %v3425_v3 = vrot.slane %v12066_v59, 1  ;;  %v3576_v10 = vrot.slane %v12066_v59, 7 }
 0x304   : > { %vm3324_vm2 = vcmp.ge.f32.partialorder %v3290_v9, 0.0  ;;  %v3332_v7 = vmul.f32 0.01, %v3290_v9  ;;  %v3449_v57 = vrot.slane %v12066_v59, 2  ;;  %v3473_v27 = vrot.slane %v12066_v59, 3 }
 0x305   : > { %v3294_v4 = vpop.f32.mrb[36].mxu0 }
 0x306   : > { %v12064_v21 = vsel %vm3324_vm2, %v3290_v9, %v3332_v7  ;;  %v3295_v0 = vadd.f32 %v3294_v4, %v3190_v14  ;;  %v3296_v61 = vpop.f32.mrb[37].mxu0  ;;  %vm14663_vm2 = vcmask 1045504   ;;  %v7036_v14 = vpack.c.bf16 %v3350_v62, %v3349_v5  ;;  %v3368_v7 = vld [vmem:[%s14661_s18 + $0xa8] sm:$0xff]  ;;  %v3351_v4 = vld [vmem:[%s14661_s18 + $0x20] sm:$0xff] }
 0x307   : > { %v3525_v47 = vrot.slane %v12064_v21, 5  ;;  %v3551_v30 = vrot.slane %v12064_v21, 6  ;;  %v3426_v8 = vrot.slane %v12064_v21, 1  ;;  %v3577_v25 = vrot.slane %v12064_v21, 7  ;;  %v3352_v61 = vld [vmem:[%s14661_s18 + $0x28] sm:$0xff] }
 0x308   : > { %vm3325_vm0 = vcmp.ge.f32.partialorder %v3295_v0, 0.0  ;;  %v3333_v42 = vmul.f32 0.01, %v3295_v0  ;;  %v3450_v11 = vrot.slane %v12064_v21, 2  ;;  %v3474_v6 = vrot.slane %v12064_v21, 3  ;;  %7037 = vmatpush3.bf16.msra.mxu0 %v7036_v14  ;;  %v3357_v14 = vld [vmem:[%s14661_s18 + $0x50] sm:$0xff] }
 0x309   : > { %v3526_v63 = vsel %vm14654_vm4, %v3524_v23, %v3525_v47  ;;  %v3552_v24 = vsel %vm14656_vm13, %v3550_v20, %v3551_v30  ;;  %v3427_v48 = vsel %vm14660_vm1, %v3425_v3, %v3426_v8  ;;  %v3578_v16 = vsel %vm14662_vm11, %v3576_v10, %v3577_v25  ;;  %v3372_v3 = vld [vmem:[%s14661_s18 + $0xc8] sm:$0xff] }
 0x30a   : > { %v12070_v32 = vsel %vm3325_vm0, %v3295_v0, %v3333_v42  ;;  %vm14664_vm0 = vmmov %vm14663_vm2  ;;  %vm14665_vm4 = vcmask 1044480   ;;  %v7038_v0 = vpack.c.bf16 %v3368_v7, %v3367_v36  ;;  %v7040_v23 = vpack.c.bf16 %v3352_v61, %v3351_v4  ;;  %v3376_v61 = vld [vmem:[%s14661_s18 + $0xe8] sm:$0xff] }
 0x30b   : > { %v8243_v22 = vpack.i.bf16 %v12070_v32, %v12064_v21  ;;  %v3527_v15 = vrot.slane %v12070_v32, 5  ;;  %v3553_v41 = vrot.slane %v12070_v32, 6  ;;  %v3428_v31 = vrot.slane %v12070_v32, 1 }
 0x30c   : > { %v3579_v58 = vrot.slane %v12070_v32, 7  ;;  %v3452_v33 = vrot.slane %v12070_v32, 2  ;;  %v3476_v17 = vrot.slane %v12070_v32, 3  ;;  %v3451_v2 = vsel %vm14664_vm0, %v3449_v57, %v3450_v11  ;;  %7039 = vmatprep.subr.bf16.mxu0 %v7038_v0 }
 0x30d   : > { %8244 = vrot.lane.b32.xlu0 %v8243_v22, %s8616_s17  ;;  %v12086_v52 = vsel %vm14655_vm9, %v3525_v47, %v3527_v15  ;;  %v12092_v49 = vsel %vm14657_vm7, %v3551_v30, %v3553_v41  ;;  %v12101_v29 = vsel %vm14658_vm6, %v3426_v8, %v3428_v31  ;;  %v3501_v19 = vrot.slane %v12070_v32, 4  ;;  %vm14666_vm9 = vmmov %vm14665_vm4  ;;  %v3369_v8 = vld [vmem:[%s14661_s18 + $0xb0] sm:$0xff]  ;;  %7041 = vmatpush3.bf16.msra.mxu0 %v7040_v23  ;;  %v3360_v23 = vld [vmem:[%s14661_s18 + $0x68] sm:$0xff] }
 0x30e   : > { %v8248_v55 = vpack.i.bf16 %v12086_v52, %v3526_v63  ;;  %v8253_v34 = vpack.i.bf16 %v12092_v49, %v3552_v24  ;;  %v12109_v28 = vsel %vm14659_vm3, %v3577_v25, %v3579_v58  ;;  %v8258_v18 = vpack.i.bf16 %v12101_v29, %v3427_v48  ;;  %v3370_v63 = vld [vmem:[%s14661_s18 + $0xb8] sm:$0xff]  ;;  %v3353_v24 = vld [vmem:[%s14661_s18 + $0x30] sm:$0xff]  ;;  %v3371_v25 = vld [vmem:[%s14661_s18 + $0xc0] sm:$0xff] }
 0x30f   : > { %v8263_v44 = vpack.i.bf16 %v12109_v28, %v3578_v16  ;;  %v12127_v12 = vsel %vm14663_vm2, %v3450_v11, %v3452_v33  ;;  %v12157_v9 = vsel %vm14665_vm4, %v3474_v6, %v3476_v17  ;;  %v3475_v42 = vsel %vm14666_vm9, %v3473_v27, %v3474_v6  ;;  %v3358_v27 = vld [vmem:[%s14661_s18 + $0x58] sm:$0xff]  ;;  %vm14671_vm2 = vmmov %vm14664_vm0 }
 0x310   : > { %8249 = vrot.lane.b32.xlu1 %v8248_v55, %s14269_s26  ;;  %v8268_v1 = vpack.i.bf16 %v12127_v12, %v3451_v2  ;;  %v3499_v47 = vrot.slane %v12064_v21, 4  ;;  %v8273_v30 = vpack.i.bf16 %v12157_v9, %v3475_v42  ;;  %v3498_v20 = vrot.slane %v12066_v59, 4  ;;  %v3397_v42 = vld [vmem:[%s14661_s18 + $0x190] sm:$0xff]  ;;  %vm14673_vm9 = vmmov %vm14660_vm1 }
 0x311   : > { %8254 = vrot.lane.b32.xlu0 %v8253_v34, %s14275_s22  ;;  %vm14667_vm13 = vcmask 1043456   ;;  %v7042_v55 = vpack.c.bf16 %v3370_v63, %v3369_v8  ;;  %v3354_v34 = vld [vmem:[%s14661_s18 + $0x38] sm:$0xff]  ;;  %v7046_v16 = vpack.c.bf16 %v3372_v3, %v3371_v25  ;;  %v7062_v57 = vpack.c.bf16 %v3396_v54, %v3395_v45  ;;  %v3399_v54 = vld [vmem:[%s14661_s18 + $0x1a0] sm:$0xff] }
 0x312   : > { %v12180_v22 = vsel %vm14667_vm13, %v3499_v47, %v3501_v19  ;;  %vm14668_vm7 = vmmov %vm14667_vm13  ;;  %v7044_v11 = vpack.c.bf16 %v3354_v34, %v3353_v24  ;;  %v7064_v62 = vpack.c.bf16 %v3380_v43, %v3379_v56  ;;  %v7052_v4 = vpack.c.bf16 %v3358_v27, %v3357_v14  ;;  %v3381_v24 = vld [vmem:[%s14661_s18 + $0x110] sm:$0xff]  ;;  %v3378_v45 = vld [vmem:[%s14661_s18 + $0xf8] sm:$0xff] }
 0x313   : > { %v3500_v10 = vsel %vm14668_vm7, %v3498_v20, %v3499_v47  ;;  %7043 = vmatprep.subr.bf16.mxu0 %v7042_v55  ;;  %7063 = vmatprep.subr.bf16.mxu1 %v7062_v57  ;;  %v3382_v55 = vld [vmem:[%s14661_s18 + $0x118] sm:$0xff]  ;;  %v3361_v57 = vld [vmem:[%s14661_s18 + $0x70] sm:$0xff]  ;;  %v3384_v43 = vld [vmem:[%s14661_s18 + $0x128] sm:$0xff]  ;;  %vm14669_vm3 = vcmask 1042432   ;;  %vm14672_vm0 = vcmask 1041408  }
 0x314   : > { %8259 = vrot.lane.b32.xlu1 %v8258_v18, %s14270_s28  ;;  %v8278_v48 = vpack.i.bf16 %v12180_v22, %v3500_v10  ;;  %7045 = vmatpush3.bf16.msra.mxu0 %v7044_v11  ;;  %v7068_v10 = vpack.c.bf16 %v3382_v55, %v3381_v24  ;;  %v3377_v11 = vld [vmem:[%s14661_s18 + $0xf0] sm:$0xff]  ;;  %v3362_v56 = vld [vmem:[%s14661_s18 + $0x78] sm:$0xff]  ;;  %vm14670_vm11 = vmmov %vm14668_vm7  ;;  %vm14675_vm7 = vcmask 1040384  }
 0x315   : > { %8264 = vrot.lane.b32.xlu0 %v8263_v44, %s14289_s21  ;;  %v3356_v44 = vld [vmem:[%s14661_s18 + $0x48] sm:$0xff]  ;;  %7047 = vmatprep.subr.bf16.mxu0 %v7046_v16  ;;  %vm14674_vm13 = vmmov %vm14671_vm2 }
 0x316   : > { %v7048_v2 = vpack.c.bf16 %v3356_v44, %v3355_v13  ;;  %7065 = vmatpush3.bf16.msra.mxu1 %v7064_v62  ;;  %v7058_v13 = vpack.c.bf16 %v3378_v45, %v3377_v11  ;;  %v3400_v44 = vld [vmem:[%s14661_s18 + $0x1a8] sm:$0xff] }
 0x318   : > { %8269 = vrot.lane.b32.xlu1 %v8268_v1, %s14256_s0  ;;  %v7050_v1 = vpack.c.bf16 %v3374_v51, %v3373_v38  ;;  %7049 = vmatpush3.bf16.msra.mxu0 %v7048_v2  ;;  %v7060_v38 = vpack.c.bf16 %v3362_v56, %v3361_v57  ;;  %v3383_v51 = vld [vmem:[%s14661_s18 + $0x120] sm:$0xff]  ;;  %v3405_v56 = vld [vmem:[%s14661_s18 + $0x1d0] sm:$0xff] }
 0x319   : > { %v7072_v2 = vpack.c.bf16 %v3384_v43, %v3383_v51 }
 0x31a   : > { %7051 = vmatprep.subr.bf16.mxu0 %v7050_v1 }
 0x31b   : > { %v6387_v18 = vpop.f32.mrb[22].mxu1 }
 0x31c   : > { %8274 = vrot.lane.b32.xlu1 %v8273_v30, %s14260_s5  ;;  %v6388_v53 = vpop.f32.mrb[23].mxu1  ;;  %7053 = vmatpush3.bf16.msra.mxu0 %v7052_v4  ;;  %v3398_v30 = vld [vmem:[%s14661_s18 + $0x198] sm:$0xff]  ;;  %v3401_v4 = vld [vmem:[%s14661_s18 + $0x1b0] sm:$0xff] }
 0x31d   : > { %v6389_v5 = vadd.f32 %v6388_v53, %v6387_v18  ;;  %v7066_v8 = vpack.c.bf16 %v3398_v30, %v3397_v42  ;;  %v7070_v53 = vpack.c.bf16 %v3400_v44, %v3399_v54 }
 0x31f   : > { %v6390_v6 = vpop.f32.mrb[24].mxu1  ;;  %v3195_v39 = vadd.f32 %v6389_v5, %v12052_v50  ;;  %v3375_v50 = vld [vmem:[%s14661_s18 + $0xe0] sm:$0xff]  ;;  %7067 = vmatprep.subr.bf16.mxu1 %v7066_v8  ;;  %v3388_v8 = vld [vmem:[%s14661_s18 + $0x148] sm:$0xff] }
 0x320   : > { %8279 = vrot.lane.b32.xlu1 %v8278_v48, %s14271_s29  ;;  %v6391_v36 = vpop.f32.mrb[25].mxu1  ;;  %v7054_v47 = vpack.c.bf16 %v3376_v61, %v3375_v50  ;;  %7069 = vmatpush3.bf16.msra.mxu1 %v7068_v10  ;;  %v3385_v61 = vld [vmem:[%s14661_s18 + $0x130] sm:$0xff] }
 0x321   : > { %v6392_v7 = vadd.f32 %v6391_v36, %v6390_v6  ;;  %7071 = vmatprep.subr.bf16.mxu1 %v7070_v53 }
 0x322   : > { %7055 = vmatprep.subr.bf16.mxu0 %v7054_v47 }
 0x323   : > { %v3200_v0 = vadd.f32 %v6392_v7, %v12054_v60  ;;  %v3359_v60 = vld [vmem:[%s14661_s18 + $0x60] sm:$0xff] }
 0x324   : > { %v7056_v63 = vpack.c.bf16 %v3360_v23, %v3359_v60  ;;  %7073 = vmatpush3.bf16.msra.mxu1 %v7072_v2  ;;  %v3403_v60 = vld [vmem:[%s14661_s18 + $0x1c0] sm:$0xff]  ;;  %v3408_v2 = vld [vmem:[%s14661_s18 + $0x1e8] sm:$0xff] }
 0x326   : > { %7057 = vmatpush3.bf16.msra.mxu0 %v7056_v63 }
 0x327   : > { %7059 = vmatprep.subr.bf16.mxu0 %v7058_v13 }
 0x329   : > { %v3299_v20 = vpop.f32.mrb[38].mxu0 }
 0x32a   : > { %v3300_v34 = vadd.f32 %v3299_v20, %v3195_v39  ;;  %v6393_v25 = vpop.f32.mrb[26].mxu1  ;;  %v3301_v3 = vpop.f32.mrb[39].mxu0  ;;  %7061 = vmatpush3.bf16.msra.mxu0 %v7060_v38  ;;  %v3387_v20 = vld [vmem:[%s14661_s18 + $0x140] sm:$0xff]  ;;  %v3406_v38 = vld [vmem:[%s14661_s18 + $0x1d8] sm:$0xff] }
 0x32b   : > { %v6394_v48 = vpop.f32.mrb[27].mxu1  ;;  %7094 = vmatprep.subr.bf16.mxu0 %v14553_v46  ;;  %v7080_v10 = vpack.c.bf16 %v3388_v8, %v3387_v20 }
 0x32c   : > { %vm3326_vm6 = vcmp.ge.f32.partialorder %v3300_v34, 0.0  ;;  %v3334_v18 = vmul.f32 0.01, %v3300_v34  ;;  %v6395_v16 = vadd.f32 %v6394_v48, %v6393_v25 }
 0x32e   : > { %v12284_v5 = vsel %vm3326_vm6, %v3300_v34, %v3334_v18  ;;  %v3205_v62 = vadd.f32 %v6395_v16, %v12057_v37  ;;  %vm14676_vm6 = vcmask 1044480  }
 0x32f   : > { %v3529_v6 = vrot.slane %v12284_v5, 5  ;;  %v3430_v39 = vrot.slane %v12284_v5, 1  ;;  %v3503_v1 = vrot.slane %v12284_v5, 4  ;;  %v3454_v14 = vrot.slane %v12284_v5, 2 }
 0x330   : > { %v3555_v27 = vrot.slane %v12284_v5, 6  ;;  %v3581_v18 = vrot.slane %v12284_v5, 7 }
 0x331   : > { %v12298_v37 = vsel %vm14669_vm3, %v3527_v15, %v3529_v6  ;;  %v3431_v36 = vsel %vm14660_vm1, %v3428_v31, %v3430_v39  ;;  %v12308_v7 = vsel %vm14670_vm11, %v3501_v19, %v3503_v1  ;;  %v3402_v15 = vld [vmem:[%s14661_s18 + $0x1b8] sm:$0xff]  ;;  %v3455_v30 = vsel %vm14671_vm2, %v3452_v33, %v3454_v14  ;;  %vm14677_vm3 = vmmov %vm14676_vm6 }
 0x332   : > { %3539 = vrot.lane.b32.xlu1 %v12298_v37, %s14269_s26  ;;  %v3304_v50 = vpop.f32.mrb[40].mxu0  ;;  %v8283_v31 = vpack.i.bf16 %v3431_v36, %v12101_v29  ;;  %v3386_v19 = vld [vmem:[%s14661_s18 + $0x138] sm:$0xff]  ;;  %v3404_v29 = vld [vmem:[%s14661_s18 + $0x1c8] sm:$0xff]  ;;  %v8298_v23 = vpack.i.bf16 %v12308_v7, %v12180_v22  ;;  %v3556_v33 = vsel %vm14672_vm0, %v3553_v41, %v3555_v27  ;;  %v8288_v34 = vpack.i.bf16 %v3455_v30, %v12127_v12  ;;  %vm14678_vm1 = vmmov %vm14670_vm11 }
 0x333   : > { %v3305_v42 = vadd.f32 %v3304_v50, %v3200_v0  ;;  %v3306_v47 = vpop.f32.mrb[41].mxu0  ;;  %v7074_v0 = vpack.c.bf16 %v3402_v15, %v3401_v4  ;;  %v7076_v24 = vpack.c.bf16 %v3386_v19, %v3385_v61  ;;  %v7078_v55 = vpack.c.bf16 %v3404_v29, %v3403_v60  ;;  %v3391_v4 = vld [vmem:[%s14661_s18 + $0x160] sm:$0xff]  ;;  %v3392_v15 = vld [vmem:[%s14661_s18 + $0x168] sm:$0xff]  ;;  %v3410_v61 = vld [vmem:[%s14661_s18 + $0x1f8] sm:$0xff] }
 0x334   : > { %8284 = vrot.lane.b32.xlu0 %v8283_v31, %s8619_s16  ;;  %v8308_v48 = vpack.i.bf16 %v3556_v33, %v12092_v49  ;;  %v3478_v49 = vrot.slane %v12284_v5, 3  ;;  %v3582_v44 = vsel %vm14675_vm7, %v3579_v58, %v3581_v18  ;;  %v3389_v58 = vld [vmem:[%s14661_s18 + $0x150] sm:$0xff]  ;;  %v7088_v47 = vpack.c.bf16 %v3392_v15, %v3391_v4  ;;  %v3394_v29 = vld [vmem:[%s14661_s18 + $0x178] sm:$0xff]  ;;  %vm14679_vm11 = vmmov %vm14672_vm0 }
 0x335   : > { %vm3327_vm4 = vcmp.ge.f32.partialorder %v3305_v42, 0.0  ;;  %v3335_v63 = vmul.f32 0.01, %v3305_v42  ;;  %7075 = vmatprep.subr.bf16.mxu1 %v7074_v0  ;;  %v3393_v60 = vld [vmem:[%s14661_s18 + $0x170] sm:$0xff]  ;;  %vm14680_vm0 = vmmov %vm14675_vm7  ;;  %vm14683_vm7 = vcmask 1045504  }
 0x336   : > { %8299 = vrot.lane.b32.xlu1 %v8298_v23, %s14223_s27  ;;  %v3309_v22 = vpop.f32.mrb[42].mxu0  ;;  %7077 = vmatpush3.bf16.msra.mxu1 %v7076_v24  ;;  %v3479_v57 = vsel %vm14676_vm6, %v3476_v17, %v3478_v49  ;;  %v3390_v17 = vld [vmem:[%s14661_s18 + $0x158] sm:$0xff]  ;;  %v7092_v23 = vpack.c.bf16 %v3394_v29, %v3393_v60  ;;  %vm14684_vm6 = vmmov %vm14677_vm3 }
 0x337   : > { %v12350_v41 = vsel %vm3327_vm4, %v3305_v42, %v3335_v63  ;;  %v12352_v25 = vadd.f32 %v3309_v22, %v3205_v62  ;;  %v3311_v3 = vpop.f32.mrb[43].mxu0  ;;  %7079 = vmatprep.subr.bf16.mxu1 %v7078_v55  ;;  %v3407_v62 = vld [vmem:[%s14661_s18 + $0x1e0] sm:$0xff]  ;;  %v8303_v42 = vpack.i.bf16 %v12298_v37, %v12086_v52  ;;  %v8313_v37 = vpack.i.bf16 %v3582_v44, %v12109_v28 }
 0x338   : > { %8289 = vrot.lane.b32.xlu0 %v8288_v34, %s8621_s7  ;;  %v12357_v11 = vrot.slane %v12350_v41, 1  ;;  %v12360_v45 = vrot.slane %v12350_v41, 2  ;;  %v12376_v13 = vrot.slane %v12350_v41, 3  ;;  %v3505_v43 = vrot.slane %v12350_v41, 4 }
 0x339   : > { %v7086_v31 = vpack.c.bf16 %v3408_v2, %v3407_v62  ;;  %v8318_v28 = vpack.i.bf16 %v12350_v41, %v12284_v5  ;;  %v3336_v63 = vmul.f32 0.01, %v12352_v25  ;;  %v3531_v24 = vrot.slane %v12350_v41, 5 }
 0x33a   : > { %8309 = vrot.lane.b32.xlu1 %v8308_v48, %s8622_s23  ;;  %v12365_v12 = vsel %vm14673_vm9, %v3430_v39, %v12357_v11  ;;  %7081 = vmatpush3.bf16.msra.mxu1 %v7080_v10  ;;  %v12373_v16 = vsel %vm14674_vm13, %v3454_v14, %v12360_v45  ;;  %v12403_v51 = vsel %vm14677_vm3, %v3478_v49, %v12376_v13  ;;  %vm3328_vm2 = vcmp.ge.f32.partialorder %v12352_v25, 0.0  ;;  %vm14682_vm13 = vmmov %vm14679_vm11 }
 0x33b   : > { %v8323_v54 = vpack.i.bf16 %v12365_v12, %v3431_v36  ;;  %v8328_v53 = vpack.i.bf16 %v12373_v16, %v3455_v30  ;;  %v8293_v39 = vpack.i.bf16 %v3479_v57, %v12157_v9  ;;  %v7082_v14 = vpack.c.bf16 %v3406_v38, %v3405_v56  ;;  %v3409_v9 = vld [vmem:[%s14661_s18 + $0x1f0] sm:$0xff] }
 0x33c   : > { %3565 = vrot.lane.b32.xlu0 %v3556_v33, %s14275_s22  ;;  %v7084_v36 = vpack.c.bf16 %v3390_v17, %v3389_v58  ;;  %v8333_v50 = vpack.i.bf16 %v12403_v51, %v3479_v57  ;;  %v12433_v19 = vsel %vm14678_vm1, %v3503_v1, %v3505_v43  ;;  %v7090_v30 = vpack.c.bf16 %v3410_v61, %v3409_v9 }
 0x33d   : > { %7083 = vmatprep.subr.bf16.mxu1 %v7082_v14  ;;  %v8338_v52 = vpack.i.bf16 %v12433_v19, %v12308_v7  ;;  %v3557_v1 = vrot.slane %v12350_v41, 6  ;;  %v3583_v7 = vrot.slane %v12350_v41, 7  ;;  %v12474_v22 = vsel %vm3328_vm2, %v12352_v25, %v3336_v63  ;;  %vm14687_vm2 = vmmov %vm14673_vm9 }
 0x33e   : > { %8324 = vrot.lane.b32.xlu1 %v8323_v54, %s14270_s28  ;;  %7085 = vmatpush3.bf16.msra.mxu1 %v7084_v36  ;;  %vm14681_vm4 = vcmask 1042432   ;;  %v3634_v3 = vrot.slane %v12474_v22, 2  ;;  %v3559_v10 = vrot.slane %v12474_v22, 6  ;;  %v12488_v25 = vrot.slane %v12474_v22, 3 }
 0x33f   : > { %7087 = vmatprep.subr.bf16.mxu1 %v7086_v31  ;;  %v12454_v20 = vsel %vm14679_vm11, %v3555_v27, %v3557_v1  ;;  %v12469_v55 = vsel %vm14680_vm0, %v3581_v18, %v3583_v7  ;;  %v3532_v34 = vsel %vm14681_vm4, %v3529_v6, %v3531_v24  ;;  %v3533_v17 = vrot.slane %v12474_v22, 5  ;;  %vm14685_vm1 = vmmov %vm14681_vm4 }
 0x340   : > { %3591 = vrot.lane.b32.xlu0 %v3582_v44, %s14289_s21  ;;  %v3560_v48 = vsel %vm14682_vm13, %v3557_v1, %v3559_v10  ;;  %v3635_v57 = vsel %vm14683_vm7, %v12360_v45, %v3634_v3  ;;  %v3585_v36 = vrot.slane %v12474_v22, 7  ;;  %vm14686_vm11 = vmmov %vm14680_vm0  ;;  %vm14688_vm0 = vcmask 1043456  }
 0x341   : > { %v8348_v58 = vpack.i.bf16 %v3635_v57, %v12373_v16  ;;  %v3534_v14 = vsel %vm14685_vm1, %v3531_v24, %v3533_v17  ;;  %vm14689_vm4 = vmmov %vm14683_vm7 }
 0x342   : > { %8329 = vrot.lane.b32.xlu1 %v8328_v53, %s14256_s0  ;;  %7089 = vmatpush3.bf16.msra.mxu1 %v7088_v47  ;;  %v3652_v53 = vsel %vm14684_vm6, %v12376_v13, %v12488_v25  ;;  %v8378_v31 = vpack.i.bf16 %v3534_v14, %v3532_v34  ;;  %vm14690_vm13 = vmmov %vm14685_vm1 }
 0x343   : > { %7091 = vmatprep.subr.bf16.mxu1 %v7090_v30  ;;  %v8363_v2 = vpack.i.bf16 %v3652_v53, %v12376_v13  ;;  %v8368_v4 = vpack.i.bf16 %v3652_v53, %v12403_v51  ;;  %v3586_v13 = vsel %vm14686_vm11, %v3583_v7, %v3585_v36  ;;  %v8358_v51 = vpack.i.bf16 %v3635_v57, %v12360_v45  ;;  %vm14691_vm7 = vmmov %vm14688_vm0 }
 0x344   : > { %8294 = vrot.lane.b32.xlu0 %v8293_v39, %s8623_s2  ;;  %vm14693_vm11 = vcmask 1041408  }
 0x346   : > { %8334 = vrot.lane.b32.xlu1 %v8333_v50, %s14260_s5  ;;  %7093 = vmatpush3.bf16.msra.mxu1 %v7092_v23  ;;  %v3507_v50 = vrot.slane %v12474_v22, 4 }
 0x348   : > { %8304 = vrot.lane.b32.xlu0 %v8303_v42, %s8624_s4  ;;  %v3508_v30 = vsel %vm14688_vm0, %v3505_v43, %v3507_v50 }
 0x34a   : > { %8339 = vrot.lane.b32.xlu1 %v8338_v52, %s14271_s29  ;;  %v8373_v52 = vpack.i.bf16 %v3508_v30, %v12433_v19 }
 0x34c   : > { %8314 = vrot.lane.b32.xlu0 %v8313_v37, %s8625_s30  ;;  %v8383_v37 = vpack.i.bf16 %v3560_v48, %v12454_v20 }
 0x34d   : > { %v6396_v33 = vpop.f32.mrb[28].mxu1 }
 0x34e   : > { %v6397_v0 = vpop.f32.mrb[29].mxu1  ;;  %3567 = vrot.lane.b32.xlu1 %v12454_v20, %s14275_s22 }
 0x34f   : > { %v6398_v8 = vadd.f32 %v6397_v0, %v6396_v33  ;;  %v8388_v0 = vpack.i.bf16 %v3586_v13, %v12469_v55 }
 0x350   : > { %8319 = vrot.lane.b32.xlu0 %v8318_v28, %s8616_s17 }
 0x351   : > { %v3210_v27 = vadd.f32 %v6398_v8, %v12060_v40  ;;  %v3617_v40 = vrot.slane %v12474_v22, 1 }
 0x352   : > { %3593 = vrot.lane.b32.xlu1 %v12469_v55, %s14289_s21 }
 0x353   : > { %v3618_v6 = vsel %vm14673_vm9, %v12357_v11, %v3617_v40 }
 0x354   : > { %3541 = vrot.lane.b32.xlu0 %v3532_v34, %s14269_s26  ;;  %v8343_v18 = vpack.i.bf16 %v3618_v6, %v12365_v12  ;;  %v8353_v56 = vpack.i.bf16 %v3618_v6, %v12357_v11 }
 0x356   : > { %3610 = vrot.lane.b32.xlu1 %v12474_v22, %s8616_s17 }
 0x358   : > { %3627 = vrot.lane.b32.xlu0 %v3617_v40, %s8619_s16 }
 0x35a   : > { %3644 = vrot.lane.b32.xlu1 %v3634_v3, %s8621_s7 }
 0x35c   : > { %3661 = vrot.lane.b32.xlu0 %v12488_v25, %s8623_s2 }
 0x35e   : > { %3569 = vrot.lane.b32.xlu1 %v3560_v48, %s14275_s22 }
 0x35f   : > { %v3314_v54 = vpop.f32.mrb[44].mxu0 }
 0x360   : > { %v3315_v49 = vadd.f32 %v3314_v54, %v3210_v27  ;;  %v3316_v44 = vpop.f32.mrb[45].mxu0  ;;  %8344 = vrot.lane.b32.xlu0 %v8343_v18, %s8619_s16 }
 0x362   : > { %v3337_v38 = vmul.f32 0.01, %v3315_v49  ;;  %8354 = vrot.lane.b32.xlu1 %v8353_v56, %s14270_s28  ;;  %vm3329_vm3 = vcmp.ge.f32.partialorder %v3315_v49, 0.0 }
 0x364   : > { %v6399_v12 = vpop.f32.mrb[30].mxu1  ;;  %8349 = vrot.lane.b32.xlu0 %v8348_v58, %s8621_s7  ;;  %v12511_v11 = vsel %vm3329_vm3, %v3315_v49, %v3337_v38  ;;  %vm14692_vm3 = vmmov %vm14688_vm0  ;;  %vm14695_vm0 = vcmask 1040384  }
 0x365   : > { %v6400_v62 = vpop.f32.mrb[31].mxu1  ;;  %v3819_v15 = vrot.slane %v12511_v11, 1  ;;  %v3686_v45 = vrot.slane %v12511_v11, 5  ;;  %v3669_v43 = vrot.slane %v12511_v11, 4  ;;  %v3841_v8 = vrot.slane %v12511_v11, 3 }
 0x366   : > { %v6401_v39 = vadd.f32 %v6400_v62, %v6399_v12  ;;  %8364 = vrot.lane.b32.xlu1 %v8363_v2, %s14260_s5  ;;  %v3720_v48 = vrot.slane %v12511_v11, 7 }
 0x367   : > { %v3820_v9 = vsel %vm14687_vm2, %v3617_v40, %v3819_v15  ;;  %v3687_v33 = vsel %vm14690_vm13, %v3533_v17, %v3686_v45  ;;  %v3670_v7 = vsel %vm14691_vm7, %v3507_v50, %v3669_v43  ;;  %v3842_v63 = vsel %vm14684_vm6, %v12488_v25, %v3841_v8  ;;  %vm14694_vm2 = vmmov %vm14693_vm11 }
 0x368   : > { %v3215_v16 = vadd.f32 %v6401_v39, %v12062_v35  ;;  %3543 = vrot.lane.b32.xlu0 %v3534_v14, %s14269_s26  ;;  %v3830_v35 = vrot.slane %v12511_v11, 2  ;;  %v8398_v60 = vpack.i.bf16 %v3819_v15, %v3820_v9  ;;  %v8393_v28 = vpack.i.bf16 %v3670_v7, %v3508_v30 }
 0x369   : > { %v8408_v55 = vpack.i.bf16 %v3841_v8, %v3842_v63  ;;  %v3703_v40 = vrot.slane %v12511_v11, 6  ;;  %v3721_v49 = vsel %vm14695_vm0, %v3585_v36, %v3720_v48  ;;  %vm14697_vm13 = vcmask 326656  }
 0x36a   : > { %8369 = vrot.lane.b32.xlu1 %v8368_v4, %s8623_s2  ;;  %v3831_v29 = vsel %vm14689_vm4, %v3634_v3, %v3830_v35  ;;  %vm14696_vm4 = vmmov %vm14695_vm0  ;;  %vm3783_vm7 = vcmask 916480   ;;  %vm14698_vm6 = vcmask 195584   ;;  %vm3789_vm0 = vcmask 64512   ;;  %s14814_s2 = sld [smem:[#allocation84_spill]] }
 0x36b   : > { %v8403_v1 = vpack.i.bf16 %v3830_v35, %v3831_v29  ;;  %v3704_v25 = vsel %vm14693_vm11, %v3559_v10, %v3703_v40  ;;  %vm14701_vm11 = vmmov %vm14698_vm6 }
 0x36c   : > { %3595 = vrot.lane.b32.xlu0 %v3586_v13, %s14289_s21 }
 0x36e   : > { %8379 = vrot.lane.b32.xlu1 %v8378_v31, %s8624_s4 }
 0x36f   : > { %v3319_v61 = vpop.f32.mrb[46].mxu0 }
 0x370   : > { %v3320_v42 = vadd.f32 %v3319_v61, %v3215_v16  ;;  %v3321_v47 = vpop.f32.mrb[47].mxu0  ;;  %8359 = vrot.lane.b32.xlu0 %v8358_v51, %s14256_s0 }
 0x372   : > { %8399 = vrot.lane.b32.xlu1 %v8398_v60, %s14270_s28  ;;  %v3338_v23 = vmul.f32 0.01, %v3320_v42  ;;  %vm3330_vm9 = vcmp.ge.f32.partialorder %v3320_v42, 0.0 }
 0x374   : > { %8374 = vrot.lane.b32.xlu0 %v8373_v52, %s14223_s27  ;;  %v3346_v19 = vsel %vm3330_vm9, %v3320_v42, %v3338_v23  ;;  %vm3777_vm9 = vcmask 719872   ;;  %v3412_v23 = vld [vmem:[%s14661_s18 + $0x208] sm:$0xff] }
 0x375   : > { %v3853_v20 = vrot.slane %v3346_v19, 4  ;;  %v3861_v27 = vrot.slane %v3346_v19, 5  ;;  %v3869_v6 = vrot.slane %v3346_v19, 6  ;;  %v3877_v44 = vrot.slane %v3346_v19, 7 }
 0x376   : > { %8404 = vrot.lane.b32.xlu1 %v8403_v1, %s14256_s0 }
 0x377   : > { %v3854_v24 = vsel %vm14692_vm3, %v3669_v43, %v3853_v20  ;;  %v3862_v34 = vsel %vm14685_vm1, %v3686_v45, %v3861_v27  ;;  %v3870_v54 = vsel %vm14694_vm2, %v3703_v40, %v3869_v6  ;;  %v3878_v56 = vsel %vm14696_vm4, %v3720_v48, %v3877_v44  ;;  %vm14699_vm3 = vmmov %vm14697_vm13  ;;  %v3414_v6 = vld [vmem:[%s14661_s18 + $0x218] sm:$0xff] }
 0x378   : > { %8384 = vrot.lane.b32.xlu0 %v8383_v37, %s8622_s23  ;;  %vm14700_vm1 = vcmask 392192   ;;  %v3411_v37 = vld [vmem:[%s14661_s18 + $0x200] sm:$0xff]  ;;  %vm3795_vm4 = vcmask 261120  }
 0x379   : > { %vm14702_vm2 = vmmov %vm14700_vm1 }
 0x37a   : > { %3863 = vrot.lane.b32.xlu1 %v3687_v33, %s14269_s26 }
 0x37c   : > { %8389 = vrot.lane.b32.xlu0 %v8388_v0, %s8625_s30 }
 0x37e   : > { %3679 = vrot.lane.b32.xlu1 %v3670_v7, %s14223_s27  ;;  %s14819_s27 = sld [smem:[#allocation87_spill]] }
 0x37f   : > { %v8245_v10 = vpop.permute.xlu0 %8244 }
 0x380   : > { %8394 = vrot.lane.b32.xlu0 %v8393_v28, %s14271_s29  ;;  %v8246_v9 = vunpack.i.l.bf16 %v8245_v10  ;;  %v8247_v29 = vunpack.i.h.bf16 %v8245_v10 }
 0x382   : > { %3857 = vrot.lane.b32.xlu1 %v3854_v24, %s14271_s29  ;;  %v12559_v3 = vpop.permute.xlu1 %8249 }
 0x383   : > { %v8255_v53 = vpop.permute.xlu0 %8254  ;;  %v8251_v17 = vunpack.i.l.bf16 %v12559_v3  ;;  %v8252_v39 = vunpack.i.h.bf16 %v12559_v3 }
 0x384   : > { %8409 = vrot.lane.b32.xlu0 %v8408_v55, %s14260_s5  ;;  %v8256_v62 = vunpack.i.l.bf16 %v8255_v53  ;;  %v8257_v14 = vunpack.i.h.bf16 %v8255_v53  ;;  %v7095_v55 = vpack.c.bf16 %v3412_v23, %v3411_v37  ;;  %v3416_v53 = vld [vmem:[%s14661_s18 + $0x228] sm:$0xff] }
 0x386   : > { %3865 = vrot.lane.b32.xlu1 %v3862_v34, %s14269_s26  ;;  %v8260_v18 = vpop.permute.xlu1 %8259  ;;  %v3762_v13 = vsel %vm1538_vm8, %v8251_v17, %v8256_v62  ;;  %v3763_v51 = vsel %vm1538_vm8, %v8252_v39, %v8257_v14  ;;  %v3417_v62 = vld [vmem:[%s14661_s18 + $0x230] sm:$0xff] }
 0x387   : > { %v8265_v58 = vpop.permute.xlu0 %8264  ;;  %v8261_v36 = vunpack.i.l.bf16 %v8260_v18  ;;  %v8262_v42 = vunpack.i.h.bf16 %v8260_v18 }
 0x388   : > { %3696 = vrot.lane.b32.xlu0 %v3687_v33, %s8624_s4  ;;  %v8266_v2 = vunpack.i.l.bf16 %v8265_v58  ;;  %v8267_v4 = vunpack.i.h.bf16 %v8265_v58  ;;  %s14826_s4 = sld [smem:[#allocation91_spill]] }
 0x389   : > { %v3737_v47 = vsel %vm14698_vm6, %v12066_v59, %v8261_v36  ;;  %v3738_v63 = vsel %vm14701_vm11, %v12064_v21, %v8262_v42  ;;  %vm3813_vm11 = vcmask 850944  }
 0x38a   : > { %3871 = vrot.lane.b32.xlu1 %v3704_v25, %s14275_s22  ;;  %v8270_v57 = vpop.permute.xlu1 %8269  ;;  %v3767_v35 = vsel %vm14697_vm13, %v3762_v13, %v8266_v2  ;;  %v3768_v52 = vsel %vm14699_vm3, %v3763_v51, %v8267_v4  ;;  %v3418_v2 = vld [vmem:[%s14661_s18 + $0x238] sm:$0xff]  ;;  %vm3801_vm13 = vcmask 457728   ;;  %vm14703_vm3 = vmmov %vm14700_vm1 }
 0x38b   : > { %v8271_v15 = vunpack.i.l.bf16 %v8270_v57  ;;  %v8272_v1 = vunpack.i.h.bf16 %v8270_v57  ;;  %v3772_v19 = vsel %vm2635_vm5, %v3767_v35, %v8246_v9  ;;  %v3773_v3 = vsel %vm2635_vm5, %v3768_v52, %v8247_v29 }
 0x38c   : > { %3713 = vrot.lane.b32.xlu0 %v3704_v25, %s8622_s23  ;;  %v3413_v25 = vld [vmem:[%s14661_s18 + $0x210] sm:$0xff] }
 0x38d   : > { %v3742_v45 = vsel %vm14700_vm1, %v3737_v47, %v8271_v15  ;;  %v3743_v34 = vsel %vm14702_vm2, %v3738_v63, %v8272_v1  ;;  %v7098_v57 = vpack.c.bf16 %v3414_v6, %v3413_v25  ;;  %v7104_v15 = vpack.c.bf16 %v3418_v2, %v3417_v62  ;;  %vm14704_vm2 = vmmov %vm14698_vm6 }
 0x38e   : > { %3873 = vrot.lane.b32.xlu1 %v3870_v54, %s14275_s22  ;;  %v8275_v38 = vpop.permute.xlu1 %8274  ;;  %vm3807_vm1 = vcmask 654336  }
 0x38f   : > { %v8276_v50 = vunpack.i.l.bf16 %v8275_v38  ;;  %v8277_v43 = vunpack.i.h.bf16 %v8275_v38 }
 0x390   : > { %3730 = vrot.lane.b32.xlu0 %v3721_v49, %s8625_s30  ;;  %s14757_s30 = sld [smem:[#allocation81_spill]] }
 0x391   : > { %v3747_v59 = vsel %vm1484_vm12, %v3742_v45, %v8276_v50  ;;  %v3748_v18 = vsel %vm1484_vm12, %v3743_v34, %v8277_v43 }
 0x392   : > { %v8280_v12 = vpop.permute.xlu1 %8279 }
 0x393   : > { %v8281_v61 = vunpack.i.l.bf16 %v8280_v12  ;;  %v8282_v7 = vunpack.i.h.bf16 %v8280_v12 }
 0x394   : > { %3879 = vrot.lane.b32.xlu0 %v3721_v49, %s14289_s21 }
 0x395   : > { %v3752_v28 = vsel %vm1502_vm14, %v3747_v59, %v8281_v61  ;;  %v3753_v44 = vsel %vm1502_vm14, %v3748_v18, %v8282_v7 }
 0x396   : > { %v3757_v48 = vsel %vm1520_vm10, %v3752_v28, %v8251_v17  ;;  %v3758_v58 = vsel %vm1520_vm10, %v3753_v44, %v8252_v39  ;;  %s14758_s23 = smov %s14757_s30 }
 0x398   : > { %3881 = vrot.lane.b32.xlu0 %v3878_v56, %s14289_s21  ;;  %v3415_v56 = vld [vmem:[%s14661_s18 + $0x220] sm:$0xff] }
 0x399   : > { %v7101_v17 = vpack.c.bf16 %v3416_v53, %v3415_v56 }
 0x3a4   : > { %v12579_v16 = vpop.permute.xlu1 %3539 }
 0x3a6   : > { %v8285_v31 = vpop.permute.xlu0 %8284 }
 0x3a7   : > { %v8286_v30 = vunpack.i.l.bf16 %v8285_v31  ;;  %v8287_v33 = vunpack.i.h.bf16 %v8285_v31 }
 0x3a8   : > { %v12586_v60 = vpop.permute.xlu1 %8299 }
 0x3a9   : > { %v3778_v27 = vsel %vm3777_vm9, %v3772_v19, %v8286_v30  ;;  %v3779_v54 = vsel %vm3777_vm9, %v3773_v3, %v8287_v33  ;;  %v8301_v31 = vunpack.i.l.bf16 %v12586_v60 }
 0x3aa   : > { %v12597_v0 = vpop.permute.xlu0 %8289 }
 0x3ab   : > { %v8292_v8 = vunpack.i.h.bf16 %v12597_v0  ;;  %v8291_v20 = vunpack.i.l.bf16 %v12597_v0 }
 0x3ac   : > { %v12605_v24 = vpop.permute.xlu1 %8309 }
 0x3ad   : > { %v3784_v40 = vsel %vm3783_vm7, %v3778_v27, %v8291_v20  ;;  %v3785_v49 = vsel %vm3783_vm7, %v3779_v54, %v8292_v8  ;;  %v8311_v45 = vunpack.i.l.bf16 %v12605_v24  ;;  %v8302_v27 = vunpack.i.h.bf16 %v12586_v60 }
 0x3ae   : > { %v12617_v21 = vpop.permute.xlu0 %3565  ;;  %3989 = vmatprep.mubr.f32.mxu0 %v3784_v40  ;;  %v8312_v60 = vunpack.i.h.bf16 %v12605_v24 }
 0x3af   : > { %3990 = vmatmul.mubr.f32.vlgmr.msra.gmra.mrb[48].mxu0 %v3757_v48 }
 0x3b0   : > { %3994 = vmatprep.mubr.f32.mxu0 %v3785_v49  ;;  %v12626_v10 = vpop.permute.xlu1 %8324  ;;  %7096 = vmatpush3.bf16.msra.mxu0 %v7095_v55 }
 0x3b1   : > { %7097 = vmatprep.subr.bf16.mxu0 %v14553_v46  ;;  %v8326_v4 = vunpack.i.l.bf16 %v12626_v10 }
 0x3b2   : > { %v12635_v38 = vpop.permute.xlu0 %3591 }
 0x3b3   : > { %3995 = vmatmul.mubr.f32.gmra.mrb[50].mxu0 %v3758_v58  ;;  %v3739_v51 = vsel %vm14698_vm6, %v12070_v32, %v8326_v4  ;;  %v8327_v32 = vunpack.i.h.bf16 %v12626_v10  ;;  %vm14705_vm6 = vmmov %vm14703_vm3  ;;  %v3764_v4 = vsel %vm1538_vm8, %v12579_v16, %v12617_v21 }
 0x3b4   : > { %v8330_v12 = vpop.permute.xlu1 %8329  ;;  %7099 = vmatpush3.bf16.msra.mxu0 %v7098_v57 }
 0x3b5   : > { %7100 = vmatprep.subr.bf16.mxu0 %v14553_v46  ;;  %v8331_v13 = vunpack.i.l.bf16 %v8330_v12  ;;  %v8332_v43 = vunpack.i.h.bf16 %v8330_v12  ;;  %v3740_v0 = vsel %vm14704_vm2, %v12284_v5, %v8327_v32 }
 0x3b6   : > { %v8295_v14 = vpop.permute.xlu0 %8294 }
 0x3b7   : > { %v8296_v36 = vunpack.i.l.bf16 %v8295_v14  ;;  %v8297_v42 = vunpack.i.h.bf16 %v8295_v14  ;;  %v3744_v29 = vsel %vm14703_vm3, %v3739_v51, %v8331_v13  ;;  %v3745_v25 = vsel %vm14705_vm6, %v3740_v0, %v8332_v43 }
 0x3b8   : > { %v8335_v39 = vpop.permute.xlu1 %8334  ;;  %7102 = vmatpush3.bf16.msra.mxu0 %v7101_v17  ;;  %vm14706_vm3 = vcmask 326656  }
 0x3b9   : > { %v3790_v50 = vsel %vm3789_vm0, %v8291_v20, %v8296_v36  ;;  %7103 = vmatprep.subr.bf16.mxu0 %v14553_v46  ;;  %v8336_v9 = vunpack.i.l.bf16 %v8335_v39  ;;  %v3791_v19 = vsel %vm3789_vm0, %v8292_v8, %v8297_v42  ;;  %v8337_v55 = vunpack.i.h.bf16 %v8335_v39  ;;  %vm14707_vm2 = vmmov %vm14706_vm3 }
 0x3ba   : > { %v8305_v35 = vpop.permute.xlu0 %8304  ;;  %v3796_v47 = vsel %vm3795_vm4, %v3790_v50, %v8301_v31  ;;  %v3797_v8 = vsel %vm3795_vm4, %v3791_v19, %v8302_v27  ;;  %v12688_v39 = vsel %vm14706_vm3, %v3764_v4, %v12635_v38  ;;  %vm14708_vm6 = vmmov %vm14707_vm2  ;;  %vm14709_vm3 = vcmask 195584  }
 0x3bb   : > { %v8306_v61 = vunpack.i.l.bf16 %v8305_v35  ;;  %v3749_v23 = vsel %vm1484_vm12, %v3744_v29, %v8336_v9  ;;  %v8307_v7 = vunpack.i.h.bf16 %v8305_v35  ;;  %v3750_v18 = vsel %vm1484_vm12, %v3745_v25, %v8337_v55 }
 0x3bc   : > { %v8340_v30 = vpop.permute.xlu1 %8339  ;;  %7105 = vmatpush3.bf16.msra.mxu0 %v7104_v15 }
 0x3bd   : > { %v3802_v52 = vsel %vm3801_vm13, %v3796_v47, %v8306_v61  ;;  %v8341_v1 = vunpack.i.l.bf16 %v8340_v30  ;;  %7177 = vmatprep.subr.bf16.mxu0 %v14553_v46  ;;  %v8342_v40 = vunpack.i.h.bf16 %v8340_v30  ;;  %v3803_v54 = vsel %vm3801_vm13, %v3797_v8, %v8307_v7 }
 0x3be   : > { %v8315_v37 = vpop.permute.xlu0 %8314  ;;  %v3808_v63 = vsel %vm3807_vm1, %v3802_v52, %v8311_v45  ;;  %v3809_v57 = vsel %vm3807_vm1, %v3803_v54, %v8312_v60 }
 0x3bf   : > { %v8316_v59 = vunpack.i.l.bf16 %v8315_v37  ;;  %v3754_v33 = vsel %vm1502_vm14, %v3749_v23, %v8341_v1  ;;  %v8317_v6 = vunpack.i.h.bf16 %v8315_v37  ;;  %v3755_v44 = vsel %vm1502_vm14, %v3750_v18, %v8342_v40 }
 0x3c0   : > { %v3568_v20 = vpop.permute.xlu1 %3567  ;;  %v3759_v28 = vsel %vm1520_vm10, %v3754_v33, %v12579_v16 }
 0x3c1   : > { %4079 = vmatprep.mubr.f32.mxu1 %v3759_v28  ;;  %v3814_v34 = vsel %vm3813_vm11, %v3808_v63, %v8316_v59  ;;  %v3815_v56 = vsel %vm3813_vm11, %v3809_v57, %v8317_v6 }
 0x3c2   : > { %v8320_v3 = vpop.permute.xlu0 %8319  ;;  %4080 = vmatmul.mubr.f32.vlgmr.msra.gmra.mrb[32].mxu1 %v3814_v34 }
 0x3c3   : > { %v8321_v62 = vunpack.i.l.bf16 %v8320_v3  ;;  %v8322_v31 = vunpack.i.h.bf16 %v8320_v3 }
 0x3c4   : > { %v3594_v48 = vpop.permute.xlu1 %3593 }
 0x3c5   : > { %v3774_v61 = vsel %vm2635_vm5, %v12688_v39, %v8321_v62 }
 0x3c6   : > { %v3542_v49 = vpop.permute.xlu0 %3541 }
 0x3c7   : > { %v3760_v10 = vsel %vm1520_vm10, %v3755_v44, %v3542_v49  ;;  %v3765_v2 = vsel %vm1538_vm8, %v3542_v49, %v3568_v20 }
 0x3c8   : > { %4084 = vmatprep.mubr.f32.mxu1 %v3760_v10  ;;  %v3611_v5 = vpop.permute.xlu1 %3610  ;;  %v12691_v15 = vsel %vm14707_vm2, %v3765_v2, %v3594_v48  ;;  %vm14710_vm2 = vmmov %vm14709_vm3 }
 0x3c9   : > { %4085 = vmatmul.mubr.f32.gmra.mrb[34].mxu1 %v3815_v56  ;;  %v3775_v21 = vsel %vm2635_vm5, %v12691_v15, %v8322_v31 }
 0x3ca   : > { %v3628_v53 = vpop.permute.xlu0 %3627 }
 0x3cc   : > { %v12678_v58 = vpop.permute.xlu1 %3644 }
 0x3ce   : > { %v12680_v12 = vpop.permute.xlu0 %3661 }
 0x3d0   : > { %v3570_v24 = vpop.permute.xlu1 %3569 }
 0x3d2   : > { %v8345_v17 = vpop.permute.xlu0 %8344 }
 0x3d3   : > { %v8346_v14 = vunpack.i.l.bf16 %v8345_v17  ;;  %v8347_v13 = vunpack.i.h.bf16 %v8345_v17 }
 0x3d4   : > { %v8355_v36 = vpop.permute.xlu1 %8354 }
 0x3d5   : > { %v3780_v42 = vsel %vm3777_vm9, %v3774_v61, %v8346_v14  ;;  %v3781_v47 = vsel %vm3777_vm9, %v3775_v21, %v8347_v13  ;;  %v8356_v63 = vunpack.i.l.bf16 %v8355_v36 }
 0x3d6   : > { %v8350_v50 = vpop.permute.xlu0 %8349 }
 0x3d7   : > { %v8352_v9 = vunpack.i.h.bf16 %v8350_v50  ;;  %v8351_v35 = vunpack.i.l.bf16 %v8350_v50  ;;  %v3741_v6 = vsel %vm14710_vm2, %v12350_v41, %v8356_v63 }
 0x3d8   : > { %v8365_v51 = vpop.permute.xlu1 %8364 }
 0x3d9   : > { %v3786_v16 = vsel %vm3783_vm7, %v3780_v42, %v8351_v35  ;;  %v3787_v30 = vsel %vm3783_vm7, %v3781_v47, %v8352_v9  ;;  %v8367_v48 = vunpack.i.h.bf16 %v8365_v51  ;;  %v8366_v54 = vunpack.i.l.bf16 %v8365_v51 }
 0x3da   : > { %v12699_v38 = vpop.permute.xlu0 %3543  ;;  %3999 = vmatprep.mubr.f32.mxu0 %v3786_v16 }
 0x3db   : > { %4000 = vmatmul.mubr.f32.gmra.mrb[52].mxu0 %v3759_v28  ;;  %v3766_v52 = vsel %vm1538_vm8, %v12699_v38, %v3570_v24  ;;  %v8357_v28 = vunpack.i.h.bf16 %v8355_v36 }
 0x3dc   : > { %4004 = vmatprep.mubr.f32.mxu0 %v3787_v30  ;;  %v8370_v29 = vpop.permute.xlu1 %8369 }
 0x3dd   : > { %v8372_v34 = vunpack.i.h.bf16 %v8370_v29  ;;  %v8371_v40 = vunpack.i.l.bf16 %v8370_v29  ;;  %v3885_v25 = vsel %vm14709_vm3, %v12350_v41, %v8357_v28  ;;  %vm14713_vm3 = vmmov %vm14710_vm2 }
 0x3de   : > { %v3596_v1 = vpop.permute.xlu0 %3595 }
 0x3df   : > { %v12706_v45 = vsel %vm14708_vm6, %v3766_v52, %v3596_v1  ;;  %4005 = vmatmul.mubr.f32.gmra.mrb[54].mxu0 %v3760_v10  ;;  %vm14711_vm6 = vcmask 392192   ;;  %v3793_v44 = vsel %vm3789_vm0, %v8352_v9, %v8372_v34  ;;  %v3792_v10 = vsel %vm3789_vm0, %v8351_v35, %v8371_v40 }
 0x3e0   : > { %v3776_v37 = vsel %vm2635_vm5, %v12706_v45, %v3611_v5  ;;  %v12710_v23 = vpop.permute.xlu1 %8379  ;;  %vm14712_vm15 = vmmov %vm14711_vm6 }
 0x3e1   : > { %v3782_v32 = vsel %vm3777_vm9, %v3776_v37, %v3628_v53  ;;  %v8382_v56 = vunpack.i.h.bf16 %v12710_v23  ;;  %v8381_v62 = vunpack.i.l.bf16 %v12710_v23 }
 0x3e2   : > { %v8360_v43 = vpop.permute.xlu0 %8359  ;;  %v3788_v59 = vsel %vm3783_vm7, %v3782_v32, %v12678_v58 }
 0x3e3   : > { %4009 = vmatprep.mubr.f32.mxu0 %v3788_v59  ;;  %v8361_v27 = vunpack.i.l.bf16 %v8360_v43  ;;  %v8362_v3 = vunpack.i.h.bf16 %v8360_v43 }
 0x3e4   : > { %v8400_v33 = vpop.permute.xlu1 %8399 }
 0x3e5   : > { %v3746_v60 = vsel %vm14711_vm6, %v3741_v6, %v8361_v27  ;;  %v8402_v18 = vunpack.i.h.bf16 %v8400_v33  ;;  %v3888_v57 = vsel %vm14712_vm15, %v3885_v25, %v8362_v3  ;;  %v8401_v5 = vunpack.i.l.bf16 %v8400_v33  ;;  %vm14714_vm15 = vmmov %vm14710_vm2 }
 0x3e6   : > { %v8375_v19 = vpop.permute.xlu0 %8374  ;;  %v3751_v36 = vsel %vm1484_vm12, %v3746_v60, %v8366_v54  ;;  %v3891_v9 = vsel %vm1484_vm12, %v3888_v57, %v8367_v48  ;;  %vm14715_vm2 = vmmov %vm14711_vm6 }
 0x3e7   : > { %v8376_v0 = vunpack.i.l.bf16 %v8375_v19  ;;  %v8377_v53 = vunpack.i.h.bf16 %v8375_v19  ;;  %v3887_v4 = vsel %vm14713_vm3, %v12511_v11, %v8402_v18  ;;  %v3886_v35 = vsel %vm14714_vm15, %v12474_v22, %v8401_v5  ;;  %vm14716_vm6 = vmmov %vm14715_vm2 }
 0x3e8   : > { %v8405_v7 = vpop.permute.xlu1 %8404  ;;  %vm8626_vm3 = vmmov 0   ;;  %vm14717_vm15 = vcmask 326656  }
 0x3e9   : > { %v3798_v24 = vsel %vm3795_vm4, %v3792_v10, %v8376_v0  ;;  %v8407_v13 = vunpack.i.h.bf16 %v8405_v7  ;;  %v8406_v50 = vunpack.i.l.bf16 %v8405_v7  ;;  %v3799_v16 = vsel %vm3795_vm4, %v3793_v44, %v8377_v53  ;;  %v4226_v53 = vld [vmem:[%s14719_s9 + $0x80] sm:$0xff] }
 0x3ea   : > { %v12715_v20 = vpop.permute.xlu0 %8384  ;;  %v3804_v42 = vsel %vm3801_vm13, %v3798_v24, %v8381_v62  ;;  %v4227_v24 = vld [vmem:[%s14719_s9 + $0x88] sm:$0xff] }
 0x3eb   : > { %v8386_v41 = vunpack.i.l.bf16 %v12715_v20  ;;  %v8387_v29 = vunpack.i.h.bf16 %v12715_v20  ;;  %v3889_v37 = vsel %vm14715_vm2, %v3886_v35, %v8406_v50  ;;  %v3890_v23 = vsel %vm14716_vm6, %v3887_v4, %v8407_v13  ;;  %v4211_v62 = vld [vmem:[%s14719_s9 + $0x8] sm:$0xff]  ;;  %v4212_v13 = vld [vmem:[%s14719_s9 + $0x10] sm:$0xff]  ;;  %v4213_v50 = vld [vmem:[%s14719_s9 + $0x18] sm:$0xff] }
 0x3ec   : > { %v12717_v55 = vpop.permute.xlu1 %3863  ;;  %v3805_v20 = vsel %vm3801_vm13, %v3799_v16, %v8382_v56  ;;  %v7112_v35 = vpack.c.bf16 %v4213_v50, %v4212_v13 }
 0x3ed   : > { %v3810_v30 = vsel %vm3807_vm1, %v3804_v42, %v8386_v41  ;;  %v3811_v27 = vsel %vm3807_vm1, %v3805_v20, %v8387_v29  ;;  %v4210_v41 = vld [vmem:[%s14719_s9] sm:$0xff] }
 0x3ee   : > { %v8390_v8 = vpop.permute.xlu0 %8389 }
 0x3ef   : > { %v8391_v2 = vunpack.i.l.bf16 %v8390_v8  ;;  %v8392_v32 = vunpack.i.h.bf16 %v8390_v8 }
 0x3f0   : > { %v3680_v49 = vpop.permute.xlu1 %3679 }
 0x3f1   : > { %v3816_v1 = vsel %vm3813_vm11, %v3810_v30, %v8391_v2  ;;  %v3817_v34 = vsel %vm3813_vm11, %v3811_v27, %v8392_v32  ;;  %v4228_v2 = vld [vmem:[%s14719_s9 + $0x90] sm:$0xff] }
 0x3f2   : > { %v8395_v17 = vpop.permute.xlu0 %8394 }
 0x3f3   : > { %v8396_v14 = vunpack.i.l.bf16 %v8395_v17  ;;  %v8397_v43 = vunpack.i.h.bf16 %v8395_v17  ;;  %v7106_v17 = vpack.c.bf16 %v4227_v24, %v4226_v53 }
 0x3f4   : > { %v3858_v31 = vpop.permute.xlu1 %3857 }
 0x3f5   : > { %v3756_v61 = vsel %vm1502_vm14, %v3751_v36, %v8396_v14  ;;  %v3894_v51 = vsel %vm1502_vm14, %v3891_v9, %v8396_v14  ;;  %v4229_v14 = vld [vmem:[%s14719_s9 + $0x98] sm:$0xff]  ;;  %v7108_v36 = vpack.c.bf16 %v4211_v62, %v4210_v41  ;;  %7107 = vmatprep.subr.bf16.mxu1 %v7106_v17  ;;  %v4231_v9 = vld [vmem:[%s14719_s9 + $0xa8] sm:$0xff] }
 0x3f6   : > { %v8410_v21 = vpop.permute.xlu0 %8409  ;;  %v3761_v11 = vsel %vm1520_vm10, %v3756_v61, %v12699_v38  ;;  %v3897_v47 = vsel %vm1520_vm10, %v3894_v51, %v12699_v38  ;;  %v7110_v4 = vpack.c.bf16 %v4229_v14, %v4228_v2  ;;  %v6138_v51 = vld [vmem:[%s14720_s6] ss:$0 sm:$0xff]  ;;  %s14824_s6 = sld [smem:[#allocation88_spill]] }
 0x3f7   : > { %v8412_v22 = vunpack.i.h.bf16 %v8410_v21  ;;  %v8411_v52 = vunpack.i.l.bf16 %v8410_v21  ;;  %4010 = vmatmul.mubr.f32.gmra.mrb[56].mxu0 %v3761_v11  ;;  %4089 = vmatprep.mubr.f32.mxu1 %v3897_v47 }
 0x3f8   : > { %4090 = vmatmul.mubr.f32.gmra.mrb[36].mxu1 %v3816_v1  ;;  %6686 = vmatprep.mubr.msk.f32.mxu0 %vm8626_vm3, %v8618_v26  ;;  %v3866_v33 = vpop.permute.xlu1 %3865 }
 0x3f9   : > { %v3892_v38 = vsel %vm1484_vm12, %v3889_v37, %v8411_v52  ;;  %v3893_v59 = vsel %vm1484_vm12, %v3890_v23, %v8412_v22  ;;  %7109 = vmatpush3.bf16.msra.mxu1 %v7108_v36 }
 0x3fa   : > { %v3697_v19 = vpop.permute.xlu0 %3696  ;;  %v3895_v7 = vsel %vm1502_vm14, %v3892_v38, %v8397_v43  ;;  %v3896_v28 = vsel %vm1502_vm14, %v3893_v59, %v3858_v31  ;;  %v4230_v31 = vld [vmem:[%s14719_s9 + $0xa0] sm:$0xff]  ;;  %7111 = vmatprep.subr.bf16.mxu1 %v7110_v4 }
 0x3fb   : > { %6687 = vmatmul.mubr.msk.f32.vlgmr.msra.gmra.mrb[58].mxu0 %vm2635_vm5, %v12688_v39  ;;  %v3898_v63 = vsel %vm1520_vm10, %v3895_v7, %v12717_v55  ;;  %v3899_v40 = vsel %vm1520_vm10, %v3896_v28, %v3866_v33  ;;  %v3794_v39 = vsel %vm3789_vm0, %v12678_v58, %v12680_v12  ;;  %v7114_v61 = vpack.c.bf16 %v4231_v9, %v4230_v31 }
 0x3fc   : > { %4094 = vmatprep.mubr.f32.mxu1 %v3898_v63  ;;  %6689 = vmatprep.mubr.msk.f32.mxu0 %vm8626_vm3, %v8618_v26  ;;  %v3800_v0 = vsel %vm3795_vm4, %v3794_v39, %v3680_v49  ;;  %v3872_v25 = vpop.permute.xlu1 %3871 }
 0x3fd   : > { %4095 = vmatmul.mubr.f32.gmra.mrb[38].mxu1 %v3817_v34  ;;  %v3806_v8 = vsel %vm3801_vm13, %v3800_v0, %v3697_v19  ;;  %v3900_v58 = vsel %vm1538_vm8, %v12717_v55, %v3872_v25  ;;  %vm14718_vm13 = vmmov %vm14717_vm15  ;;  %v4214_v25 = vld [vmem:[%s14719_s9 + $0x20] sm:$0xff] }
 0x3fe   : > { %v3714_v3 = vpop.permute.xlu0 %3713  ;;  %4099 = vmatprep.mubr.f32.mxu1 %v3899_v40  ;;  %7113 = vmatpush3.bf16.msra.mxu1 %v7112_v35 }
 0x3ff   : > { %6690 = vmatmul.mubr.msk.f32.gmra.mrb[60].mxu0 %vm2635_vm5, %v12691_v15  ;;  %v3812_v6 = vsel %vm3807_vm1, %v3806_v8, %v3714_v3  ;;  %7115 = vmatprep.subr.bf16.mxu1 %v7114_v61 }
 0x400   : > { %6692 = vmatprep.mubr.msk.f32.mxu0 %vm8626_vm3, %v8618_v26  ;;  %v3874_v15 = vpop.permute.xlu1 %3873 }
 0x402   : > { %v3731_v48 = vpop.permute.xlu0 %3730 }
 0x403   : > { %6693 = vmatmul.mubr.msk.f32.gmra.mrb[62].mxu0 %vm2635_vm5, %v12706_v45  ;;  %v3818_v54 = vsel %vm3813_vm11, %v3812_v6, %v3731_v48  ;;  %v3901_v45 = vsel %vm1538_vm8, %v3866_v33, %v3874_v15  ;;  %v4215_v6 = vld [vmem:[%s14719_s9 + $0x28] sm:$0xff] }
 0x404   : > { %4100 = vmatmul.mubr.f32.gmra.mrb[40].mxu1 %v3818_v54  ;;  %6695 = vmatprep.mubr.msk.f32.mxu0 %vm8626_vm3, %v8618_v26 }
 0x406   : > { %v3880_v12 = vpop.permute.xlu0 %3879 }
 0x407   : > { %v3902_v60 = vsel %vm14717_vm15, %v3900_v58, %v3880_v12  ;;  %v7116_v12 = vpack.c.bf16 %v4215_v6, %v4214_v25  ;;  %vm14721_vm15 = vcmask 1042432  }
 0x408   : > { %6696 = vmatmul.mubr.msk.f32.gmra.mrb[64].mxu0 %vm2635_vm5, %v3902_v60 }
 0x409   : > { %6698 = vmatprep.mubr.msk.f32.mxu0 %vm8626_vm3, %v8618_v26  ;;  %7117 = vmatpush3.bf16.msra.mxu1 %v7116_v12 }
 0x40a   : > { %v3882_v18 = vpop.permute.xlu0 %3881 }
 0x40b   : > { %v3903_v49 = vsel %vm14718_vm13, %v3901_v45, %v3882_v18  ;;  %vm14722_vm13 = vmmov %vm14721_vm15 }
 0x40c   : > { %6699 = vmatmul.mubr.msk.f32.gmra.mrb[66].mxu0 %vm2635_vm5, %v3903_v49  ;;  %v4232_v49 = vld [vmem:[%s14719_s9 + $0xb0] sm:$0xff] }
 0x40d   : > { %6737 = vmatprep.mubr.msk.f32.mxu0 %vm8626_vm3, %v8618_v26 }
 0x482   : > { %v6434_v55 = vpop.f32.mrb[48].mxu0 }
 0x483   : > { %v6435_v44 = vpop.f32.mrb[49].mxu0 }
 0x484   : > { %v6436_v10 = vadd.f32 %v6435_v44, %v6434_v55  ;;  %v4233_v55 = vld [vmem:[%s14719_s9 + $0xb8] sm:$0xff] }
 0x486   : > { %v6437_v57 = vpop.f32.mrb[50].mxu0  ;;  %v3992_v21 = vadd.f32 %v6436_v10, %v6138_v51 }
 0x487   : > { %v6438_v5 = vpop.f32.mrb[51].mxu0 }
 0x488   : > { %v6439_v56 = vadd.f32 %v6438_v5, %v6437_v57  ;;  %v7118_v57 = vpack.c.bf16 %v4233_v55, %v4232_v49  ;;  %v4217_v49 = vld [vmem:[%s14719_s9 + $0x38] sm:$0xff] }
 0x48a   : > { %v3997_v22 = vadd.f32 %v6439_v56, %v6138_v51  ;;  %7119 = vmatprep.subr.bf16.mxu1 %v7118_v57 }
 0x495   : > { %v6481_v42 = vpop.f32.mrb[32].mxu1 }
 0x496   : > { %v6482_v16 = vpop.f32.mrb[33].mxu1 }
 0x497   : > { %v6483_v11 = vadd.f32 %v6482_v16, %v6481_v42 }
 0x499   : > { %v4082_v47 = vadd.f32 %v6483_v11, %v3992_v21 }
 0x49c   : > { %v6484_v30 = vpop.f32.mrb[34].mxu1 }
 0x49d   : > { %v6485_v29 = vpop.f32.mrb[35].mxu1 }
 0x49e   : > { %v6486_v52 = vadd.f32 %v6485_v29, %v6484_v30 }
 0x4a0   : > { %v4087_v1 = vadd.f32 %v6486_v52, %v3997_v22 }
 0x4ae   : > { %v6440_v37 = vpop.f32.mrb[52].mxu0 }
 0x4af   : > { %v6441_v23 = vpop.f32.mrb[53].mxu0 }
 0x4b0   : > { %v6442_v32 = vadd.f32 %v6441_v23, %v6440_v37 }
 0x4b2   : > { %v6443_v43 = vpop.f32.mrb[54].mxu0  ;;  %v4002_v63 = vadd.f32 %v6442_v32, %v6138_v51 }
 0x4b3   : > { %v6444_v38 = vpop.f32.mrb[55].mxu0 }
 0x4b4   : > { %v6445_v59 = vadd.f32 %v6444_v38, %v6443_v43 }
 0x4b6   : > { %v4007_v48 = vadd.f32 %v6445_v59, %v6138_v51 }
 0x4ca   : > { %v6446_v33 = vpop.f32.mrb[56].mxu0 }
 0x4cb   : > { %v6447_v19 = vpop.f32.mrb[57].mxu0  ;;  %v6487_v7 = vpop.f32.mrb[36].mxu1 }
 0x4cc   : > { %v6448_v20 = vadd.f32 %v6447_v19, %v6446_v33  ;;  %v6488_v28 = vpop.f32.mrb[37].mxu1 }
 0x4cd   : > { %v6489_v27 = vadd.f32 %v6488_v28, %v6487_v7 }
 0x4ce   : > { %v4171_v34 = vpop.f32.mrb[58].mxu0  ;;  %v4012_v41 = vadd.f32 %v6448_v20, %v6138_v51 }
 0x4cf   : > { %v4172_v40 = vadd.f32 %v4171_v34, %v4082_v47  ;;  %v6688_v3 = vpop.f32.mrb[59].mxu0  ;;  %v4092_v39 = vadd.f32 %v6489_v27, %v4002_v63 }
 0x4d0   : > { %v6490_v0 = vpop.f32.mrb[38].mxu1 }
 0x4d1   : > { %v6491_v8 = vpop.f32.mrb[39].mxu1  ;;  %v4200_v45 = vmul.f32 0.01, %v4172_v40  ;;  %vm4195_vm11 = vcmp.ge.f32.partialorder %v4172_v40, 0.0 }
 0x4d2   : > { %v6492_v54 = vadd.f32 %v6491_v8, %v6490_v0  ;;  %v4176_v58 = vpop.f32.mrb[60].mxu0 }
 0x4d3   : > { %v4177_v15 = vadd.f32 %v4176_v58, %v4087_v1  ;;  %v6691_v60 = vpop.f32.mrb[61].mxu0  ;;  %v12839_v17 = vsel %vm4195_vm11, %v4172_v40, %v4200_v45  ;;  %vm14723_vm11 = vcmask 1041408  }
 0x4d4   : > { %v4097_v18 = vadd.f32 %v6492_v54, %v4007_v48  ;;  %v4324_v9 = vrot.slane %v12839_v17, 5  ;;  %v4344_v35 = vrot.slane %v12839_v17, 6  ;;  %v4248_v19 = vrot.slane %v12839_v17, 1 }
 0x4d5   : > { %vm4196_vm2 = vcmp.ge.f32.partialorder %v4177_v15, 0.0  ;;  %v4201_v44 = vmul.f32 0.01, %v4177_v15  ;;  %v4365_v28 = vrot.slane %v12839_v17, 7  ;;  %v4267_v8 = vrot.slane %v12839_v17, 2 }
 0x4d6   : > { %v4181_v10 = vpop.f32.mrb[62].mxu0 }
 0x4d7   : > { %v12837_v5 = vsel %vm4196_vm2, %v4177_v15, %v4201_v44  ;;  %v4182_v56 = vadd.f32 %v4181_v10, %v4092_v39  ;;  %v6493_v53 = vpop.f32.mrb[40].mxu1  ;;  %v6694_v24 = vpop.f32.mrb[63].mxu0  ;;  %vm14724_vm2 = vmmov %vm14723_vm11  ;;  %v4286_v15 = vrot.slane %v12839_v17, 3  ;;  %v4234_v44 = vld [vmem:[%s14719_s9 + $0xc0] sm:$0xff]  ;;  %v4235_v10 = vld [vmem:[%s14719_s9 + $0xc8] sm:$0xff] }
 0x4d8   : > { %v6494_v62 = vpop.f32.mrb[41].mxu1  ;;  %v4325_v36 = vrot.slane %v12837_v5, 5  ;;  %v4345_v4 = vrot.slane %v12837_v5, 6  ;;  %v4249_v47 = vrot.slane %v12837_v5, 1  ;;  %v4366_v38 = vrot.slane %v12837_v5, 7  ;;  %v4219_v24 = vld [vmem:[%s14719_s9 + $0x48] sm:$0xff] }
 0x4d9   : > { %vm4197_vm6 = vcmp.ge.f32.partialorder %v4182_v56, 0.0  ;;  %v4202_v2 = vmul.f32 0.01, %v4182_v56  ;;  %v6495_v14 = vadd.f32 %v6494_v62, %v6493_v53  ;;  %v4268_v40 = vrot.slane %v12837_v5, 2  ;;  %v4218_v53 = vld [vmem:[%s14719_s9 + $0x40] sm:$0xff] }
 0x4da   : > { %v4326_v11 = vsel %vm14721_vm15, %v4324_v9, %v4325_v36  ;;  %v4346_v1 = vsel %vm14723_vm11, %v4344_v35, %v4345_v4  ;;  %vm14725_vm15 = vcmask 1046528   ;;  %v4287_v58 = vrot.slane %v12837_v5, 3 }
 0x4db   : > { %v12843_v13 = vsel %vm4197_vm6, %v4182_v56, %v4202_v2  ;;  %v4186_v50 = vpop.f32.mrb[64].mxu0  ;;  %v4102_v31 = vadd.f32 %v6495_v14, %v4012_v41  ;;  %vm14727_vm11 = vmmov %vm14725_vm15  ;;  %v4306_v56 = vrot.slane %v12837_v5, 4  ;;  %v4305_v62 = vrot.slane %v12839_v17, 4  ;;  %v4236_v14 = vld [vmem:[%s14719_s9 + $0xd0] sm:$0xff] }
 0x4dc   : > { %v4187_v61 = vadd.f32 %v4186_v50, %v4097_v18  ;;  %v6697_v51 = vpop.f32.mrb[65].mxu0  ;;  %v8413_v42 = vpack.i.bf16 %v12843_v13, %v12837_v5  ;;  %v4327_v16 = vrot.slane %v12843_v13, 5  ;;  %v4347_v21 = vrot.slane %v12843_v13, 6  ;;  %v4216_v18 = vld [vmem:[%s14719_s9 + $0x30] sm:$0xff] }
 0x4dd   : > { %v4251_v30 = vrot.slane %v12843_v13, 1  ;;  %v4368_v29 = vrot.slane %v12843_v13, 7  ;;  %v4270_v20 = vrot.slane %v12843_v13, 2  ;;  %v4250_v34 = vsel %vm14727_vm11, %v4248_v19, %v4249_v47 }
 0x4de   : > { %v4203_v22 = vmul.f32 0.01, %v4187_v61  ;;  %8414 = vrot.lane.b32.xlu0 %v8413_v42, %s8616_s17  ;;  %v4328_v52 = vsel %vm14722_vm13, %v4325_v36, %v4327_v16  ;;  %v4348_v37 = vsel %vm14724_vm2, %v4345_v4, %v4347_v21  ;;  %vm4198_vm6 = vcmp.ge.f32.partialorder %v4187_v61, 0.0  ;;  %v4237_v36 = vld [vmem:[%s14719_s9 + $0xd8] sm:$0xff] }
 0x4df   : > { %v4191_v23 = vpop.f32.mrb[66].mxu0  ;;  %v8418_v32 = vpack.i.bf16 %v4328_v52, %v4326_v11  ;;  %v8423_v43 = vpack.i.bf16 %v4348_v37, %v4346_v1  ;;  %v4252_v7 = vsel %vm14725_vm15, %v4249_v47, %v4251_v30  ;;  %vm14726_vm13 = vcmask 1040384   ;;  %v4220_v47 = vld [vmem:[%s14719_s9 + $0x50] sm:$0xff]  ;;  %v4238_v52 = vld [vmem:[%s14719_s9 + $0xe0] sm:$0xff]  ;;  %v4239_v1 = vld [vmem:[%s14719_s9 + $0xe8] sm:$0xff] }
 0x4e0   : > { %v12864_v59 = vadd.f32 %v4191_v23, %v4102_v31  ;;  %v6700_v33 = vpop.f32.mrb[67].mxu0  ;;  %v4369_v63 = vsel %vm14726_vm13, %v4366_v38, %v4368_v29  ;;  %v12874_v27 = vsel %vm4198_vm6, %v4187_v61, %v4203_v22  ;;  %v8428_v3 = vpack.i.bf16 %v4252_v7, %v4250_v34  ;;  %vm14728_vm2 = vmmov %vm14726_vm13 }
 0x4e1   : > { %8419 = vrot.lane.b32.xlu1 %v8418_v32, %s14269_s26  ;;  %v4367_v39 = vsel %vm14728_vm2, %v4365_v28, %v4366_v38  ;;  %vm14729_vm15 = vcmask 1045504   ;;  %v4289_v6 = vrot.slane %v12843_v13, 3  ;;  %v12885_v48 = vrot.slane %v12874_v27, 1 }
 0x4e2   : > { %8424 = vrot.lane.b32.xlu0 %v8423_v43, %s14275_s22  ;;  %v8433_v0 = vpack.i.bf16 %v4369_v63, %v4367_v39  ;;  %v4271_v25 = vsel %vm14729_vm15, %v4268_v40, %v4270_v20  ;;  %vm14730_vm6 = vmmov %vm14729_vm15  ;;  %vm14731_vm13 = vcmask 1044480   ;;  %v4308_v45 = vrot.slane %v12843_v13, 4 }
 0x4e3   : > { %v4269_v54 = vsel %vm14730_vm6, %v4267_v8, %v4268_v40  ;;  %v4290_v60 = vsel %vm14731_vm13, %v4287_v58, %v4289_v6  ;;  %v4254_v55 = vsel %vm14727_vm11, %v4251_v30, %v12885_v48  ;;  %vm14732_vm2 = vmmov %vm14731_vm13  ;;  %v7120_v2 = vpack.c.bf16 %v4217_v49, %v4216_v18  ;;  %v4221_v30 = vld [vmem:[%s14719_s9 + $0x58] sm:$0xff]  ;;  %v12996_v49 = vld [vmem:[%s14719_s9 + $0x100] sm:$0xff] }
 0x4e4   : > { %v8438_v12 = vpack.i.bf16 %v4271_v25, %v4269_v54  ;;  %v4288_v57 = vsel %vm14732_vm2, %v4286_v15, %v4287_v58  ;;  %v8453_v4 = vpack.i.bf16 %v4254_v55, %v4252_v7  ;;  %vm14733_vm15 = vcmask 1043456   ;;  %v4222_v7 = vld [vmem:[%s14719_s9 + $0x60] sm:$0xff]  ;;  %v4225_v8 = vld [vmem:[%s14719_s9 + $0x78] sm:$0xff] }
 0x4e5   : > { %8429 = vrot.lane.b32.xlu1 %v8428_v3, %s14270_s28  ;;  %v8443_v41 = vpack.i.bf16 %v4290_v60, %v4288_v57  ;;  %v4309_v50 = vsel %vm14733_vm15, %v4306_v56, %v4308_v45  ;;  %v4329_v31 = vrot.slane %v12874_v27, 5  ;;  %v7122_v9 = vpack.c.bf16 %v4235_v10, %v4234_v44  ;;  %7121 = vmatpush3.bf16.msra.mxu1 %v7120_v2  ;;  %vm14734_vm6 = vmmov %vm14733_vm15 }
 0x4e6   : > { %8434 = vrot.lane.b32.xlu0 %v8433_v0, %s14289_s21  ;;  %v12932_v35 = vrot.slane %v12874_v27, 2  ;;  %v7124_v61 = vpack.c.bf16 %v4219_v24, %v4218_v53  ;;  %v4204_v51 = vmul.f32 0.01, %v12864_v59  ;;  %v4307_v42 = vsel %vm14734_vm6, %v4305_v62, %v4306_v56  ;;  %v4224_v0 = vld [vmem:[%s14719_s9 + $0x70] sm:$0xff] }
 0x4e7   : > { %7123 = vmatprep.subr.bf16.mxu1 %v7122_v9  ;;  %v7126_v11 = vpack.c.bf16 %v4237_v36, %v4236_v14  ;;  %vm4199_vm13 = vcmp.ge.f32.partialorder %v12864_v59, 0.0  ;;  %v8448_v22 = vpack.i.bf16 %v4309_v50, %v4307_v42  ;;  %v8463_v37 = vpack.i.bf16 %v12885_v48, %v4254_v55 }
 0x4e8   : > { %vm14735_vm11 = vcmask 1042432   ;;  %vm14736_vm2 = vcmask 1045504   ;;  %v4291_v43 = vrot.slane %v12874_v27, 3  ;;  %v7128_v38 = vpack.c.bf16 %v4221_v30, %v4220_v47 }
 0x4e9   : > { %8439 = vrot.lane.b32.xlu1 %v8438_v12, %s14256_s0  ;;  %v4330_v23 = vsel %vm14735_vm11, %v4327_v16, %v4329_v31  ;;  %v4273_v32 = vsel %vm14736_vm2, %v4270_v20, %v12932_v35  ;;  %7125 = vmatpush3.bf16.msra.mxu1 %v7124_v61  ;;  %v4209_v33 = vsel %vm4199_vm13, %v12864_v59, %v4204_v51  ;;  %v4223_v16 = vld [vmem:[%s14719_s9 + $0x68] sm:$0xff]  ;;  %v4240_v20 = vld [vmem:[%s14719_s9 + $0xf0] sm:$0xff]  ;;  %v4241_v59 = vld [vmem:[%s14719_s9 + $0xf8] sm:$0xff]  ;;  %vm14737_vm15 = vcmask 1044480  }
 0x4ea   : > { %4414 = vrot.lane.b32.xlu0 %v4271_v25, %s8621_s7  ;;  %7127 = vmatprep.subr.bf16.mxu1 %v7126_v11  ;;  %v7130_v19 = vpack.c.bf16 %v4239_v1, %v4238_v52  ;;  %v8458_v28 = vpack.i.bf16 %v4329_v31, %v4330_v23  ;;  %v8468_v63 = vpack.i.bf16 %v12932_v35, %v4273_v32  ;;  %v4351_v34 = vrot.slane %v4209_v33, 6 }
 0x4eb   : > { %v4292_v40 = vsel %vm14737_vm15, %v4289_v6, %v4291_v43  ;;  %v7132_v3 = vpack.c.bf16 %v4223_v16, %v4222_v7  ;;  %v7134_v39 = vpack.c.bf16 %v4241_v59, %v4240_v20  ;;  %v4349_v25 = vrot.slane %v12874_v27, 6 }
 0x4ec   : > { %v4372_v54 = vrot.slane %v4209_v33, 7  ;;  %v8473_v58 = vpack.i.bf16 %v4291_v43, %v4292_v40  ;;  %vm14738_vm6 = vcmask 1041408   ;;  %v7136_v12 = vpack.c.bf16 %v4225_v8, %v4224_v0 }
 0x4ed   : > { %8444 = vrot.lane.b32.xlu1 %v8443_v41, %s14260_s5  ;;  %7129 = vmatpush3.bf16.msra.mxu1 %v7128_v38  ;;  %v4352_v6 = vsel %vm14738_vm6, %v4349_v25, %v4351_v34  ;;  %v4370_v15 = vrot.slane %v12874_v27, 7  ;;  %v8478_v60 = vpack.i.bf16 %v4209_v33, %v12874_v27  ;;  %vm14739_vm13 = vmmov %vm14738_vm6  ;;  %vm14740_vm11 = vcmask 1040384  }
 0x4ee   : > { %8454 = vrot.lane.b32.xlu0 %v8453_v4, %s8619_s16  ;;  %7131 = vmatprep.subr.bf16.mxu1 %v7130_v19  ;;  %v4350_v18 = vsel %vm14739_vm13, %v4347_v21, %v4349_v25  ;;  %v4398_v10 = vrot.slane %v4209_v33, 1  ;;  %v4310_v57 = vrot.slane %v12874_v27, 4  ;;  %vm14741_vm2 = vmmov %vm14740_vm11  ;;  %vm14742_vm15 = vcmask 1046528  }
 0x4ef   : > { %v8483_v55 = vpack.i.bf16 %v4352_v6, %v4350_v18  ;;  %v4373_v44 = vsel %vm14740_vm11, %v4370_v15, %v4372_v54  ;;  %v4371_v21 = vsel %vm14741_vm2, %v4368_v29, %v4370_v15  ;;  %vm14743_vm6 = vcmask 1043456  }
 0x4f0   : > { %v8488_v56 = vpack.i.bf16 %v4373_v44, %v4371_v21  ;;  %v4399_v53 = vsel %vm14742_vm15, %v12885_v48, %v4398_v10  ;;  %v4311_v24 = vsel %vm14743_vm6, %v4308_v45, %v4310_v57  ;;  %v4412_v62 = vrot.slane %v4209_v33, 2 }
 0x4f1   : > { %8449 = vrot.lane.b32.xlu1 %v8448_v22, %s14271_s29  ;;  %7133 = vmatpush3.bf16.msra.mxu1 %v7132_v3  ;;  %v8493_v41 = vpack.i.bf16 %v4398_v10, %v4399_v53  ;;  %vm14744_vm13 = vcmask 1045504   ;;  %vm14745_vm11 = vcmask 326656   ;;  %vm14746_vm2 = vcmask 195584  }
 0x4f2   : > { %8464 = vrot.lane.b32.xlu0 %v8463_v37, %s14270_s28  ;;  %7135 = vmatprep.subr.bf16.mxu1 %v7134_v39  ;;  %v4413_v29 = vsel %vm14744_vm13, %v12932_v35, %v4412_v62  ;;  %vm14747_vm15 = vcmask 392192   ;;  %vm14748_vm6 = vmmov %vm14746_vm2 }
 0x4f3   : > { %vm14749_vm13 = vmmov %vm14745_vm11 }
 0x4f5   : > { %8459 = vrot.lane.b32.xlu1 %v8458_v28, %s14269_s26  ;;  %7137 = vmatpush3.bf16.msra.mxu1 %v7136_v12 }
 0x4f6   : > { %8469 = vrot.lane.b32.xlu0 %v8468_v63, %s14256_s0  ;;  %6701 = vmatprep.subr.mxu1 %v12996_v49 }
 0x4f9   : > { %4416 = vrot.lane.b32.xlu1 %v4273_v32, %s8621_s7 }
 0x4fa   : > { %8474 = vrot.lane.b32.xlu0 %v8473_v58, %s14260_s5 }
 0x4fd   : > { %8479 = vrot.lane.b32.xlu1 %v8478_v60, %s8616_s17 }
 0x4fe   : > { %8484 = vrot.lane.b32.xlu0 %v8483_v55, %s14275_s22 }
 0x501   : > { %8489 = vrot.lane.b32.xlu1 %v8488_v56, %s14289_s21 }
 0x502   : > { %4316 = vrot.lane.b32.xlu0 %v4311_v24, %s14271_s29 }
 0x505   : > { %8494 = vrot.lane.b32.xlu1 %v8493_v41, %s8619_s16  ;;  %s14828_s16 = sld [smem:[#allocation6_spill]] }
 0x506   : > { %4318 = vrot.lane.b32.xlu0 %v4310_v57, %s14271_s29 }
 0x509   : > { %4418 = vrot.lane.b32.xlu1 %v4413_v29, %s8621_s7 }
 0x50d   : > { %4420 = vrot.lane.b32.xlu1 %v4412_v62, %s8621_s7 }
 0x550   : > { %v8415_v48 = vpop.permute.xlu0 %8414 }
 0x551   : > { %v8416_v47 = vunpack.i.l.bf16 %v8415_v48  ;;  %v8417_v6 = vunpack.i.h.bf16 %v8415_v48 }
 0x553   : > { %v8420_v2 = vpop.permute.xlu1 %8419 }
 0x554   : > { %v8425_v14 = vpop.permute.xlu0 %8424  ;;  %v8421_v4 = vunpack.i.l.bf16 %v8420_v2  ;;  %v8422_v37 = vunpack.i.h.bf16 %v8420_v2 }
 0x555   : > { %v8426_v50 = vunpack.i.l.bf16 %v8425_v14  ;;  %v8427_v23 = vunpack.i.h.bf16 %v8425_v14 }
 0x557   : > { %v8430_v36 = vpop.permute.xlu1 %8429  ;;  %v4446_v51 = vsel %vm1538_vm8, %v8421_v4, %v8426_v50  ;;  %v4447_v3 = vsel %vm1538_vm8, %v8422_v37, %v8427_v23 }
 0x558   : > { %v8435_v45 = vpop.permute.xlu0 %8434  ;;  %v8431_v42 = vunpack.i.l.bf16 %v8430_v36  ;;  %v8432_v43 = vunpack.i.h.bf16 %v8430_v36 }
 0x559   : > { %v8436_v31 = vunpack.i.l.bf16 %v8435_v45  ;;  %v8437_v33 = vunpack.i.h.bf16 %v8435_v45 }
 0x55a   : > { %v4426_v38 = vsel %vm14746_vm2, %v12839_v17, %v8431_v42  ;;  %v4427_v0 = vsel %vm14748_vm6, %v12837_v5, %v8432_v43  ;;  %vm14751_vm2 = vmmov %vm14749_vm13 }
 0x55b   : > { %v8440_v9 = vpop.permute.xlu1 %8439  ;;  %v4450_v35 = vsel %vm14745_vm11, %v4446_v51, %v8436_v31  ;;  %v4451_v8 = vsel %vm14749_vm13, %v4447_v3, %v8437_v33  ;;  %vm14750_vm11 = vmmov %vm14747_vm15 }
 0x55c   : > { %v13019_v61 = vpop.permute.xlu0 %4414  ;;  %v8441_v30 = vunpack.i.l.bf16 %v8440_v9  ;;  %v4454_v32 = vsel %vm2635_vm5, %v4450_v35, %v8416_v47  ;;  %v8442_v16 = vunpack.i.h.bf16 %v8440_v9  ;;  %v4455_v18 = vsel %vm2635_vm5, %v4451_v8, %v8417_v6  ;;  %v4664_v8 = vld [vmem:[%s14758_s23 + $0x10] sm:$0xff]  ;;  %v4667_v6 = vld [vmem:[%s14758_s23 + $0x28] sm:$0xff] }
 0x55e   : > { %v4430_v28 = vsel %vm14747_vm15, %v4426_v38, %v8441_v30  ;;  %v4431_v12 = vsel %vm14750_vm11, %v4427_v0, %v8442_v16  ;;  %vm14752_vm15 = vmmov %vm14748_vm6  ;;  %v4663_v0 = vld [vmem:[%s14758_s23 + $0x8] sm:$0xff] }
 0x55f   : > { %v8445_v11 = vpop.permute.xlu1 %8444  ;;  %vm14753_vm6 = vmmov %vm14750_vm11 }
 0x560   : > { %v8455_v22 = vpop.permute.xlu0 %8454  ;;  %v8446_v52 = vunpack.i.l.bf16 %v8445_v11  ;;  %v8447_v34 = vunpack.i.h.bf16 %v8445_v11  ;;  %vm14754_vm13 = vmmov %vm14752_vm15 }
 0x561   : > { %v8456_v1 = vunpack.i.l.bf16 %v8455_v22  ;;  %v8457_v25 = vunpack.i.h.bf16 %v8455_v22  ;;  %vm14755_vm11 = vmmov %vm14751_vm2 }
 0x562   : > { %v4434_v40 = vsel %vm1484_vm12, %v4430_v28, %v8446_v52  ;;  %v4435_v60 = vsel %vm1484_vm12, %v4431_v12, %v8447_v34 }
 0x563   : > { %v8450_v19 = vpop.permute.xlu1 %8449  ;;  %v4458_v7 = vsel %vm3777_vm9, %v4454_v32, %v8456_v1  ;;  %v4459_v44 = vsel %vm3777_vm9, %v4455_v18, %v8457_v25 }
 0x564   : > { %v8451_v20 = vunpack.i.l.bf16 %v8450_v19  ;;  %v8465_v59 = vpop.permute.xlu0 %8464  ;;  %v4462_v63 = vsel %vm3783_vm7, %v4458_v7, %v13019_v61  ;;  %v8452_v39 = vunpack.i.h.bf16 %v8450_v19 }
 0x565   : > { %4544 = vmatprep.mubr.f32.mxu1 %v4462_v63  ;;  %v8467_v50 = vunpack.i.h.bf16 %v8465_v59 }
 0x566   : > { %v4438_v17 = vsel %vm1502_vm14, %v4434_v40, %v8451_v20  ;;  %v4439_v5 = vsel %vm1502_vm14, %v4435_v60, %v8452_v39  ;;  %v4669_v60 = vld [vmem:[%s14758_s23 + $0x38] sm:$0xff] }
 0x567   : > { %v13036_v54 = vpop.permute.xlu1 %8459  ;;  %v4442_v58 = vsel %vm1520_vm10, %v4438_v17, %v8421_v4  ;;  %v4443_v21 = vsel %vm1520_vm10, %v4439_v5, %v8422_v37  ;;  %v4429_v32 = vsel %vm14754_vm13, %v12874_v27, %v8467_v50  ;;  %v4662_v17 = vld [vmem:[%s14757_s30] sm:$0xff]  ;;  %s14759_s30 = sld [smem:[#allocation80_spill]]  ;;  %vm14760_vm13 = vcmask 1041408  }
 0x568   : > { %v8470_v15 = vpop.permute.xlu0 %8469  ;;  %4545 = vmatmul.mubr.f32.vlgmr.msra.gmra.mrb[42].mxu1 %v4442_v58  ;;  %v8461_v41 = vunpack.i.l.bf16 %v13036_v54  ;;  %v8462_v35 = vunpack.i.h.bf16 %v13036_v54  ;;  %v7139_v25 = vpack.c.bf16 %v4663_v0, %v4662_v17  ;;  %v4666_v58 = vld [vmem:[%s14758_s23 + $0x20] sm:$0xff] }
 0x569   : > { %6702 = vmatpush3.msra.mxu1 %v12996_v49  ;;  %v8466_v49 = vunpack.i.l.bf16 %v8465_v59  ;;  %v8471_v29 = vunpack.i.l.bf16 %v8470_v15  ;;  %v8472_v11 = vunpack.i.h.bf16 %v8470_v15  ;;  %v7145_v12 = vpack.c.bf16 %v4667_v6, %v4666_v58  ;;  %v4668_v15 = vld [vmem:[%s14758_s23 + $0x30] sm:$0xff]  ;;  %v4670_v5 = vld [vmem:[%s14758_s23 + $0x40] sm:$0xff] }
 0x56a   : > { %7138 = vmatprep.subr.bf16.mxu1 %v14553_v46  ;;  %v7148_v18 = vpack.c.bf16 %v4669_v60, %v4668_v15 }
 0x56b   : > { %v4417_v55 = vpop.permute.xlu1 %4416  ;;  %v4428_v31 = vsel %vm14752_vm15, %v12843_v13, %v8466_v49 }
 0x56c   : > { %v8475_v10 = vpop.permute.xlu0 %8474  ;;  %v4463_v57 = vsel %vm3783_vm7, %v4459_v44, %v4417_v55  ;;  %v4432_v47 = vsel %vm14753_vm6, %v4428_v31, %v8471_v29 }
 0x56d   : > { %4549 = vmatprep.mubr.f32.mxu1 %v4463_v57  ;;  %v8476_v2 = vunpack.i.l.bf16 %v8475_v10  ;;  %v8477_v22 = vunpack.i.h.bf16 %v8475_v10  ;;  %v4672_v10 = vld [vmem:[%s14758_s23 + $0x50] sm:$0xff]  ;;  %v4673_v57 = vld [vmem:[%s14758_s23 + $0x58] sm:$0xff] }
 0x56e   : > { %4550 = vmatmul.mubr.f32.gmra.mrb[44].mxu1 %v4443_v21  ;;  %v7154_v21 = vpack.c.bf16 %v4673_v57, %v4672_v10 }
 0x56f   : > { %v8480_v56 = vpop.permute.xlu1 %8479  ;;  %v4436_v52 = vsel %vm1484_vm12, %v4432_v47, %v8476_v2 }
 0x570   : > { %v8485_v53 = vpop.permute.xlu0 %8484  ;;  %v8481_v9 = vunpack.i.l.bf16 %v8480_v56  ;;  %v8482_v7 = vunpack.i.h.bf16 %v8480_v56  ;;  %v4674_v56 = vld [vmem:[%s14758_s23 + $0x60] sm:$0xff] }
 0x571   : > { %v8486_v24 = vunpack.i.l.bf16 %v8485_v53  ;;  %v8487_v45 = vunpack.i.h.bf16 %v8485_v53  ;;  %v4675_v53 = vld [vmem:[%s14758_s23 + $0x68] sm:$0xff] }
 0x573   : > { %v8490_v62 = vpop.permute.xlu1 %8489  ;;  %v4448_v14 = vsel %vm1538_vm8, %v8461_v41, %v8486_v24  ;;  %v4449_v37 = vsel %vm1538_vm8, %v8462_v35, %v8487_v45  ;;  %v7157_v24 = vpack.c.bf16 %v4675_v53, %v4674_v56  ;;  %v4677_v45 = vld [vmem:[%s14758_s23 + $0x78] sm:$0xff]  ;;  %v4687_v56 = vld [vmem:[%s14758_s23 + $0xc8] sm:$0xff] }
 0x574   : > { %v8491_v48 = vunpack.i.l.bf16 %v8490_v62  ;;  %v4317_v36 = vpop.permute.xlu0 %4316  ;;  %v8492_v51 = vunpack.i.h.bf16 %v8490_v62 }
 0x575   : > { %v4440_v23 = vsel %vm1502_vm14, %v4436_v52, %v4317_v36  ;;  %v4676_v36 = vld [vmem:[%s14758_s23 + $0x70] sm:$0xff] }
 0x576   : > { %v4452_v4 = vsel %vm14751_vm2, %v4448_v14, %v8491_v48  ;;  %v4453_v43 = vsel %vm14755_vm11, %v4449_v37, %v8492_v51  ;;  %vm14756_vm2 = vmmov %vm14753_vm6  ;;  %v4444_v59 = vsel %vm1520_vm10, %v4440_v23, %v8461_v41  ;;  %v7160_v50 = vpack.c.bf16 %v4677_v45, %v4676_v36 }
 0x577   : > { %v8495_v42 = vpop.permute.xlu1 %8494  ;;  %v4456_v1 = vsel %vm2635_vm5, %v4452_v4, %v8481_v9  ;;  %v4433_v16 = vsel %vm14756_vm2, %v4429_v32, %v8472_v11  ;;  %v4457_v27 = vsel %vm2635_vm5, %v4453_v43, %v8482_v7  ;;  %v4679_v11 = vld [vmem:[%s14758_s23 + $0x88] sm:$0xff]  ;;  %vm14761_vm11 = vcmask 1042432  }
 0x578   : > { %v8496_v30 = vunpack.i.l.bf16 %v8495_v42  ;;  %v8497_v38 = vunpack.i.h.bf16 %v8495_v42  ;;  %v4319_v33 = vpop.permute.xlu0 %4318  ;;  %v4437_v20 = vsel %vm1484_vm12, %v4433_v16, %v8477_v22  ;;  %v6144_v42 = vld [vmem:[%s14759_s30] ss:$0 sm:$0xff]  ;;  %vm14762_vm2 = vcmask 1040384  }
 0x579   : > { %v4441_v63 = vsel %vm1502_vm14, %v4437_v20, %v4319_v33  ;;  %v4681_v33 = vld [vmem:[%s14758_s23 + $0x98] sm:$0xff]  ;;  %v4682_v20 = vld [vmem:[%s14758_s23 + $0xa0] sm:$0xff] }
 0x57a   : > { %v4460_v13 = vsel %vm3777_vm9, %v4456_v1, %v8496_v30  ;;  %v4461_v40 = vsel %vm3777_vm9, %v4457_v27, %v8497_v38  ;;  %v4445_v39 = vsel %vm1520_vm10, %v4441_v63, %v8462_v35  ;;  %v4678_v35 = vld [vmem:[%s14758_s23 + $0x80] sm:$0xff]  ;;  %v4680_v38 = vld [vmem:[%s14758_s23 + $0x90] sm:$0xff] }
 0x57b   : > { %v4419_v19 = vpop.permute.xlu1 %4418  ;;  %v7163_v30 = vpack.c.bf16 %v4679_v11, %v4678_v35 }
 0x57c   : > { %v4464_v28 = vsel %vm3783_vm7, %v4460_v13, %v4419_v19 }
 0x57d   : > { %4554 = vmatprep.mubr.f32.mxu1 %v4464_v28  ;;  %v7166_v28 = vpack.c.bf16 %v4681_v33, %v4680_v38 }
 0x57e   : > { %4555 = vmatmul.mubr.f32.gmra.mrb[46].mxu1 %v4444_v59  ;;  %v4683_v59 = vld [vmem:[%s14758_s23 + $0xa8] sm:$0xff] }
 0x57f   : > { %v4421_v34 = vpop.permute.xlu1 %4420 }
 0x580   : > { %v4465_v3 = vsel %vm3783_vm7, %v4461_v40, %v4421_v34 }
 0x581   : > { %4559 = vmatprep.mubr.f32.mxu1 %v4465_v3 }
 0x582   : > { %4560 = vmatmul.mubr.f32.gmra.mrb[48].mxu1 %v4445_v39 }
 0x583   : > { %6703 = vmatprep.mubr.msk.f32.mxu1 %vm3789_vm0, %v13019_v61  ;;  %v4665_v61 = vld [vmem:[%s14758_s23 + $0x18] sm:$0xff] }
 0x584   : > { %v7142_v54 = vpack.c.bf16 %v4665_v61, %v4664_v8 }
 0x586   : > { %6704 = vmatmul.mubr.msk.f32.vlgmr.msra.gmra.mrb[50].mxu1 %vm3789_vm0, %v4417_v55  ;;  %v4671_v55 = vld [vmem:[%s14758_s23 + $0x48] sm:$0xff] }
 0x587   : > { %6706 = vmatprep.mubr.msk.f32.mxu1 %vm3789_vm0, %v4419_v19  ;;  %7140 = vmatpush1.bf16.msra.mxu1 %v7139_v25  ;;  %v7151_v44 = vpack.c.bf16 %v4671_v55, %v4670_v5  ;;  %v7169_v25 = vpack.c.bf16 %v4683_v59, %v4682_v20  ;;  %v4684_v5 = vld [vmem:[%s14758_s23 + $0xb0] sm:$0xff]  ;;  %v4685_v55 = vld [vmem:[%s14758_s23 + $0xb8] sm:$0xff] }
 0x588   : > { %7141 = vmatprep.subr.bf16.mxu1 %v14553_v46 }
 0x58a   : > { %6707 = vmatmul.mubr.msk.f32.gmra.mrb[52].mxu1 %vm3789_vm0, %v4421_v34 }
 0x58b   : > { %7143 = vmatpush1.bf16.msra.mxu1 %v7142_v54 }
 0x58c   : > { %7144 = vmatprep.subr.bf16.mxu1 %v14553_v46 }
 0x58f   : > { %7146 = vmatpush1.bf16.msra.mxu1 %v7145_v12 }
 0x590   : > { %7147 = vmatprep.subr.bf16.mxu1 %v14553_v46 }
 0x593   : > { %7149 = vmatpush1.bf16.msra.mxu1 %v7148_v18 }
 0x594   : > { %7150 = vmatprep.subr.bf16.mxu1 %v14553_v46 }
 0x597   : > { %7152 = vmatpush1.bf16.msra.mxu1 %v7151_v44 }
 0x598   : > { %7153 = vmatprep.subr.bf16.mxu1 %v14553_v46 }
 0x59b   : > { %7155 = vmatpush1.bf16.msra.mxu1 %v7154_v21  ;;  %v4686_v21 = vld [vmem:[%s14758_s23 + $0xc0] sm:$0xff] }
 0x59c   : > { %7156 = vmatprep.subr.bf16.mxu1 %v14553_v46  ;;  %v7175_v36 = vpack.c.bf16 %v4687_v56, %v4686_v21 }
 0x59f   : > { %7158 = vmatpush1.bf16.msra.mxu1 %v7157_v24 }
 0x5a0   : > { %7159 = vmatprep.subr.bf16.mxu1 %v14553_v46 }
 0x5a3   : > { %7161 = vmatpush1.bf16.msra.mxu1 %v7160_v50 }
 0x5a4   : > { %7162 = vmatprep.subr.bf16.mxu1 %v14553_v46 }
 0x5a7   : > { %7164 = vmatpush1.bf16.msra.mxu1 %v7163_v30 }
 0x5a8   : > { %7165 = vmatprep.subr.bf16.mxu1 %v14553_v46 }
 0x5ab   : > { %7167 = vmatpush1.bf16.msra.mxu1 %v7166_v28 }
 0x5ac   : > { %7168 = vmatprep.subr.bf16.mxu1 %v14553_v46 }
 0x5af   : > { %7170 = vmatpush1.bf16.msra.mxu1 %v7169_v25 }
 0x5b0   : > { %7171 = vmatprep.subr.bf16.mxu1 %v14553_v46 }
 0x63b   : > { %v6541_v49 = vpop.f32.mrb[42].mxu1 }
 0x63c   : > { %v6542_v41 = vpop.f32.mrb[43].mxu1 }
 0x63d   : > { %v6543_v62 = vadd.f32 %v6542_v41, %v6541_v49  ;;  %v7172_v41 = vpack.c.bf16 %v4685_v55, %v4684_v5 }
 0x63f   : > { %v4547_v1 = vadd.f32 %v6543_v62, %v6144_v42  ;;  %7173 = vmatpush1.bf16.msra.mxu1 %v7172_v41 }
 0x640   : > { %7174 = vmatprep.subr.bf16.mxu1 %v14553_v46 }
 0x641   : > { %v6544_v29 = vpop.f32.mrb[44].mxu1 }
 0x642   : > { %v6545_v48 = vpop.f32.mrb[45].mxu1 }
 0x643   : > { %v6546_v2 = vadd.f32 %v6545_v48, %v6544_v29  ;;  %7176 = vmatpush1.bf16.msra.mxu1 %v7175_v36 }
 0x644   : > { %4896 = vmatprep.subr.mxu1 %v8618_v26 }
 0x645   : > { %v4552_v22 = vadd.f32 %v6546_v2, %v6144_v42 }
 0x651   : > { %v6547_v14 = vpop.f32.mrb[46].mxu1 }
 0x652   : > { %v6548_v4 = vpop.f32.mrb[47].mxu1 }
 0x653   : > { %v6549_v31 = vadd.f32 %v6548_v4, %v6547_v14 }
 0x655   : > { %v6550_v9 = vpop.f32.mrb[48].mxu1  ;;  %v4557_v16 = vadd.f32 %v6549_v31, %v6144_v42 }
 0x656   : > { %v6551_v51 = vpop.f32.mrb[49].mxu1 }
 0x657   : > { %v6552_v47 = vadd.f32 %v6551_v51, %v6550_v9 }
 0x659   : > { %v6705_v52 = vpop.f32.mrb[50].mxu1  ;;  %v4562_v43 = vadd.f32 %v6552_v47, %v6144_v42 }
 0x65a   : > { %v4637_v37 = vadd.f32 %v6705_v52, %v4552_v22  ;;  %v4631_v23 = vpop.f32.mrb[51].mxu1  ;;  %v4688_v22 = vld [vmem:[%s14758_s23 + $0xd0] sm:$0xff] }
 0x65b   : > { %v4632_v13 = vadd.f32 %v4631_v23, %v4547_v1  ;;  %4897 = vmatpush1.msra.mxu1 %v4688_v22 }
 0x65c   : > { %vm4651_vm0 = vcmp.ge.f32.partialorder %v4637_v37, 0.0  ;;  %v4655_v32 = vmul.f32 0.01, %v4637_v37 }
 0x65d   : > { %vm4650_vm15 = vcmp.ge.f32.partialorder %v4632_v13, 0.0  ;;  %v4654_v19 = vmul.f32 0.01, %v4632_v13  ;;  %v6708_v7 = vpop.f32.mrb[52].mxu1 }
 0x65e   : > { %v13155_v63 = vsel %vm4651_vm0, %v4637_v37, %v4655_v32  ;;  %v13157_v27 = vadd.f32 %v6708_v7, %v4562_v43  ;;  %v4641_v34 = vpop.f32.mrb[53].mxu1  ;;  %vm14763_vm0 = vcmask 1046528  }
 0x65f   : > { %v13159_v40 = vsel %vm4650_vm15, %v4632_v13, %v4654_v19  ;;  %v4642_v3 = vadd.f32 %v4641_v34, %v4557_v16  ;;  %4796 = vrot.lane.b32.xlu1 %v13155_v63, %s8616_s17  ;;  %v4765_v39 = vrot.slane %v13155_v63, 6  ;;  %v4750_v17 = vrot.slane %v13155_v63, 5  ;;  %vm14764_vm15 = vmmov %vm14763_vm0 }
 0x660   : > { %v4764_v0 = vrot.slane %v13159_v40, 6  ;;  %v4749_v8 = vrot.slane %v13159_v40, 5  ;;  %v4780_v6 = vrot.slane %v13159_v40, 7  ;;  %v4781_v12 = vrot.slane %v13155_v63, 7 }
 0x661   : > { %vm4652_vm6 = vcmp.ge.f32.partialorder %v4642_v3, 0.0  ;;  %v4656_v61 = vmul.f32 0.01, %v4642_v3  ;;  %v4693_v44 = vrot.slane %v13159_v40, 1  ;;  %v4694_v10 = vrot.slane %v13155_v63, 1 }
 0x662   : > { %v4766_v54 = vsel %vm14760_vm13, %v4764_v0, %v4765_v39  ;;  %v4751_v58 = vsel %vm14761_vm11, %v4749_v8, %v4750_v17  ;;  %v4782_v18 = vsel %vm14762_vm2, %v4780_v6, %v4781_v12  ;;  %v4707_v62 = vrot.slane %v13159_v40, 2 }
 0x663   : > { %v13176_v15 = vsel %vm4652_vm6, %v4642_v3, %v4656_v61  ;;  %4771 = vrot.lane.b32.xlu1 %v4766_v54, %s14275_s22  ;;  %4754 = vrot.lane.b32.xlu0 %v4751_v58, %s14269_s26  ;;  %v4708_v29 = vrot.slane %v13155_v63, 2  ;;  %v4695_v48 = vsel %vm14764_vm15, %v4693_v44, %v4694_v10  ;;  %v4721_v2 = vrot.slane %v13159_v40, 3 }
 0x664   : > { %v4696_v60 = vrot.slane %v13176_v15, 1  ;;  %v4752_v57 = vrot.slane %v13176_v15, 5  ;;  %v4710_v53 = vrot.slane %v13176_v15, 2  ;;  %v4724_v49 = vrot.slane %v13176_v15, 3 }
 0x665   : > { %v4722_v14 = vrot.slane %v13155_v63, 3  ;;  %vm14765_vm6 = vcmask 1045504   ;;  %vm14766_vm13 = vcmask 1044480   ;;  %v4738_v31 = vrot.slane %v13176_v15, 4 }
 0x666   : > { %v4697_v24 = vsel %vm14763_vm0, %v4694_v10, %v4696_v60  ;;  %v4711_v4 = vsel %vm14765_vm6, %v4708_v29, %v4710_v53  ;;  %vm4653_vm11 = vcmp.ge.f32.partialorder %v13157_v27, 0.0  ;;  %v4657_v9 = vmul.f32 0.01, %v13157_v27  ;;  %vm14767_vm2 = vmmov %vm14765_vm6 }
 0x667   : > { %4787 = vrot.lane.b32.xlu1 %v4782_v18, %s14289_s21  ;;  %4702 = vrot.lane.b32.xlu0 %v4696_v60, %s14270_s28  ;;  %v8498_v45 = vpack.i.bf16 %v4697_v24, %v4695_v48  ;;  %v4725_v50 = vsel %vm14766_vm13, %v4722_v14, %v4724_v49  ;;  %v4709_v51 = vsel %vm14767_vm2, %v4707_v62, %v4708_v29  ;;  %vm14768_vm0 = vmmov %vm14766_vm13  ;;  %v4735_v35 = vrot.slane %v13159_v40, 4 }
 0x668   : > { %v4723_v42 = vsel %vm14768_vm0, %v4721_v2, %v4722_v14  ;;  %v4736_v11 = vrot.slane %v13155_v63, 4  ;;  %v8503_v47 = vpack.i.bf16 %v4711_v4, %v4709_v51  ;;  %v4767_v52 = vrot.slane %v13176_v15, 6 }
 0x669   : > { %v8508_v30 = vpack.i.bf16 %v4725_v50, %v4723_v42  ;;  %vm14769_vm15 = vcmask 1043456   ;;  %v4661_v37 = vsel %vm4653_vm11, %v13157_v27, %v4657_v9  ;;  %vm14771_vm13 = vcmask 1041408  }
 0x66a   : > { %v4739_v1 = vsel %vm14769_vm15, %v4736_v11, %v4738_v31  ;;  %vm14770_vm6 = vmmov %vm14769_vm15  ;;  %v4769_v32 = vrot.slane %v4661_v37, 6  ;;  %v4768_v43 = vsel %vm14771_vm13, %v4765_v39, %v4767_v52  ;;  %v4785_v38 = vrot.slane %v4661_v37, 7 }
 0x66b   : > { %4798 = vrot.lane.b32.xlu1 %v13176_v15, %s8616_s17  ;;  %4758 = vrot.lane.b32.xlu0 %v4752_v57, %s14269_s26  ;;  %v4737_v23 = vsel %vm14770_vm6, %v4735_v35, %v4736_v11  ;;  %vm14772_vm2 = vmmov %vm14771_vm13  ;;  %vm14773_vm11 = vcmask 1042432   ;;  %v4783_v7 = vrot.slane %v13176_v15, 7  ;;  %vm14774_vm0 = vcmask 1040384  }
 0x66c   : > { %v8513_v13 = vpack.i.bf16 %v4739_v1, %v4737_v23  ;;  %v4770_v33 = vsel %vm14772_vm2, %v4767_v52, %v4769_v32  ;;  %v4753_v19 = vsel %vm14773_vm11, %v4750_v17, %v4752_v57  ;;  %vm14775_vm15 = vmmov %vm14774_vm0  ;;  %vm14776_vm6 = vcmask 326656  }
 0x66d   : > { %v4786_v16 = vsel %vm14774_vm0, %v4783_v7, %v4785_v38  ;;  %v4784_v28 = vsel %vm14775_vm15, %v4781_v12, %v4783_v7  ;;  %vm14777_vm13 = vcmask 195584   ;;  %vm14778_vm2 = vcmask 392192   ;;  %vm14781_vm15 = vmmov %vm14776_vm6 }
 0x66e   : > { %vm14779_vm11 = vmmov %vm14777_vm13 }
 0x66f   : > { %4716 = vrot.lane.b32.xlu1 %v4710_v53, %s14256_s0  ;;  %8499 = vrot.lane.b32.xlu0 %v8498_v45, %s14270_s28  ;;  %vm14780_vm0 = vmmov %vm14778_vm2 }
 0x673   : > { %8504 = vrot.lane.b32.xlu1 %v8503_v47, %s14256_s0  ;;  %8509 = vrot.lane.b32.xlu0 %v8508_v30, %s14260_s5 }
 0x677   : > { %4773 = vrot.lane.b32.xlu1 %v4768_v43, %s14275_s22  ;;  %8514 = vrot.lane.b32.xlu0 %v8513_v13, %s14271_s29 }
 0x67b   : > { %4775 = vrot.lane.b32.xlu1 %v4770_v33, %s14275_s22  ;;  %4756 = vrot.lane.b32.xlu0 %v4753_v19, %s14269_s26 }
 0x67f   : > { %4791 = vrot.lane.b32.xlu1 %v4786_v16, %s14289_s21  ;;  %4789 = vrot.lane.b32.xlu0 %v4784_v28, %s14289_s21  ;;  %s14784_s21 = sld [smem:[#allocation83_spill]] }
 0x683   : > { %4800 = vrot.lane.b32.xlu1 %v4661_v37, %s8616_s17  ;;  %4730 = vrot.lane.b32.xlu0 %v4724_v49, %s14260_s5 }
 0x685   : > { %v4933_v13 = vld [vmem:[%s14784_s21] sm:$0xff]  ;;  %v4935_v32 = vld [vmem:[%s14784_s21 + $0x10] sm:$0xff]  ;;  %v4936_v38 = vld [vmem:[%s14784_s21 + $0x18] sm:$0xff] }
 0x686   : > { %v7181_v33 = vpack.c.bf16 %v4936_v38, %v4935_v32  ;;  %v4937_v19 = vld [vmem:[%s14784_s21 + $0x20] sm:$0xff]  ;;  %v4938_v7 = vld [vmem:[%s14784_s21 + $0x28] sm:$0xff]  ;;  %v4939_v28 = vld [vmem:[%s14784_s21 + $0x30] sm:$0xff] }
 0x687   : > { %4744 = vrot.lane.b32.xlu0 %v4738_v31, %s14271_s29  ;;  %v7184_v16 = vpack.c.bf16 %v4938_v7, %v4937_v19  ;;  %v5095_v32 = vld [vmem:[%s13989_s11 + $0x18] sm:$0xff]  ;;  %v5096_v38 = vld [vmem:[%s13989_s11 + $0x20] sm:$0xff]  ;;  %v5098_v7 = vld [vmem:[%s13989_s11 + $0x30] sm:$0xff] }
 0x6d1   : > { %v4797_v20 = vpop.permute.xlu1 %4796 }
 0x6d5   : > { %v4772_v59 = vpop.permute.xlu1 %4771  ;;  %v4755_v27 = vpop.permute.xlu0 %4754 }
 0x6d6   : > { %v4820_v34 = vsel %vm1538_vm8, %v4755_v27, %v4772_v59 }
 0x6d9   : > { %v4788_v3 = vpop.permute.xlu1 %4787  ;;  %v4703_v39 = vpop.permute.xlu0 %4702 }
 0x6da   : > { %v4823_v17 = vsel %vm14776_vm6, %v4820_v34, %v4788_v3  ;;  %v4942_v34 = vld [vmem:[%s14784_s21 + $0x48] sm:$0xff] }
 0x6db   : > { %v4826_v0 = vsel %vm2635_vm5, %v4823_v17, %v4797_v20  ;;  %v4940_v20 = vld [vmem:[%s14784_s21 + $0x38] sm:$0xff] }
 0x6dc   : > { %6150 = vmatprep.mubr.msk.f32.mxu1 %vm3777_vm9, %v4826_v0  ;;  %v7187_v59 = vpack.c.bf16 %v4940_v20, %v4939_v28  ;;  %v4944_v17 = vld [vmem:[%s14784_s21 + $0x58] sm:$0xff]  ;;  %v5100_v20 = vld [vmem:[%s13989_s11 + $0x40] sm:$0xff] }
 0x6dd   : > { %v4799_v8 = vpop.permute.xlu1 %4798  ;;  %v4759_v25 = vpop.permute.xlu0 %4758 }
 0x6e1   : > { %v4717_v61 = vpop.permute.xlu1 %4716  ;;  %v8500_v54 = vpop.permute.xlu0 %8499 }
 0x6e2   : > { %v8501_v58 = vunpack.i.l.bf16 %v8500_v54  ;;  %v8502_v55 = vunpack.i.h.bf16 %v8500_v54 }
 0x6e4   : > { %v4805_v18 = vsel %vm14777_vm13, %v13159_v40, %v8501_v58  ;;  %v4806_v24 = vsel %vm14779_vm11, %v13155_v63, %v8502_v55  ;;  %vm14782_vm13 = vmmov %vm14779_vm11  ;;  %v6149_v58 = vld [vmem:[%s14788_s20] ss:$0 sm:$0xff] }
 0x6e5   : > { %v8505_v6 = vpop.permute.xlu1 %8504  ;;  %v8510_v12 = vpop.permute.xlu0 %8509  ;;  %v4807_v30 = vsel %vm14782_vm13, %v13176_v15, %v4703_v39  ;;  %v4934_v15 = vld [vmem:[%s14784_s21 + $0x8] sm:$0xff]  ;;  %v4943_v39 = vld [vmem:[%s14784_s21 + $0x50] sm:$0xff]  ;;  %vm14790_vm13 = vcmask 1046528  }
 0x6e6   : > { %v8506_v60 = vunpack.i.l.bf16 %v8505_v6  ;;  %v8511_v5 = vunpack.i.l.bf16 %v8510_v12  ;;  %v8507_v10 = vunpack.i.h.bf16 %v8505_v6  ;;  %v8512_v49 = vunpack.i.h.bf16 %v8510_v12 }
 0x6e7   : > { %v7178_v43 = vpack.c.bf16 %v4934_v15, %v4933_v13  ;;  %v7193_v0 = vpack.c.bf16 %v4944_v17, %v4943_v39  ;;  %v5094_v13 = vld [vmem:[%s13989_s11 + $0x10] sm:$0xff]  ;;  %v6153_v17 = vld [vmem:[%s13988_s10] ss:$0 sm:$0xff] }
 0x6e8   : > { %v4808_v44 = vsel %vm14778_vm2, %v4805_v18, %v8506_v60  ;;  %v4809_v62 = vsel %vm14780_vm0, %v4806_v24, %v8507_v10  ;;  %vm14783_vm2 = vmmov %vm14780_vm0 }
 0x6e9   : > { %v4774_v57 = vpop.permute.xlu1 %4773  ;;  %v8515_v21 = vpop.permute.xlu0 %8514  ;;  %v4811_v53 = vsel %vm1484_vm12, %v4808_v44, %v8511_v5  ;;  %v4812_v14 = vsel %vm1484_vm12, %v4809_v62, %v8512_v49  ;;  %v4810_v22 = vsel %vm14783_vm2, %v4807_v30, %v4717_v61  ;;  %7179 = vmatpush3.bf16.msra.mxu0 %v7178_v43  ;;  %v7203_v43 = vpack.c.bf16 %v5095_v32, %v5094_v13  ;;  %v5237_v13 = vld [vmem:[%s13991_s13 + $0x38] sm:$0xff]  ;;  %v5238_v32 = vld [vmem:[%s13991_s13 + $0x40] sm:$0xff] }
 0x6ea   : > { %v8516_v56 = vunpack.i.l.bf16 %v8515_v21  ;;  %v8517_v29 = vunpack.i.h.bf16 %v8515_v21  ;;  %7180 = vmatprep.subr.bf16.mxu0 %v14553_v46 }
 0x6ec   : > { %v4814_v41 = vsel %vm1502_vm14, %v4811_v53, %v8516_v56  ;;  %v4815_v50 = vsel %vm1502_vm14, %v4812_v14, %v8517_v29 }
 0x6ed   : > { %v4776_v40 = vpop.permute.xlu1 %4775  ;;  %v4757_v48 = vpop.permute.xlu0 %4756  ;;  %v4817_v2 = vsel %vm1520_vm10, %v4814_v41, %v4755_v27  ;;  %7182 = vmatpush3.bf16.msra.mxu0 %v7181_v33  ;;  %v4941_v27 = vld [vmem:[%s14784_s21 + $0x40] sm:$0xff]  ;;  %v5097_v33 = vld [vmem:[%s13989_s11 + $0x28] sm:$0xff] }
 0x6ee   : > { %4909 = vmatmul.mubr.f32.vlgmr.msra.gmra.mrb[54].mxu1 %v4817_v2  ;;  %v4821_v36 = vsel %vm1538_vm8, %v4757_v48, %v4774_v57  ;;  %v4822_v9 = vsel %vm1538_vm8, %v4759_v25, %v4776_v40  ;;  %v4818_v51 = vsel %vm1520_vm10, %v4815_v50, %v4757_v48  ;;  %7183 = vmatprep.subr.bf16.mxu0 %v14553_v46 }
 0x6ef   : > { %v7190_v3 = vpack.c.bf16 %v4942_v34, %v4941_v27  ;;  %v7207_v19 = vpack.c.bf16 %v5097_v33, %v5096_v38  ;;  %v5102_v34 = vld [vmem:[%s13989_s11 + $0x50] sm:$0xff] }
 0x6f0   : > { %v5240_v33 = vld [vmem:[%s13991_s13 + $0x50] sm:$0xff] }
 0x6f1   : > { %v4792_v45 = vpop.permute.xlu1 %4791  ;;  %v4790_v4 = vpop.permute.xlu0 %4789  ;;  %7185 = vmatpush3.bf16.msra.mxu0 %v7184_v16  ;;  %v5099_v16 = vld [vmem:[%s13989_s11 + $0x38] sm:$0xff] }
 0x6f2   : > { %v4824_v63 = vsel %vm14781_vm15, %v4821_v36, %v4790_v4  ;;  %v4825_v42 = vsel %vm14776_vm6, %v4822_v9, %v4792_v45  ;;  %7186 = vmatprep.subr.bf16.mxu0 %v14553_v46  ;;  %vm14789_vm6 = vcmask 1045504   ;;  %v7211_v28 = vpack.c.bf16 %v5099_v16, %v5098_v7  ;;  %v6158_v16 = vld [vmem:[%s13990_s12] ss:$0 sm:$0xff] }
 0x6f3   : > { %v4827_v31 = vsel %vm2635_vm5, %v4824_v63, %v4799_v8  ;;  %v4945_v8 = vld [vmem:[%s14784_s21 + $0x60] sm:$0xff] }
 0x6f4   : > { %6151 = vmatprep.mubr.msk.f32.mxu1 %vm3777_vm9, %v4827_v31 }
 0x6f5   : > { %v4801_v35 = vpop.permute.xlu1 %4800  ;;  %v4731_v11 = vpop.permute.xlu0 %4730  ;;  %4914 = vmatmul.mubr.f32.gmra.mrb[56].mxu1 %v4818_v51  ;;  %7188 = vmatpush3.bf16.msra.mxu0 %v7187_v59  ;;  %v5101_v59 = vld [vmem:[%s13989_s11 + $0x48] sm:$0xff] }
 0x6f6   : > { %v4828_v47 = vsel %vm2635_vm5, %v4825_v42, %v4801_v35  ;;  %v4813_v52 = vsel %vm1484_vm12, %v4810_v22, %v4731_v11  ;;  %7189 = vmatprep.subr.bf16.mxu0 %v14553_v46  ;;  %v7215_v27 = vpack.c.bf16 %v5101_v59, %v5100_v20  ;;  %v5243_v20 = vld [vmem:[%s13991_s13 + $0x68] sm:$0xf] }
 0x6f7   : > { %6152 = vmatprep.mubr.msk.f32.mxu1 %vm3777_vm9, %v4828_v47  ;;  %vm14785_vm9 = vcmask 1043456  }
 0x6f9   : > { %v4745_v1 = vpop.permute.xlu0 %4744  ;;  %7191 = vmatpush3.bf16.msra.mxu0 %v7190_v3  ;;  %v5103_v3 = vld [vmem:[%s13989_s11 + $0x58] sm:$0xff] }
 0x6fa   : > { %v4816_v37 = vsel %vm1502_vm14, %v4813_v52, %v4745_v1  ;;  %7192 = vmatprep.subr.bf16.mxu0 %v14553_v46  ;;  %v7219_v39 = vpack.c.bf16 %v5103_v3, %v5102_v34 }
 0x6fb   : > { %v4819_v23 = vsel %vm1520_vm10, %v4816_v37, %v4759_v25  ;;  %v4946_v25 = vld [vmem:[%s14784_s21 + $0x68] sm:$0xf]  ;;  %vm8627_vm10 = vmmov 1   ;;  %v5092_v37 = vld [vmem:[%s13989_s11] sm:$0xff] }
 0x6fc   : > { %4919 = vmatmul.mubr.f32.gmra.mrb[58].mxu1 %v4819_v23  ;;  %v7196_v61 = vpack.c.bf16 %v4946_v25, %v4945_v8  ;;  %vm13335_vm11 = vmpackc.low %vm14785_vm9, %vm8627_vm10  ;;  %v5093_v23 = vld [vmem:[%s13989_s11 + $0x8] sm:$0xff] }
 0x6fd   : > { %7194 = vmatpush3.bf16.msra.mxu0 %v7193_v0  ;;  %vm14791_vm10 = vmmov %vm14789_vm6  ;;  %v7199_v15 = vpack.c.bf16 %v5093_v23, %v5092_v37  ;;  %v5236_v23 = vld [vmem:[%s13991_s13 + $0x30] sm:$0xff] }
 0x6fe   : > { %7195 = vmatprep.subr.bf16.mxu0 %v14553_v46  ;;  %vm14792_vm9 = vmmov %vm14790_vm13 }
 0x701   : > { %7198 = vmatpush3.bf16.msk.msra.mxu0 %vm13335_vm11, %v7196_v61  ;;  %v5104_v61 = vld [vmem:[%s13989_s11 + $0x60] sm:$0xff] }
 0x702   : > { %7200 = vmatprep.subr.bf16.mxu0 %v7199_v15 }
 0x7c1   : > { %v4910_v6 = vpop.f32.mrb[54].mxu1 }
 0x7c2   : > { %v4912_v12 = vpop.f32.mrb[55].mxu1  ;;  %v4911_v60 = vadd.f32 %v6149_v58, %v4910_v6 }
 0x7c4   : > { %v4927_v18 = vmul.f32 0.01, %v4911_v60  ;;  %vm4924_vm0 = vcmp.ge.f32.partialorder %v4911_v60, 0.0 }
 0x7c6   : > { %v4930_v10 = vsel %vm4924_vm0, %v4911_v60, %v4927_v18  ;;  %vm14793_vm0 = vcmask 293888  }
 0x7c7   : > { %v4951_v56 = vrot.slane %v4930_v10, 1  ;;  %v4965_v53 = vrot.slane %v4930_v10, 2 }
 0x7c8   : > { %v4915_v5 = vpop.f32.mrb[56].mxu1 }
 0x7c9   : > { %v4916_v55 = vadd.f32 %v6149_v58, %v4915_v5  ;;  %v4917_v44 = vpop.f32.mrb[57].mxu1 }
 0x7cb   : > { %vm4925_vm15 = vcmp.ge.f32.partialorder %v4916_v55, 0.0  ;;  %v4928_v57 = vmul.f32 0.01, %v4916_v55 }
 0x7cd   : > { %v4931_v21 = vsel %vm4925_vm15, %v4916_v55, %v4928_v57  ;;  %vm14794_vm15 = vcmask 883712  }
 0x7ce   : > { %v4952_v24 = vrot.slane %v4931_v21, 1  ;;  %v4966_v49 = vrot.slane %v4931_v21, 2 }
 0x7cf   : > { %v4920_v41 = vpop.f32.mrb[58].mxu1 }
 0x7d0   : > { %v4921_v62 = vadd.f32 %v6149_v58, %v4920_v41  ;;  %v4922_v29 = vpop.f32.mrb[59].mxu1  ;;  %v4967_v40 = vsel %vm14789_vm6, %v4965_v53, %v4966_v49  ;;  %v4953_v48 = vsel %vm14790_vm13, %v4951_v56, %v4952_v24  ;;  %vm14795_vm6 = vmmov %vm14793_vm0  ;;  %v5105_v58 = vld [vmem:[%s13989_s11 + $0x68] sm:$0xf] }
 0x7d1   : > { %4970 = vrot.lane.b32.xlu1 %v4967_v40, %s14260_s5  ;;  %4956 = vrot.lane.b32.xlu0 %v4953_v48, %s14258_s3  ;;  %vm14796_vm13 = vmmov %vm14794_vm15  ;;  %v7223_v6 = vpack.c.bf16 %v5105_v58, %v5104_v61 }
 0x7d2   : > { %vm4926_vm2 = vcmp.ge.f32.partialorder %v4921_v62, 0.0  ;;  %v4929_v2 = vmul.f32 0.01, %v4921_v62 }
 0x7d4   : > { %v4932_v14 = vsel %vm4926_vm2, %v4921_v62, %v4929_v2  ;;  %vm14797_vm2 = vmmov %vm14793_vm0 }
 0x7d5   : > { %v4954_v36 = vrot.slane %v4932_v14, 1  ;;  %v4968_v45 = vrot.slane %v4932_v14, 2 }
 0x7d7   : > { %v4969_v4 = vsel %vm14791_vm10, %v4966_v49, %v4968_v45  ;;  %v4955_v50 = vsel %vm14792_vm9, %v4952_v24, %v4954_v36  ;;  %vm14798_vm10 = vmmov %vm14796_vm13 }
 0x7d8   : > { %4972 = vrot.lane.b32.xlu1 %v4969_v4, %s14260_s5  ;;  %4958 = vrot.lane.b32.xlu0 %v4955_v50, %s14258_s3 }
 0x7dc   : > { %4974 = vrot.lane.b32.xlu1 %v4968_v45, %s14260_s5  ;;  %4960 = vrot.lane.b32.xlu0 %v4954_v36, %s14258_s3 }
 0x843   : > { %v4971_v63 = vpop.permute.xlu1 %4970  ;;  %v4957_v31 = vpop.permute.xlu0 %4956 }
 0x844   : > { %v4979_v9 = vsel %vm14793_vm0, %v4930_v10, %v4957_v31 }
 0x845   : > { %v4982_v51 = vsel %vm1484_vm12, %v4979_v9, %v4971_v63 }
 0x846   : > { %6738 = vmatmul.mubr.msk.f32.vlgmr.msra.gmra.mrb[68].mxu0 %vm14794_vm15, %v4982_v51 }
 0x847   : > { %6740 = vmatprep.mubr.msk.f32.mxu0 %vm8626_vm3, %v8618_v26  ;;  %7202 = vmatpush3.bf16.msra.mxu0 %v7199_v15  ;;  %v7241_v15 = vpack.c.bf16 %v5237_v13, %v5236_v23  ;;  %v6162_v23 = vld [vmem:[%s13992_s14] ss:$0 sm:$0xff] }
 0x848   : > { %7204 = vmatprep.subr.bf16.mxu0 %v7203_v43 }
 0x84a   : > { %v4973_v42 = vpop.permute.xlu1 %4972  ;;  %v4959_v35 = vpop.permute.xlu0 %4958 }
 0x84b   : > { %v4980_v11 = vsel %vm14795_vm6, %v4931_v21, %v4959_v35  ;;  %7206 = vmatpush3.bf16.msra.mxu0 %v7203_v43  ;;  %vm14799_vm6 = vcmask 1046528   ;;  %v5231_v35 = vld [vmem:[%s13991_s13 + $0x8] sm:$0xff] }
 0x84c   : > { %v4983_v47 = vsel %vm1484_vm12, %v4980_v11, %v4973_v42  ;;  %7208 = vmatprep.subr.bf16.mxu0 %v7207_v19  ;;  %v5230_v42 = vld [vmem:[%s13991_s13] sm:$0xff]  ;;  %v5232_v11 = vld [vmem:[%s13991_s13 + $0x10] sm:$0xff]  ;;  %v5239_v43 = vld [vmem:[%s13991_s13 + $0x48] sm:$0xff] }
 0x84d   : > { %6741 = vmatmul.mubr.msk.f32.gmra.mrb[70].mxu0 %vm14796_vm13, %v4983_v47  ;;  %vm14800_vm13 = vcmask 1045504   ;;  %v7229_v47 = vpack.c.bf16 %v5231_v35, %v5230_v42  ;;  %v7245_v38 = vpack.c.bf16 %v5239_v43, %v5238_v32  ;;  %v5377_v42 = vld [vmem:[%s13993_s15 + $0x60] sm:$0xff]  ;;  %v5378_v35 = vld [vmem:[%s13993_s15 + $0x68] sm:$0xff] }
 0x84e   : > { %v4975_v30 = vpop.permute.xlu1 %4974  ;;  %v4961_v22 = vpop.permute.xlu0 %4960  ;;  %6743 = vmatprep.mubr.msk.f32.mxu0 %vm8626_vm3, %v8618_v26 }
 0x84f   : > { %v4981_v52 = vsel %vm14797_vm2, %v4932_v14, %v4961_v22  ;;  %7210 = vmatpush3.bf16.msra.mxu0 %v7207_v19  ;;  %vm14801_vm2 = vmmov %vm14800_vm13  ;;  %7230 = vmatprep.subr.bf16.mxu1 %v7229_v47  ;;  %v5241_v19 = vld [vmem:[%s13991_s13 + $0x58] sm:$0xff] }
 0x850   : > { %v4984_v1 = vsel %vm1484_vm12, %v4981_v52, %v4975_v30  ;;  %7212 = vmatprep.subr.bf16.mxu0 %v7211_v28  ;;  %v5233_v30 = vld [vmem:[%s13991_s13 + $0x18] sm:$0xff]  ;;  %v5234_v52 = vld [vmem:[%s13991_s13 + $0x20] sm:$0xff]  ;;  %7232 = vmatpush3.bf16.msra.mxu1 %v7229_v47  ;;  %v7249_v7 = vpack.c.bf16 %v5241_v19, %v5240_v33  ;;  %v5379_v47 = vld [vmem:[%s13993_s15 + $0x70] sm:$0xff] }
 0x851   : > { %6744 = vmatmul.mubr.msk.f32.gmra.mrb[72].mxu0 %vm14798_vm10, %v4984_v1  ;;  %vm14802_vm10 = vcmask 293888   ;;  %v7233_v22 = vpack.c.bf16 %v5233_v30, %v5232_v11  ;;  %v5235_v1 = vld [vmem:[%s13991_s13 + $0x28] sm:$0xff]  ;;  %v7278_v11 = vpack.c.bf16 %v5378_v35, %v5377_v42  ;;  %v5380_v30 = vld [vmem:[%s13993_s15 + $0x78] sm:$0xff] }
 0x852   : > { %v7237_v37 = vpack.c.bf16 %v5235_v1, %v5234_v52  ;;  %v5381_v52 = vld [vmem:[%s13993_s15 + $0x80] sm:$0xff]  ;;  %v5382_v1 = vld [vmem:[%s13993_s15 + $0x88] sm:$0xff] }
 0x853   : > { %7214 = vmatpush3.bf16.msra.mxu0 %v7211_v28  ;;  %7234 = vmatprep.subr.bf16.mxu1 %v7233_v22  ;;  %v5242_v28 = vld [vmem:[%s13991_s13 + $0x60] sm:$0xff] }
 0x854   : > { %7216 = vmatprep.subr.bf16.mxu0 %v7215_v27  ;;  %7236 = vmatpush3.bf16.msra.mxu1 %v7233_v22  ;;  %v7281_v22 = vpack.c.bf16 %v5380_v30, %v5379_v47 }
 0x855   : > { %7238 = vmatprep.subr.bf16.mxu1 %v7237_v37 }
 0x857   : > { %7218 = vmatpush3.bf16.msra.mxu0 %v7215_v27  ;;  %v7253_v27 = vpack.c.bf16 %v5243_v20, %v5242_v28 }
 0x858   : > { %7220 = vmatprep.subr.bf16.mxu0 %v7219_v39  ;;  %7240 = vmatpush3.bf16.msra.mxu1 %v7237_v37  ;;  %v7284_v37 = vpack.c.bf16 %v5382_v1, %v5381_v52 }
 0x859   : > { %7242 = vmatprep.subr.bf16.mxu1 %v7241_v15 }
 0x85b   : > { %7222 = vmatpush3.bf16.msra.mxu0 %v7219_v39 }
 0x85c   : > { %7225 = vmatprep.subr.msk.bf16.mxu0 %vm13335_vm11, %v7223_v6  ;;  %7244 = vmatpush3.bf16.msra.mxu1 %v7241_v15 }
 0x85d   : > { %7246 = vmatprep.subr.bf16.mxu1 %v7245_v38 }
 0x85f   : > { %7228 = vmatpush3.bf16.msk.msra.mxu0 %vm13335_vm11, %v7223_v6 }
 0x860   : > { %7259 = vmatprep.subr.bf16.mxu0 %v14553_v46  ;;  %7248 = vmatpush3.bf16.msra.mxu1 %v7245_v38 }
 0x861   : > { %7250 = vmatprep.subr.bf16.mxu1 %v7249_v7 }
 0x864   : > { %7252 = vmatpush3.bf16.msra.mxu1 %v7249_v7 }
 0x865   : > { %7255 = vmatprep.subr.msk.bf16.mxu1 %vm13335_vm11, %v7253_v27 }
 0x868   : > { %7258 = vmatpush3.bf16.msk.msra.mxu1 %vm13335_vm11, %v7253_v27 }
 0x869   : > { %7286 = vmatprep.subr.bf16.mxu1 %v14553_v46 }
 0x919   : > { %v5069_v0 = vpop.f32.mrb[68].mxu0 }
 0x91a   : > { %v6739_v8 = vpop.f32.mrb[69].mxu0  ;;  %v5070_v25 = vadd.f32 %v6153_v17, %v5069_v0 }
 0x91c   : > { %v5086_v12 = vmul.f32 0.01, %v5070_v25  ;;  %vm5083_vm9 = vcmp.ge.f32.partialorder %v5070_v25, 0.0 }
 0x91e   : > { %v5089_v55 = vsel %vm5083_vm9, %v5070_v25, %v5086_v12  ;;  %vm14803_vm9 = vmmov %vm14802_vm10 }
 0x91f   : > { %v5109_v53 = vrot.slane %v5089_v55, 1  ;;  %v5119_v40 = vrot.slane %v5089_v55, 2  ;;  %vm14808_vm11 = vmmov %vm14803_vm9 }
 0x920   : > { %v5074_v60 = vpop.f32.mrb[70].mxu0 }
 0x921   : > { %v5075_v18 = vadd.f32 %v6153_v17, %v5074_v60  ;;  %v6742_v5 = vpop.f32.mrb[71].mxu0 }
 0x923   : > { %vm5084_vm0 = vcmp.ge.f32.partialorder %v5075_v18, 0.0  ;;  %v5087_v44 = vmul.f32 0.01, %v5075_v18 }
 0x924   : > { %v5079_v10 = vpop.f32.mrb[72].mxu0 }
 0x925   : > { %v5090_v57 = vsel %vm5084_vm0, %v5075_v18, %v5087_v44  ;;  %v5080_v21 = vadd.f32 %v6153_v17, %v5079_v10  ;;  %v6745_v56 = vpop.f32.mrb[73].mxu0  ;;  %vm14804_vm0 = vcmask 883712  }
 0x926   : > { %v5110_v24 = vrot.slane %v5090_v57, 1  ;;  %v5120_v41 = vrot.slane %v5090_v57, 2 }
 0x927   : > { %vm5085_vm15 = vcmp.ge.f32.partialorder %v5080_v21, 0.0  ;;  %v5088_v49 = vmul.f32 0.01, %v5080_v21 }
 0x928   : > { %5114 = vrot.lane.b32.xlu1 %v5110_v24, %s14258_s3  ;;  %v5111_v62 = vsel %vm14799_vm6, %v5109_v53, %v5110_v24  ;;  %v5121_v2 = vsel %vm14800_vm13, %v5119_v40, %v5120_v41  ;;  %v5365_v53 = vld [vmem:[%s13993_s15] sm:$0xff]  ;;  %v5366_v24 = vld [vmem:[%s13993_s15 + $0x8] sm:$0xff] }
 0x929   : > { %v5091_v29 = vsel %vm5085_vm15, %v5080_v21, %v5088_v49  ;;  %5112 = vrot.lane.b32.xlu0 %v5111_v62, %s14258_s3  ;;  %vm14805_vm15 = vmmov %vm14804_vm0  ;;  %v5367_v49 = vld [vmem:[%s13993_s15 + $0x10] sm:$0xff]  ;;  %v5368_v62 = vld [vmem:[%s13993_s15 + $0x18] sm:$0xff] }
 0x92a   : > { %v5122_v48 = vrot.slane %v5091_v29, 2  ;;  %v7263_v29 = vpack.c.bf16 %v5368_v62, %v5367_v49  ;;  %v5369_v40 = vld [vmem:[%s13993_s15 + $0x20] sm:$0xff]  ;;  %v5510_v62 = vld [vmem:[%s14813_s8 + $0x58] sm:$0xff] }
 0x92c   : > { %v5123_v14 = vsel %vm14801_vm2, %v5120_v41, %v5122_v48  ;;  %vm14806_vm2 = vcmask 1046528   ;;  %v7260_v41 = vpack.c.bf16 %v5366_v24, %v5365_v53  ;;  %v5370_v48 = vld [vmem:[%s13993_s15 + $0x28] sm:$0xff]  ;;  %v5507_v53 = vld [vmem:[%s14813_s8 + $0x40] sm:$0xff] }
 0x92d   : > { %5124 = vrot.lane.b32.xlu0 %v5121_v2, %s14260_s5  ;;  %5126 = vrot.lane.b32.xlu1 %v5123_v14, %s14260_s5  ;;  %v7266_v2 = vpack.c.bf16 %v5370_v48, %v5369_v40  ;;  %v5371_v14 = vld [vmem:[%s13993_s15 + $0x30] sm:$0xff]  ;;  %v5508_v24 = vld [vmem:[%s14813_s8 + $0x48] sm:$0xff] }
 0x92e   : > { %v7299_v49 = vpack.c.bf16 %v5508_v24, %v5507_v53  ;;  %v5511_v40 = vld [vmem:[%s14813_s8 + $0x60] sm:$0xff]  ;;  %v5512_v48 = vld [vmem:[%s14813_s8 + $0x68] sm:$0xff]  ;;  %v5648_v53 = vld [vmem:[%s14819_s27 + $0x78] sm:$0xff] }
 0x99a   : > { %v5115_v36 = vpop.permute.xlu1 %5114 }
 0x99b   : > { %v5113_v45 = vpop.permute.xlu0 %5112  ;;  %v5131_v4 = vsel %vm14802_vm10, %v5090_v57, %v5115_v36  ;;  %vm14807_vm10 = vcmask 1045504   ;;  %v5372_v36 = vld [vmem:[%s13993_s15 + $0x38] sm:$0xff] }
 0x99c   : > { %v5130_v50 = vsel %vm14803_vm9, %v5089_v55, %v5113_v45  ;;  %v7269_v45 = vpack.c.bf16 %v5372_v36, %v5371_v14  ;;  %v5513_v14 = vld [vmem:[%s14813_s8 + $0x70] sm:$0xff]  ;;  %v5514_v36 = vld [vmem:[%s14813_s8 + $0x78] sm:$0xff] }
 0x99f   : > { %v5127_v63 = vpop.permute.xlu1 %5126  ;;  %v5125_v31 = vpop.permute.xlu0 %5124 }
 0x9a0   : > { %v5133_v9 = vsel %vm1484_vm12, %v5131_v4, %v5127_v63  ;;  %v5132_v51 = vsel %vm1484_vm12, %v5130_v50, %v5125_v31  ;;  %v5373_v4 = vld [vmem:[%s13993_s15 + $0x40] sm:$0xff]  ;;  %v5374_v50 = vld [vmem:[%s13993_s15 + $0x48] sm:$0xff]  ;;  %v5375_v31 = vld [vmem:[%s13993_s15 + $0x50] sm:$0xff] }
 0x9a1   : > { %6774 = vmatprep.mubr.msk.f32.mxu0 %vm14804_vm0, %v5132_v51  ;;  %v7272_v63 = vpack.c.bf16 %v5374_v50, %v5373_v4  ;;  %v5515_v4 = vld [vmem:[%s14813_s8 + $0x80] sm:$0xff]  ;;  %v5516_v50 = vld [vmem:[%s14813_s8 + $0x88] sm:$0xff] }
 0x9a2   : > { %6775 = vmatmul.mubr.msk.f32.vlgmr.msra.gmra.mrb[74].mxu0 %vm14805_vm15, %v5133_v9  ;;  %vm14809_vm15 = vmmov %vm14804_vm0  ;;  %v5376_v9 = vld [vmem:[%s13993_s15 + $0x58] sm:$0xff] }
 0x9a3   : > { %7261 = vmatpush1.bf16.msra.mxu0 %v7260_v41  ;;  %v7275_v51 = vpack.c.bf16 %v5376_v9, %v5375_v31  ;;  %v5509_v41 = vld [vmem:[%s14813_s8 + $0x50] sm:$0xff]  ;;  %v6166_v31 = vld [vmem:[%s14814_s2] ss:$0 sm:$0xff]  ;;  %s14820_s2 = sld [smem:[#allocation86_spill]] }
 0x9a4   : > { %7262 = vmatprep.subr.bf16.mxu0 %v14553_v46 }
 0x9a7   : > { %7264 = vmatpush1.bf16.msra.mxu0 %v7263_v29  ;;  %v7302_v29 = vpack.c.bf16 %v5510_v62, %v5509_v41  ;;  %v5650_v41 = vld [vmem:[%s14819_s27 + $0x88] sm:$0xff] }
 0x9a8   : > { %7265 = vmatprep.subr.bf16.mxu0 %v14553_v46 }
 0x9ab   : > { %7267 = vmatpush1.bf16.msra.mxu0 %v7266_v2  ;;  %v7305_v2 = vpack.c.bf16 %v5512_v48, %v5511_v40 }
 0x9ac   : > { %7268 = vmatprep.subr.bf16.mxu0 %v14553_v46 }
 0x9af   : > { %7270 = vmatpush1.bf16.msra.mxu0 %v7269_v45  ;;  %v7308_v45 = vpack.c.bf16 %v5514_v36, %v5513_v14 }
 0x9b0   : > { %7271 = vmatprep.subr.bf16.mxu0 %v14553_v46 }
 0x9b3   : > { %7273 = vmatpush1.bf16.msra.mxu0 %v7272_v63  ;;  %v7311_v63 = vpack.c.bf16 %v5516_v50, %v5515_v4 }
 0x9b4   : > { %7274 = vmatprep.subr.bf16.mxu0 %v14553_v46 }
 0x9b7   : > { %7276 = vmatpush1.bf16.msra.mxu0 %v7275_v51 }
 0x9b8   : > { %7277 = vmatprep.subr.bf16.mxu0 %v14553_v46 }
 0x9bb   : > { %7279 = vmatpush1.bf16.msra.mxu0 %v7278_v11 }
 0x9bc   : > { %7280 = vmatprep.subr.bf16.mxu0 %v14553_v46 }
 0x9bf   : > { %7282 = vmatpush1.bf16.msra.mxu0 %v7281_v22 }
 0x9c0   : > { %7283 = vmatprep.subr.bf16.mxu0 %v14553_v46 }
 0x9c3   : > { %7285 = vmatpush1.bf16.msra.mxu0 %v7284_v37 }
 0x9c4   : > { %7313 = vmatprep.subr.bf16.mxu0 %v14553_v46 }
 0xa75   : > { %v6776_v59 = vpop.f32.mrb[74].mxu0 }
 0xa76   : > { %v5221_v34 = vadd.f32 %v6776_v59, %v6158_v16  ;;  %v5215_v3 = vpop.f32.mrb[75].mxu0 }
 0xa77   : > { %v5216_v39 = vadd.f32 %v6158_v16, %v5215_v3 }
 0xa78   : > { %vm5225_vm6 = vcmp.ge.f32.partialorder %v5221_v34, 0.0  ;;  %v5227_v17 = vmul.f32 0.01, %v5221_v34 }
 0xa79   : > { %vm5224_vm13 = vcmp.ge.f32.partialorder %v5216_v39, 0.0  ;;  %v5226_v0 = vmul.f32 0.01, %v5216_v39 }
 0xa7a   : > { %v5229_v8 = vsel %vm5225_vm6, %v5221_v34, %v5227_v17 }
 0xa7b   : > { %v5248_v25 = vrot.slane %v5229_v8, 1  ;;  %v5228_v61 = vsel %vm5224_vm13, %v5216_v39, %v5226_v0  ;;  %v5257_v6 = vrot.slane %v5229_v8, 2  ;;  %vm14810_vm13 = vmmov %vm14807_vm10 }
 0xa7c   : > { %v5247_v58 = vrot.slane %v5228_v61, 1  ;;  %v5256_v12 = vrot.slane %v5228_v61, 2 }
 0xa7d   : > { %5252 = vrot.lane.b32.xlu1 %v5248_v25, %s14258_s3 }
 0xa7e   : > { %v5249_v60 = vsel %vm14806_vm2, %v5247_v58, %v5248_v25  ;;  %v5258_v54 = vsel %vm14807_vm10, %v5256_v12, %v5257_v6  ;;  %vm14811_vm10 = vcmask 392192   ;;  %v5500_v12 = vld [vmem:[%s14813_s8 + $0x8] sm:$0xff] }
 0xa7f   : > { %5250 = vrot.lane.b32.xlu0 %v5249_v60, %s14258_s3  ;;  %v5501_v60 = vld [vmem:[%s14813_s8 + $0x10] sm:$0xff] }
 0xa81   : > { %5261 = vrot.lane.b32.xlu1 %v5257_v6, %s14260_s5  ;;  %v5499_v6 = vld [vmem:[%s14813_s8] sm:$0xff] }
 0xa83   : > { %5259 = vrot.lane.b32.xlu0 %v5258_v54, %s14260_s5  ;;  %v7287_v54 = vpack.c.bf16 %v5500_v12, %v5499_v6  ;;  %v5640_v6 = vld [vmem:[%s14819_s27 + $0x38] sm:$0xff]  ;;  %s14832_s5 = sld [smem:[#allocation92_spill]] }
 0xaef   : > { %v5253_v18 = vpop.permute.xlu1 %5252 }
 0xaf0   : > { %v5266_v57 = vsel %vm14803_vm9, %v5229_v8, %v5253_v18  ;;  %v5502_v18 = vld [vmem:[%s14813_s8 + $0x18] sm:$0xff] }
 0xaf1   : > { %v5251_v5 = vpop.permute.xlu0 %5250 }
 0xaf2   : > { %v5265_v44 = vsel %vm14808_vm11, %v5228_v61, %v5251_v5  ;;  %vm14812_vm11 = vmmov %vm14811_vm10  ;;  %v7290_v5 = vpack.c.bf16 %v5502_v18, %v5501_v60  ;;  %v5641_v60 = vld [vmem:[%s14819_s27 + $0x40] sm:$0xff] }
 0xaf3   : > { %v5262_v55 = vpop.permute.xlu1 %5261 }
 0xaf4   : > { %v5268_v56 = vsel %vm1484_vm12, %v5266_v57, %v5262_v55  ;;  %v5503_v55 = vld [vmem:[%s14813_s8 + $0x20] sm:$0xff]  ;;  %v5505_v57 = vld [vmem:[%s14813_s8 + $0x30] sm:$0xff] }
 0xaf5   : > { %v5260_v10 = vpop.permute.xlu0 %5259 }
 0xaf6   : > { %v5267_v21 = vsel %vm1484_vm12, %v5265_v44, %v5260_v10  ;;  %v5504_v44 = vld [vmem:[%s14813_s8 + $0x28] sm:$0xff] }
 0xaf7   : > { %6805 = vmatprep.mubr.msk.f32.mxu1 %vm14804_vm0, %v5267_v21  ;;  %v7293_v10 = vpack.c.bf16 %v5504_v44, %v5503_v55  ;;  %v5506_v21 = vld [vmem:[%s14813_s8 + $0x38] sm:$0xff] }
 0xaf8   : > { %6806 = vmatmul.mubr.msk.f32.vlgmr.msra.gmra.mrb[60].mxu1 %vm14809_vm15, %v5268_v56  ;;  %v7296_v56 = vpack.c.bf16 %v5506_v21, %v5505_v57  ;;  %vm14815_vm15 = vmmov %vm14810_vm13  ;;  %v5644_v55 = vld [vmem:[%s14819_s27 + $0x58] sm:$0xff]  ;;  %v5646_v57 = vld [vmem:[%s14819_s27 + $0x68] sm:$0xff] }
 0xaf9   : > { %7288 = vmatpush1.bf16.msra.mxu1 %v7287_v54  ;;  %v5642_v54 = vld [vmem:[%s14819_s27 + $0x48] sm:$0xff] }
 0xafa   : > { %7289 = vmatprep.subr.bf16.mxu1 %v14553_v46  ;;  %v7326_v18 = vpack.c.bf16 %v5642_v54, %v5641_v60  ;;  %v5785_v60 = vld [vmem:[%s14823_s24 + $0x38] sm:$0xff]  ;;  %v5814_v54 = vld [vmem:[%s14823_s24 + $0x120] sm:$0xff] }
 0xafd   : > { %7291 = vmatpush1.bf16.msra.mxu1 %v7290_v5  ;;  %v5643_v5 = vld [vmem:[%s14819_s27 + $0x50] sm:$0xff] }
 0xafe   : > { %7292 = vmatprep.subr.bf16.mxu1 %v14553_v46  ;;  %v7329_v44 = vpack.c.bf16 %v5644_v55, %v5643_v5  ;;  %v5802_v5 = vld [vmem:[%s14823_s24 + $0xc0] sm:$0xff]  ;;  %v5803_v55 = vld [vmem:[%s14823_s24 + $0xc8] sm:$0xff] }
 0xb01   : > { %7294 = vmatpush1.bf16.msra.mxu1 %v7293_v10  ;;  %v5645_v10 = vld [vmem:[%s14819_s27 + $0x60] sm:$0xff] }
 0xb02   : > { %7295 = vmatprep.subr.bf16.mxu1 %v14553_v46  ;;  %v7332_v21 = vpack.c.bf16 %v5646_v57, %v5645_v10  ;;  %v7356_v57 = vpack.c.bf16 %v5803_v55, %v5802_v5  ;;  %v5971_v5 = vld [vmem:[%s14826_s4 + $0x20] sm:$0xff]  ;;  %v5972_v55 = vld [vmem:[%s14826_s4 + $0x28] sm:$0xff] }
 0xb05   : > { %7297 = vmatpush1.bf16.msra.mxu1 %v7296_v56  ;;  %v5647_v56 = vld [vmem:[%s14819_s27 + $0x70] sm:$0xff] }
 0xb06   : > { %7298 = vmatprep.subr.bf16.mxu1 %v14553_v46  ;;  %v7335_v24 = vpack.c.bf16 %v5648_v53, %v5647_v56  ;;  %v5787_v56 = vld [vmem:[%s14823_s24 + $0x48] sm:$0xff]  ;;  %v5804_v53 = vld [vmem:[%s14823_s24 + $0xd0] sm:$0xff] }
 0xb09   : > { %7300 = vmatpush1.bf16.msra.mxu1 %v7299_v49  ;;  %v5649_v49 = vld [vmem:[%s14819_s27 + $0x80] sm:$0xff] }
 0xb0a   : > { %7301 = vmatprep.subr.bf16.mxu1 %v14553_v46  ;;  %v7338_v62 = vpack.c.bf16 %v5650_v41, %v5649_v49 }
 0xb0d   : > { %7303 = vmatpush1.bf16.msra.mxu1 %v7302_v29  ;;  %v6169_v29 = vld [vmem:[%s14820_s2] ss:$0 sm:$0xff] }
 0xb0e   : > { %7304 = vmatprep.subr.bf16.mxu1 %v14553_v46 }
 0xb11   : > { %7306 = vmatpush1.bf16.msra.mxu1 %v7305_v2 }
 0xb12   : > { %7307 = vmatprep.subr.bf16.mxu1 %v14553_v46 }
 0xb15   : > { %7309 = vmatpush1.bf16.msra.mxu1 %v7308_v45 }
 0xb16   : > { %7310 = vmatprep.subr.bf16.mxu1 %v14553_v46 }
 0xb19   : > { %7312 = vmatpush1.bf16.msra.mxu1 %v7311_v63 }
 0xbcb   : > { %v6807_v13 = vpop.f32.mrb[60].mxu1 }
 0xbcc   : > { %v5356_v15 = vadd.f32 %v6807_v13, %v6162_v23  ;;  %v5350_v32 = vpop.f32.mrb[61].mxu1 }
 0xbcd   : > { %v5351_v43 = vadd.f32 %v6162_v23, %v5350_v32 }
 0xbce   : > { %vm5360_vm12 = vcmp.ge.f32.partialorder %v5356_v15, 0.0  ;;  %v5362_v38 = vmul.f32 0.01, %v5356_v15 }
 0xbcf   : > { %vm5359_vm6 = vcmp.ge.f32.partialorder %v5351_v43, 0.0  ;;  %v5361_v33 = vmul.f32 0.01, %v5351_v43 }
 0xbd0   : > { %v5364_v19 = vsel %vm5360_vm12, %v5356_v15, %v5362_v38  ;;  %vm14816_vm12 = vmmov %vm14806_vm2 }
 0xbd1   : > { %v5387_v7 = vrot.slane %v5364_v19, 1  ;;  %v5396_v16 = vrot.slane %v5364_v19, 2  ;;  %v5363_v28 = vsel %vm5359_vm6, %v5351_v43, %v5361_v33  ;;  %vm14817_vm6 = vmmov %vm14811_vm10 }
 0xbd2   : > { %v5386_v20 = vrot.slane %v5363_v28, 1  ;;  %v5395_v59 = vrot.slane %v5363_v28, 2 }
 0xbd4   : > { %v5397_v27 = vsel %vm14810_vm13, %v5395_v59, %v5396_v16  ;;  %v5388_v34 = vsel %vm14806_vm2, %v5386_v20, %v5387_v7  ;;  %vm14818_vm13 = vmmov %vm14817_vm6 }
 0xbd5   : > { %5398 = vrot.lane.b32.xlu1 %v5397_v27, %s14271_s29  ;;  %5389 = vrot.lane.b32.xlu0 %v5388_v34, %s14256_s0  ;;  %v5633_v27 = vld [vmem:[%s14819_s27] sm:$0xff]  ;;  %v5634_v34 = vld [vmem:[%s14819_s27 + $0x8] sm:$0xff] }
 0xbd9   : > { %5400 = vrot.lane.b32.xlu1 %v5396_v16, %s14271_s29  ;;  %5391 = vrot.lane.b32.xlu0 %v5387_v7, %s14256_s0 }
 0xc47   : > { %v5399_v3 = vpop.permute.xlu1 %5398  ;;  %v5390_v39 = vpop.permute.xlu0 %5389 }
 0xc48   : > { %v5404_v17 = vsel %vm14811_vm10, %v5363_v28, %v5390_v39  ;;  %6167 = vmatprep.mubr.msk.f32.mxu0 %vm1538_vm8, %v5399_v3  ;;  %v7314_v39 = vpack.c.bf16 %v5634_v34, %v5633_v27  ;;  %v5782_v27 = vld [vmem:[%s14823_s24 + $0x20] sm:$0xff]  ;;  %v5783_v34 = vld [vmem:[%s14823_s24 + $0x28] sm:$0xff] }
 0xc49   : > { %v5406_v0 = vsel %vm1502_vm14, %v5404_v17, %v5399_v3  ;;  %v5635_v3 = vld [vmem:[%s14819_s27 + $0x10] sm:$0xff]  ;;  %v5636_v17 = vld [vmem:[%s14819_s27 + $0x18] sm:$0xff] }
 0xc4a   : > { %5483 = vmatmul.mubr.f32.vlgmr.msra.gmra.mrb[76].mxu0 %v5406_v0  ;;  %v7317_v0 = vpack.c.bf16 %v5636_v17, %v5635_v3  ;;  %v5811_v3 = vld [vmem:[%s14823_s24 + $0x108] sm:$0xff]  ;;  %v5801_v17 = vld [vmem:[%s14823_s24 + $0xb8] sm:$0xff] }
 0xc4b   : > { %v5401_v8 = vpop.permute.xlu1 %5400  ;;  %v5392_v25 = vpop.permute.xlu0 %5391  ;;  %7315 = vmatpush1.bf16.msra.mxu0 %v7314_v39  ;;  %v5800_v39 = vld [vmem:[%s14823_s24 + $0xb0] sm:$0xff] }
 0xc4c   : > { %v5405_v61 = vsel %vm14812_vm11, %v5364_v19, %v5392_v25  ;;  %6168 = vmatprep.mubr.msk.f32.mxu0 %vm1538_vm8, %v5401_v8  ;;  %7316 = vmatprep.subr.bf16.mxu0 %v14553_v46  ;;  %v5638_v25 = vld [vmem:[%s14819_s27 + $0x28] sm:$0xff]  ;;  %vm14821_vm11 = vmmov %vm14815_vm15 }
 0xc4d   : > { %v5407_v58 = vsel %vm1502_vm14, %v5405_v61, %v5401_v8  ;;  %v5637_v8 = vld [vmem:[%s14819_s27 + $0x20] sm:$0xff] }
 0xc4e   : > { %5488 = vmatmul.mubr.f32.gmra.mrb[78].mxu0 %v5407_v58  ;;  %v7320_v61 = vpack.c.bf16 %v5638_v25, %v5637_v8  ;;  %v5639_v58 = vld [vmem:[%s14819_s27 + $0x30] sm:$0xff]  ;;  %v5813_v25 = vld [vmem:[%s14823_s24 + $0x118] sm:$0xff] }
 0xc4f   : > { %7318 = vmatpush1.bf16.msra.mxu0 %v7317_v0  ;;  %v7323_v12 = vpack.c.bf16 %v5640_v6, %v5639_v58  ;;  %v5812_v8 = vld [vmem:[%s14823_s24 + $0x110] sm:$0xff] }
 0xc50   : > { %7319 = vmatprep.subr.bf16.mxu0 %v14553_v46  ;;  %v5784_v58 = vld [vmem:[%s14823_s24 + $0x30] sm:$0xff]  ;;  %v7376_v6 = vpack.c.bf16 %v5813_v25, %v5812_v8 }
 0xc53   : > { %7321 = vmatpush1.bf16.msra.mxu0 %v7320_v61  ;;  %v7350_v61 = vpack.c.bf16 %v5783_v34, %v5782_v27  ;;  %v5967_v34 = vld [vmem:[%s14826_s4] sm:$0xff] }
 0xc54   : > { %7322 = vmatprep.subr.bf16.mxu0 %v14553_v46 }
 0xc57   : > { %7324 = vmatpush1.bf16.msra.mxu0 %v7323_v12  ;;  %v7352_v12 = vpack.c.bf16 %v5801_v17, %v5800_v39 }
 0xc58   : > { %7325 = vmatprep.subr.bf16.mxu0 %v14553_v46 }
 0xc5b   : > { %7327 = vmatpush1.bf16.msra.mxu0 %v7326_v18  ;;  %v5815_v18 = vld [vmem:[%s14823_s24 + $0x128] sm:$0xff] }
 0xc5c   : > { %7328 = vmatprep.subr.bf16.mxu0 %v14553_v46  ;;  %v7379_v10 = vpack.c.bf16 %v5815_v18, %v5814_v54 }
 0xc5f   : > { %7330 = vmatpush1.bf16.msra.mxu0 %v7329_v44  ;;  %v7354_v44 = vpack.c.bf16 %v5785_v60, %v5784_v58  ;;  %v5970_v60 = vld [vmem:[%s14826_s4 + $0x18] sm:$0xff] }
 0xc60   : > { %7331 = vmatprep.subr.bf16.mxu0 %v14553_v46 }
 0xc63   : > { %7333 = vmatpush1.bf16.msra.mxu0 %v7332_v21  ;;  %v5786_v21 = vld [vmem:[%s14823_s24 + $0x40] sm:$0xff] }
 0xc64   : > { %7334 = vmatprep.subr.bf16.mxu0 %v14553_v46  ;;  %v7358_v49 = vpack.c.bf16 %v5787_v56, %v5786_v21  ;;  %v5975_v21 = vld [vmem:[%s14826_s4 + $0x40] sm:$0xff]  ;;  %v5976_v56 = vld [vmem:[%s14826_s4 + $0x48] sm:$0xff] }
 0xc67   : > { %7336 = vmatpush1.bf16.msra.mxu0 %v7335_v24  ;;  %v5805_v24 = vld [vmem:[%s14823_s24 + $0xd8] sm:$0xff] }
 0xc68   : > { %7337 = vmatprep.subr.bf16.mxu0 %v14553_v46  ;;  %v7360_v41 = vpack.c.bf16 %v5805_v24, %v5804_v53  ;;  %v7400_v53 = vpack.c.bf16 %v5976_v56, %v5975_v21  ;;  %v5977_v24 = vld [vmem:[%s14826_s4 + $0x50] sm:$0xff] }
 0xc6b   : > { %7339 = vmatpush1.bf16.msra.mxu0 %v7338_v62  ;;  %v5788_v62 = vld [vmem:[%s14823_s24 + $0x50] sm:$0xff] }
 0xc6c   : > { %7372 = vmatprep.subr.bf16.mxu0 %v14553_v46 }
 0xd1d   : > { %v5484_v9 = vpop.f32.mrb[76].mxu0 }
 0xd1e   : > { %v5485_v51 = vadd.f32 %v6166_v31, %v5484_v9  ;;  %v5486_v42 = vpop.f32.mrb[77].mxu0 }
 0xd20   : > { %v5495_v35 = vmul.f32 0.01, %v5485_v51  ;;  %vm5493_vm9 = vcmp.ge.f32.partialorder %v5485_v51, 0.0 }
 0xd21   : > { %v5489_v11 = vpop.f32.mrb[78].mxu0 }
 0xd22   : > { %v5490_v47 = vadd.f32 %v6166_v31, %v5489_v11  ;;  %v5491_v30 = vpop.f32.mrb[79].mxu0  ;;  %v5497_v22 = vsel %vm5493_vm9, %v5485_v51, %v5495_v35  ;;  %vm14822_vm9 = vmmov %vm14817_vm6 }
 0xd23   : > { %v5520_v37 = vrot.slane %v5497_v22, 1  ;;  %v5529_v23 = vrot.slane %v5497_v22, 2 }
 0xd24   : > { %vm5494_vm0 = vcmp.ge.f32.partialorder %v5490_v47, 0.0  ;;  %v5496_v52 = vmul.f32 0.01, %v5490_v47 }
 0xd26   : > { %v5498_v1 = vsel %vm5494_vm0, %v5490_v47, %v5496_v52  ;;  %v5794_v52 = vld [vmem:[%s14823_s24 + $0x80] sm:$0xff] }
 0xd27   : > { %v5521_v13 = vrot.slane %v5498_v1, 1  ;;  %v5530_v15 = vrot.slane %v5498_v1, 2 }
 0xd29   : > { %v5531_v32 = vsel %vm14815_vm15, %v5529_v23, %v5530_v15  ;;  %v5522_v43 = vsel %vm14816_vm12, %v5520_v37, %v5521_v13  ;;  %v5778_v37 = vld [vmem:[%s14823_s24] sm:$0xff]  ;;  %vm14827_vm15 = vmmov %vm14817_vm6 }
 0xd2a   : > { %5532 = vrot.lane.b32.xlu1 %v5531_v32, %s14271_s29  ;;  %5523 = vrot.lane.b32.xlu0 %v5522_v43, %s14256_s0  ;;  %v5797_v32 = vld [vmem:[%s14823_s24 + $0x98] sm:$0xff] }
 0xd2e   : > { %5534 = vrot.lane.b32.xlu1 %v5530_v15, %s14271_s29  ;;  %5525 = vrot.lane.b32.xlu0 %v5521_v13, %s14256_s0  ;;  %v5779_v13 = vld [vmem:[%s14823_s24 + $0x8] sm:$0xff]  ;;  %v5796_v15 = vld [vmem:[%s14823_s24 + $0x90] sm:$0xff] }
 0xd2f   : > { %v7342_v43 = vpack.c.bf16 %v5779_v13, %v5778_v37  ;;  %v5793_v37 = vld [vmem:[%s14823_s24 + $0x78] sm:$0xff] }
 0xd9c   : > { %v5533_v38 = vpop.permute.xlu1 %5532  ;;  %v5524_v33 = vpop.permute.xlu0 %5523 }
 0xd9d   : > { %v5538_v19 = vsel %vm14817_vm6, %v5497_v22, %v5524_v33  ;;  %6170 = vmatprep.mubr.msk.f32.mxu1 %vm1538_vm8, %v5533_v38  ;;  %v5780_v33 = vld [vmem:[%s14823_s24 + $0x10] sm:$0xff] }
 0xd9e   : > { %v5540_v7 = vsel %vm1502_vm14, %v5538_v19, %v5533_v38  ;;  %v7344_v38 = vpack.c.bf16 %v5797_v32, %v5796_v15  ;;  %v5781_v19 = vld [vmem:[%s14823_s24 + $0x18] sm:$0xff] }
 0xd9f   : > { %5617 = vmatmul.mubr.f32.vlgmr.msra.gmra.mrb[62].mxu1 %v5540_v7  ;;  %v5798_v7 = vld [vmem:[%s14823_s24 + $0xa0] sm:$0xff] }
 0xda0   : > { %v5535_v16 = vpop.permute.xlu1 %5534  ;;  %v5526_v28 = vpop.permute.xlu0 %5525 }
 0xda1   : > { %v5539_v20 = vsel %vm14818_vm13, %v5498_v1, %v5526_v28  ;;  %6171 = vmatprep.mubr.msk.f32.mxu1 %vm1538_vm8, %v5535_v16  ;;  %v5795_v1 = vld [vmem:[%s14823_s24 + $0x88] sm:$0xff]  ;;  %v7346_v28 = vpack.c.bf16 %v5781_v19, %v5780_v33 }
 0xda2   : > { %v5541_v59 = vsel %vm1502_vm14, %v5539_v20, %v5535_v16  ;;  %v7340_v23 = vpack.c.bf16 %v5795_v1, %v5794_v52  ;;  %v5799_v16 = vld [vmem:[%s14823_s24 + $0xa8] sm:$0xff]  ;;  %v5810_v20 = vld [vmem:[%s14823_s24 + $0x100] sm:$0xff]  ;;  %v5792_v1 = vld [vmem:[%s14823_s24 + $0x70] sm:$0xff] }
 0xda3   : > { %5622 = vmatmul.mubr.f32.gmra.mrb[64].mxu1 %v5541_v59  ;;  %v7348_v59 = vpack.c.bf16 %v5799_v16, %v5798_v7  ;;  %v7373_v0 = vpack.c.bf16 %v5811_v3, %v5810_v20  ;;  %v5819_v52 = vld [vmem:[%s14823_s24 + $0x148] sm:$0xff]  ;;  %v7370_v13 = vpack.c.bf16 %v5793_v37, %v5792_v1 }
 0xda4   : > { %7341 = vmatprep.subr.bf16.mxu1 %v7340_v23  ;;  %v5968_v3 = vld [vmem:[%s14826_s4 + $0x8] sm:$0xff] }
 0xda5   : > { %7343 = vmatpush3.bf16.msra.mxu1 %v7342_v43 }
 0xda6   : > { %7345 = vmatprep.subr.bf16.mxu1 %v7344_v38 }
 0xda9   : > { %7347 = vmatpush3.bf16.msra.mxu1 %v7346_v28 }
 0xdaa   : > { %7349 = vmatprep.subr.bf16.mxu1 %v7348_v59 }
 0xdad   : > { %7351 = vmatpush3.bf16.msra.mxu1 %v7350_v61  ;;  %v7388_v61 = vpack.c.bf16 %v5968_v3, %v5967_v34 }
 0xdae   : > { %7353 = vmatprep.subr.bf16.mxu1 %v7352_v12  ;;  %v5969_v12 = vld [vmem:[%s14826_s4 + $0x10] sm:$0xff] }
 0xdaf   : > { %v7391_v18 = vpack.c.bf16 %v5970_v60, %v5969_v12 }
 0xdb1   : > { %7355 = vmatpush3.bf16.msra.mxu1 %v7354_v44  ;;  %v7394_v44 = vpack.c.bf16 %v5972_v55, %v5971_v5 }
 0xdb2   : > { %7357 = vmatprep.subr.bf16.mxu1 %v7356_v57 }
 0xdb5   : > { %7359 = vmatpush3.bf16.msra.mxu1 %v7358_v49  ;;  %v5978_v49 = vld [vmem:[%s14826_s4 + $0x58] sm:$0xff] }
 0xdb6   : > { %7361 = vmatprep.subr.bf16.mxu1 %v7360_v41  ;;  %v7403_v41 = vpack.c.bf16 %v5978_v49, %v5977_v24 }
 0xe72   : > { %v5618_v40 = vpop.f32.mrb[62].mxu1 }
 0xe73   : > { %v5619_v48 = vadd.f32 %v6169_v29, %v5618_v40  ;;  %v5620_v2 = vpop.f32.mrb[63].mxu1 }
 0xe74   : > { %v5807_v2 = vld [vmem:[%s14823_s24 + $0xe8] sm:$0xff] }
 0xe75   : > { %vm5627_vm2 = vcmp.ge.f32.partialorder %v5619_v48, 0.0  ;;  %v5629_v14 = vmul.f32 0.01, %v5619_v48 }
 0xe76   : > { %v5623_v36 = vpop.f32.mrb[64].mxu1 }
 0xe77   : > { %v5631_v45 = vsel %vm5627_vm2, %v5619_v48, %v5629_v14  ;;  %v5624_v4 = vadd.f32 %v6169_v29, %v5623_v36  ;;  %v5625_v50 = vpop.f32.mrb[65].mxu1  ;;  %v5789_v29 = vld [vmem:[%s14823_s24 + $0x58] sm:$0xff]  ;;  %v5806_v48 = vld [vmem:[%s14823_s24 + $0xe0] sm:$0xff]  ;;  %v5816_v14 = vld [vmem:[%s14823_s24 + $0x130] sm:$0xff] }
 0xe78   : > { %v5653_v63 = vrot.slane %v5631_v45, 1  ;;  %v5658_v51 = vrot.slane %v5631_v45, 2  ;;  %v7362_v40 = vpack.c.bf16 %v5789_v29, %v5788_v62  ;;  %v7364_v36 = vpack.c.bf16 %v5807_v2, %v5806_v48  ;;  %v5791_v50 = vld [vmem:[%s14823_s24 + $0x68] sm:$0xff]  ;;  %v5979_v62 = vld [vmem:[%s14826_s4 + $0x60] sm:$0xff]  ;;  %v5982_v2 = vld [vmem:[%s14826_s4 + $0x78] sm:$0xff] }
 0xe79   : > { %vm5628_vm10 = vcmp.ge.f32.partialorder %v5624_v4, 0.0  ;;  %v5630_v31 = vmul.f32 0.01, %v5624_v4  ;;  %v5980_v29 = vld [vmem:[%s14826_s4 + $0x68] sm:$0xff] }
 0xe7a   : > { %5654 = vrot.lane.b32.xlu0 %v5653_v63, %s14256_s0  ;;  %7363 = vmatpush3.bf16.msra.mxu1 %v7362_v40  ;;  %v5981_v40 = vld [vmem:[%s14826_s4 + $0x70] sm:$0xff]  ;;  %v7406_v48 = vpack.c.bf16 %v5980_v29, %v5979_v62 }
 0xe7b   : > { %v5632_v9 = vsel %vm5628_vm10, %v5624_v4, %v5630_v31  ;;  %v5790_v4 = vld [vmem:[%s14823_s24 + $0x60] sm:$0xff]  ;;  %7365 = vmatprep.subr.bf16.mxu1 %v7364_v36 }
 0xe7c   : > { %v5659_v42 = vrot.slane %v5632_v9, 2  ;;  %v7366_v31 = vpack.c.bf16 %v5791_v50, %v5790_v4  ;;  %v6172_v9 = vld [vmem:[%s14824_s6] ss:$0 sm:$0xff] }
 0xe7e   : > { %v5660_v35 = vsel %vm14821_vm11, %v5658_v51, %v5659_v42  ;;  %7367 = vmatpush3.bf16.msra.mxu1 %v7366_v31  ;;  %v5808_v42 = vld [vmem:[%s14823_s24 + $0xf0] sm:$0xff] }
 0xe7f   : > { %5661 = vrot.lane.b32.xlu1 %v5660_v35, %s14271_s29  ;;  %v5809_v35 = vld [vmem:[%s14823_s24 + $0xf8] sm:$0xff] }
 0xeec   : > { %v5655_v11 = vpop.permute.xlu0 %5654 }
 0xeed   : > { %v5664_v47 = vsel %vm14822_vm9, %v5631_v45, %v5655_v11  ;;  %v5817_v45 = vld [vmem:[%s14823_s24 + $0x138] sm:$0xff]  ;;  %v5818_v11 = vld [vmem:[%s14823_s24 + $0x140] sm:$0xff] }
 0xeee   : > { %v7382_v63 = vpack.c.bf16 %v5817_v45, %v5816_v14  ;;  %v7385_v23 = vpack.c.bf16 %v5819_v52, %v5818_v11  ;;  %v7409_v14 = vpack.c.bf16 %v5982_v2, %v5981_v40 }
 0xef1   : > { %v5662_v30 = vpop.permute.xlu1 %5661 }
 0xef2   : > { %v5665_v22 = vsel %vm1502_vm14, %v5664_v47, %v5662_v30  ;;  %6173 = vmatprep.mubr.msk.f32.mxu0 %vm1538_vm8, %v5662_v30 }
 0xef3   : > { %5739 = vmatmul.mubr.f32.vlgmr.msra.gmra.mrb[80].mxu0 %v5665_v22  ;;  %v7368_v22 = vpack.c.bf16 %v5809_v35, %v5808_v42 }
 0xef4   : > { %6828 = vmatprep.mubr.msk.f32.mxu0 %vm8626_vm3, %v8618_v26  ;;  %7374 = vmatpush3.bf16.msra.mxu0 %v7373_v0 }
 0xef5   : > { %7375 = vmatprep.subr.bf16.mxu0 %v14553_v46  ;;  %7369 = vmatprep.subr.bf16.mxu1 %v7368_v22 }
 0xef6   : > { %7371 = vmatpush3.bf16.msra.mxu1 %v7370_v13 }
 0xef7   : > { %7387 = vmatprep.subr.bf16.mxu1 %v14553_v46 }
 0xef8   : > { %7377 = vmatpush3.bf16.msra.mxu0 %v7376_v6 }
 0xef9   : > { %7378 = vmatprep.subr.bf16.mxu0 %v14553_v46 }
 0xefc   : > { %7380 = vmatpush3.bf16.msra.mxu0 %v7379_v10  ;;  %v5973_v10 = vld [vmem:[%s14826_s4 + $0x30] sm:$0xff] }
 0xefd   : > { %7381 = vmatprep.subr.bf16.mxu0 %v14553_v46 }
 0xf00   : > { %7383 = vmatpush3.bf16.msra.mxu0 %v7382_v63 }
 0xf01   : > { %7384 = vmatprep.subr.bf16.mxu0 %v14553_v46 }
 0xf04   : > { %7386 = vmatpush3.bf16.msra.mxu0 %v7385_v23 }
 0xfc6   : > { %v5740_v51 = vpop.f32.mrb[80].mxu0 }
 0xfc7   : > { %v5741_v47 = vadd.f32 %v6172_v9, %v5740_v51  ;;  %v5742_v30 = vpop.f32.mrb[81].mxu0 }
 0xfc9   : > { %vm5744_vm0 = vcmp.ge.f32.partialorder %v5741_v47, 0.0  ;;  %v5745_v15 = vmul.f32 0.01, %v5741_v47 }
 0xfcb   : > { %v5746_v32 = vsel %vm5744_vm0, %v5741_v47, %v5745_v15 }
 0xfcc   : > { %v5756_v43 = vrot.slane %v5746_v32, 3  ;;  %v5752_v38 = vrot.slane %v5746_v32, 2  ;;  %v5760_v33 = vrot.slane %v5746_v32, 4  ;;  %v5748_v19 = vrot.slane %v5746_v32, 1 }
 0xfcd   : > { %v5764_v7 = vrot.slane %v5746_v32, 5  ;;  %v5768_v16 = vrot.slane %v5746_v32, 6 }
 0xfce   : > { %5757 = vrot.lane.b32.xlu1 %v5756_v43, %s14275_s22  ;;  %5753 = vrot.lane.b32.xlu0 %v5752_v38, %s14271_s29  ;;  %s14829_s22 = sld [smem:[#allocation9_spill]] }
 0xfd2   : > { %5761 = vrot.lane.b32.xlu0 %v5760_v33, %s8616_s17  ;;  %5749 = vrot.lane.b32.xlu1 %v5748_v19, %s14256_s0  ;;  %s14830_s0 = sld [smem:[#allocation90_spill]] }
 0xfd4   : > { %s6175_s28 = sshll.u32 %s14829_s22, 4  ;;  %s8628_s22 = smov [#allocation2]  }
 0xfd6   : > { %5765 = vrot.lane.b32.xlu0 %v5764_v7, %s8621_s7  ;;  %5769 = vrot.lane.b32.xlu1 %v5768_v16, %s14825_s1  ;;  %s755_s7 = sand.u32 1, %s14828_s16   ;;  %s14833_s1 = sld [smem:[#allocation93_spill]] }
 0xfd7   : > { %s756_s2 = scalar_lea.vmem [#allocation2], %s755_s7  ;;  %s6057_s16 = scalar_lea.sflag [#allocation3], %s755_s7 }
 0xfd8   : > { %v5820_v50 = vld [vmem:[%s14830_s0] sm:$0x1]  ;;  %s6069_s19 = sshll.u32 %s756_s2, 4  ;;  %s8541_s0 = sshll.u32 %s8628_s22, 4  ;;  %s13938_s19 = int_to_ptr.vmem [resolvable:$true] %s6069_s19  ;;  %s8542_s0 = int_to_ptr.vmem [resolvable:$false] %s8541_s0 }
 0xfd9   : > { %s8537_s30 = scalar_lea.vmem %s13938_s19, 16  ;;  %s8543_s3 = scalar_lea.vmem %s8542_s0, 32 }
 0xfda   : > { %p8538_p11 = scmp.ne.s32.totalorder %s13938_s19, %s8537_s30  ;;  %p8544_p0 = scmp.lt.s32.totalorder %s13938_s19, %s8542_s0 }
 0xfdb   : > { %p8545_p1 = scmp.lt.s32.totalorder %s8543_s3, %s8537_s30 }
 0xfdc   : > { %s13936_s29 = scalar_lea.hbm %s14833_s1, %s6175_s28  ;;  %p8539_p12 = pnand %p8538_p11, %p8797_p5 }
 0xfdd   : > { %p8546_p2 = por %p8545_p1, %p8544_p0 }
 0xfde   : > { %p8540_p13 = pneg %p8539_p12 }
 0xfe0   : > { %p8547_p3 = pnand %p8546_p2, %p8540_p13 }
0x1040   : > { %v5758_v28 = vpop.permute.xlu1 %5757  ;;  %v5754_v20 = vpop.permute.xlu0 %5753 }
0x1041   : > { %v5774_v39 = vsel %vm1538_vm8, %v5754_v20, %v5758_v28 }
0x1044   : > { %v5762_v59 = vpop.permute.xlu0 %5761  ;;  %v5750_v27 = vpop.permute.xlu1 %5749 }
0x1045   : > { %v5772_v17 = vsel %vm14827_vm15, %v5746_v32, %v5750_v27  ;;  %v5775_v0 = vsel %vm2635_vm5, %v5774_v39, %v5762_v59 }
0x1046   : > { %v5773_v54 = vsel %vm1502_vm14, %v5772_v17, %v5754_v20  ;;  %vm6054_vm14 = vcmask 8192  }
0x1048   : > { %v5766_v8 = vpop.permute.xlu0 %5765  ;;  %v5770_v25 = vpop.permute.xlu1 %5769 }
0x1049   : > { %v5777_v58 = vsel %vm3795_vm4, %v5766_v8, %v5770_v25  ;;  %v5776_v6 = vsel %vm3783_vm7, %v5775_v0, %v5766_v8 }
0x104a   : > { %5888 = vmatprep.mubr.f32.mxu1 %v5776_v6  ;;  %6829 = vmatmul.mubr.msk.f32.vlgmr.msra.gmra.mrb[82].mxu0 %vm3807_vm1, %v5777_v58 }
0x104b   : > { %5889 = vmatmul.mubr.f32.vlgmr.msra.gmra.mrb[66].mxu1 %v5773_v54 }
0x104c   : > { %7389 = vmatpush3.bf16.msra.mxu1 %v7388_v61  ;;  %6863 = vmatprep.mubr.msk.f32.mxu1 %vm8626_vm3, %v8618_v26  ;;  %v5974_v26 = vld [vmem:[%s14826_s4 + $0x38] sm:$0xff] }
0x104d   : > { %7390 = vmatprep.subr.bf16.mxu1 %v14553_v46  ;;  %v7397_v57 = vpack.c.bf16 %v5974_v26, %v5973_v10 }
0x1050   : > { %7392 = vmatpush3.bf16.msra.mxu1 %v7391_v18 }
0x1051   : > { %7393 = vmatprep.subr.bf16.mxu1 %v14553_v46 }
0x1054   : > { %7395 = vmatpush3.bf16.msra.mxu1 %v7394_v44 }
0x1055   : > { %7396 = vmatprep.subr.bf16.mxu1 %v14553_v46 }
0x1058   : > { %7398 = vmatpush3.bf16.msra.mxu1 %v7397_v57 }
0x1059   : > { %7399 = vmatprep.subr.bf16.mxu1 %v14553_v46 }
0x105c   : > { %7401 = vmatpush3.bf16.msra.mxu1 %v7400_v53 }
0x105d   : > { %7402 = vmatprep.subr.bf16.mxu1 %v14553_v46 }
0x1060   : > { %7404 = vmatpush3.bf16.msra.mxu1 %v7403_v41 }
0x1061   : > { %7405 = vmatprep.subr.bf16.mxu1 %v14553_v46 }
0x1064   : > { %7407 = vmatpush3.bf16.msra.mxu1 %v7406_v48 }
0x1065   : > { %7408 = vmatprep.subr.bf16.mxu1 %v14553_v46  ;;  %v5983_v46 = vld [vmem:[%s14832_s5] sm:$0x1] }
0x1068   : > { %7410 = vmatpush3.bf16.msra.mxu1 %v7409_v14 }
0x111d   : > { %v5960_v36 = vpop.f32.mrb[82].mxu0 }
0x111e   : > { %v6639_v45 = vpop.f32.mrb[66].mxu1  ;;  %v6830_v4 = vpop.f32.mrb[83].mxu0 }
0x111f   : > { %v6640_v63 = vpop.f32.mrb[67].mxu1 }
0x1120   : > { %v6641_v31 = vadd.f32 %v6640_v63, %v6639_v45 }
0x1122   : > { %v5891_v9 = vadd.f32 %v6641_v31, %v5820_v50 }
0x1124   : > { %v5961_v51 = vadd.f32 %v5960_v36, %v5891_v9 }
0x1126   : > { %vm5964_vm5 = vcmp.ge.f32.partialorder %v5961_v51, 0.0  ;;  %v5965_v42 = vmul.f32 0.01, %v5961_v51 }
0x1128   : > { %v5966_v35 = vsel %vm5964_vm5, %v5961_v51, %v5965_v42 }
0x1129   : > { %6864 = vmatmul.mubr.f32.vlgmr.msra.gmra.mrb[68].mxu1 %v5966_v35 }
0x11fc   : > { %v6050_v11 = vpop.f32.mrb[68].mxu1 }
0x11fd   : > { %v6051_v47 = vadd.f32 %v6050_v11, %v5983_v46  ;;  %v6865_v30 = vpop.f32.mrb[69].mxu1 }
0x11ff   : > { %6055 = vst.msk [vmem:[%s756_s2] sm:$0x1] %vm6054_vm14, %v6051_v47 }
0x1200   : > { %8550 = shalt.err (!%p8547_p3)
}
0x1201   : > { %s8551_s7 = scalar_lea.hbm %s13936_s29, 16  ;;  %s8555_s28 = scalar_lea.hbm %s14833_s1, 32 }
0x1202   : > { %p8552_p4 = scmp.ne.s32.totalorder %s13936_s29, %s8551_s7  ;;  %p8556_p9 = scmp.lt.u32.totalorder %s13936_s29, %s14833_s1 }
0x1203   : > { %p8557_p10 = scmp.lt.u32.totalorder %s8555_s28, %s8551_s7  ;;  %p8559_p12 = scmp.lt.u32.totalorder %s8551_s7, %s13936_s29 }
0x1204   : > { %p8553_p7 = pnand %p8552_p4, %p8797_p5 }
0x1205   : > { %p8558_p11 = por %p8557_p10, %p8556_p9 }
0x1206   : > { %p8554_p8 = pneg %p8553_p7 }
0x1207   : > { %p8560_p13 = por %p8559_p12, %p8558_p11 }
0x1209   : > { %p8561_p0 = pnand %p8560_p13, %p8554_p8 }
0x120b   : > { %8564 = shalt.err (!%p8561_p0)
}
0x120c   : > { %7412 = dma.vmem_to_hbm [thread:$0]  (%p8797_p5), %s13938_s19, 16, %s13936_s29, %s6057_s16  }
0x120d PF: > { %s14834_s6 = sld [smem:[#allocation8_spill]]  ;;  %s14835_s30 = sld [smem:[#allocation5_spill]] }
0x1213   : > { %p7418_p1 = scmp.ge.s32.totalorder %s14834_s6, 2  ;;  %s6081_s0 = sand.u32 1, %s14835_s30  }
0x1214   : > { %s6082_s3 = scalar_lea.sflag [#allocation3], %s6081_s0 }
0x1215   : > { %p7415_p2 = pnand %p7418_p1, %p8801_p6 }
0x1217   : > { %8582 = dma.done.wait (!%p7415_p2), %s6082_s3, 16  }
0x1218   : > { %8584 = vsyncadd (!%p7415_p2), %s6082_s3, 4294967280  ;;  %s14837_s30 = sld [smem:[#allocation10_spill]]  ;;  %s14838_s29 = sld [smem:[#allocation6_spill]] }
0x1219   : > { %s14839_s2 = sld [smem:[#allocation7_spill]]  ;;  %s14840_s6 = sld [smem:[#allocation11_spill]] }
0x121e   : > { %p35_p3 = scmp.ge.s32.totalorder %s14837_s30, 4  }
0x1220   :  { %37 = sbr.rel (!%p35_p3) target bundleno = 24 (0x18), region = 155 }
0x1227   :  { %6086 = vsyncpa [#allocation3], 1 }
0x1228   :  { %6088 = vsyncpa [#allocation3 + $0x1], 1 }

</bundles_post_ra>
